<compile_context>
chip_gen: v5e
topology: v5e:2x2
jax: 0.10.0
libtpu: 0.0.40
codegen_flags: <defaults>
</compile_context>

<pallas_src>
import jax
import jax.numpy as jnp
from jax.experimental import pallas as pl
from jax.experimental.pallas import tpu as pltpu

NEG_SLOPE = 0.01  # torch.nn.LeakyReLU default


def _leaky(y):
    return jnp.where(y >= 0, y, NEG_SLOPE * y)


# ----------------------------------------------------------------------------
# Fused kernel: (conv3x3+lrelu) -> (conv3x3+lrelu) -> fused concat + 1x1 conv
# One program = one image (grid over batch, "parallel").
# ----------------------------------------------------------------------------
def _fused_kernel(x_ref, w1_ref, b1_ref, w2_ref, b2_ref,
                  wcm_ref, wc1_ref, wc2_ref, bc_ref,
                  o_ref,
                  pad1_ref, pad2_ref, acc1_ref, acc2_ref):
    H = x_ref.shape[1]
    W = x_ref.shape[2]
    Cin = x_ref.shape[3]
    C1 = w1_ref.shape[3]

    x = x_ref[0].astype(jnp.float32)                       # (H, W, Cin)

    # ---- component 1: 3x3 'same' conv + LeakyReLU ---------------------------
    # In-kernel zero padding: zeroed VMEM scratch, interior write (no HBM pad).
    pad1_ref[...] = jnp.zeros_like(pad1_ref)
    pad1_ref[1:H + 1, 1:W + 1, :] = x

    acc1_ref[...] = jnp.zeros_like(acc1_ref)               # (H*W, C1) f32 scratch
    for dy in range(3):
        for dx in range(3):
            patch = pad1_ref[dy:dy + H, dx:dx + W, :].reshape(H * W, Cin)
            acc1_ref[...] += jnp.dot(patch, w1_ref[dy, dx],
                                     preferred_element_type=jnp.float32)
    t1 = _leaky(acc1_ref[...] + b1_ref[...])                # (H*W, C1)

    # ---- component 2: 3x3 'same' conv + LeakyReLU ---------------------------
    # t1 is written straight into the interior of the next padded scratch.
    pad2_ref[...] = jnp.zeros_like(pad2_ref)
    pad2_ref[1:H + 1, 1:W + 1, :] = t1.reshape(H, W, C1)

    acc2_ref[...] = jnp.zeros_like(acc2_ref)                # (H*W, C2) f32 scratch
    for dy in range(3):
        for dx in range(3):
            patch = pad2_ref[dy:dy + H, dx:dx + W, :].reshape(H * W, C1)
            acc2_ref[...] += jnp.dot(patch, w2_ref[dy, dx],
                                     preferred_element_type=jnp.float32)
    t2 = _leaky(acc2_ref[...] + b2_ref[...])                # (H*W, C2)

    # ---- fused concat([m, t1, t2], ch) + 1x1 combiner -----------------------
    # Combiner weight was split along its input-channel (concat) axis, so the
    # concatenated tensor is never built: out = m@Wm + t1@W1 + t2@W2 + b.
    out = (jnp.dot(x.reshape(H * W, Cin), wcm_ref[...],
                   preferred_element_type=jnp.float32)
           + jnp.dot(t1, wc1_ref[...], preferred_element_type=jnp.float32)
           + jnp.dot(t2, wc2_ref[...], preferred_element_type=jnp.float32)
           + bc_ref[...])
    o_ref[...] = out.reshape(1, H, W, -1).astype(o_ref.dtype)


# ----------------------------------------------------------------------------
# Wrapper: NCHW (PyTorch convention) in/out, NHWC inside.
# ----------------------------------------------------------------------------
def one_shot_forward(params, x_nchw):
    x = jnp.transpose(x_nchw, (0, 2, 3, 1))                 # NHWC
    N, H, W, Cin = x.shape

    w1, b1 = params["w1"], params["b1"]                     # (3,3,Cin,C1), (C1,)
    w2, b2 = params["w2"], params["b2"]                     # (3,3,C1,C2),  (C2,)
    wc, bc = params["wc"], params["bc"]                     # (Ctot,Cdest), (Cdest,)
    C1 = w1.shape[3]
    C2 = w2.shape[3]
    Cdest = wc.shape[1]

    # Split the 1x1 combiner weight along the concat axis (m | t1 | t2).
    wcm = wc[:Cin]
    wc1 = wc[Cin:Cin + C1]
    wc2 = wc[Cin + C1:]

    b1r = b1.reshape(1, C1)
    b2r = b2.reshape(1, C2)
    bcr = bc.reshape(1, Cdest)

    def full_spec(a):
        nd = a.ndim
        return pl.BlockSpec(a.shape, lambda n, _nd=nd: (0,) * _nd)

    out = pl.pallas_call(
        _fused_kernel,
        out_shape=jax.ShapeDtypeStruct((N, H, W, Cdest), x.dtype),
        grid_spec=pltpu.PrefetchScalarGridSpec(
            num_scalar_prefetch=0,
            grid=(N,),
            in_specs=[
                pl.BlockSpec((1, H, W, Cin), lambda n: (n, 0, 0, 0)),
                full_spec(w1), full_spec(b1r),
                full_spec(w2), full_spec(b2r),
                full_spec(wcm), full_spec(wc1), full_spec(wc2), full_spec(bcr),
            ],
            out_specs=pl.BlockSpec((1, H, W, Cdest), lambda n: (n, 0, 0, 0)),
            scratch_shapes=[
                pltpu.VMEM((H + 2, W + 2, Cin), jnp.float32),   # padded x
                pltpu.VMEM((H + 2, W + 2, C1), jnp.float32),    # padded t1
                pltpu.VMEM((H * W, C1), jnp.float32),           # conv1 acc
                pltpu.VMEM((H * W, C2), jnp.float32),           # conv2 acc
            ],
        ),
        compiler_params=pltpu.CompilerParams(
            dimension_semantics=("parallel",),          # shard batch across TCs (v7x)
            vmem_limit_bytes=32 * 1024 * 1024,          # safe on v5e/v6e/v7x
        ),
    )(x, w1, b1r, w2, b2r, wcm, wc1, wc2, bcr)

    return jnp.transpose(out, (0, 3, 1, 2))                 # back to NCHW


# ----------------------------------------------------------------------------
# Pure-JAX reference (same math, XLA convs) for verification.
# ----------------------------------------------------------------------------
def ref_forward(params, x_nchw):
    x = jnp.transpose(x_nchw, (0, 2, 3, 1))

    def comp(a, w, b):
        y = jax.lax.conv_general_dilated(
            a, w, (1, 1), "SAME",
            dimension_numbers=("NHWC", "HWIO", "NHWC"),
            precision=jax.lax.Precision.HIGHEST) + b
        return jnp.where(y >= 0, y, NEG_SLOPE * y)

    t1 = comp(x, params["w1"], params["b1"])
    t2 = comp(t1, params["w2"], params["b2"])
    cat = jnp.concatenate([x, t1, t2], axis=-1)
    o = jnp.einsum("nhwc,cd->nhwd", cat, params["wc"],
                   precision=jax.lax.Precision.HIGHEST) + params["bc"]
    return jnp.transpose(o, (0, 3, 1, 2))


def init_params(key, cin, c1, c2, cdest):
    ks = jax.random.split(key, 6)
    ctot = cin + c1 + c2
    return {
        "w1": jax.random.normal(ks[0], (3, 3, cin, c1), jnp.float32) * 0.1,
        "b1": jax.random.normal(ks[1], (c1,), jnp.float32) * 0.05,
        "w2": jax.random.normal(ks[2], (3, 3, c1, c2), jnp.float32) * 0.1,
        "b2": jax.random.normal(ks[3], (c2,), jnp.float32) * 0.05,
        "wc": jax.random.normal(ks[4], (ctot, cdest), jnp.float32) * 0.1,
        "bc": jax.random.normal(ks[5], (cdest,), jnp.float32) * 0.05,
    }


if __name__ == "__main__":
    key = jax.random.PRNGKey(0)
    k_x, k_p = jax.random.split(key)

    # small shapes: batch=2, infeat=4, spatial=16x16
    # components: Conv3x3(4->8)+LReLU, Conv3x3(8->8)+LReLU
    # chanTotal = 4+8+8 = 20, chanDest = 8
    N, CIN, H, W = 2, 4, 16, 16
    C1, C2, CDEST = 8, 8, 8

    x = jax.random.normal(k_x, (N, CIN, H, W), jnp.float32)
    params = init_params(k_p, CIN, C1, C2, CDEST)

    out = jax.jit(one_shot_forward)(params, x)
    out = jax.block_until_ready(out)

    ref = jax.block_until_ready(ref_forward(params, x))

    assert out.shape == (N, CDEST, H, W), out.shape
    assert bool(jnp.all(jnp.isfinite(out)))
    err = float(jnp.max(jnp.abs(out - ref)))
    assert err < 1e-2, f"max abs error vs reference: {err}"
    print("KERNEL_OK")
</pallas_src>

<mosaic_0001>
module attributes {stable_mosaic.version = 11 : i64} {
  func.func @_fused_kernel(%arg0: i32, %arg1: memref<1x16x16x4xf32, #tpu.memory_space<vmem>>, %arg2: memref<3x3x4x8xf32, #tpu.memory_space<vmem>>, %arg3: memref<1x8xf32, #tpu.memory_space<vmem>>, %arg4: memref<3x3x8x8xf32, #tpu.memory_space<vmem>>, %arg5: memref<1x8xf32, #tpu.memory_space<vmem>>, %arg6: memref<4x8xf32, #tpu.memory_space<vmem>>, %arg7: memref<8x8xf32, #tpu.memory_space<vmem>>, %arg8: memref<8x8xf32, #tpu.memory_space<vmem>>, %arg9: memref<1x8xf32, #tpu.memory_space<vmem>>, %arg10: memref<1x16x16x8xf32, #tpu.memory_space<vmem>>, %arg11: memref<18x18x4xf32, #tpu.memory_space<vmem>>, %arg12: memref<18x18x8xf32, #tpu.memory_space<vmem>>, %arg13: memref<256x8xf32, #tpu.memory_space<vmem>>, %arg14: memref<256x8xf32, #tpu.memory_space<vmem>>) attributes {dimension_semantics = [#tpu.dimension_semantics<parallel>], iteration_bounds = array<i64: 2>, scalar_prefetch = 0 : i64, scratch_operands = 4 : i64, tpu.core_type = #tpu.core_type<tc>, window_params = [{transform_indices = @transform_0, window_bounds = array<i64: 1, 16, 16, 4>}, {pipeline_mode = #tpu.pipeline_mode<synchronous>, transform_indices = @transform_1, window_bounds = array<i64: 3, 3, 4, 8>}, {pipeline_mode = #tpu.pipeline_mode<synchronous>, transform_indices = @transform_2, window_bounds = array<i64: 1, 8>}, {pipeline_mode = #tpu.pipeline_mode<synchronous>, transform_indices = @transform_3, window_bounds = array<i64: 3, 3, 8, 8>}, {pipeline_mode = #tpu.pipeline_mode<synchronous>, transform_indices = @transform_4, window_bounds = array<i64: 1, 8>}, {pipeline_mode = #tpu.pipeline_mode<synchronous>, transform_indices = @transform_5, window_bounds = array<i64: 4, 8>}, {pipeline_mode = #tpu.pipeline_mode<synchronous>, transform_indices = @transform_6, window_bounds = array<i64: 8, 8>}, {pipeline_mode = #tpu.pipeline_mode<synchronous>, transform_indices = @transform_7, window_bounds = array<i64: 8, 8>}, {pipeline_mode = #tpu.pipeline_mode<synchronous>, transform_indices = @transform_8, window_bounds = array<i64: 1, 8>}, {transform_indices = @transform_9, window_bounds = array<i64: 1, 16, 16, 8>}]} {
    %c0 = arith.constant 0 : index
    %c0_0 = arith.constant 0 : index
    %c0_1 = arith.constant 0 : index
    %c0_2 = arith.constant 0 : index
    %0 = vector.load %arg1[%c0, %c0_0, %c0_1, %c0_2] : memref<1x16x16x4xf32, #tpu.memory_space<vmem>>, vector<1x16x16x4xf32>
    %1 = vector.shape_cast %0 : vector<1x16x16x4xf32> to vector<16x16x4xf32>
    %cst = arith.constant 0.000000e+00 : f32
    %2 = vector.broadcast %cst : f32 to vector<18x18x4xf32>
    %c0_3 = arith.constant 0 : index
    %c0_4 = arith.constant 0 : index
    %c0_5 = arith.constant 0 : index
    %3 = vector.load %arg11[%c0_3, %c0_4, %c0_5] : memref<18x18x4xf32, #tpu.memory_space<vmem>>, vector<18x18x4xf32>
    tpu.vector_store %arg11[%c0_3, %c0_4, %c0_5], %2 {strides = array<i32>} : memref<18x18x4xf32, #tpu.memory_space<vmem>>, vector<18x18x4xf32>,
    %c1 = arith.constant 1 : index
    %c1_6 = arith.constant 1 : index
    %c0_7 = arith.constant 0 : index
    %4 = vector.load %arg11[%c1, %c1_6, %c0_7] : memref<18x18x4xf32, #tpu.memory_space<vmem>>, vector<16x16x4xf32>
    tpu.vector_store %arg11[%c1, %c1_6, %c0_7], %1 {strides = array<i32>} : memref<18x18x4xf32, #tpu.memory_space<vmem>>, vector<16x16x4xf32>,
    %cst_8 = arith.constant 0.000000e+00 : f32
    %5 = vector.broadcast %cst_8 : f32 to vector<256x8xf32>
    %c0_9 = arith.constant 0 : index
    %c0_10 = arith.constant 0 : index
    %6 = vector.load %arg13[%c0_9, %c0_10] : memref<256x8xf32, #tpu.memory_space<vmem>>, vector<256x8xf32>
    tpu.vector_store %arg13[%c0_9, %c0_10], %5 {strides = array<i32>} : memref<256x8xf32, #tpu.memory_space<vmem>>, vector<256x8xf32>,
    %c0_11 = arith.constant 0 : index
    %c0_12 = arith.constant 0 : index
    %c0_13 = arith.constant 0 : index
    %7 = vector.load %arg11[%c0_11, %c0_12, %c0_13] : memref<18x18x4xf32, #tpu.memory_space<vmem>>, vector<16x16x4xf32>
    %8 = vector.shape_cast %7 : vector<16x16x4xf32> to vector<256x4xf32>
    %c0_14 = arith.constant 0 : index
    %c0_15 = arith.constant 0 : index
    %9 = vector.load %arg13[%c0_14, %c0_15] : memref<256x8xf32, #tpu.memory_space<vmem>>, vector<256x8xf32>
    %c0_16 = arith.constant 0 : index
    %c0_17 = arith.constant 0 : index
    %c0_18 = arith.constant 0 : index
    %c0_19 = arith.constant 0 : index
    %10 = vector.load %arg2[%c0_16, %c0_17, %c0_18, %c0_19] : memref<3x3x4x8xf32, #tpu.memory_space<vmem>>, vector<1x1x4x8xf32>
    %11 = vector.shape_cast %10 : vector<1x1x4x8xf32> to vector<4x8xf32>
    %cst_20 = arith.constant dense<0.000000e+00> : vector<256x8xf32>
    %12 = tpu.matmul %8, %11, %cst_20 {dimension_numbers = #tpu.dot_dimension_numbers<[1], [0], [0], [1], [0, 0, 1, 1], [], []>} : vector<256x4xf32>, vector<4x8xf32>, vector<256x8xf32> -> vector<256x8xf32>
    %13 = arith.addf %9, %12 : vector<256x8xf32>
    %c0_21 = arith.constant 0 : index
    %c0_22 = arith.constant 0 : index
    %14 = vector.load %arg13[%c0_21, %c0_22] : memref<256x8xf32, #tpu.memory_space<vmem>>, vector<256x8xf32>
    tpu.vector_store %arg13[%c0_21, %c0_22], %13 {strides = array<i32>} : memref<256x8xf32, #tpu.memory_space<vmem>>, vector<256x8xf32>,
    %c0_23 = arith.constant 0 : index
    %c1_24 = arith.constant 1 : index
    %c0_25 = arith.constant 0 : index
    %15 = vector.load %arg11[%c0_23, %c1_24, %c0_25] : memref<18x18x4xf32, #tpu.memory_space<vmem>>, vector<16x16x4xf32>
    %16 = vector.shape_cast %15 : vector<16x16x4xf32> to vector<256x4xf32>
    %c0_26 = arith.constant 0 : index
    %c0_27 = arith.constant 0 : index
    %17 = vector.load %arg13[%c0_26, %c0_27] : memref<256x8xf32, #tpu.memory_space<vmem>>, vector<256x8xf32>
    %c0_28 = arith.constant 0 : index
    %c1_29 = arith.constant 1 : index
    %c0_30 = arith.constant 0 : index
    %c0_31 = arith.constant 0 : index
    %18 = vector.load %arg2[%c0_28, %c1_29, %c0_30, %c0_31] : memref<3x3x4x8xf32, #tpu.memory_space<vmem>>, vector<1x1x4x8xf32>
    %19 = vector.shape_cast %18 : vector<1x1x4x8xf32> to vector<4x8xf32>
    %cst_32 = arith.constant dense<0.000000e+00> : vector<256x8xf32>
    %20 = tpu.matmul %16, %19, %cst_32 {dimension_numbers = #tpu.dot_dimension_numbers<[1], [0], [0], [1], [0, 0, 1, 1], [], []>} : vector<256x4xf32>, vector<4x8xf32>, vector<256x8xf32> -> vector<256x8xf32>
    %21 = arith.addf %17, %20 : vector<256x8xf32>
    %c0_33 = arith.constant 0 : index
    %c0_34 = arith.constant 0 : index
    %22 = vector.load %arg13[%c0_33, %c0_34] : memref<256x8xf32, #tpu.memory_space<vmem>>, vector<256x8xf32>
    tpu.vector_store %arg13[%c0_33, %c0_34], %21 {strides = array<i32>} : memref<256x8xf32, #tpu.memory_space<vmem>>, vector<256x8xf32>,
    %c0_35 = arith.constant 0 : index
    %c2 = arith.constant 2 : index
    %c0_36 = arith.constant 0 : index
    %23 = vector.load %arg11[%c0_35, %c2, %c0_36] : memref<18x18x4xf32, #tpu.memory_space<vmem>>, vector<16x16x4xf32>
    %24 = vector.shape_cast %23 : vector<16x16x4xf32> to vector<256x4xf32>
    %c0_37 = arith.constant 0 : index
    %c0_38 = arith.constant 0 : index
    %25 = vector.load %arg13[%c0_37, %c0_38] : memref<256x8xf32, #tpu.memory_space<vmem>>, vector<256x8xf32>
    %c0_39 = arith.constant 0 : index
    %c2_40 = arith.constant 2 : index
    %c0_41 = arith.constant 0 : index
    %c0_42 = arith.constant 0 : index
    %26 = vector.load %arg2[%c0_39, %c2_40, %c0_41, %c0_42] : memref<3x3x4x8xf32, #tpu.memory_space<vmem>>, vector<1x1x4x8xf32>
    %27 = vector.shape_cast %26 : vector<1x1x4x8xf32> to vector<4x8xf32>
    %cst_43 = arith.constant dense<0.000000e+00> : vector<256x8xf32>
    %28 = tpu.matmul %24, %27, %cst_43 {dimension_numbers = #tpu.dot_dimension_numbers<[1], [0], [0], [1], [0, 0, 1, 1], [], []>} : vector<256x4xf32>, vector<4x8xf32>, vector<256x8xf32> -> vector<256x8xf32>
    %29 = arith.addf %25, %28 : vector<256x8xf32>
    %c0_44 = arith.constant 0 : index
    %c0_45 = arith.constant 0 : index
    %30 = vector.load %arg13[%c0_44, %c0_45] : memref<256x8xf32, #tpu.memory_space<vmem>>, vector<256x8xf32>
    tpu.vector_store %arg13[%c0_44, %c0_45], %29 {strides = array<i32>} : memref<256x8xf32, #tpu.memory_space<vmem>>, vector<256x8xf32>,
    %c1_46 = arith.constant 1 : index
    %c0_47 = arith.constant 0 : index
    %c0_48 = arith.constant 0 : index
    %31 = vector.load %arg11[%c1_46, %c0_47, %c0_48] : memref<18x18x4xf32, #tpu.memory_space<vmem>>, vector<16x16x4xf32>
    %32 = vector.shape_cast %31 : vector<16x16x4xf32> to vector<256x4xf32>
    %c0_49 = arith.constant 0 : index
    %c0_50 = arith.constant 0 : index
    %33 = vector.load %arg13[%c0_49, %c0_50] : memref<256x8xf32, #tpu.memory_space<vmem>>, vector<256x8xf32>
    %c1_51 = arith.constant 1 : index
    %c0_52 = arith.constant 0 : index
    %c0_53 = arith.constant 0 : index
    %c0_54 = arith.constant 0 : index
    %34 = vector.load %arg2[%c1_51, %c0_52, %c0_53, %c0_54] : memref<3x3x4x8xf32, #tpu.memory_space<vmem>>, vector<1x1x4x8xf32>
    %35 = vector.shape_cast %34 : vector<1x1x4x8xf32> to vector<4x8xf32>
    %cst_55 = arith.constant dense<0.000000e+00> : vector<256x8xf32>
    %36 = tpu.matmul %32, %35, %cst_55 {dimension_numbers = #tpu.dot_dimension_numbers<[1], [0], [0], [1], [0, 0, 1, 1], [], []>} : vector<256x4xf32>, vector<4x8xf32>, vector<256x8xf32> -> vector<256x8xf32>
    %37 = arith.addf %33, %36 : vector<256x8xf32>
    %c0_56 = arith.constant 0 : index
    %c0_57 = arith.constant 0 : index
    %38 = vector.load %arg13[%c0_56, %c0_57] : memref<256x8xf32, #tpu.memory_space<vmem>>, vector<256x8xf32>
    tpu.vector_store %arg13[%c0_56, %c0_57], %37 {strides = array<i32>} : memref<256x8xf32, #tpu.memory_space<vmem>>, vector<256x8xf32>,
    %c1_58 = arith.constant 1 : index
    %c1_59 = arith.constant 1 : index
    %c0_60 = arith.constant 0 : index
    %39 = vector.load %arg11[%c1_58, %c1_59, %c0_60] : memref<18x18x4xf32, #tpu.memory_space<vmem>>, vector<16x16x4xf32>
    %40 = vector.shape_cast %39 : vector<16x16x4xf32> to vector<256x4xf32>
    %c0_61 = arith.constant 0 : index
    %c0_62 = arith.constant 0 : index
    %41 = vector.load %arg13[%c0_61, %c0_62] : memref<256x8xf32, #tpu.memory_space<vmem>>, vector<256x8xf32>
    %c1_63 = arith.constant 1 : index
    %c1_64 = arith.constant 1 : index
    %c0_65 = arith.constant 0 : index
    %c0_66 = arith.constant 0 : index
    %42 = vector.load %arg2[%c1_63, %c1_64, %c0_65, %c0_66] : memref<3x3x4x8xf32, #tpu.memory_space<vmem>>, vector<1x1x4x8xf32>
    %43 = vector.shape_cast %42 : vector<1x1x4x8xf32> to vector<4x8xf32>
    %cst_67 = arith.constant dense<0.000000e+00> : vector<256x8xf32>
    %44 = tpu.matmul %40, %43, %cst_67 {dimension_numbers = #tpu.dot_dimension_numbers<[1], [0], [0], [1], [0, 0, 1, 1], [], []>} : vector<256x4xf32>, vector<4x8xf32>, vector<256x8xf32> -> vector<256x8xf32>
    %45 = arith.addf %41, %44 : vector<256x8xf32>
    %c0_68 = arith.constant 0 : index
    %c0_69 = arith.constant 0 : index
    %46 = vector.load %arg13[%c0_68, %c0_69] : memref<256x8xf32, #tpu.memory_space<vmem>>, vector<256x8xf32>
    tpu.vector_store %arg13[%c0_68, %c0_69], %45 {strides = array<i32>} : memref<256x8xf32, #tpu.memory_space<vmem>>, vector<256x8xf32>,
    %c1_70 = arith.constant 1 : index
    %c2_71 = arith.constant 2 : index
    %c0_72 = arith.constant 0 : index
    %47 = vector.load %arg11[%c1_70, %c2_71, %c0_72] : memref<18x18x4xf32, #tpu.memory_space<vmem>>, vector<16x16x4xf32>
    %48 = vector.shape_cast %47 : vector<16x16x4xf32> to vector<256x4xf32>
    %c0_73 = arith.constant 0 : index
    %c0_74 = arith.constant 0 : index
    %49 = vector.load %arg13[%c0_73, %c0_74] : memref<256x8xf32, #tpu.memory_space<vmem>>, vector<256x8xf32>
    %c1_75 = arith.constant 1 : index
    %c2_76 = arith.constant 2 : index
    %c0_77 = arith.constant 0 : index
    %c0_78 = arith.constant 0 : index
    %50 = vector.load %arg2[%c1_75, %c2_76, %c0_77, %c0_78] : memref<3x3x4x8xf32, #tpu.memory_space<vmem>>, vector<1x1x4x8xf32>
    %51 = vector.shape_cast %50 : vector<1x1x4x8xf32> to vector<4x8xf32>
    %cst_79 = arith.constant dense<0.000000e+00> : vector<256x8xf32>
    %52 = tpu.matmul %48, %51, %cst_79 {dimension_numbers = #tpu.dot_dimension_numbers<[1], [0], [0], [1], [0, 0, 1, 1], [], []>} : vector<256x4xf32>, vector<4x8xf32>, vector<256x8xf32> -> vector<256x8xf32>
    %53 = arith.addf %49, %52 : vector<256x8xf32>
    %c0_80 = arith.constant 0 : index
    %c0_81 = arith.constant 0 : index
    %54 = vector.load %arg13[%c0_80, %c0_81] : memref<256x8xf32, #tpu.memory_space<vmem>>, vector<256x8xf32>
    tpu.vector_store %arg13[%c0_80, %c0_81], %53 {strides = array<i32>} : memref<256x8xf32, #tpu.memory_space<vmem>>, vector<256x8xf32>,
    %c2_82 = arith.constant 2 : index
    %c0_83 = arith.constant 0 : index
    %c0_84 = arith.constant 0 : index
    %55 = vector.load %arg11[%c2_82, %c0_83, %c0_84] : memref<18x18x4xf32, #tpu.memory_space<vmem>>, vector<16x16x4xf32>
    %56 = vector.shape_cast %55 : vector<16x16x4xf32> to vector<256x4xf32>
    %c0_85 = arith.constant 0 : index
    %c0_86 = arith.constant 0 : index
    %57 = vector.load %arg13[%c0_85, %c0_86] : memref<256x8xf32, #tpu.memory_space<vmem>>, vector<256x8xf32>
    %c2_87 = arith.constant 2 : index
    %c0_88 = arith.constant 0 : index
    %c0_89 = arith.constant 0 : index
    %c0_90 = arith.constant 0 : index
    %58 = vector.load %arg2[%c2_87, %c0_88, %c0_89, %c0_90] : memref<3x3x4x8xf32, #tpu.memory_space<vmem>>, vector<1x1x4x8xf32>
    %59 = vector.shape_cast %58 : vector<1x1x4x8xf32> to vector<4x8xf32>
    %cst_91 = arith.constant dense<0.000000e+00> : vector<256x8xf32>
    %60 = tpu.matmul %56, %59, %cst_91 {dimension_numbers = #tpu.dot_dimension_numbers<[1], [0], [0], [1], [0, 0, 1, 1], [], []>} : vector<256x4xf32>, vector<4x8xf32>, vector<256x8xf32> -> vector<256x8xf32>
    %61 = arith.addf %57, %60 : vector<256x8xf32>
    %c0_92 = arith.constant 0 : index
    %c0_93 = arith.constant 0 : index
    %62 = vector.load %arg13[%c0_92, %c0_93] : memref<256x8xf32, #tpu.memory_space<vmem>>, vector<256x8xf32>
    tpu.vector_store %arg13[%c0_92, %c0_93], %61 {strides = array<i32>} : memref<256x8xf32, #tpu.memory_space<vmem>>, vector<256x8xf32>,
    %c2_94 = arith.constant 2 : index
    %c1_95 = arith.constant 1 : index
    %c0_96 = arith.constant 0 : index
    %63 = vector.load %arg11[%c2_94, %c1_95, %c0_96] : memref<18x18x4xf32, #tpu.memory_space<vmem>>, vector<16x16x4xf32>
    %64 = vector.shape_cast %63 : vector<16x16x4xf32> to vector<256x4xf32>
    %c0_97 = arith.constant 0 : index
    %c0_98 = arith.constant 0 : index
    %65 = vector.load %arg13[%c0_97, %c0_98] : memref<256x8xf32, #tpu.memory_space<vmem>>, vector<256x8xf32>
    %c2_99 = arith.constant 2 : index
    %c1_100 = arith.constant 1 : index
    %c0_101 = arith.constant 0 : index
    %c0_102 = arith.constant 0 : index
    %66 = vector.load %arg2[%c2_99, %c1_100, %c0_101, %c0_102] : memref<3x3x4x8xf32, #tpu.memory_space<vmem>>, vector<1x1x4x8xf32>
    %67 = vector.shape_cast %66 : vector<1x1x4x8xf32> to vector<4x8xf32>
    %cst_103 = arith.constant dense<0.000000e+00> : vector<256x8xf32>
    %68 = tpu.matmul %64, %67, %cst_103 {dimension_numbers = #tpu.dot_dimension_numbers<[1], [0], [0], [1], [0, 0, 1, 1], [], []>} : vector<256x4xf32>, vector<4x8xf32>, vector<256x8xf32> -> vector<256x8xf32>
    %69 = arith.addf %65, %68 : vector<256x8xf32>
    %c0_104 = arith.constant 0 : index
    %c0_105 = arith.constant 0 : index
    %70 = vector.load %arg13[%c0_104, %c0_105] : memref<256x8xf32, #tpu.memory_space<vmem>>, vector<256x8xf32>
    tpu.vector_store %arg13[%c0_104, %c0_105], %69 {strides = array<i32>} : memref<256x8xf32, #tpu.memory_space<vmem>>, vector<256x8xf32>,
    %c2_106 = arith.constant 2 : index
    %c2_107 = arith.constant 2 : index
    %c0_108 = arith.constant 0 : index
    %71 = vector.load %arg11[%c2_106, %c2_107, %c0_108] : memref<18x18x4xf32, #tpu.memory_space<vmem>>, vector<16x16x4xf32>
    %72 = vector.shape_cast %71 : vector<16x16x4xf32> to vector<256x4xf32>
    %c0_109 = arith.constant 0 : index
    %c0_110 = arith.constant 0 : index
    %73 = vector.load %arg13[%c0_109, %c0_110] : memref<256x8xf32, #tpu.memory_space<vmem>>, vector<256x8xf32>
    %c2_111 = arith.constant 2 : index
    %c2_112 = arith.constant 2 : index
    %c0_113 = arith.constant 0 : index
    %c0_114 = arith.constant 0 : index
    %74 = vector.load %arg2[%c2_111, %c2_112, %c0_113, %c0_114] : memref<3x3x4x8xf32, #tpu.memory_space<vmem>>, vector<1x1x4x8xf32>
    %75 = vector.shape_cast %74 : vector<1x1x4x8xf32> to vector<4x8xf32>
    %cst_115 = arith.constant dense<0.000000e+00> : vector<256x8xf32>
    %76 = tpu.matmul %72, %75, %cst_115 {dimension_numbers = #tpu.dot_dimension_numbers<[1], [0], [0], [1], [0, 0, 1, 1], [], []>} : vector<256x4xf32>, vector<4x8xf32>, vector<256x8xf32> -> vector<256x8xf32>
    %77 = arith.addf %73, %76 : vector<256x8xf32>
    %c0_116 = arith.constant 0 : index
    %c0_117 = arith.constant 0 : index
    %78 = vector.load %arg13[%c0_116, %c0_117] : memref<256x8xf32, #tpu.memory_space<vmem>>, vector<256x8xf32>
    tpu.vector_store %arg13[%c0_116, %c0_117], %77 {strides = array<i32>} : memref<256x8xf32, #tpu.memory_space<vmem>>, vector<256x8xf32>,
    %c0_118 = arith.constant 0 : index
    %c0_119 = arith.constant 0 : index
    %79 = vector.load %arg13[%c0_118, %c0_119] : memref<256x8xf32, #tpu.memory_space<vmem>>, vector<256x8xf32>
    %c0_120 = arith.constant 0 : index
    %c0_121 = arith.constant 0 : index
    %80 = vector.load %arg3[%c0_120, %c0_121] : memref<1x8xf32, #tpu.memory_space<vmem>>, vector<1x8xf32>
    %81 = vector.broadcast %80 : vector<1x8xf32> to vector<256x8xf32>
    %82 = arith.addf %79, %81 : vector<256x8xf32>
    %cst_122 = arith.constant 0.000000e+00 : f32
    %83 = vector.broadcast %cst_122 : f32 to vector<256x8xf32>
    %84 = arith.cmpf oge, %82, %83 : vector<256x8xf32>
    %cst_123 = arith.constant 0.00999999977 : f32
    %85 = vector.broadcast %cst_123 : f32 to vector<256x8xf32>
    %86 = arith.mulf %85, %82 : vector<256x8xf32>
    %87 = arith.select %84, %82, %86 : vector<256x8xi1>, vector<256x8xf32>
    %cst_124 = arith.constant 0.000000e+00 : f32
    %88 = vector.broadcast %cst_124 : f32 to vector<18x18x8xf32>
    %c0_125 = arith.constant 0 : index
    %c0_126 = arith.constant 0 : index
    %c0_127 = arith.constant 0 : index
    %89 = vector.load %arg12[%c0_125, %c0_126, %c0_127] : memref<18x18x8xf32, #tpu.memory_space<vmem>>, vector<18x18x8xf32>
    tpu.vector_store %arg12[%c0_125, %c0_126, %c0_127], %88 {strides = array<i32>} : memref<18x18x8xf32, #tpu.memory_space<vmem>>, vector<18x18x8xf32>,
    %90 = vector.shape_cast %87 : vector<256x8xf32> to vector<16x16x8xf32>
    %c1_128 = arith.constant 1 : index
    %c1_129 = arith.constant 1 : index
    %c0_130 = arith.constant 0 : index
    %91 = vector.load %arg12[%c1_128, %c1_129, %c0_130] : memref<18x18x8xf32, #tpu.memory_space<vmem>>, vector<16x16x8xf32>
    tpu.vector_store %arg12[%c1_128, %c1_129, %c0_130], %90 {strides = array<i32>} : memref<18x18x8xf32, #tpu.memory_space<vmem>>, vector<16x16x8xf32>,
    %cst_131 = arith.constant 0.000000e+00 : f32
    %92 = vector.broadcast %cst_131 : f32 to vector<256x8xf32>
    %c0_132 = arith.constant 0 : index
    %c0_133 = arith.constant 0 : index
    %93 = vector.load %arg14[%c0_132, %c0_133] : memref<256x8xf32, #tpu.memory_space<vmem>>, vector<256x8xf32>
    tpu.vector_store %arg14[%c0_132, %c0_133], %92 {strides = array<i32>} : memref<256x8xf32, #tpu.memory_space<vmem>>, vector<256x8xf32>,
    %c0_134 = arith.constant 0 : index
    %c0_135 = arith.constant 0 : index
    %c0_136 = arith.constant 0 : index
    %94 = vector.load %arg12[%c0_134, %c0_135, %c0_136] : memref<18x18x8xf32, #tpu.memory_space<vmem>>, vector<16x16x8xf32>
    %95 = vector.shape_cast %94 : vector<16x16x8xf32> to vector<256x8xf32>
    %c0_137 = arith.constant 0 : index
    %c0_138 = arith.constant 0 : index
    %96 = vector.load %arg14[%c0_137, %c0_138] : memref<256x8xf32, #tpu.memory_space<vmem>>, vector<256x8xf32>
    %c0_139 = arith.constant 0 : index
    %c0_140 = arith.constant 0 : index
    %c0_141 = arith.constant 0 : index
    %c0_142 = arith.constant 0 : index
    %97 = vector.load %arg4[%c0_139, %c0_140, %c0_141, %c0_142] : memref<3x3x8x8xf32, #tpu.memory_space<vmem>>, vector<1x1x8x8xf32>
    %98 = vector.shape_cast %97 : vector<1x1x8x8xf32> to vector<8x8xf32>
    %cst_143 = arith.constant dense<0.000000e+00> : vector<256x8xf32>
    %99 = tpu.matmul %95, %98, %cst_143 {dimension_numbers = #tpu.dot_dimension_numbers<[1], [0], [0], [1], [0, 0, 1, 1], [], []>} : vector<256x8xf32>, vector<8x8xf32>, vector<256x8xf32> -> vector<256x8xf32>
    %100 = arith.addf %96, %99 : vector<256x8xf32>
    %c0_144 = arith.constant 0 : index
    %c0_145 = arith.constant 0 : index
    %101 = vector.load %arg14[%c0_144, %c0_145] : memref<256x8xf32, #tpu.memory_space<vmem>>, vector<256x8xf32>
    tpu.vector_store %arg14[%c0_144, %c0_145], %100 {strides = array<i32>} : memref<256x8xf32, #tpu.memory_space<vmem>>, vector<256x8xf32>,
    %c0_146 = arith.constant 0 : index
    %c1_147 = arith.constant 1 : index
    %c0_148 = arith.constant 0 : index
    %102 = vector.load %arg12[%c0_146, %c1_147, %c0_148] : memref<18x18x8xf32, #tpu.memory_space<vmem>>, vector<16x16x8xf32>
    %103 = vector.shape_cast %102 : vector<16x16x8xf32> to vector<256x8xf32>
    %c0_149 = arith.constant 0 : index
    %c0_150 = arith.constant 0 : index
    %104 = vector.load %arg14[%c0_149, %c0_150] : memref<256x8xf32, #tpu.memory_space<vmem>>, vector<256x8xf32>
    %c0_151 = arith.constant 0 : index
    %c1_152 = arith.constant 1 : index
    %c0_153 = arith.constant 0 : index
    %c0_154 = arith.constant 0 : index
    %105 = vector.load %arg4[%c0_151, %c1_152, %c0_153, %c0_154] : memref<3x3x8x8xf32, #tpu.memory_space<vmem>>, vector<1x1x8x8xf32>
    %106 = vector.shape_cast %105 : vector<1x1x8x8xf32> to vector<8x8xf32>
    %cst_155 = arith.constant dense<0.000000e+00> : vector<256x8xf32>
    %107 = tpu.matmul %103, %106, %cst_155 {dimension_numbers = #tpu.dot_dimension_numbers<[1], [0], [0], [1], [0, 0, 1, 1], [], []>} : vector<256x8xf32>, vector<8x8xf32>, vector<256x8xf32> -> vector<256x8xf32>
    %108 = arith.addf %104, %107 : vector<256x8xf32>
    %c0_156 = arith.constant 0 : index
    %c0_157 = arith.constant 0 : index
    %109 = vector.load %arg14[%c0_156, %c0_157] : memref<256x8xf32, #tpu.memory_space<vmem>>, vector<256x8xf32>
    tpu.vector_store %arg14[%c0_156, %c0_157], %108 {strides = array<i32>} : memref<256x8xf32, #tpu.memory_space<vmem>>, vector<256x8xf32>,
    %c0_158 = arith.constant 0 : index
    %c2_159 = arith.constant 2 : index
    %c0_160 = arith.constant 0 : index
    %110 = vector.load %arg12[%c0_158, %c2_159, %c0_160] : memref<18x18x8xf32, #tpu.memory_space<vmem>>, vector<16x16x8xf32>
    %111 = vector.shape_cast %110 : vector<16x16x8xf32> to vector<256x8xf32>
    %c0_161 = arith.constant 0 : index
    %c0_162 = arith.constant 0 : index
    %112 = vector.load %arg14[%c0_161, %c0_162] : memref<256x8xf32, #tpu.memory_space<vmem>>, vector<256x8xf32>
    %c0_163 = arith.constant 0 : index
    %c2_164 = arith.constant 2 : index
    %c0_165 = arith.constant 0 : index
    %c0_166 = arith.constant 0 : index
    %113 = vector.load %arg4[%c0_163, %c2_164, %c0_165, %c0_166] : memref<3x3x8x8xf32, #tpu.memory_space<vmem>>, vector<1x1x8x8xf32>
    %114 = vector.shape_cast %113 : vector<1x1x8x8xf32> to vector<8x8xf32>
    %cst_167 = arith.constant dense<0.000000e+00> : vector<256x8xf32>
    %115 = tpu.matmul %111, %114, %cst_167 {dimension_numbers = #tpu.dot_dimension_numbers<[1], [0], [0], [1], [0, 0, 1, 1], [], []>} : vector<256x8xf32>, vector<8x8xf32>, vector<256x8xf32> -> vector<256x8xf32>
    %116 = arith.addf %112, %115 : vector<256x8xf32>
    %c0_168 = arith.constant 0 : index
    %c0_169 = arith.constant 0 : index
    %117 = vector.load %arg14[%c0_168, %c0_169] : memref<256x8xf32, #tpu.memory_space<vmem>>, vector<256x8xf32>
    tpu.vector_store %arg14[%c0_168, %c0_169], %116 {strides = array<i32>} : memref<256x8xf32, #tpu.memory_space<vmem>>, vector<256x8xf32>,
    %c1_170 = arith.constant 1 : index
    %c0_171 = arith.constant 0 : index
    %c0_172 = arith.constant 0 : index
    %118 = vector.load %arg12[%c1_170, %c0_171, %c0_172] : memref<18x18x8xf32, #tpu.memory_space<vmem>>, vector<16x16x8xf32>
    %119 = vector.shape_cast %118 : vector<16x16x8xf32> to vector<256x8xf32>
    %c0_173 = arith.constant 0 : index
    %c0_174 = arith.constant 0 : index
    %120 = vector.load %arg14[%c0_173, %c0_174] : memref<256x8xf32, #tpu.memory_space<vmem>>, vector<256x8xf32>
    %c1_175 = arith.constant 1 : index
    %c0_176 = arith.constant 0 : index
    %c0_177 = arith.constant 0 : index
    %c0_178 = arith.constant 0 : index
    %121 = vector.load %arg4[%c1_175, %c0_176, %c0_177, %c0_178] : memref<3x3x8x8xf32, #tpu.memory_space<vmem>>, vector<1x1x8x8xf32>
    %122 = vector.shape_cast %121 : vector<1x1x8x8xf32> to vector<8x8xf32>
    %cst_179 = arith.constant dense<0.000000e+00> : vector<256x8xf32>
    %123 = tpu.matmul %119, %122, %cst_179 {dimension_numbers = #tpu.dot_dimension_numbers<[1], [0], [0], [1], [0, 0, 1, 1], [], []>} : vector<256x8xf32>, vector<8x8xf32>, vector<256x8xf32> -> vector<256x8xf32>
    %124 = arith.addf %120, %123 : vector<256x8xf32>
    %c0_180 = arith.constant 0 : index
    %c0_181 = arith.constant 0 : index
    %125 = vector.load %arg14[%c0_180, %c0_181] : memref<256x8xf32, #tpu.memory_space<vmem>>, vector<256x8xf32>
    tpu.vector_store %arg14[%c0_180, %c0_181], %124 {strides = array<i32>} : memref<256x8xf32, #tpu.memory_space<vmem>>, vector<256x8xf32>,
    %c1_182 = arith.constant 1 : index
    %c1_183 = arith.constant 1 : index
    %c0_184 = arith.constant 0 : index
    %126 = vector.load %arg12[%c1_182, %c1_183, %c0_184] : memref<18x18x8xf32, #tpu.memory_space<vmem>>, vector<16x16x8xf32>
    %127 = vector.shape_cast %126 : vector<16x16x8xf32> to vector<256x8xf32>
    %c0_185 = arith.constant 0 : index
    %c0_186 = arith.constant 0 : index
    %128 = vector.load %arg14[%c0_185, %c0_186] : memref<256x8xf32, #tpu.memory_space<vmem>>, vector<256x8xf32>
    %c1_187 = arith.constant 1 : index
    %c1_188 = arith.constant 1 : index
    %c0_189 = arith.constant 0 : index
    %c0_190 = arith.constant 0 : index
    %129 = vector.load %arg4[%c1_187, %c1_188, %c0_189, %c0_190] : memref<3x3x8x8xf32, #tpu.memory_space<vmem>>, vector<1x1x8x8xf32>
    %130 = vector.shape_cast %129 : vector<1x1x8x8xf32> to vector<8x8xf32>
    %cst_191 = arith.constant dense<0.000000e+00> : vector<256x8xf32>
    %131 = tpu.matmul %127, %130, %cst_191 {dimension_numbers = #tpu.dot_dimension_numbers<[1], [0], [0], [1], [0, 0, 1, 1], [], []>} : vector<256x8xf32>, vector<8x8xf32>, vector<256x8xf32> -> vector<256x8xf32>
    %132 = arith.addf %128, %131 : vector<256x8xf32>
    %c0_192 = arith.constant 0 : index
    %c0_193 = arith.constant 0 : index
    %133 = vector.load %arg14[%c0_192, %c0_193] : memref<256x8xf32, #tpu.memory_space<vmem>>, vector<256x8xf32>
    tpu.vector_store %arg14[%c0_192, %c0_193], %132 {strides = array<i32>} : memref<256x8xf32, #tpu.memory_space<vmem>>, vector<256x8xf32>,
    %c1_194 = arith.constant 1 : index
    %c2_195 = arith.constant 2 : index
    %c0_196 = arith.constant 0 : index
    %134 = vector.load %arg12[%c1_194, %c2_195, %c0_196] : memref<18x18x8xf32, #tpu.memory_space<vmem>>, vector<16x16x8xf32>
    %135 = vector.shape_cast %134 : vector<16x16x8xf32> to vector<256x8xf32>
    %c0_197 = arith.constant 0 : index
    %c0_198 = arith.constant 0 : index
    %136 = vector.load %arg14[%c0_197, %c0_198] : memref<256x8xf32, #tpu.memory_space<vmem>>, vector<256x8xf32>
    %c1_199 = arith.constant 1 : index
    %c2_200 = arith.constant 2 : index
    %c0_201 = arith.constant 0 : index
    %c0_202 = arith.constant 0 : index
    %137 = vector.load %arg4[%c1_199, %c2_200, %c0_201, %c0_202] : memref<3x3x8x8xf32, #tpu.memory_space<vmem>>, vector<1x1x8x8xf32>
    %138 = vector.shape_cast %137 : vector<1x1x8x8xf32> to vector<8x8xf32>
    %cst_203 = arith.constant dense<0.000000e+00> : vector<256x8xf32>
    %139 = tpu.matmul %135, %138, %cst_203 {dimension_numbers = #tpu.dot_dimension_numbers<[1], [0], [0], [1], [0, 0, 1, 1], [], []>} : vector<256x8xf32>, vector<8x8xf32>, vector<256x8xf32> -> vector<256x8xf32>
    %140 = arith.addf %136, %139 : vector<256x8xf32>
    %c0_204 = arith.constant 0 : index
    %c0_205 = arith.constant 0 : index
    %141 = vector.load %arg14[%c0_204, %c0_205] : memref<256x8xf32, #tpu.memory_space<vmem>>, vector<256x8xf32>
    tpu.vector_store %arg14[%c0_204, %c0_205], %140 {strides = array<i32>} : memref<256x8xf32, #tpu.memory_space<vmem>>, vector<256x8xf32>,
    %c2_206 = arith.constant 2 : index
    %c0_207 = arith.constant 0 : index
    %c0_208 = arith.constant 0 : index
    %142 = vector.load %arg12[%c2_206, %c0_207, %c0_208] : memref<18x18x8xf32, #tpu.memory_space<vmem>>, vector<16x16x8xf32>
    %143 = vector.shape_cast %142 : vector<16x16x8xf32> to vector<256x8xf32>
    %c0_209 = arith.constant 0 : index
    %c0_210 = arith.constant 0 : index
    %144 = vector.load %arg14[%c0_209, %c0_210] : memref<256x8xf32, #tpu.memory_space<vmem>>, vector<256x8xf32>
    %c2_211 = arith.constant 2 : index
    %c0_212 = arith.constant 0 : index
    %c0_213 = arith.constant 0 : index
    %c0_214 = arith.constant 0 : index
    %145 = vector.load %arg4[%c2_211, %c0_212, %c0_213, %c0_214] : memref<3x3x8x8xf32, #tpu.memory_space<vmem>>, vector<1x1x8x8xf32>
    %146 = vector.shape_cast %145 : vector<1x1x8x8xf32> to vector<8x8xf32>
    %cst_215 = arith.constant dense<0.000000e+00> : vector<256x8xf32>
    %147 = tpu.matmul %143, %146, %cst_215 {dimension_numbers = #tpu.dot_dimension_numbers<[1], [0], [0], [1], [0, 0, 1, 1], [], []>} : vector<256x8xf32>, vector<8x8xf32>, vector<256x8xf32> -> vector<256x8xf32>
    %148 = arith.addf %144, %147 : vector<256x8xf32>
    %c0_216 = arith.constant 0 : index
    %c0_217 = arith.constant 0 : index
    %149 = vector.load %arg14[%c0_216, %c0_217] : memref<256x8xf32, #tpu.memory_space<vmem>>, vector<256x8xf32>
    tpu.vector_store %arg14[%c0_216, %c0_217], %148 {strides = array<i32>} : memref<256x8xf32, #tpu.memory_space<vmem>>, vector<256x8xf32>,
    %c2_218 = arith.constant 2 : index
    %c1_219 = arith.constant 1 : index
    %c0_220 = arith.constant 0 : index
    %150 = vector.load %arg12[%c2_218, %c1_219, %c0_220] : memref<18x18x8xf32, #tpu.memory_space<vmem>>, vector<16x16x8xf32>
    %151 = vector.shape_cast %150 : vector<16x16x8xf32> to vector<256x8xf32>
    %c0_221 = arith.constant 0 : index
    %c0_222 = arith.constant 0 : index
    %152 = vector.load %arg14[%c0_221, %c0_222] : memref<256x8xf32, #tpu.memory_space<vmem>>, vector<256x8xf32>
    %c2_223 = arith.constant 2 : index
    %c1_224 = arith.constant 1 : index
    %c0_225 = arith.constant 0 : index
    %c0_226 = arith.constant 0 : index
    %153 = vector.load %arg4[%c2_223, %c1_224, %c0_225, %c0_226] : memref<3x3x8x8xf32, #tpu.memory_space<vmem>>, vector<1x1x8x8xf32>
    %154 = vector.shape_cast %153 : vector<1x1x8x8xf32> to vector<8x8xf32>
    %cst_227 = arith.constant dense<0.000000e+00> : vector<256x8xf32>
    %155 = tpu.matmul %151, %154, %cst_227 {dimension_numbers = #tpu.dot_dimension_numbers<[1], [0], [0], [1], [0, 0, 1, 1], [], []>} : vector<256x8xf32>, vector<8x8xf32>, vector<256x8xf32> -> vector<256x8xf32>
    %156 = arith.addf %152, %155 : vector<256x8xf32>
    %c0_228 = arith.constant 0 : index
    %c0_229 = arith.constant 0 : index
    %157 = vector.load %arg14[%c0_228, %c0_229] : memref<256x8xf32, #tpu.memory_space<vmem>>, vector<256x8xf32>
    tpu.vector_store %arg14[%c0_228, %c0_229], %156 {strides = array<i32>} : memref<256x8xf32, #tpu.memory_space<vmem>>, vector<256x8xf32>,
    %c2_230 = arith.constant 2 : index
    %c2_231 = arith.constant 2 : index
    %c0_232 = arith.constant 0 : index
    %158 = vector.load %arg12[%c2_230, %c2_231, %c0_232] : memref<18x18x8xf32, #tpu.memory_space<vmem>>, vector<16x16x8xf32>
    %159 = vector.shape_cast %158 : vector<16x16x8xf32> to vector<256x8xf32>
    %c0_233 = arith.constant 0 : index
    %c0_234 = arith.constant 0 : index
    %160 = vector.load %arg14[%c0_233, %c0_234] : memref<256x8xf32, #tpu.memory_space<vmem>>, vector<256x8xf32>
    %c2_235 = arith.constant 2 : index
    %c2_236 = arith.constant 2 : index
    %c0_237 = arith.constant 0 : index
    %c0_238 = arith.constant 0 : index
    %161 = vector.load %arg4[%c2_235, %c2_236, %c0_237, %c0_238] : memref<3x3x8x8xf32, #tpu.memory_space<vmem>>, vector<1x1x8x8xf32>
    %162 = vector.shape_cast %161 : vector<1x1x8x8xf32> to vector<8x8xf32>
    %cst_239 = arith.constant dense<0.000000e+00> : vector<256x8xf32>
    %163 = tpu.matmul %159, %162, %cst_239 {dimension_numbers = #tpu.dot_dimension_numbers<[1], [0], [0], [1], [0, 0, 1, 1], [], []>} : vector<256x8xf32>, vector<8x8xf32>, vector<256x8xf32> -> vector<256x8xf32>
    %164 = arith.addf %160, %163 : vector<256x8xf32>
    %c0_240 = arith.constant 0 : index
    %c0_241 = arith.constant 0 : index
    %165 = vector.load %arg14[%c0_240, %c0_241] : memref<256x8xf32, #tpu.memory_space<vmem>>, vector<256x8xf32>
    tpu.vector_store %arg14[%c0_240, %c0_241], %164 {strides = array<i32>} : memref<256x8xf32, #tpu.memory_space<vmem>>, vector<256x8xf32>,
    %c0_242 = arith.constant 0 : index
    %c0_243 = arith.constant 0 : index
    %166 = vector.load %arg14[%c0_242, %c0_243] : memref<256x8xf32, #tpu.memory_space<vmem>>, vector<256x8xf32>
    %c0_244 = arith.constant 0 : index
    %c0_245 = arith.constant 0 : index
    %167 = vector.load %arg5[%c0_244, %c0_245] : memref<1x8xf32, #tpu.memory_space<vmem>>, vector<1x8xf32>
    %168 = vector.broadcast %167 : vector<1x8xf32> to vector<256x8xf32>
    %169 = arith.addf %166, %168 : vector<256x8xf32>
    %cst_246 = arith.constant 0.000000e+00 : f32
    %170 = vector.broadcast %cst_246 : f32 to vector<256x8xf32>
    %171 = arith.cmpf oge, %169, %170 : vector<256x8xf32>
    %cst_247 = arith.constant 0.00999999977 : f32
    %172 = vector.broadcast %cst_247 : f32 to vector<256x8xf32>
    %173 = arith.mulf %172, %169 : vector<256x8xf32>
    %174 = arith.select %171, %169, %173 : vector<256x8xi1>, vector<256x8xf32>
    %175 = vector.shape_cast %1 : vector<16x16x4xf32> to vector<256x4xf32>
    %c0_248 = arith.constant 0 : index
    %c0_249 = arith.constant 0 : index
    %176 = vector.load %arg6[%c0_248, %c0_249] : memref<4x8xf32, #tpu.memory_space<vmem>>, vector<4x8xf32>
    %cst_250 = arith.constant dense<0.000000e+00> : vector<256x8xf32>
    %177 = tpu.matmul %175, %176, %cst_250 {dimension_numbers = #tpu.dot_dimension_numbers<[1], [0], [0], [1], [0, 0, 1, 1], [], []>} : vector<256x4xf32>, vector<4x8xf32>, vector<256x8xf32> -> vector<256x8xf32>
    %c0_251 = arith.constant 0 : index
    %c0_252 = arith.constant 0 : index
    %178 = vector.load %arg7[%c0_251, %c0_252] : memref<8x8xf32, #tpu.memory_space<vmem>>, vector<8x8xf32>
    %cst_253 = arith.constant dense<0.000000e+00> : vector<256x8xf32>
    %179 = tpu.matmul %87, %178, %cst_253 {dimension_numbers = #tpu.dot_dimension_numbers<[1], [0], [0], [1], [0, 0, 1, 1], [], []>} : vector<256x8xf32>, vector<8x8xf32>, vector<256x8xf32> -> vector<256x8xf32>
    %180 = arith.addf %177, %179 : vector<256x8xf32>
    %c0_254 = arith.constant 0 : index
    %c0_255 = arith.constant 0 : index
    %181 = vector.load %arg8[%c0_254, %c0_255] : memref<8x8xf32, #tpu.memory_space<vmem>>, vector<8x8xf32>
    %cst_256 = arith.constant dense<0.000000e+00> : vector<256x8xf32>
    %182 = tpu.matmul %174, %181, %cst_256 {dimension_numbers = #tpu.dot_dimension_numbers<[1], [0], [0], [1], [0, 0, 1, 1], [], []>} : vector<256x8xf32>, vector<8x8xf32>, vector<256x8xf32> -> vector<256x8xf32>
    %183 = arith.addf %180, %182 : vector<256x8xf32>
    %c0_257 = arith.constant 0 : index
    %c0_258 = arith.constant 0 : index
    %184 = vector.load %arg9[%c0_257, %c0_258] : memref<1x8xf32, #tpu.memory_space<vmem>>, vector<1x8xf32>
    %185 = vector.broadcast %184 : vector<1x8xf32> to vector<256x8xf32>
    %186 = arith.addf %183, %185 : vector<256x8xf32>
    %187 = vector.shape_cast %186 : vector<256x8xf32> to vector<1x16x16x8xf32>
    %c0_259 = arith.constant 0 : index
    %c0_260 = arith.constant 0 : index
    %c0_261 = arith.constant 0 : index
    %c0_262 = arith.constant 0 : index
    %188 = vector.load %arg10[%c0_259, %c0_260, %c0_261, %c0_262] : memref<1x16x16x8xf32, #tpu.memory_space<vmem>>, vector<1x16x16x8xf32>
    tpu.vector_store %arg10[%c0_259, %c0_260, %c0_261, %c0_262], %187 {strides = array<i32>} : memref<1x16x16x8xf32, #tpu.memory_space<vmem>>, vector<1x16x16x8xf32>,
    return
  }
  func.func @transform_0(%arg0: i32) -> (i32, i32, i32, i32) {
    %c0_i32 = arith.constant 0 : i32
    %c0_i32_0 = arith.constant 0 : i32
    %c0_i32_1 = arith.constant 0 : i32
    %c0_i32_2 = arith.constant 0 : i32
    return %arg0, %c0_i32, %c0_i32_0, %c0_i32_1 : i32, i32, i32, i32
  }
  func.func @transform_1(%arg0: i32) -> (i32, i32, i32, i32) {
    %c0_i32 = arith.constant 0 : i32
    %c0_i32_0 = arith.constant 0 : i32
    %c0_i32_1 = arith.constant 0 : i32
    %c0_i32_2 = arith.constant 0 : i32
    %c0_i32_3 = arith.constant 0 : i32
    return %c0_i32, %c0_i32_0, %c0_i32_1, %c0_i32_2 : i32, i32, i32, i32
  }
  func.func @transform_2(%arg0: i32) -> (i32, i32) {
    %c0_i32 = arith.constant 0 : i32
    %c0_i32_0 = arith.constant 0 : i32
    %c0_i32_1 = arith.constant 0 : i32
    return %c0_i32, %c0_i32_0 : i32, i32
  }
  func.func @transform_3(%arg0: i32) -> (i32, i32, i32, i32) {
    %c0_i32 = arith.constant 0 : i32
    %c0_i32_0 = arith.constant 0 : i32
    %c0_i32_1 = arith.constant 0 : i32
    %c0_i32_2 = arith.constant 0 : i32
    %c0_i32_3 = arith.constant 0 : i32
    return %c0_i32, %c0_i32_0, %c0_i32_1, %c0_i32_2 : i32, i32, i32, i32
  }
  func.func @transform_4(%arg0: i32) -> (i32, i32) {
    %c0_i32 = arith.constant 0 : i32
    %c0_i32_0 = arith.constant 0 : i32
    %c0_i32_1 = arith.constant 0 : i32
    return %c0_i32, %c0_i32_0 : i32, i32
  }
  func.func @transform_5(%arg0: i32) -> (i32, i32) {
    %c0_i32 = arith.constant 0 : i32
    %c0_i32_0 = arith.constant 0 : i32
    %c0_i32_1 = arith.constant 0 : i32
    return %c0_i32, %c0_i32_0 : i32, i32
  }
  func.func @transform_6(%arg0: i32) -> (i32, i32) {
    %c0_i32 = arith.constant 0 : i32
    %c0_i32_0 = arith.constant 0 : i32
    %c0_i32_1 = arith.constant 0 : i32
    return %c0_i32, %c0_i32_0 : i32, i32
  }
  func.func @transform_7(%arg0: i32) -> (i32, i32) {
    %c0_i32 = arith.constant 0 : i32
    %c0_i32_0 = arith.constant 0 : i32
    %c0_i32_1 = arith.constant 0 : i32
    return %c0_i32, %c0_i32_0 : i32, i32
  }
  func.func @transform_8(%arg0: i32) -> (i32, i32) {
    %c0_i32 = arith.constant 0 : i32
    %c0_i32_0 = arith.constant 0 : i32
    %c0_i32_1 = arith.constant 0 : i32
    return %c0_i32, %c0_i32_0 : i32, i32
  }
  func.func @transform_9(%arg0: i32) -> (i32, i32, i32, i32) {
    %c0_i32 = arith.constant 0 : i32
    %c0_i32_0 = arith.constant 0 : i32
    %c0_i32_1 = arith.constant 0 : i32
    %c0_i32_2 = arith.constant 0 : i32
    return %arg0, %c0_i32, %c0_i32_0, %c0_i32_1 : i32, i32, i32, i32
  }
}

</mosaic_0001>

<bundles_post_ra>
// kernel: one_shot_forward.1
= control target key start
LH: loop header
LB: loop body
LE: loop exit
PB: predicated region body
PF: predicated region fallthrough
CT: control target
= control target key end

     0   :  { %s8639_s30 = smov 0   ;;  %s11561_s0 = inlined_call_operand.vmem [shape: f32[2,16,16,4], index: 0, kind: input, shape index: {}]   ;;  %s11562_s1 = inlined_call_operand.vmem [shape: f32[3,3,4,8], index: 1, kind: input, shape index: {}]   ;;  %s11563_s2 = inlined_call_operand.vmem [shape: f32[1,8], index: 2, kind: input, shape index: {}]   ;;  %s11564_s3 = inlined_call_operand.vmem [shape: f32[3,3,8,8], index: 3, kind: input, shape index: {}]   ;;  %s11565_s4 = inlined_call_operand.vmem [shape: f32[1,8], index: 4, kind: input, shape index: {}]   ;;  %s11566_s5 = inlined_call_operand.vmem [shape: f32[4,8], index: 5, kind: input, shape index: {}]   ;;  %s11567_s6 = inlined_call_operand.vmem [shape: f32[8,8], index: 6, kind: input, shape index: {}]   ;;  %s11568_s7 = inlined_call_operand.vmem [shape: f32[8,8], index: 7, kind: input, shape index: {}]   ;;  %s11569_s8 = inlined_call_operand.vmem [shape: f32[1,8], index: 8, kind: input, shape index: {}]   ;;  %s11570_s9 = inlined_call_operand.vmem [shape: f32[2,16,16,8], index: 9, kind: output, shape index: {}]  }
   0x1 LB: > { %s7853_s10 = sadd.s32 4294967295, %s8586_s30   ;;  %p7857_p0 = scmp.ge.s32.totalorder %s8586_s30, 1  ;;  %s8586_s30 = sphi %s8639_s30, %s19_s30  }
   0x2   : > { %p287_p1 = scmp.lt.s32.totalorder %s8586_s30, 3 }
   0x4   : > { %p288_p2 = pnand %p7857_p0, %p287_p1 }
   0x6   : > { %291 = sbr.rel (%p288_p2) target bundleno = 1693 (0x69d), region = 56 }
   0xb   : > { %v551_v0 = vld [vmem:[%s11562_s1] sm:$0xf]  ;;  %vm648_vm0 = vcmask 1043456   ;;  %vm365_vm1 = vcmask 31744   ;;  %v11575_v1 = vmov 0.0   ;;  %p323_p3 = scmp.lt.s32.totalorder %s7853_s10, 1 }
   0xc   : > { %7862 = vmatpush.msk.msra.mxu0 %vm648_vm0, %v551_v0  ;;  %366 = vst.msk [vmem:[#allocation2] sm:$0xff] %vm365_vm1, %v11575_v1  ;;  %8564 = vmatpush.msk.msra.mxu1 %vm648_vm0, %v551_v0  ;;  %v7895_v3 = vld [vmem:[%s11562_s1 + $0x4] sm:$0xf]  ;;  %vm368_vm2 = vcmask 25600   ;;  %v7997_v51 = vld [vmem:[%s11562_s1 + $0x10] sm:$0xf] }
   0xd   : > { %367 = vst.msk [vmem:[#allocation2 + $0x8] sm:$0xff] %vm365_vm1, %v11575_v1  ;;  %8565 = vmatpush.msk.msra.mxu2 %vm648_vm0, %v551_v0  ;;  %8566 = vmatpush.msk.msra.mxu3 %vm648_vm0, %v551_v0  ;;  %s11650_s10 = smov (!%p323_p3, %s7853_s10), 1  ;;  %v7929_v52 = vld [vmem:[%s11562_s1 + $0x8] sm:$0xf]  ;;  %v7963_v53 = vld [vmem:[%s11562_s1 + $0xc] sm:$0xf] }
   0xe   : > { %370 = vst.msk [vmem:[#allocation2 + $0x18] sm:$0xff] %vm365_vm1, %v11575_v1  ;;  %7896 = vmatpush.msk.msrb.mxu1 %vm648_vm0, %v7895_v3  ;;  %s8562_s15 = sshll.u32 %s11650_s10, 8  ;;  %7998 = vmatpush.msk.msrb.mxu0 %vm648_vm0, %v7997_v51  ;;  %v8031_v58 = vld [vmem:[%s11562_s1 + $0x14] sm:$0xf]  ;;  %vm454_vm3 = vcmask 64512   ;;  %vm3732_vm6 = vcmask 58368  }
   0xf   : > { %371 = vst.msk [vmem:[#allocation2 + $0x20] sm:$0xff] %vm365_vm1, %v11575_v1  ;;  %s8734_s18 = scalar_lea.vmem %s11561_s0, %s8562_s15  ;;  %7930 = vmatpush.msk.msrb.mxu2 %vm648_vm0, %v7929_v52  ;;  %7964 = vmatpush.msk.msrb.mxu3 %vm648_vm0, %v7963_v53  ;;  %s11360_s12 = scalar_lea.vmem %s11570_s9, %s8562_s15 }
  0x10   : > { %373 = vst.msk [vmem:[#allocation2 + $0x30] sm:$0xff] %vm365_vm1, %v11575_v1  ;;  %v8743_v5 = vld [vmem:[%s8734_s18 + $0x30] sm:$0xff]  ;;  %v8760_v8 = vld [vmem:[%s8734_s18 + $0x38] sm:$0xff]  ;;  %v8822_v15 = vld [vmem:[%s8734_s18] sm:$0xff] }
  0x11   : > { %374 = vst.msk [vmem:[#allocation2 + $0x38] sm:$0xff] %vm365_vm1, %v11575_v1  ;;  %v8748_v6 = vld [vmem:[%s8734_s18 + $0x70] sm:$0xff]  ;;  %v8812_v13 = vld [vmem:[%s8734_s18 + $0x78] sm:$0xff]  ;;  %v8827_v16 = vld [vmem:[%s8734_s18 + $0x40] sm:$0xff] }
  0x12   : > { %376 = vst.msk [vmem:[#allocation2 + $0x48] sm:$0xff] %vm365_vm1, %v11575_v1  ;;  %v8753_v7 = vld [vmem:[%s8734_s18 + $0xb0] sm:$0xff]  ;;  %v8817_v14 = vld [vmem:[%s8734_s18 + $0xb8] sm:$0xff]  ;;  %v8832_v17 = vld [vmem:[%s8734_s18 + $0x80] sm:$0xff] }
  0x13   : > { %v487_v2 = vld [vmem:[#allocation2] sm:$0xff]  ;;  %377 = vst.msk [vmem:[#allocation2 + $0x50] sm:$0xff] %vm365_vm1, %v11575_v1  ;;  %v8842_v19 = vld [vmem:[%s8734_s18 + $0x8] sm:$0xff]  ;;  %v8864_v24 = vld [vmem:[%s8734_s18 + $0x10] sm:$0xff] }
  0x14   : > { %7863 = vmatmul.msk.f32.vlgmr.msra.gmra.mxu0 %vm365_vm1, %v487_v2  ;;  %379 = vst.msk [vmem:[#allocation2 + $0x60] sm:$0xff] %vm365_vm1, %v11575_v1  ;;  %v488_v4 = vld [vmem:[#allocation2 + $0x8] sm:$0xff]  ;;  %v8837_v18 = vld [vmem:[%s8734_s18 + $0xc0] sm:$0xff]  ;;  %v8871_v26 = vld [vmem:[%s8734_s18 + $0x50] sm:$0xff] }
  0x15   : > { %380 = vst.msk [vmem:[#allocation2 + $0x68] sm:$0xff] %vm365_vm1, %v11575_v1  ;;  %v8847_v20 = vld [vmem:[%s8734_s18 + $0x48] sm:$0xff]  ;;  %v8879_v28 = vld [vmem:[%s8734_s18 + $0x90] sm:$0xff]  ;;  %v8895_v31 = vld [vmem:[%s8734_s18 + $0x18] sm:$0xff] }
  0x16   : > { %382 = vst.msk [vmem:[#allocation2 + $0x78] sm:$0xff] %vm365_vm1, %v11575_v1  ;;  %v8852_v21 = vld [vmem:[%s8734_s18 + $0x88] sm:$0xff]  ;;  %v8888_v30 = vld [vmem:[%s8734_s18 + $0xd0] sm:$0xff]  ;;  %v8900_v32 = vld [vmem:[%s8734_s18 + $0x58] sm:$0xff] }
  0x17   : > { %383 = vst.msk [vmem:[#allocation2 + $0x80] sm:$0xff] %vm365_vm1, %v11575_v1  ;;  %v8857_v22 = vld [vmem:[%s8734_s18 + $0xc8] sm:$0xff]  ;;  %v8907_v34 = vld [vmem:[%s8734_s18 + $0x98] sm:$0xff]  ;;  %v8919_v38 = vld [vmem:[%s8734_s18 + $0x20] sm:$0xff] }
  0x18   : > { %385 = vst.msk [vmem:[#allocation2 + $0x90] sm:$0xff] %vm365_vm1, %v11575_v1  ;;  %v8912_v36 = vld [vmem:[%s8734_s18 + $0xd8] sm:$0xff]  ;;  %v8928_v40 = vld [vmem:[%s8734_s18 + $0x60] sm:$0xff]  ;;  %v8948_v43 = vld [vmem:[%s8734_s18 + $0x28] sm:$0xff] }
  0x19   : > { %386 = vst.msk [vmem:[#allocation2 + $0x98] sm:$0xff] %vm365_vm1, %v11575_v1  ;;  %v8934_v41 = vld [vmem:[%s8734_s18 + $0xa0] sm:$0xff]  ;;  %v8953_v44 = vld [vmem:[%s8734_s18 + $0x68] sm:$0xff] }
  0x1a   : > { %388 = vst.msk [vmem:[#allocation2 + $0xa8] sm:$0xff] %vm365_vm1, %v11575_v1  ;;  %v8941_v42 = vld [vmem:[%s8734_s18 + $0xe0] sm:$0xff]  ;;  %v8960_v46 = vld [vmem:[%s8734_s18 + $0xa8] sm:$0xff] }
  0x1b   : > { %389 = vst.msk [vmem:[#allocation2 + $0xb0] sm:$0xff] %vm365_vm1, %v11575_v1  ;;  %v8965_v48 = vld [vmem:[%s8734_s18 + $0xe8] sm:$0xff] }
  0x1c   : > { %391 = vst.msk [vmem:[#allocation2 + $0xc0] sm:$0xff] %vm365_vm1, %v11575_v1  ;;  %7864 = vmatmul.msk.f32.gmra.mxu0 %vm365_vm1, %v488_v4 }
  0x1d   : > { %392 = vst.msk [vmem:[#allocation2 + $0xc8] sm:$0xff] %vm365_vm1, %v11575_v1 }
  0x1e   : > { %394 = vst.msk [vmem:[#allocation2 + $0xd8] sm:$0xff] %vm365_vm1, %v11575_v1 }
  0x1f   : > { %395 = vst.msk [vmem:[#allocation2 + $0xe0] sm:$0xff] %vm365_vm1, %v11575_v1 }
  0x20   : > { %397 = vst.msk [vmem:[#allocation2 + $0xf0] sm:$0xff] %vm365_vm1, %v11575_v1 }
  0x21   : > { %398 = vst.msk [vmem:[#allocation2 + $0xf8] sm:$0xff] %vm365_vm1, %v11575_v1 }
  0x22   : > { %400 = vst.msk [vmem:[#allocation2 + $0x108] sm:$0xff] %vm365_vm1, %v11575_v1 }
  0x23   : > { %401 = vst.msk [vmem:[#allocation2 + $0x110] sm:$0xff] %vm365_vm1, %v11575_v1 }
  0x24   : > { %403 = vst.msk [vmem:[#allocation2 + $0x120] sm:$0xff] %vm365_vm1, %v11575_v1 }
  0x25   : > { %404 = vst.msk [vmem:[#allocation2 + $0x128] sm:$0xff] %vm365_vm1, %v11575_v1 }
  0x26   : > { %406 = vst.msk [vmem:[#allocation2 + $0x138] sm:$0xff] %vm365_vm1, %v11575_v1 }
  0x27   : > { %407 = vst.msk [vmem:[#allocation2 + $0x140] sm:$0xff] %vm365_vm1, %v11575_v1 }
  0x28   : > { %409 = vst.msk [vmem:[#allocation2 + $0x150] sm:$0xff] %vm365_vm1, %v11575_v1 }
  0x29   : > { %410 = vst.msk [vmem:[#allocation2 + $0x158] sm:$0xff] %vm365_vm1, %v11575_v1 }
  0x2a   : > { %412 = vst.msk [vmem:[#allocation2 + $0x168] sm:$0xff] %vm365_vm1, %v11575_v1 }
  0x2b   : > { %413 = vst.msk [vmem:[#allocation2 + $0x170] sm:$0xff] %vm365_vm1, %v11575_v1 }
  0x2c   : > { %415 = vst.msk [vmem:[#allocation2 + $0x180] sm:$0xff] %vm365_vm1, %v11575_v1 }
  0x2d   : > { %416 = vst.msk [vmem:[#allocation2 + $0x188] sm:$0xff] %vm365_vm1, %v11575_v1 }
  0x2e   : > { %418 = vst.msk [vmem:[#allocation2 + $0x198] sm:$0xff] %vm365_vm1, %v11575_v1 }
  0x2f   : > { %419 = vst.msk [vmem:[#allocation2 + $0x1a0] sm:$0xff] %vm365_vm1, %v11575_v1 }
  0x30   : > { %11598 = vst [vmem:[#allocation6_spill] sm:$0xff] %v8753_v7 }
  0x31   : > { %428 = vst.msk [vmem:[#allocation2 + $0x61] sm:$0xff] %vm365_vm1, %v8743_v5 }
  0x32   : > { %436 = vst.msk [vmem:[#allocation2 + $0xc1] sm:$0xff] %vm365_vm1, %v8748_v6 }
  0x33   : > { %444 = vst.msk [vmem:[#allocation2 + $0x121] sm:$0xff] %vm365_vm1, %v8753_v7 }
  0x34   : > { %381 = vst.msk [vmem:[#allocation2 + $0x70] sm:$0x3] %vm368_vm2, %v11575_v1 }
  0x35   : > { %429 = vst.msk [vmem:[#allocation2 + $0x69] sm:$0xff] %vm365_vm1, %v8760_v8 }
  0x36   : > { %369 = vst.msk [vmem:[#allocation2 + $0x10] sm:$0x3] %vm368_vm2, %v11575_v1 }
  0x37   : > { %372 = vst.msk [vmem:[#allocation2 + $0x28] sm:$0x3] %vm368_vm2, %v11575_v1 }
  0x38   : > { %v8772_v9 = vld [vmem:[#allocation2 + $0x60] sm:$0xff]  ;;  %375 = vst.msk [vmem:[#allocation2 + $0x40] sm:$0x3] %vm368_vm2, %v11575_v1 }
  0x39   : > { %7871 = vmatmul.msk.f32.vlgmr.msra.gmra.mxu1 %vm365_vm1, %v8772_v9  ;;  %v8778_v10 = vld [vmem:[#allocation2 + $0xc0] sm:$0xff]  ;;  %378 = vst.msk [vmem:[#allocation2 + $0x58] sm:$0x3] %vm368_vm2, %v11575_v1 }
  0x3a   : > { %7879 = vmatmul.msk.f32.vlgmr.msra.gmra.mxu2 %vm365_vm1, %v8778_v10  ;;  %v511_v11 = vld [vmem:[#allocation2 + $0x120] sm:$0xff]  ;;  %384 = vst.msk [vmem:[#allocation2 + $0x88] sm:$0x3] %vm368_vm2, %v11575_v1  ;;  %8032 = vmatpush.msk.msra.mxu1 %vm648_vm0, %v8031_v58 }
  0x3b   : > { %7887 = vmatmul.msk.f32.vlgmr.msra.gmra.mxu3 %vm365_vm1, %v511_v11  ;;  %387 = vst.msk [vmem:[#allocation2 + $0xa0] sm:$0x3] %vm368_vm2, %v11575_v1 }
  0x3c   : > { %390 = vst.msk [vmem:[#allocation2 + $0xb8] sm:$0x3] %vm368_vm2, %v11575_v1  ;;  %v8793_v12 = vld [vmem:[#allocation2 + $0x68] sm:$0xff] }
  0x3d   : > { %393 = vst.msk [vmem:[#allocation2 + $0xd0] sm:$0x3] %vm368_vm2, %v11575_v1  ;;  %v830_v52 = vld [vmem:[#allocation2 + $0x9] sm:$0xff] }
  0x3e   : > { %396 = vst.msk [vmem:[#allocation2 + $0xe8] sm:$0x3] %vm368_vm2, %v11575_v1  ;;  %v1172_v53 = vld [vmem:[#allocation2 + $0xa] sm:$0xff] }
  0x3f   : > { %399 = vst.msk [vmem:[#allocation2 + $0x100] sm:$0x3] %vm368_vm2, %v11575_v1 }
  0x40   : > { %402 = vst.msk [vmem:[#allocation2 + $0x118] sm:$0x3] %vm368_vm2, %v11575_v1 }
  0x41   : > { %7872 = vmatmul.msk.f32.gmra.mxu1 %vm365_vm1, %v8793_v12  ;;  %405 = vst.msk [vmem:[#allocation2 + $0x130] sm:$0x3] %vm368_vm2, %v11575_v1 }
  0x42   : > { %408 = vst.msk [vmem:[#allocation2 + $0x148] sm:$0x3] %vm368_vm2, %v11575_v1 }
  0x43   : > { %411 = vst.msk [vmem:[#allocation2 + $0x160] sm:$0x3] %vm368_vm2, %v11575_v1 }
  0x44   : > { %414 = vst.msk [vmem:[#allocation2 + $0x178] sm:$0x3] %vm368_vm2, %v11575_v1 }
  0x45   : > { %417 = vst.msk [vmem:[#allocation2 + $0x190] sm:$0x3] %vm368_vm2, %v11575_v1 }
  0x46   : > { %11599 = vst [vmem:[#allocation7_spill] sm:$0xff] %v8817_v14 }
  0x47   : > { %420 = vst.msk [vmem:[#allocation2 + $0x1a8] sm:$0x3] %vm368_vm2, %v11575_v1 }
  0x48   : > { %437 = vst.msk [vmem:[#allocation2 + $0xc9] sm:$0xff] %vm365_vm1, %v8812_v13 }
  0x49   : > { %445 = vst.msk [vmem:[#allocation2 + $0x129] sm:$0xff] %vm365_vm1, %v8817_v14 }
  0x4a   : > { %422 = vst.msk [vmem:[#allocation2 + $0x19] sm:$0xff] %vm365_vm1, %v8822_v15 }
  0x4b   : > { %11600 = vst [vmem:[#allocation8_spill] sm:$0xff] %v8837_v18 }
  0x4c   : > { %430 = vst.msk [vmem:[#allocation2 + $0x79] sm:$0xff] %vm365_vm1, %v8827_v16 }
  0x4d   : > { %438 = vst.msk [vmem:[#allocation2 + $0xd9] sm:$0xff] %vm365_vm1, %v8832_v17 }
  0x4e   : > { %446 = vst.msk [vmem:[#allocation2 + $0x139] sm:$0xff] %vm365_vm1, %v8837_v18 }
  0x4f   : > { %423 = vst.msk [vmem:[#allocation2 + $0x21] sm:$0xff] %vm365_vm1, %v8842_v19  ;;  %v8859_v23 = vld [vmem:[#allocation2 + $0xc8] sm:$0xff] }
  0x50   : > { %11601 = vst [vmem:[#allocation9_spill] sm:$0xff] %v8857_v22  ;;  %7880 = vmatmul.msk.f32.gmra.mxu2 %vm365_vm1, %v8859_v23  ;;  %v512_v25 = vld [vmem:[#allocation2 + $0x128] sm:$0xff] }
  0x51   : > { %431 = vst.msk [vmem:[#allocation2 + $0x81] sm:$0xff] %vm365_vm1, %v8847_v20  ;;  %7888 = vmatmul.msk.f32.gmra.mxu3 %vm365_vm1, %v512_v25  ;;  %v8874_v27 = vld [vmem:[#allocation2 + $0x18] sm:$0xff] }
  0x52   : > { %439 = vst.msk [vmem:[#allocation2 + $0xe1] sm:$0xff] %vm365_vm1, %v8852_v21  ;;  %7865 = vmatmul.msk.f32.gmra.mxu0 %vm365_vm1, %v8874_v27  ;;  %v1855_v25 = vld [vmem:[#allocation2 + $0x19] sm:$0xff] }
  0x53   : > { %447 = vst.msk [vmem:[#allocation2 + $0x141] sm:$0xff] %vm365_vm1, %v8857_v22  ;;  %v8883_v29 = vld [vmem:[#allocation2 + $0x78] sm:$0xff] }
  0x54   : > { %424 = vst.msk [vmem:[#allocation2 + $0x31] sm:$0xff] %vm365_vm1, %v8864_v24  ;;  %7873 = vmatmul.msk.f32.gmra.mxu1 %vm365_vm1, %v8883_v29  ;;  %v8902_v33 = vld [vmem:[#allocation2 + $0xd8] sm:$0xff] }
  0x55   : > { %11602 = vst [vmem:[#allocation10_spill] sm:$0xff] %v8888_v30  ;;  %v513_v35 = vld [vmem:[#allocation2 + $0x138] sm:$0xff] }
  0x56   : > { %432 = vst.msk [vmem:[#allocation2 + $0x91] sm:$0xff] %vm365_vm1, %v8871_v26  ;;  %v8914_v37 = vld [vmem:[#allocation2 + $0x20] sm:$0xff] }
  0x57   : > { %440 = vst.msk [vmem:[#allocation2 + $0xf1] sm:$0xff] %vm365_vm1, %v8879_v28  ;;  %v1856_v51 = vld [vmem:[#allocation2 + $0x21] sm:$0xff] }
  0x58   : > { %448 = vst.msk [vmem:[#allocation2 + $0x151] sm:$0xff] %vm365_vm1, %v8888_v30  ;;  %7881 = vmatmul.msk.f32.gmra.mxu2 %vm365_vm1, %v8902_v33  ;;  %v8923_v39 = vld [vmem:[#allocation2 + $0x80] sm:$0xff] }
  0x59   : > { %11603 = vst [vmem:[#allocation11_spill] sm:$0xff] %v8907_v34  ;;  %7889 = vmatmul.msk.f32.gmra.mxu3 %vm365_vm1, %v513_v35  ;;  %v8955_v45 = vld [vmem:[#allocation2 + $0xe0] sm:$0xff] }
  0x5a   : > { %425 = vst.msk [vmem:[#allocation2 + $0x39] sm:$0xff] %vm365_vm1, %v8895_v31  ;;  %7866 = vmatmul.msk.f32.gmra.mxu0 %vm365_vm1, %v8914_v37  ;;  %v514_v47 = vld [vmem:[#allocation2 + $0x140] sm:$0xff] }
  0x5b   : > { %11604 = vst [vmem:[#allocation12_spill] sm:$0xff] %v8912_v36  ;;  %v8967_v49 = vld [vmem:[#allocation2 + $0x30] sm:$0xff]  ;;  %v829_v35 = vld [vmem:[#allocation2 + $0x1] sm:$0xff] }
  0x5c   : > { %433 = vst.msk [vmem:[#allocation2 + $0x99] sm:$0xff] %vm365_vm1, %v8900_v32  ;;  %7874 = vmatmul.msk.f32.gmra.mxu1 %vm365_vm1, %v8923_v39  ;;  %v1173_v58 = vld [vmem:[#allocation2 + $0x1a] sm:$0xff] }
  0x5d   : > { %441 = vst.msk [vmem:[#allocation2 + $0xf9] sm:$0xff] %vm365_vm1, %v8907_v34  ;;  %v8973_v50 = vld [vmem:[#allocation2 + $0x90] sm:$0xff] }
  0x5e   : > { %449 = vst.msk [vmem:[#allocation2 + $0x159] sm:$0xff] %vm365_vm1, %v8912_v36  ;;  %v8996_v54 = vld [vmem:[#allocation2 + $0xf0] sm:$0xff] }
  0x5f   : > { %11605 = vst [vmem:[#allocation13_spill] sm:$0xff] %v8934_v41  ;;  %v515_v55 = vld [vmem:[#allocation2 + $0x150] sm:$0xff] }
  0x60   : > { %426 = vst.msk [vmem:[#allocation2 + $0x49] sm:$0xff] %vm365_vm1, %v8919_v38  ;;  %7882 = vmatmul.msk.f32.gmra.mxu2 %vm365_vm1, %v8955_v45 }
  0x61   : > { %11606 = vst [vmem:[#allocation14_spill] sm:$0xff] %v8941_v42  ;;  %7890 = vmatmul.msk.f32.gmra.mxu3 %vm365_vm1, %v514_v47  ;;  %v492_v56 = vld [vmem:[#allocation2 + $0x38] sm:$0xff]  ;;  %v1171_v47 = vld [vmem:[#allocation2 + $0x2] sm:$0xff] }
  0x62   : > { %434 = vst.msk [vmem:[#allocation2 + $0xa9] sm:$0xff] %vm365_vm1, %v8928_v40  ;;  %7867 = vmatmul.msk.f32.gmra.mxu0 %vm365_vm1, %v8967_v49 }
  0x63   : > { %442 = vst.msk [vmem:[#allocation2 + $0x109] sm:$0xff] %vm365_vm1, %v8934_v41  ;;  %v9000_v57 = vld [vmem:[#allocation2 + $0x98] sm:$0xff] }
  0x64   : > { %450 = vst.msk [vmem:[#allocation2 + $0x169] sm:$0xff] %vm365_vm1, %v8941_v42  ;;  %7875 = vmatmul.msk.f32.gmra.mxu1 %vm365_vm1, %v8973_v50  ;;  %v9010_v59 = vld [vmem:[#allocation2 + $0xf8] sm:$0xff] }
  0x65   : > { %11607 = vst [vmem:[#allocation15_spill] sm:$0xff] %v8960_v46  ;;  %v516_v60 = vld [vmem:[#allocation2 + $0x158] sm:$0xff] }
  0x66   : > { %427 = vst.msk [vmem:[#allocation2 + $0x51] sm:$0xff] %vm365_vm1, %v8948_v43 }
  0x67   : > { %11608 = vst [vmem:[#allocation16_spill] sm:$0xff] %v8965_v48  ;;  %v9012_v61 = vld [vmem:[#allocation2 + $0x48] sm:$0xff] }
  0x68   : > { %435 = vst.msk [vmem:[#allocation2 + $0xb1] sm:$0xff] %vm365_vm1, %v8953_v44  ;;  %7883 = vmatmul.msk.f32.gmra.mxu2 %vm365_vm1, %v8996_v54 }
  0x69   : > { %443 = vst.msk [vmem:[#allocation2 + $0x111] sm:$0xff] %vm365_vm1, %v8960_v46  ;;  %7891 = vmatmul.msk.f32.gmra.mxu3 %vm365_vm1, %v515_v55  ;;  %v9016_v62 = vld [vmem:[#allocation2 + $0xa8] sm:$0xff]  ;;  %v1857_v55 = vld [vmem:[#allocation2 + $0x31] sm:$0xff] }
  0x6a   : > { %451 = vst.msk [vmem:[#allocation2 + $0x171] sm:$0xff] %vm365_vm1, %v8965_v48  ;;  %7868 = vmatmul.msk.f32.gmra.mxu0 %vm365_vm1, %v492_v56  ;;  %v9023_v63 = vld [vmem:[#allocation2 + $0x108] sm:$0xff] }
  0x6b   : > { %v517_v0 = vld [vmem:[#allocation2 + $0x168] sm:$0xff]  ;;  %455 = vst.msk [vmem:[#allocation4] sm:$0xff] %vm454_vm3, %v11575_v1 }
  0x6c   : > { %7876 = vmatmul.msk.f32.gmra.mxu1 %vm365_vm1, %v9000_v57  ;;  %456 = vst.msk [vmem:[#allocation4 + $0x8] sm:$0xff] %vm454_vm3, %v11575_v1 }
  0x6d   : > { %v9025_v2 = vld [vmem:[#allocation2 + $0x50] sm:$0xff]  ;;  %457 = vst.msk [vmem:[#allocation4 + $0x10] sm:$0xff] %vm454_vm3, %v11575_v1 }
  0x6e   : > { %458 = vst.msk [vmem:[#allocation4 + $0x18] sm:$0xff] %vm454_vm3, %v11575_v1 }
  0x6f   : > { %v9029_v3 = vld [vmem:[#allocation2 + $0xb0] sm:$0xff]  ;;  %459 = vst.msk [vmem:[#allocation4 + $0x20] sm:$0xff] %vm454_vm3, %v11575_v1 }
  0x70   : > { %7884 = vmatmul.msk.f32.gmra.mxu2 %vm365_vm1, %v9010_v59  ;;  %v9036_v4 = vld [vmem:[#allocation2 + $0x110] sm:$0xff]  ;;  %460 = vst.msk [vmem:[#allocation4 + $0x28] sm:$0xff] %vm454_vm3, %v11575_v1 }
  0x71   : > { %7892 = vmatmul.msk.f32.gmra.mxu3 %vm365_vm1, %v516_v60  ;;  %v518_v11 = vld [vmem:[#allocation2 + $0x170] sm:$0xff]  ;;  %v1858_v60 = vld [vmem:[#allocation2 + $0x39] sm:$0xff]  ;;  %461 = vst.msk [vmem:[#allocation4 + $0x30] sm:$0xff] %vm454_vm3, %v11575_v1 }
  0x72   : > { %7869 = vmatmul.msk.f32.gmra.mxu0 %vm365_vm1, %v9012_v61  ;;  %462 = vst.msk [vmem:[#allocation4 + $0x38] sm:$0xff] %vm454_vm3, %v11575_v1 }
  0x73   : > { %463 = vst.msk [vmem:[#allocation4 + $0x40] sm:$0xff] %vm454_vm3, %v11575_v1 }
  0x74   : > { %7877 = vmatmul.msk.f32.gmra.mxu1 %vm365_vm1, %v9016_v62  ;;  %464 = vst.msk [vmem:[#allocation4 + $0x48] sm:$0xff] %vm454_vm3, %v11575_v1  ;;  %v521_v42 = vld [vmem:[#allocation4 + $0x10] sm:$0xff] }
  0x75   : > { %465 = vst.msk [vmem:[#allocation4 + $0x50] sm:$0xff] %vm454_vm3, %v11575_v1 }
  0x76   : > { %466 = vst.msk [vmem:[#allocation4 + $0x58] sm:$0xff] %vm454_vm3, %v11575_v1 }
  0x77   : > { %467 = vst.msk [vmem:[#allocation4 + $0x60] sm:$0xff] %vm454_vm3, %v11575_v1 }
  0x78   : > { %7885 = vmatmul.msk.f32.gmra.mxu2 %vm365_vm1, %v9023_v63  ;;  %468 = vst.msk [vmem:[#allocation4 + $0x68] sm:$0xff] %vm454_vm3, %v11575_v1 }
  0x79   : > { %7893 = vmatmul.msk.f32.gmra.mxu3 %vm365_vm1, %v517_v0  ;;  %469 = vst.msk [vmem:[#allocation4 + $0x70] sm:$0xff] %vm454_vm3, %v11575_v1 }
  0x7a   : > { %7870 = vmatmul.msk.f32.gmra.mxu0 %vm365_vm1, %v9025_v2  ;;  %470 = vst.msk [vmem:[#allocation4 + $0x78] sm:$0xff] %vm454_vm3, %v11575_v1 }
  0x7b   : > { %471 = vst.msk [vmem:[#allocation4 + $0x80] sm:$0xff] %vm454_vm3, %v11575_v1 }
  0x7c   : > { %7878 = vmatmul.msk.f32.gmra.mxu1 %vm365_vm1, %v9029_v3  ;;  %472 = vst.msk [vmem:[#allocation4 + $0x88] sm:$0xff] %vm454_vm3, %v11575_v1  ;;  %v529_v30 = vld [vmem:[#allocation4 + $0x50] sm:$0xff] }
  0x7d   : > { %473 = vst.msk [vmem:[#allocation4 + $0x90] sm:$0xff] %vm454_vm3, %v11575_v1 }
  0x7e   : > { %474 = vst.msk [vmem:[#allocation4 + $0x98] sm:$0xff] %vm454_vm3, %v11575_v1 }
  0x7f   : > { %475 = vst.msk [vmem:[#allocation4 + $0xa0] sm:$0xff] %vm454_vm3, %v11575_v1 }
  0x80   : > { %7886 = vmatmul.msk.f32.gmra.mxu2 %vm365_vm1, %v9036_v4  ;;  %476 = vst.msk [vmem:[#allocation4 + $0xa8] sm:$0xff] %vm454_vm3, %v11575_v1 }
  0x81   : > { %7894 = vmatmul.msk.f32.gmra.mxu3 %vm365_vm1, %v518_v11  ;;  %477 = vst.msk [vmem:[#allocation4 + $0xb0] sm:$0xff] %vm454_vm3, %v11575_v1 }
  0x82   : > { %7999 = vmatmul.msk.f32.vlgmr.msrb.gmra.mxu0 %vm365_vm1, %v1855_v25  ;;  %478 = vst.msk [vmem:[#allocation4 + $0xb8] sm:$0xff] %vm454_vm3, %v11575_v1 }
  0x83   : > { %479 = vst.msk [vmem:[#allocation4 + $0xc0] sm:$0xff] %vm454_vm3, %v11575_v1 }
  0x84   : > { %7897 = vmatmul.msk.f32.vlgmr.msrb.gmra.mxu1 %vm365_vm1, %v829_v35  ;;  %v1176_v35 = vld [vmem:[#allocation2 + $0x3a] sm:$0xff]  ;;  %480 = vst.msk [vmem:[#allocation4 + $0xc8] sm:$0xff] %vm454_vm3, %v11575_v1 }
  0x85   : > { %481 = vst.msk [vmem:[#allocation4 + $0xd0] sm:$0xff] %vm454_vm3, %v11575_v1 }
  0x86   : > { %482 = vst.msk [vmem:[#allocation4 + $0xd8] sm:$0xff] %vm454_vm3, %v11575_v1 }
  0x87   : > { %483 = vst.msk [vmem:[#allocation4 + $0xe0] sm:$0xff] %vm454_vm3, %v11575_v1 }
  0x88   : > { %7931 = vmatmul.msk.f32.vlgmr.msrb.gmra.mxu2 %vm365_vm1, %v1171_v47  ;;  %v1177_v47 = vld [vmem:[#allocation2 + $0x4a] sm:$0xff]  ;;  %484 = vst.msk [vmem:[#allocation4 + $0xe8] sm:$0xff] %vm454_vm3, %v11575_v1 }
  0x89   : > { %7965 = vmatmul.msk.f32.vlgmr.msrb.gmra.mxu3 %vm365_vm1, %v8874_v27  ;;  %v1174_v27 = vld [vmem:[#allocation2 + $0x22] sm:$0xff]  ;;  %485 = vst.msk [vmem:[#allocation4 + $0xf0] sm:$0xff] %vm454_vm3, %v11575_v1 }
  0x8a   : > { %8000 = vmatmul.msk.f32.gmra.mxu0 %vm365_vm1, %v1856_v51  ;;  %486 = vst.msk [vmem:[#allocation4 + $0xf8] sm:$0xff] %vm454_vm3, %v11575_v1 }
  0x8b   : > { %3730 = vst.msk [vmem:[#allocation3] sm:$0xff] %vm454_vm3, %v11575_v1 }
  0x8c   : > { %7898 = vmatmul.msk.f32.gmra.mxu1 %vm365_vm1, %v830_v52  ;;  %3731 = vst.msk [vmem:[#allocation3 + $0x8] sm:$0xff] %vm454_vm3, %v11575_v1 }
  0x8d   : > { %3734 = vst.msk [vmem:[#allocation3 + $0x18] sm:$0xff] %vm454_vm3, %v11575_v1 }
  0x8e   : > { %3735 = vst.msk [vmem:[#allocation3 + $0x20] sm:$0xff] %vm454_vm3, %v11575_v1 }
  0x8f   : > { %3737 = vst.msk [vmem:[#allocation3 + $0x30] sm:$0xff] %vm454_vm3, %v11575_v1 }
  0x90   : > { %7932 = vmatmul.msk.f32.gmra.mxu2 %vm365_vm1, %v1172_v53  ;;  %3738 = vst.msk [vmem:[#allocation3 + $0x38] sm:$0xff] %vm454_vm3, %v11575_v1 }
  0x91   : > { %7966 = vmatmul.msk.f32.gmra.mxu3 %vm365_vm1, %v8914_v37  ;;  %v1859_v37 = vld [vmem:[#allocation2 + $0x49] sm:$0xff]  ;;  %v669_v0 = vpop.f32.mrf.mxu0  ;;  %3740 = vst.msk [vmem:[#allocation3 + $0x48] sm:$0xff] %vm454_vm3, %v11575_v1 }
  0x92   : > { %8001 = vmatmul.msk.f32.gmra.mxu0 %vm365_vm1, %v1857_v55  ;;  %3741 = vst.msk [vmem:[#allocation3 + $0x50] sm:$0xff] %vm454_vm3, %v11575_v1 }
  0x93   : > { %3743 = vst.msk [vmem:[#allocation3 + $0x60] sm:$0xff] %vm454_vm3, %v11575_v1 }
  0x94   : > { %7899 = vmatmul.msk.f32.gmra.mxu1 %vm365_vm1, %v1855_v25  ;;  %v1860_v25 = vld [vmem:[#allocation2 + $0x51] sm:$0xff]  ;;  %3744 = vst.msk [vmem:[#allocation3 + $0x68] sm:$0xff] %vm454_vm3, %v11575_v1 }
  0x95   : > { %3746 = vst.msk [vmem:[#allocation3 + $0x78] sm:$0xff] %vm454_vm3, %v11575_v1 }
  0x96   : > { %3747 = vst.msk [vmem:[#allocation3 + $0x80] sm:$0xff] %vm454_vm3, %v11575_v1 }
  0x97   : > { %3749 = vst.msk [vmem:[#allocation3 + $0x90] sm:$0xff] %vm454_vm3, %v11575_v1 }
  0x98   : > { %7933 = vmatmul.msk.f32.gmra.mxu2 %vm365_vm1, %v1173_v58  ;;  %3750 = vst.msk [vmem:[#allocation3 + $0x98] sm:$0xff] %vm454_vm3, %v11575_v1 }
  0x99   : > { %7967 = vmatmul.msk.f32.gmra.mxu3 %vm365_vm1, %v8967_v49  ;;  %v519_v49 = vld [vmem:[#allocation4] sm:$0xff]  ;;  %3752 = vst.msk [vmem:[#allocation3 + $0xa8] sm:$0xff] %vm454_vm3, %v11575_v1 }
  0x9a   : > { %8002 = vmatmul.msk.f32.gmra.mxu0 %vm365_vm1, %v1858_v60  ;;  %v765_v11 = vadd.f32 %v669_v0, %v519_v49  ;;  %3753 = vst.msk [vmem:[#allocation3 + $0xb0] sm:$0xff] %vm454_vm3, %v11575_v1 }
  0x9b   : > { %3755 = vst.msk [vmem:[#allocation3 + $0xc0] sm:$0xff] %vm454_vm3, %v11575_v1 }
  0x9c   : > { %7900 = vmatmul.msk.f32.gmra.mxu1 %vm365_vm1, %v1856_v51  ;;  %797 = vst.msk [vmem:[#allocation4] sm:$0xff] %vm454_vm3, %v765_v11  ;;  %v1863_v51 = vld [vmem:[#allocation2 + $0x79] sm:$0xff] }
  0x9d   : > { %3756 = vst.msk [vmem:[#allocation3 + $0xc8] sm:$0xff] %vm454_vm3, %v11575_v1  ;;  %v1866_v11 = vld [vmem:[#allocation2 + $0x99] sm:$0xff] }
  0x9e   : > { %3758 = vst.msk [vmem:[#allocation3 + $0xd8] sm:$0xff] %vm454_vm3, %v11575_v1 }
  0x9f   : > { %3759 = vst.msk [vmem:[#allocation3 + $0xe0] sm:$0xff] %vm454_vm3, %v11575_v1 }
  0xa0   : > { %7934 = vmatmul.msk.f32.gmra.mxu2 %vm365_vm1, %v1174_v27  ;;  %3761 = vst.msk [vmem:[#allocation3 + $0xf0] sm:$0xff] %vm454_vm3, %v11575_v1 }
  0xa1   : > { %7968 = vmatmul.msk.f32.gmra.mxu3 %vm365_vm1, %v492_v56  ;;  %v1175_v56 = vld [vmem:[#allocation2 + $0x32] sm:$0xff]  ;;  %3762 = vst.msk [vmem:[#allocation3 + $0xf8] sm:$0xff] %vm454_vm3, %v11575_v1 }
  0xa2   : > { %8003 = vmatmul.msk.f32.gmra.mxu0 %vm365_vm1, %v1859_v37  ;;  %3764 = vst.msk [vmem:[#allocation3 + $0x108] sm:$0xff] %vm454_vm3, %v11575_v1 }
  0xa3   : > { %3765 = vst.msk [vmem:[#allocation3 + $0x110] sm:$0xff] %vm454_vm3, %v11575_v1 }
  0xa4   : > { %7901 = vmatmul.msk.f32.gmra.mxu1 %vm365_vm1, %v1857_v55  ;;  %3767 = vst.msk [vmem:[#allocation3 + $0x120] sm:$0xff] %vm454_vm3, %v11575_v1 }
  0xa5   : > { %3768 = vst.msk [vmem:[#allocation3 + $0x128] sm:$0xff] %vm454_vm3, %v11575_v1 }
  0xa6   : > { %3770 = vst.msk [vmem:[#allocation3 + $0x138] sm:$0xff] %vm454_vm3, %v11575_v1 }
  0xa7   : > { %3771 = vst.msk [vmem:[#allocation3 + $0x140] sm:$0xff] %vm454_vm3, %v11575_v1 }
  0xa8   : > { %7935 = vmatmul.msk.f32.gmra.mxu2 %vm365_vm1, %v1175_v56  ;;  %3773 = vst.msk [vmem:[#allocation3 + $0x150] sm:$0xff] %vm454_vm3, %v11575_v1 }
  0xa9   : > { %7969 = vmatmul.msk.f32.gmra.mxu3 %vm365_vm1, %v9012_v61  ;;  %v1861_v61 = vld [vmem:[#allocation2 + $0x61] sm:$0xff]  ;;  %3774 = vst.msk [vmem:[#allocation3 + $0x158] sm:$0xff] %vm454_vm3, %v11575_v1 }
  0xaa   : > { %8004 = vmatmul.msk.f32.gmra.mxu0 %vm365_vm1, %v1860_v25  ;;  %3776 = vst.msk [vmem:[#allocation3 + $0x168] sm:$0xff] %vm454_vm3, %v11575_v1 }
  0xab   : > { %3777 = vst.msk [vmem:[#allocation3 + $0x170] sm:$0xff] %vm454_vm3, %v11575_v1 }
  0xac   : > { %7902 = vmatmul.msk.f32.gmra.mxu1 %vm365_vm1, %v1858_v60  ;;  %3779 = vst.msk [vmem:[#allocation3 + $0x180] sm:$0xff] %vm454_vm3, %v11575_v1  ;;  %v1865_v60 = vld [vmem:[#allocation2 + $0x91] sm:$0xff] }
  0xad   : > { %3780 = vst.msk [vmem:[#allocation3 + $0x188] sm:$0xff] %vm454_vm3, %v11575_v1 }
  0xae   : > { %3782 = vst.msk [vmem:[#allocation3 + $0x198] sm:$0xff] %vm454_vm3, %v11575_v1 }
  0xaf   : > { %3783 = vst.msk [vmem:[#allocation3 + $0x1a0] sm:$0xff] %vm454_vm3, %v11575_v1 }
  0xb0   : > { %7936 = vmatmul.msk.f32.gmra.mxu2 %vm365_vm1, %v1176_v35  ;;  %3818 = vst.msk [vmem:[#allocation5] sm:$0xff] %vm454_vm3, %v11575_v1 }
  0xb1   : > { %7970 = vmatmul.msk.f32.gmra.mxu3 %vm365_vm1, %v9025_v2  ;;  %v1862_v2 = vld [vmem:[#allocation2 + $0x69] sm:$0xff]  ;;  %3819 = vst.msk [vmem:[#allocation5 + $0x8] sm:$0xff] %vm454_vm3, %v11575_v1 }
  0xb2   : > { %8005 = vmatmul.msk.f32.gmra.mxu0 %vm365_vm1, %v1861_v61  ;;  %3820 = vst.msk [vmem:[#allocation5 + $0x10] sm:$0xff] %vm454_vm3, %v11575_v1 }
  0xb3   : > { %3821 = vst.msk [vmem:[#allocation5 + $0x18] sm:$0xff] %vm454_vm3, %v11575_v1 }
  0xb4   : > { %7903 = vmatmul.msk.f32.gmra.mxu1 %vm365_vm1, %v1859_v37  ;;  %3822 = vst.msk [vmem:[#allocation5 + $0x20] sm:$0xff] %vm454_vm3, %v11575_v1 }
  0xb5   : > { %3823 = vst.msk [vmem:[#allocation5 + $0x28] sm:$0xff] %vm454_vm3, %v11575_v1 }
  0xb6   : > { %3824 = vst.msk [vmem:[#allocation5 + $0x30] sm:$0xff] %vm454_vm3, %v11575_v1 }
  0xb7   : > { %3825 = vst.msk [vmem:[#allocation5 + $0x38] sm:$0xff] %vm454_vm3, %v11575_v1 }
  0xb8   : > { %7937 = vmatmul.msk.f32.gmra.mxu2 %vm365_vm1, %v1177_v47  ;;  %3826 = vst.msk [vmem:[#allocation5 + $0x40] sm:$0xff] %vm454_vm3, %v11575_v1 }
  0xb9   : > { %7971 = vmatmul.msk.f32.gmra.mxu3 %vm365_vm1, %v8772_v9  ;;  %v1178_v9 = vld [vmem:[#allocation2 + $0x52] sm:$0xff]  ;;  %3827 = vst.msk [vmem:[#allocation5 + $0x48] sm:$0xff] %vm454_vm3, %v11575_v1 }
  0xba   : > { %8006 = vmatmul.msk.f32.gmra.mxu0 %vm365_vm1, %v1862_v2  ;;  %3828 = vst.msk [vmem:[#allocation5 + $0x50] sm:$0xff] %vm454_vm3, %v11575_v1 }
  0xbb   : > { %3829 = vst.msk [vmem:[#allocation5 + $0x58] sm:$0xff] %vm454_vm3, %v11575_v1 }
  0xbc   : > { %7904 = vmatmul.msk.f32.gmra.mxu1 %vm365_vm1, %v1860_v25  ;;  %3830 = vst.msk [vmem:[#allocation5 + $0x60] sm:$0xff] %vm454_vm3, %v11575_v1  ;;  %v8065_v25 = vld [vmem:[%s11562_s1 + $0x18] sm:$0xf] }
  0xbd   : > { %v9236_v52 = vpop.f32.mrf.mxu2  ;;  %3831 = vst.msk [vmem:[#allocation5 + $0x68] sm:$0xff] %vm454_vm3, %v11575_v1  ;;  %8066 = vmatpush.msk.msra.mxu2 %vm648_vm0, %v8065_v25 }
  0xbe   : > { %v9243_v53 = vpop.f32.mrf.mxu3  ;;  %3832 = vst.msk [vmem:[#allocation5 + $0x70] sm:$0xff] %vm454_vm3, %v11575_v1 }
  0xbf   : > { %3833 = vst.msk [vmem:[#allocation5 + $0x78] sm:$0xff] %vm454_vm3, %v11575_v1 }
  0xc0   : > { %7938 = vmatmul.msk.f32.gmra.mxu2 %vm365_vm1, %v1178_v9  ;;  %3834 = vst.msk [vmem:[#allocation5 + $0x80] sm:$0xff] %vm454_vm3, %v11575_v1  ;;  %v8099_v9 = vld [vmem:[%s11562_s1 + $0x1c] sm:$0xf] }
  0xc1   : > { %7972 = vmatmul.msk.f32.gmra.mxu3 %vm365_vm1, %v8793_v12  ;;  %v9213_v12 = vpop.f32.mrf.mxu1  ;;  %3835 = vst.msk [vmem:[#allocation5 + $0x88] sm:$0xff] %vm454_vm3, %v11575_v1 }
  0xc2   : > { %8007 = vmatmul.msk.f32.gmra.mxu0 %vm365_vm1, %v1863_v51  ;;  %3836 = vst.msk [vmem:[#allocation5 + $0x90] sm:$0xff] %vm454_vm3, %v11575_v1  ;;  %8100 = vmatpush.msk.msra.mxu3 %vm648_vm0, %v8099_v9  ;;  %v1183_v9 = vld [vmem:[#allocation2 + $0x92] sm:$0xff] }
  0xc3   : > { %3837 = vst.msk [vmem:[#allocation5 + $0x98] sm:$0xff] %vm454_vm3, %v11575_v1 }
  0xc4   : > { %7905 = vmatmul.msk.f32.gmra.mxu1 %vm365_vm1, %v1861_v61  ;;  %3838 = vst.msk [vmem:[#allocation5 + $0xa0] sm:$0xff] %vm454_vm3, %v11575_v1 }
  0xc5   : > { %3839 = vst.msk [vmem:[#allocation5 + $0xa8] sm:$0xff] %vm454_vm3, %v11575_v1 }
  0xc6   : > { %3840 = vst.msk [vmem:[#allocation5 + $0xb0] sm:$0xff] %vm454_vm3, %v11575_v1 }
  0xc7   : > { %3841 = vst.msk [vmem:[#allocation5 + $0xb8] sm:$0xff] %vm454_vm3, %v11575_v1 }
  0xc8   : > { %3842 = vst.msk [vmem:[#allocation5 + $0xc0] sm:$0xff] %vm454_vm3, %v11575_v1 }
  0xc9   : > { %7973 = vmatmul.msk.f32.gmra.mxu3 %vm365_vm1, %v8883_v29  ;;  %v9229_v29 = vpop.f32.mrf.mxu0  ;;  %v9248_v55 = vpop.f32.mrf.mxu1  ;;  %3843 = vst.msk [vmem:[#allocation5 + $0xc8] sm:$0xff] %vm454_vm3, %v11575_v1 }
  0xca   : > { %3844 = vst.msk [vmem:[#allocation5 + $0xd0] sm:$0xff] %vm454_vm3, %v11575_v1 }
  0xcb   : > { %3845 = vst.msk [vmem:[#allocation5 + $0xd8] sm:$0xff] %vm454_vm3, %v11575_v1 }
  0xcc   : > { %7906 = vmatmul.msk.f32.gmra.mxu1 %vm365_vm1, %v1862_v2  ;;  %v1867_v2 = vld [vmem:[#allocation2 + $0xa9] sm:$0xff]  ;;  %3846 = vst.msk [vmem:[#allocation5 + $0xe0] sm:$0xff] %vm454_vm3, %v11575_v1 }
  0xcd   : > { %3847 = vst.msk [vmem:[#allocation5 + $0xe8] sm:$0xff] %vm454_vm3, %v11575_v1 }
  0xce   : > { %3848 = vst.msk [vmem:[#allocation5 + $0xf0] sm:$0xff] %vm454_vm3, %v11575_v1 }
  0xcf   : > { %3849 = vst.msk [vmem:[#allocation5 + $0xf8] sm:$0xff] %vm454_vm3, %v11575_v1 }
  0xd1   : > { %7974 = vmatmul.msk.f32.gmra.mxu3 %vm365_vm1, %v8923_v39  ;;  %v1179_v39 = vld [vmem:[#allocation2 + $0x62] sm:$0xff]  ;;  %v9258_v58 = vpop.f32.mrf.mxu0  ;;  %v9277_v49 = vpop.f32.mrf.mxu1 }
  0xd2   : > { %7939 = vmatmul.msk.f32.gmra.mxu2 %vm365_vm1, %v1179_v39 }
  0xd3   : > { %v9265_v27 = vpop.f32.mrf.mxu2 }
  0xd4   : > { %7907 = vmatmul.msk.f32.gmra.mxu1 %vm365_vm1, %v1863_v51  ;;  %v9272_v37 = vpop.f32.mrf.mxu3  ;;  %v527_v51 = vld [vmem:[#allocation4 + $0x40] sm:$0xff] }
  0xd9   : > { %7975 = vmatmul.msk.f32.gmra.mxu3 %vm365_vm1, %v8973_v50  ;;  %v1864_v50 = vld [vmem:[#allocation2 + $0x81] sm:$0xff]  ;;  %v9287_v0 = vpop.f32.mrf.mxu0  ;;  %v9309_v61 = vpop.f32.mrf.mxu1 }
  0xda   : > { %8008 = vmatmul.msk.f32.gmra.mxu0 %vm365_vm1, %v1864_v50 }
  0xdb   : > { %v9294_v56 = vpop.f32.mrf.mxu2 }
  0xdc   : > { %7908 = vmatmul.msk.f32.gmra.mxu1 %vm365_vm1, %v1864_v50  ;;  %v9304_v35 = vpop.f32.mrf.mxu3  ;;  %v520_v50 = vld [vmem:[#allocation4 + $0x8] sm:$0xff] }
  0xdd   : > { %v766_v25 = vadd.f32 %v9229_v29, %v520_v50  ;;  %v1868_v29 = vld [vmem:[#allocation2 + $0xb1] sm:$0xff] }
  0xdf   : > { %798 = vst.msk [vmem:[#allocation4 + $0x8] sm:$0xff] %vm454_vm3, %v766_v25  ;;  %v537_v25 = vld [vmem:[#allocation4 + $0x90] sm:$0xff] }
  0xe1   : > { %7976 = vmatmul.msk.f32.gmra.mxu3 %vm365_vm1, %v9000_v57  ;;  %v1180_v57 = vld [vmem:[#allocation2 + $0x6a] sm:$0xff]  ;;  %v9320_v47 = vpop.f32.mrf.mxu0 }
  0xe2   : > { %7940 = vmatmul.msk.f32.gmra.mxu2 %vm365_vm1, %v1180_v57  ;;  %8009 = vmatmul.msk.f32.gmra.mxu0 %vm365_vm1, %v1865_v60 }
  0xe3   : > { %v9331_v39 = vpop.f32.mrf.mxu2 }
  0xe4   : > { %7909 = vmatmul.msk.f32.gmra.mxu1 %vm365_vm1, %v1865_v60  ;;  %v9338_v57 = vpop.f32.mrf.mxu3  ;;  %v535_v60 = vld [vmem:[#allocation4 + $0x80] sm:$0xff] }
  0xe5   : > { %v781_v48 = vadd.f32 %v9236_v52, %v535_v60  ;;  %v544_v52 = vld [vmem:[#allocation4 + $0xc8] sm:$0xff]  ;;  %v767_v60 = vadd.f32 %v9258_v58, %v521_v42  ;;  %v545_v42 = vld [vmem:[#allocation4 + $0xd0] sm:$0xff]  ;;  %v530_v58 = vld [vmem:[#allocation4 + $0x58] sm:$0xff] }
  0xe7   : > { %813 = vst.msk [vmem:[#allocation4 + $0x80] sm:$0xff] %vm454_vm3, %v781_v48 }
  0xe8   : > { %799 = vst.msk [vmem:[#allocation4 + $0x10] sm:$0xff] %vm454_vm3, %v767_v60 }
  0xe9   : > { %7977 = vmatmul.msk.f32.gmra.mxu3 %vm365_vm1, %v9016_v62  ;;  %v1181_v62 = vld [vmem:[#allocation2 + $0x7a] sm:$0xff]  ;;  %v684_v36 = vpop.f32.mrf.mxu0 }
  0xea   : > { %7941 = vmatmul.msk.f32.gmra.mxu2 %vm365_vm1, %v1181_v62  ;;  %8010 = vmatmul.msk.f32.gmra.mxu0 %vm365_vm1, %v1866_v11  ;;  %v9342_v62 = vpop.f32.mrf.mxu1 }
  0xeb   : > { %v729_v1 = vpop.f32.mrf.mxu2 }
  0xec   : > { %7910 = vmatmul.msk.f32.gmra.mxu1 %vm365_vm1, %v1866_v11  ;;  %v543_v11 = vld [vmem:[#allocation4 + $0xc0] sm:$0xff] }
  0xf1   : > { %7978 = vmatmul.msk.f32.gmra.mxu3 %vm365_vm1, %v9029_v3  ;;  %v1182_v3 = vld [vmem:[#allocation2 + $0x82] sm:$0xff] }
  0xf2   : > { %7942 = vmatmul.msk.f32.gmra.mxu2 %vm365_vm1, %v1182_v3  ;;  %8011 = vmatmul.msk.f32.gmra.mxu0 %vm365_vm1, %v1867_v2  ;;  %v528_v3 = vld [vmem:[#allocation4 + $0x48] sm:$0xff] }
  0xf3   : > { %v774_v50 = vadd.f32 %v9248_v55, %v528_v3  ;;  %v753_v55 = vpop.f32.mrf.mxu3  ;;  %v708_v3 = vpop.f32.mrf.mxu1 }
  0xf4   : > { %7911 = vmatmul.msk.f32.gmra.mxu1 %vm365_vm1, %v1867_v2  ;;  %v8133_v2 = vld [vmem:[%s11562_s1 + $0x20] sm:$0xf] }
  0xf5   : > { %8134 = vmatpush.msk.msra.mxu0 %vm648_vm0, %v8133_v2  ;;  %806 = vst.msk [vmem:[#allocation4 + $0x48] sm:$0xff] %vm454_vm3, %v774_v50  ;;  %v791_v2 = vadd.f32 %v9304_v35, %v545_v42  ;;  %v732_v50 = vpop.f32.mrf.mxu2  ;;  %v525_v42 = vld [vmem:[#allocation4 + $0x30] sm:$0xff] }
  0xf7   : > { %823 = vst.msk [vmem:[#allocation4 + $0xd0] sm:$0xff] %vm454_vm3, %v791_v2 }
  0xf9   : > { %7979 = vmatmul.msk.f32.gmra.mxu3 %vm365_vm1, %v8778_v10  ;;  %v773_v10 = vadd.f32 %v9213_v12, %v527_v51  ;;  %v789_v12 = vadd.f32 %v9243_v53, %v543_v11  ;;  %v536_v51 = vld [vmem:[#allocation4 + $0x88] sm:$0xff]  ;;  %v522_v11 = vld [vmem:[#allocation4 + $0x18] sm:$0xff] }
  0xfa   : > { %7943 = vmatmul.msk.f32.gmra.mxu2 %vm365_vm1, %v1183_v9  ;;  %v782_v53 = vadd.f32 %v9265_v27, %v536_v51  ;;  %8012 = vmatmul.msk.f32.gmra.mxu0 %vm365_vm1, %v1868_v29  ;;  %v768_v48 = vadd.f32 %v9287_v0, %v522_v11  ;;  %v1184_v27 = vld [vmem:[#allocation2 + $0x9a] sm:$0xff]  ;;  %v783_v9 = vadd.f32 %v9294_v56, %v537_v25  ;;  %v687_v51 = vpop.f32.mrf.mxu0  ;;  %v1185_v25 = vld [vmem:[#allocation2 + $0xaa] sm:$0xff] }
  0xfb   : > { %805 = vst.msk [vmem:[#allocation4 + $0x40] sm:$0xff] %vm454_vm3, %v773_v10  ;;  %v790_v10 = vadd.f32 %v9272_v37, %v544_v52  ;;  %v523_v37 = vld [vmem:[#allocation4 + $0x20] sm:$0xff]  ;;  %v524_v52 = vld [vmem:[#allocation4 + $0x28] sm:$0xff]  ;;  %v711_v11 = vpop.f32.mrf.mxu1 }
  0xfc   : > { %821 = vst.msk [vmem:[#allocation4 + $0xc0] sm:$0xff] %vm454_vm3, %v789_v12  ;;  %7912 = vmatmul.msk.f32.gmra.mxu1 %vm365_vm1, %v1868_v29  ;;  %v538_v12 = vld [vmem:[#allocation4 + $0x98] sm:$0xff]  ;;  %v1869_v29 = vld [vmem:[#allocation2 + $0xc1] sm:$0xff]  ;;  %v769_v0 = vadd.f32 %v9320_v47, %v523_v37  ;;  %v533_v37 = vld [vmem:[#allocation4 + $0x70] sm:$0xff] }
  0xfd   : > { %814 = vst.msk [vmem:[#allocation4 + $0x88] sm:$0xff] %vm454_vm3, %v782_v53  ;;  %v531_v56 = vld [vmem:[#allocation4 + $0x60] sm:$0xff]  ;;  %v784_v35 = vadd.f32 %v9331_v39, %v538_v12  ;;  %v770_v39 = vadd.f32 %v684_v36, %v524_v52  ;;  %v771_v36 = vadd.f32 %v687_v51, %v525_v42  ;;  %v735_v2 = vpop.f32.mrf.mxu2  ;;  %v779_v51 = vadd.f32 %v711_v11, %v533_v37  ;;  %v550_v11 = vld [vmem:[#allocation4 + $0xf8] sm:$0xff]  ;;  %v1188_v37 = vld [vmem:[#allocation2 + $0xca] sm:$0xff] }
  0xfe   : > { %822 = vst.msk [vmem:[#allocation4 + $0xc8] sm:$0xff] %vm454_vm3, %v790_v10  ;;  %v539_v53 = vld [vmem:[#allocation4 + $0xa0] sm:$0xff]  ;;  %v532_v10 = vld [vmem:[#allocation4 + $0x68] sm:$0xff] }
  0xff   : > { %800 = vst.msk [vmem:[#allocation4 + $0x18] sm:$0xff] %vm454_vm3, %v768_v48  ;;  %v547_v47 = vld [vmem:[#allocation4 + $0xe0] sm:$0xff]  ;;  %v540_v48 = vld [vmem:[#allocation4 + $0xa8] sm:$0xff] }
 0x100   : > { %815 = vst.msk [vmem:[#allocation4 + $0x90] sm:$0xff] %vm454_vm3, %v783_v9  ;;  %v778_v9 = vadd.f32 %v708_v3, %v532_v10 }
 0x101   : > { %7980 = vmatmul.msk.f32.gmra.mxu3 %vm365_vm1, %v8859_v23  ;;  %v775_v23 = vadd.f32 %v9277_v49, %v529_v30  ;;  %v776_v30 = vadd.f32 %v9309_v61, %v530_v58  ;;  %v546_v49 = vld [vmem:[#allocation4 + $0xd8] sm:$0xff]  ;;  %v756_v61 = vpop.f32.mrf.mxu3  ;;  %801 = vst.msk [vmem:[#allocation4 + $0x20] sm:$0xff] %vm454_vm3, %v769_v0 }
 0x102   : > { %7944 = vmatmul.msk.f32.gmra.mxu2 %vm365_vm1, %v1184_v27  ;;  %8013 = vmatmul.msk.f32.gmra.mxu0 %vm365_vm1, %v1869_v29  ;;  %v792_v60 = vadd.f32 %v9338_v57, %v546_v49  ;;  %816 = vst.msk [vmem:[#allocation4 + $0x98] sm:$0xff] %vm454_vm3, %v784_v35  ;;  %v793_v57 = vadd.f32 %v753_v55, %v547_v47  ;;  %v690_v58 = vpop.f32.mrf.mxu0  ;;  %v1870_v27 = vld [vmem:[#allocation2 + $0xc9] sm:$0xff]  ;;  %v526_v55 = vld [vmem:[#allocation4 + $0x38] sm:$0xff]  ;;  %v861_v47 = vld [vmem:[#allocation4] sm:$0xff] }
 0x103   : > { %807 = vst.msk [vmem:[#allocation4 + $0x50] sm:$0xff] %vm454_vm3, %v775_v23  ;;  %v785_v23 = vadd.f32 %v729_v1, %v539_v53  ;;  %v786_v1 = vadd.f32 %v732_v50, %v540_v48  ;;  %v549_v49 = vld [vmem:[#allocation4 + $0xf0] sm:$0xff]  ;;  %v534_v0 = vld [vmem:[#allocation4 + $0x78] sm:$0xff]  ;;  %v1872_v48 = vld [vmem:[#allocation2 + $0xe1] sm:$0xff] }
 0x104   : > { %7913 = vmatmul.msk.f32.gmra.mxu1 %vm365_vm1, %v1869_v29  ;;  %808 = vst.msk [vmem:[#allocation4 + $0x58] sm:$0xff] %vm454_vm3, %v776_v30  ;;  %v541_v29 = vld [vmem:[#allocation4 + $0xb0] sm:$0xff]  ;;  %v714_v30 = vpop.f32.mrf.mxu1 }
 0x105   : > { %824 = vst.msk [vmem:[#allocation4 + $0xd8] sm:$0xff] %vm454_vm3, %v792_v60  ;;  %v787_v50 = vadd.f32 %v735_v2, %v541_v29  ;;  %v542_v60 = vld [vmem:[#allocation4 + $0xb8] sm:$0xff]  ;;  %v780_v53 = vadd.f32 %v714_v30, %v534_v0 }
 0x106   : > { %802 = vst.msk [vmem:[#allocation4 + $0x28] sm:$0xff] %vm454_vm3, %v770_v39 }
 0x107   : > { %817 = vst.msk [vmem:[#allocation4 + $0xa0] sm:$0xff] %vm454_vm3, %v785_v23 }
 0x108   : > { %825 = vst.msk [vmem:[#allocation4 + $0xe0] sm:$0xff] %vm454_vm3, %v793_v57  ;;  %v1187_v57 = vld [vmem:[#allocation2 + $0xc2] sm:$0xff] }
 0x109   : > { %7981 = vmatmul.msk.f32.gmra.mxu3 %vm365_vm1, %v8902_v33  ;;  %v777_v33 = vadd.f32 %v9342_v62, %v531_v56  ;;  %v548_v62 = vld [vmem:[#allocation4 + $0xe8] sm:$0xff]  ;;  %v759_v12 = vpop.f32.mrf.mxu3  ;;  %810 = vst.msk [vmem:[#allocation4 + $0x68] sm:$0xff] %vm454_vm3, %v778_v9  ;;  %v1186_v56 = vld [vmem:[#allocation2 + $0xb2] sm:$0xff] }
 0x10a   : > { %7945 = vmatmul.msk.f32.gmra.mxu2 %vm365_vm1, %v1185_v25  ;;  %8014 = vmatmul.msk.f32.gmra.mxu0 %vm365_vm1, %v1870_v27  ;;  %v794_v3 = vadd.f32 %v756_v61, %v548_v62  ;;  %803 = vst.msk [vmem:[#allocation4 + $0x30] sm:$0xff] %vm454_vm3, %v771_v36  ;;  %v795_v35 = vadd.f32 %v759_v12, %v549_v49  ;;  %v9413_v52 = vpop.f32.mrf.mxu0  ;;  %v1871_v61 = vld [vmem:[#allocation2 + $0xd9] sm:$0xff]  ;;  %v1873_v12 = vld [vmem:[#allocation2 + $0xf1] sm:$0xff] }
 0x10b   : > { %809 = vst.msk [vmem:[#allocation4 + $0x60] sm:$0xff] %vm454_vm3, %v777_v33  ;;  %v738_v33 = vpop.f32.mrf.mxu2 }
 0x10c   : > { %7914 = vmatmul.msk.f32.gmra.mxu1 %vm365_vm1, %v1870_v27  ;;  %818 = vst.msk [vmem:[#allocation4 + $0xa8] sm:$0xff] %vm454_vm3, %v786_v1  ;;  %v788_v39 = vadd.f32 %v738_v33, %v542_v60  ;;  %v1011_v23 = vpop.f32.mrf.mxu1  ;;  %v862_v27 = vld [vmem:[#allocation4 + $0x8] sm:$0xff]  ;;  %v864_v60 = vld [vmem:[#allocation4 + $0x18] sm:$0xff] }
 0x10d   : > { %826 = vst.msk [vmem:[#allocation4 + $0xe8] sm:$0xff] %vm454_vm3, %v794_v3  ;;  %v1107_v42 = vadd.f32 %v1011_v23, %v861_v47  ;;  %v863_v3 = vld [vmem:[#allocation4 + $0x10] sm:$0xff] }
 0x10e   : > { %811 = vst.msk [vmem:[#allocation4 + $0x70] sm:$0xff] %vm454_vm3, %v779_v51 }
 0x10f   : > { %819 = vst.msk [vmem:[#allocation4 + $0xb0] sm:$0xff] %vm454_vm3, %v787_v50  ;;  %v1874_v50 = vld [vmem:[#allocation2 + $0xf9] sm:$0xff] }
 0x110   : > { %827 = vst.msk [vmem:[#allocation4 + $0xf0] sm:$0xff] %vm454_vm3, %v795_v35 }
 0x111   : > { %7982 = vmatmul.msk.f32.gmra.mxu3 %vm365_vm1, %v8955_v45  ;;  %v772_v45 = vadd.f32 %v690_v58, %v526_v55  ;;  %v762_v10 = vpop.f32.mrf.mxu3  ;;  %812 = vst.msk [vmem:[#allocation4 + $0x78] sm:$0xff] %vm454_vm3, %v780_v53 }
 0x112   : > { %7946 = vmatmul.msk.f32.gmra.mxu2 %vm365_vm1, %v1186_v56  ;;  %8015 = vmatmul.msk.f32.gmra.mxu0 %vm365_vm1, %v1871_v61  ;;  %v796_v25 = vadd.f32 %v762_v10, %v550_v11  ;;  %820 = vst.msk [vmem:[#allocation4 + $0xb8] sm:$0xff] %vm454_vm3, %v788_v39  ;;  %v1190_v39 = vld [vmem:[#allocation2 + $0xe2] sm:$0xff] }
 0x113   : > { %804 = vst.msk [vmem:[#allocation4 + $0x38] sm:$0xff] %vm454_vm3, %v772_v45  ;;  %v1353_v58 = vpop.f32.mrf.mxu2  ;;  %v1189_v45 = vld [vmem:[#allocation2 + $0xda] sm:$0xff] }
 0x114   : > { %7915 = vmatmul.msk.f32.gmra.mxu1 %vm365_vm1, %v1871_v61  ;;  %828 = vst.msk [vmem:[#allocation4 + $0xf8] sm:$0xff] %vm454_vm3, %v796_v25  ;;  %v1014_v62 = vpop.f32.mrf.mxu1 }
 0x115   : > { %1139 = vst.msk [vmem:[#allocation4] sm:$0xff] %vm454_vm3, %v1107_v42  ;;  %v1108_v36 = vadd.f32 %v1014_v62, %v862_v27  ;;  %v1875_v42 = vld [vmem:[#allocation2 + $0x109] sm:$0xff]  ;;  %v1535_v27 = vld [vmem:[#allocation2 + $0x120] sm:$0xff] }
 0x117   : > { %1140 = vst.msk [vmem:[#allocation4 + $0x8] sm:$0xff] %vm454_vm3, %v1108_v36 }
 0x119   : > { %7983 = vmatmul.msk.f32.gmra.mxu3 %vm365_vm1, %v8996_v54  ;;  %v9428_v54 = vpop.f32.mrf.mxu0  ;;  %v1695_v9 = vpop.f32.mrf.mxu3 }
 0x11a   : > { %7947 = vmatmul.msk.f32.gmra.mxu2 %vm365_vm1, %v1187_v57  ;;  %8016 = vmatmul.msk.f32.gmra.mxu0 %vm365_vm1, %v1872_v48 }
 0x11c   : > { %7916 = vmatmul.msk.f32.gmra.mxu1 %vm365_vm1, %v1872_v48  ;;  %v1203_v2 = vld [vmem:[#allocation4] sm:$0xff]  ;;  %v1017_v30 = vpop.f32.mrf.mxu1 }
 0x11d   : > { %v1449_v1 = vadd.f32 %v1353_v58, %v1203_v2  ;;  %v1109_v51 = vadd.f32 %v1017_v30, %v863_v3  ;;  %v865_v48 = vld [vmem:[#allocation4 + $0x20] sm:$0xff] }
 0x11e   : > { %v1204_v49 = vld [vmem:[#allocation4 + $0x8] sm:$0xff] }
 0x11f   : > { %1481 = vst.msk [vmem:[#allocation4] sm:$0xff] %vm454_vm3, %v1449_v1  ;;  %v1191_v1 = vld [vmem:[#allocation2 + $0xf2] sm:$0xff] }
 0x120   : > { %1141 = vst.msk [vmem:[#allocation4 + $0x10] sm:$0xff] %vm454_vm3, %v1109_v51 }
 0x121   : > { %7984 = vmatmul.msk.f32.gmra.mxu3 %vm365_vm1, %v9010_v59  ;;  %v9436_v55 = vpop.f32.mrf.mxu0  ;;  %v1356_v59 = vpop.f32.mrf.mxu2 }
 0x122   : > { %7948 = vmatmul.msk.f32.gmra.mxu2 %vm365_vm1, %v1188_v37  ;;  %8017 = vmatmul.msk.f32.gmra.mxu0 %vm365_vm1, %v1873_v12  ;;  %v1698_v29 = vpop.f32.mrf.mxu3  ;;  %v1450_v0 = vadd.f32 %v1356_v59, %v1204_v49  ;;  %v866_v49 = vld [vmem:[#allocation4 + $0x28] sm:$0xff] }
 0x124   : > { %7917 = vmatmul.msk.f32.gmra.mxu1 %vm365_vm1, %v1873_v12  ;;  %1482 = vst.msk [vmem:[#allocation4 + $0x8] sm:$0xff] %vm454_vm3, %v1450_v0  ;;  %v1020_v11 = vpop.f32.mrf.mxu1 }
 0x125   : > { %v1110_v33 = vadd.f32 %v1020_v11, %v864_v60  ;;  %v1192_v60 = vld [vmem:[#allocation2 + $0xfa] sm:$0xff] }
 0x126   : > { %v1545_v35 = vld [vmem:[#allocation4] sm:$0xff] }
 0x127   : > { %v1205_v47 = vld [vmem:[#allocation4 + $0x10] sm:$0xff]  ;;  %1142 = vst.msk [vmem:[#allocation4 + $0x18] sm:$0xff] %vm454_vm3, %v1110_v33 }
 0x129   : > { %7985 = vmatmul.msk.f32.gmra.mxu3 %vm365_vm1, %v9023_v63  ;;  %v9445_v56 = vpop.f32.mrf.mxu0  ;;  %v1791_v63 = vadd.f32 %v1695_v9, %v1545_v35  ;;  %v1359_v61 = vpop.f32.mrf.mxu2 }
 0x12a   : > { %7949 = vmatmul.msk.f32.gmra.mxu2 %vm365_vm1, %v1189_v45  ;;  %8018 = vmatmul.msk.f32.gmra.mxu0 %vm365_vm1, %v1874_v50  ;;  %v1701_v53 = vpop.f32.mrf.mxu3  ;;  %v1451_v10 = vadd.f32 %v1359_v61, %v1205_v47  ;;  %v1536_v45 = vld [vmem:[#allocation2 + $0x128] sm:$0xff] }
 0x12b   : > { %1823 = vst.msk [vmem:[#allocation4] sm:$0xff] %vm454_vm3, %v1791_v63  ;;  %v1546_v25 = vld [vmem:[#allocation4 + $0x8] sm:$0xff] }
 0x12c   : > { %7918 = vmatmul.msk.f32.gmra.mxu1 %vm365_vm1, %v1874_v50  ;;  %v1792_v57 = vadd.f32 %v1698_v29, %v1546_v25  ;;  %1483 = vst.msk [vmem:[#allocation4 + $0x10] sm:$0xff] %vm454_vm3, %v1451_v10  ;;  %v1023_v9 = vpop.f32.mrf.mxu1  ;;  %v1876_v29 = vld [vmem:[#allocation2 + $0x111] sm:$0xff]  ;;  %v1877_v47 = vld [vmem:[#allocation2 + $0x121] sm:$0xff] }
 0x12d   : > { %v1111_v36 = vadd.f32 %v1023_v9, %v865_v48  ;;  %v867_v25 = vld [vmem:[#allocation4 + $0x30] sm:$0xff] }
 0x12e   : > { %1824 = vst.msk [vmem:[#allocation4 + $0x8] sm:$0xff] %vm454_vm3, %v1792_v57  ;;  %v1206_v2 = vld [vmem:[#allocation4 + $0x18] sm:$0xff]  ;;  %v1193_v9 = vld [vmem:[#allocation2 + $0x10a] sm:$0xff] }
 0x12f   : > { %1143 = vst.msk [vmem:[#allocation4 + $0x20] sm:$0xff] %vm454_vm3, %v1111_v36 }
 0x131   : > { %7986 = vmatmul.msk.f32.gmra.mxu3 %vm365_vm1, %v9036_v4  ;;  %v9455_v23 = vpop.f32.mrf.mxu0  ;;  %v1362_v4 = vpop.f32.mrf.mxu2 }
 0x132   : > { %7950 = vmatmul.msk.f32.gmra.mxu2 %vm365_vm1, %v1190_v39  ;;  %8019 = vmatmul.msk.f32.gmra.mxu0 %vm365_vm1, %v1875_v42  ;;  %v1704_v58 = vpop.f32.mrf.mxu3  ;;  %v1887_v62 = vld [vmem:[#allocation4] sm:$0xff]  ;;  %v1452_v12 = vadd.f32 %v1362_v4, %v1206_v2  ;;  %v1878_v2 = vld [vmem:[#allocation2 + $0x129] sm:$0xff] }
 0x133   : > { %v2133_v37 = vadd.f32 %v9413_v52, %v1887_v62  ;;  %v1547_v59 = vld [vmem:[#allocation4 + $0x10] sm:$0xff] }
 0x134   : > { %7919 = vmatmul.msk.f32.gmra.mxu1 %vm365_vm1, %v1875_v42  ;;  %v1793_v30 = vadd.f32 %v1701_v53, %v1547_v59  ;;  %1484 = vst.msk [vmem:[#allocation4 + $0x18] sm:$0xff] %vm454_vm3, %v1452_v12  ;;  %v1026_v0 = vpop.f32.mrf.mxu1  ;;  %v1537_v42 = vld [vmem:[#allocation2 + $0x138] sm:$0xff] }
 0x135   : > { %2165 = vst.msk [vmem:[#allocation4] sm:$0xff] %vm454_vm3, %v2133_v37  ;;  %v1888_v50 = vld [vmem:[#allocation4 + $0x8] sm:$0xff]  ;;  %v1112_v35 = vadd.f32 %v1026_v0, %v866_v49  ;;  %v868_v59 = vld [vmem:[#allocation4 + $0x38] sm:$0xff] }
 0x136   : > { %1825 = vst.msk [vmem:[#allocation4 + $0x10] sm:$0xff] %vm454_vm3, %v1793_v30  ;;  %v2134_v63 = vadd.f32 %v9428_v54, %v1888_v50  ;;  %v1207_v61 = vld [vmem:[#allocation4 + $0x20] sm:$0xff]  ;;  %v1194_v0 = vld [vmem:[#allocation2 + $0x112] sm:$0xff] }
 0x137   : > { %1144 = vst.msk [vmem:[#allocation4 + $0x28] sm:$0xff] %vm454_vm3, %v1112_v35 }
 0x138   : > { %2166 = vst.msk [vmem:[#allocation4 + $0x8] sm:$0xff] %vm454_vm3, %v2134_v63 }
 0x139   : > { %7987 = vmatmul.msk.f32.gmra.mxu3 %vm365_vm1, %v1535_v27  ;;  %v9465_v3 = vpop.f32.mrf.mxu0  ;;  %v1365_v51 = vpop.f32.mrf.mxu2 }
 0x13a   : > { %7951 = vmatmul.msk.f32.gmra.mxu2 %vm365_vm1, %v1191_v1  ;;  %8020 = vmatmul.msk.f32.gmra.mxu0 %vm365_vm1, %v1876_v29  ;;  %v1707_v52 = vpop.f32.mrf.mxu3  ;;  %v1453_v53 = vadd.f32 %v1365_v51, %v1207_v61  ;;  %v1879_v61 = vld [vmem:[#allocation2 + $0x139] sm:$0xff] }
 0x13b   : > { %v1548_v11 = vld [vmem:[#allocation4 + $0x18] sm:$0xff] }
 0x13c   : > { %7920 = vmatmul.msk.f32.gmra.mxu1 %vm365_vm1, %v1876_v29  ;;  %v1794_v39 = vadd.f32 %v1704_v58, %v1548_v11  ;;  %1485 = vst.msk [vmem:[#allocation4 + $0x20] sm:$0xff] %vm454_vm3, %v1453_v53  ;;  %v1029_v57 = vpop.f32.mrf.mxu1  ;;  %v1538_v29 = vld [vmem:[#allocation2 + $0x140] sm:$0xff]  ;;  %v1539_v11 = vld [vmem:[#allocation2 + $0x150] sm:$0xff] }
 0x13d   : > { %v1889_v4 = vld [vmem:[#allocation4 + $0x10] sm:$0xff]  ;;  %v1113_v48 = vadd.f32 %v1029_v57, %v867_v25  ;;  %v1195_v57 = vld [vmem:[#allocation2 + $0x122] sm:$0xff] }
 0x13e   : > { %1826 = vst.msk [vmem:[#allocation4 + $0x18] sm:$0xff] %vm454_vm3, %v1794_v39  ;;  %v2135_v58 = vadd.f32 %v9436_v55, %v1889_v4  ;;  %v1208_v27 = vld [vmem:[#allocation4 + $0x28] sm:$0xff] }
 0x13f   : > { %1145 = vst.msk [vmem:[#allocation4 + $0x30] sm:$0xff] %vm454_vm3, %v1113_v48 }
 0x140   : > { %2167 = vst.msk [vmem:[#allocation4 + $0x10] sm:$0xff] %vm454_vm3, %v2135_v58 }
 0x141   : > { %7988 = vmatmul.msk.f32.gmra.mxu3 %vm365_vm1, %v1536_v45  ;;  %v9476_v33 = vpop.f32.mrf.mxu0  ;;  %v1368_v10 = vpop.f32.mrf.mxu2 }
 0x142   : > { %7952 = vmatmul.msk.f32.gmra.mxu2 %vm365_vm1, %v1192_v60  ;;  %8021 = vmatmul.msk.f32.gmra.mxu0 %vm365_vm1, %v1877_v47  ;;  %v1710_v54 = vpop.f32.mrf.mxu3  ;;  %v1454_v62 = vadd.f32 %v1368_v10, %v1208_v27  ;;  %v1880_v27 = vld [vmem:[#allocation2 + $0x141] sm:$0xff] }
 0x143   : > { %v1549_v36 = vld [vmem:[#allocation4 + $0x20] sm:$0xff] }
 0x144   : > { %7921 = vmatmul.msk.f32.gmra.mxu1 %vm365_vm1, %v1877_v47  ;;  %v1795_v1 = vadd.f32 %v1707_v52, %v1549_v36  ;;  %1486 = vst.msk [vmem:[#allocation4 + $0x28] sm:$0xff] %vm454_vm3, %v1454_v62  ;;  %v1032_v30 = vpop.f32.mrf.mxu1  ;;  %v869_v47 = vld [vmem:[#allocation4 + $0x40] sm:$0xff]  ;;  %v1540_v62 = vld [vmem:[#allocation2 + $0x158] sm:$0xff] }
 0x145   : > { %v1890_v51 = vld [vmem:[#allocation4 + $0x18] sm:$0xff]  ;;  %v1114_v49 = vadd.f32 %v1032_v30, %v868_v59  ;;  %v1196_v30 = vld [vmem:[#allocation2 + $0x12a] sm:$0xff] }
 0x146   : > { %1827 = vst.msk [vmem:[#allocation4 + $0x20] sm:$0xff] %vm454_vm3, %v1795_v1  ;;  %v2136_v52 = vadd.f32 %v9445_v56, %v1890_v51  ;;  %v1209_v45 = vld [vmem:[#allocation4 + $0x30] sm:$0xff] }
 0x147   : > { %1146 = vst.msk [vmem:[#allocation4 + $0x38] sm:$0xff] %vm454_vm3, %v1114_v49 }
 0x148   : > { %2168 = vst.msk [vmem:[#allocation4 + $0x18] sm:$0xff] %vm454_vm3, %v2136_v52 }
 0x149   : > { %7989 = vmatmul.msk.f32.gmra.mxu3 %vm365_vm1, %v1537_v42  ;;  %v9487_v37 = vpop.f32.mrf.mxu0  ;;  %v1371_v12 = vpop.f32.mrf.mxu2 }
 0x14a   : > { %7953 = vmatmul.msk.f32.gmra.mxu2 %vm365_vm1, %v1193_v9  ;;  %8022 = vmatmul.msk.f32.gmra.mxu0 %vm365_vm1, %v1878_v2  ;;  %v1713_v55 = vpop.f32.mrf.mxu3  ;;  %v1455_v50 = vadd.f32 %v1371_v12, %v1209_v45  ;;  %v1881_v45 = vld [vmem:[#allocation2 + $0x151] sm:$0xff] }
 0x14b   : > { %v1550_v35 = vld [vmem:[#allocation4 + $0x28] sm:$0xff] }
 0x14c   : > { %7922 = vmatmul.msk.f32.gmra.mxu1 %vm365_vm1, %v1878_v2  ;;  %v1796_v60 = vadd.f32 %v1710_v54, %v1550_v35  ;;  %1487 = vst.msk [vmem:[#allocation4 + $0x30] sm:$0xff] %vm454_vm3, %v1455_v50  ;;  %v1035_v39 = vpop.f32.mrf.mxu1  ;;  %v870_v2 = vld [vmem:[#allocation4 + $0x48] sm:$0xff] }
 0x14d   : > { %v1891_v10 = vld [vmem:[#allocation4 + $0x20] sm:$0xff]  ;;  %v1115_v25 = vadd.f32 %v1035_v39, %v869_v47  ;;  %v1541_v50 = vld [vmem:[#allocation2 + $0x168] sm:$0xff] }
 0x14e   : > { %1828 = vst.msk [vmem:[#allocation4 + $0x28] sm:$0xff] %vm454_vm3, %v1796_v60  ;;  %v2137_v54 = vadd.f32 %v9455_v23, %v1891_v10  ;;  %v1210_v42 = vld [vmem:[#allocation4 + $0x38] sm:$0xff] }
 0x14f   : > { %1147 = vst.msk [vmem:[#allocation4 + $0x40] sm:$0xff] %vm454_vm3, %v1115_v25  ;;  %v1197_v39 = vld [vmem:[#allocation2 + $0x13a] sm:$0xff] }
 0x150   : > { %2169 = vst.msk [vmem:[#allocation4 + $0x20] sm:$0xff] %vm454_vm3, %v2137_v54 }
 0x151   : > { %7990 = vmatmul.msk.f32.gmra.mxu3 %vm365_vm1, %v1538_v29  ;;  %v9498_v63 = vpop.f32.mrf.mxu0  ;;  %v1374_v53 = vpop.f32.mrf.mxu2 }
 0x152   : > { %7954 = vmatmul.msk.f32.gmra.mxu2 %vm365_vm1, %v1194_v0  ;;  %8023 = vmatmul.msk.f32.gmra.mxu0 %vm365_vm1, %v1879_v61  ;;  %v1716_v56 = vpop.f32.mrf.mxu3  ;;  %v1456_v4 = vadd.f32 %v1374_v53, %v1210_v42  ;;  %v1882_v42 = vld [vmem:[#allocation2 + $0x159] sm:$0xff] }
 0x153   : > { %v1551_v48 = vld [vmem:[#allocation4 + $0x30] sm:$0xff] }
 0x154   : > { %7923 = vmatmul.msk.f32.gmra.mxu1 %vm365_vm1, %v1879_v61  ;;  %v1797_v9 = vadd.f32 %v1713_v55, %v1551_v48  ;;  %1488 = vst.msk [vmem:[#allocation4 + $0x38] sm:$0xff] %vm454_vm3, %v1456_v4  ;;  %v1038_v1 = vpop.f32.mrf.mxu1  ;;  %v871_v61 = vld [vmem:[#allocation4 + $0x50] sm:$0xff] }
 0x155   : > { %v1892_v12 = vld [vmem:[#allocation4 + $0x28] sm:$0xff]  ;;  %v1116_v59 = vadd.f32 %v1038_v1, %v870_v2  ;;  %v1542_v4 = vld [vmem:[#allocation2 + $0x170] sm:$0xff] }
 0x156   : > { %1829 = vst.msk [vmem:[#allocation4 + $0x30] sm:$0xff] %vm454_vm3, %v1797_v9  ;;  %v2138_v55 = vadd.f32 %v9465_v3, %v1892_v12  ;;  %v1211_v29 = vld [vmem:[#allocation4 + $0x40] sm:$0xff]  ;;  %v9539_v48 = vld [vmem:[%s8734_s18 + $0xf0] sm:$0xff]  ;;  %v872_v9 = vld [vmem:[#allocation4 + $0x58] sm:$0xff] }
 0x157   : > { %1148 = vst.msk [vmem:[#allocation4 + $0x48] sm:$0xff] %vm454_vm3, %v1116_v59  ;;  %v1198_v12 = vld [vmem:[#allocation2 + $0x142] sm:$0xff] }
 0x158   : > { %2170 = vst.msk [vmem:[#allocation4 + $0x28] sm:$0xff] %vm454_vm3, %v2138_v55 }
 0x159   : > { %7991 = vmatmul.msk.f32.gmra.mxu3 %vm365_vm1, %v1539_v11  ;;  %v9509_v58 = vpop.f32.mrf.mxu0  ;;  %v1377_v36 = vpop.f32.mrf.mxu2  ;;  %11609 = vst [vmem:[#allocation17_spill] sm:$0xff] %v9539_v48 }
 0x15a   : > { %7955 = vmatmul.msk.f32.gmra.mxu2 %vm365_vm1, %v1195_v57  ;;  %8024 = vmatmul.msk.f32.gmra.mxu0 %vm365_vm1, %v1880_v27  ;;  %v1719_v23 = vpop.f32.mrf.mxu3  ;;  %v1457_v51 = vadd.f32 %v1377_v36, %v1211_v29  ;;  %452 = vst.msk [vmem:[#allocation2 + $0x181] sm:$0xff] %vm365_vm1, %v9539_v48 }
 0x15b   : > { %v1552_v49 = vld [vmem:[#allocation4 + $0x38] sm:$0xff] }
 0x15c   : > { %7924 = vmatmul.msk.f32.gmra.mxu1 %vm365_vm1, %v1880_v27  ;;  %v1798_v0 = vadd.f32 %v1716_v56, %v1552_v49  ;;  %1489 = vst.msk [vmem:[#allocation4 + $0x40] sm:$0xff] %vm454_vm3, %v1457_v51  ;;  %v1041_v60 = vpop.f32.mrf.mxu1 }
 0x15d   : > { %v1893_v53 = vld [vmem:[#allocation4 + $0x30] sm:$0xff]  ;;  %v1117_v11 = vadd.f32 %v1041_v60, %v871_v61 }
 0x15e   : > { %1830 = vst.msk [vmem:[#allocation4 + $0x38] sm:$0xff] %vm454_vm3, %v1798_v0  ;;  %v2139_v56 = vadd.f32 %v9476_v33, %v1893_v53  ;;  %v1212_v47 = vld [vmem:[#allocation4 + $0x48] sm:$0xff]  ;;  %v873_v0 = vld [vmem:[#allocation4 + $0x60] sm:$0xff] }
 0x15f   : > { %1149 = vst.msk [vmem:[#allocation4 + $0x50] sm:$0xff] %vm454_vm3, %v1117_v11  ;;  %v1199_v11 = vld [vmem:[#allocation2 + $0x152] sm:$0xff] }
 0x160   : > { %2171 = vst.msk [vmem:[#allocation4 + $0x30] sm:$0xff] %vm454_vm3, %v2139_v56 }
 0x161   : > { %7992 = vmatmul.msk.f32.gmra.mxu3 %vm365_vm1, %v1540_v62  ;;  %v9520_v52 = vpop.f32.mrf.mxu0  ;;  %v1543_v49 = vld [vmem:[#allocation2 + $0x180] sm:$0xff] }
 0x162   : > { %7956 = vmatmul.msk.f32.gmra.mxu2 %vm365_vm1, %v1196_v30  ;;  %8025 = vmatmul.msk.f32.gmra.mxu0 %vm365_vm1, %v1881_v45  ;;  %v1722_v3 = vpop.f32.mrf.mxu3  ;;  %v1883_v30 = vld [vmem:[#allocation2 + $0x169] sm:$0xff] }
 0x163   : > { %v1553_v25 = vld [vmem:[#allocation4 + $0x40] sm:$0xff] }
 0x164   : > { %7925 = vmatmul.msk.f32.gmra.mxu1 %vm365_vm1, %v1881_v45  ;;  %v1799_v57 = vadd.f32 %v1719_v23, %v1553_v25  ;;  %v1044_v62 = vpop.f32.mrf.mxu1 }
 0x165   : > { %v1380_v35 = vpop.f32.mrf.mxu2  ;;  %v1894_v23 = vld [vmem:[#allocation4 + $0x38] sm:$0xff]  ;;  %v1118_v36 = vadd.f32 %v1044_v62, %v872_v9 }
 0x166   : > { %v1458_v10 = vadd.f32 %v1380_v35, %v1212_v47  ;;  %1831 = vst.msk [vmem:[#allocation4 + $0x40] sm:$0xff] %vm454_vm3, %v1799_v57  ;;  %v2140_v2 = vadd.f32 %v9487_v37, %v1894_v23  ;;  %v1213_v1 = vld [vmem:[#allocation4 + $0x50] sm:$0xff]  ;;  %v9557_v35 = vld [vmem:[%s8734_s18 + $0xf8] sm:$0xff]  ;;  %v874_v57 = vld [vmem:[#allocation4 + $0x68] sm:$0xff] }
 0x167   : > { %1150 = vst.msk [vmem:[#allocation4 + $0x58] sm:$0xff] %vm454_vm3, %v1118_v36  ;;  %v1200_v36 = vld [vmem:[#allocation2 + $0x15a] sm:$0xff] }
 0x168   : > { %1490 = vst.msk [vmem:[#allocation4 + $0x48] sm:$0xff] %vm454_vm3, %v1458_v10  ;;  %v1884_v10 = vld [vmem:[#allocation2 + $0x171] sm:$0xff] }
 0x169   : > { %7993 = vmatmul.msk.f32.gmra.mxu3 %vm365_vm1, %v1541_v50  ;;  %v9531_v54 = vpop.f32.mrf.mxu0  ;;  %2172 = vst.msk [vmem:[#allocation4 + $0x38] sm:$0xff] %vm454_vm3, %v2140_v2 }
 0x16a   : > { %7957 = vmatmul.msk.f32.gmra.mxu2 %vm365_vm1, %v1197_v39  ;;  %8026 = vmatmul.msk.f32.gmra.mxu0 %vm365_vm1, %v1882_v42  ;;  %v1725_v33 = vpop.f32.mrf.mxu3  ;;  %11610 = vst [vmem:[#allocation18_spill] sm:$0xff] %v9557_v35 }
 0x16b   : > { %453 = vst.msk [vmem:[#allocation2 + $0x189] sm:$0xff] %vm365_vm1, %v9557_v35 }
 0x16c   : > { %7926 = vmatmul.msk.f32.gmra.mxu1 %vm365_vm1, %v1882_v42  ;;  %v1047_v50 = vpop.f32.mrf.mxu1 }
 0x16d   : > { %v1383_v27 = vpop.f32.mrf.mxu2  ;;  %v1119_v61 = vadd.f32 %v1047_v50, %v873_v0 }
 0x16e   : > { %v1459_v59 = vadd.f32 %v1383_v27, %v1213_v1  ;;  %v1214_v53 = vld [vmem:[#allocation4 + $0x58] sm:$0xff] }
 0x16f   : > { %v1554_v55 = vld [vmem:[#allocation4 + $0x48] sm:$0xff]  ;;  %1151 = vst.msk [vmem:[#allocation4 + $0x60] sm:$0xff] %vm454_vm3, %v1119_v61 }
 0x170   : > { %v1800_v51 = vadd.f32 %v1722_v3, %v1554_v55  ;;  %1491 = vst.msk [vmem:[#allocation4 + $0x50] sm:$0xff] %vm454_vm3, %v1459_v59  ;;  %v1895_v3 = vld [vmem:[#allocation4 + $0x40] sm:$0xff] }
 0x171   : > { %7994 = vmatmul.msk.f32.gmra.mxu3 %vm365_vm1, %v1542_v4  ;;  %v9547_v29 = vpop.f32.mrf.mxu0  ;;  %v2141_v60 = vadd.f32 %v9498_v63, %v1895_v3  ;;  %v1885_v59 = vld [vmem:[#allocation2 + $0x181] sm:$0xff] }
 0x172   : > { %7958 = vmatmul.msk.f32.gmra.mxu2 %vm365_vm1, %v1198_v12  ;;  %1832 = vst.msk [vmem:[#allocation4 + $0x48] sm:$0xff] %vm454_vm3, %v1800_v51  ;;  %8027 = vmatmul.msk.f32.gmra.mxu0 %vm365_vm1, %v1883_v30  ;;  %v1728_v37 = vpop.f32.mrf.mxu3  ;;  %v1544_v27 = vld [vmem:[#allocation2 + $0x188] sm:$0xff]  ;;  %v2882_v51 = vld [vmem:[#allocation2 + $0x31] sm:$0xff] }
 0x173   : > { %2173 = vst.msk [vmem:[#allocation4 + $0x40] sm:$0xff] %vm454_vm3, %v2141_v60 }
 0x174   : > { %7927 = vmatmul.msk.f32.gmra.mxu1 %vm365_vm1, %v1883_v30  ;;  %v1050_v4 = vpop.f32.mrf.mxu1  ;;  %v2197_v30 = vld [vmem:[#allocation2 + $0x1a] sm:$0xff] }
 0x175   : > { %v1386_v45 = vpop.f32.mrf.mxu2  ;;  %v1120_v62 = vadd.f32 %v1050_v4, %v874_v57  ;;  %v2883_v57 = vld [vmem:[#allocation2 + $0x39] sm:$0xff] }
 0x176   : > { %v1460_v56 = vadd.f32 %v1386_v45, %v1214_v53  ;;  %v1215_v23 = vld [vmem:[#allocation4 + $0x60] sm:$0xff]  ;;  %v875_v45 = vld [vmem:[#allocation4 + $0x70] sm:$0xff] }
 0x177   : > { %v1555_v47 = vld [vmem:[#allocation4 + $0x50] sm:$0xff]  ;;  %1152 = vst.msk [vmem:[#allocation4 + $0x68] sm:$0xff] %vm454_vm3, %v1120_v62 }
 0x178   : > { %v1801_v25 = vadd.f32 %v1725_v33, %v1555_v47  ;;  %1492 = vst.msk [vmem:[#allocation4 + $0x58] sm:$0xff] %vm454_vm3, %v1460_v56  ;;  %v1201_v53 = vld [vmem:[#allocation2 + $0x16a] sm:$0xff] }
 0x179   : > { %7995 = vmatmul.msk.f32.gmra.mxu3 %vm365_vm1, %v1543_v49  ;;  %v9563_v39 = vpop.f32.mrf.mxu0  ;;  %v1896_v9 = vld [vmem:[#allocation4 + $0x48] sm:$0xff] }
 0x17a   : > { %7959 = vmatmul.msk.f32.gmra.mxu2 %vm365_vm1, %v1199_v11  ;;  %1833 = vst.msk [vmem:[#allocation4 + $0x50] sm:$0xff] %vm454_vm3, %v1801_v25  ;;  %8028 = vmatmul.msk.f32.gmra.mxu0 %vm365_vm1, %v1884_v10  ;;  %v1731_v63 = vpop.f32.mrf.mxu3  ;;  %v2142_v33 = vadd.f32 %v9509_v58, %v1896_v9 }
 0x17c   : > { %7928 = vmatmul.msk.f32.gmra.mxu1 %vm365_vm1, %v1884_v10  ;;  %2174 = vst.msk [vmem:[#allocation4 + $0x48] sm:$0xff] %vm454_vm3, %v2142_v33  ;;  %v1053_v0 = vpop.f32.mrf.mxu1  ;;  %v1886_v10 = vld [vmem:[#allocation2 + $0x189] sm:$0xff] }
 0x17d   : > { %v1389_v42 = vpop.f32.mrf.mxu2  ;;  %v1121_v3 = vadd.f32 %v1053_v0, %v875_v45  ;;  %v877_v45 = vld [vmem:[#allocation4 + $0x80] sm:$0xff] }
 0x17e   : > { %v1461_v2 = vadd.f32 %v1389_v42, %v1215_v23  ;;  %v1216_v60 = vld [vmem:[#allocation4 + $0x68] sm:$0xff] }
 0x17f   : > { %v1556_v1 = vld [vmem:[#allocation4 + $0x58] sm:$0xff]  ;;  %1153 = vst.msk [vmem:[#allocation4 + $0x70] sm:$0xff] %vm454_vm3, %v1121_v3  ;;  %v2198_v42 = vld [vmem:[#allocation2 + $0x22] sm:$0xff] }
 0x180   : > { %v1802_v55 = vadd.f32 %v1728_v37, %v1556_v1  ;;  %1493 = vst.msk [vmem:[#allocation4 + $0x60] sm:$0xff] %vm454_vm3, %v1461_v2  ;;  %v3914_v37 = vld [vmem:[%s11564_s3] sm:$0xff] }
 0x181   : > { %7996 = vmatmul.msk.f32.gmra.mxu3 %vm365_vm1, %v1544_v27  ;;  %v9574_v12 = vpop.f32.mrf.mxu0  ;;  %v1897_v50 = vld [vmem:[#allocation4 + $0x50] sm:$0xff]  ;;  %4026 = vmatpush.msrb.mxu1 %v3914_v37  ;;  %v876_v27 = vld [vmem:[#allocation4 + $0x78] sm:$0xff] }
 0x182   : > { %7960 = vmatmul.msk.f32.gmra.mxu2 %vm365_vm1, %v1200_v36  ;;  %1834 = vst.msk [vmem:[#allocation4 + $0x58] sm:$0xff] %vm454_vm3, %v1802_v55  ;;  %8029 = vmatmul.msk.f32.gmra.mxu0 %vm365_vm1, %v1885_v59  ;;  %v1734_v58 = vpop.f32.mrf.mxu3  ;;  %v2143_v61 = vadd.f32 %v9520_v52, %v1897_v50  ;;  %v1202_v36 = vld [vmem:[#allocation2 + $0x172] sm:$0xff] }
 0x183   : > { %v3224_v55 = vld [vmem:[#allocation2 + $0x32] sm:$0xff] }
 0x184   : > { %8033 = vmatmul.msk.f32.vlgmr.msra.gmra.mxu1 %vm365_vm1, %v2197_v30  ;;  %2175 = vst.msk [vmem:[#allocation4 + $0x50] sm:$0xff] %vm454_vm3, %v2143_v61  ;;  %v1056_v9 = vpop.f32.mrf.mxu1  ;;  %v2540_v61 = vld [vmem:[#allocation2 + $0x30] sm:$0xff] }
 0x185   : > { %v1392_v49 = vpop.f32.mrf.mxu2  ;;  %v1122_v33 = vadd.f32 %v1056_v9, %v876_v27 }
 0x186   : > { %v1462_v11 = vadd.f32 %v1392_v49, %v1216_v60  ;;  %v1217_v23 = vld [vmem:[#allocation4 + $0x70] sm:$0xff] }
 0x187   : > { %v1557_v56 = vld [vmem:[#allocation4 + $0x60] sm:$0xff]  ;;  %1154 = vst.msk [vmem:[#allocation4 + $0x78] sm:$0xff] %vm454_vm3, %v1122_v33  ;;  %v2541_v33 = vld [vmem:[#allocation2 + $0x38] sm:$0xff] }
 0x188   : > { %v1803_v25 = vadd.f32 %v1731_v63, %v1557_v56  ;;  %1494 = vst.msk [vmem:[#allocation4 + $0x68] sm:$0xff] %vm454_vm3, %v1462_v11  ;;  %v3225_v56 = vld [vmem:[#allocation2 + $0x3a] sm:$0xff] }
 0x189   : > { %8101 = vmatmul.msk.f32.vlgmr.msra.gmra.mxu3 %vm365_vm1, %v2882_v51  ;;  %v9588_v47 = vpop.f32.mrf.mxu0  ;;  %v1898_v62 = vld [vmem:[#allocation4 + $0x58] sm:$0xff]  ;;  %v2884_v51 = vld [vmem:[#allocation2 + $0x49] sm:$0xff] }
 0x18a   : > { %7961 = vmatmul.msk.f32.gmra.mxu2 %vm365_vm1, %v1201_v53  ;;  %1835 = vst.msk [vmem:[#allocation4 + $0x60] sm:$0xff] %vm454_vm3, %v1803_v25  ;;  %8030 = vmatmul.msk.f32.gmra.mxu0 %vm365_vm1, %v1886_v10  ;;  %v1737_v52 = vpop.f32.mrf.mxu3  ;;  %v2144_v63 = vadd.f32 %v9531_v54, %v1898_v62  ;;  %v2885_v25 = vld [vmem:[#allocation2 + $0x51] sm:$0xff] }
 0x18c   : > { %8034 = vmatmul.msk.f32.gmra.mxu1 %vm365_vm1, %v2198_v42  ;;  %2176 = vst.msk [vmem:[#allocation4 + $0x58] sm:$0xff] %vm454_vm3, %v2144_v63  ;;  %v1059_v0 = vpop.f32.mrf.mxu1 }
 0x18d   : > { %v1395_v4 = vpop.f32.mrf.mxu2  ;;  %v1123_v50 = vadd.f32 %v1059_v0, %v877_v45 }
 0x18e   : > { %v1463_v2 = vadd.f32 %v1395_v4, %v1217_v23  ;;  %v1218_v3 = vld [vmem:[#allocation4 + $0x78] sm:$0xff] }
 0x18f   : > { %v1558_v1 = vld [vmem:[#allocation4 + $0x68] sm:$0xff]  ;;  %1155 = vst.msk [vmem:[#allocation4 + $0x80] sm:$0xff] %vm454_vm3, %v1123_v50 }
 0x190   : > { %v1804_v30 = vadd.f32 %v1734_v58, %v1558_v1  ;;  %1495 = vst.msk [vmem:[#allocation4 + $0x70] sm:$0xff] %vm454_vm3, %v1463_v2  ;;  %v3226_v2 = vld [vmem:[#allocation2 + $0x4a] sm:$0xff] }
 0x191   : > { %8102 = vmatmul.msk.f32.gmra.mxu3 %vm365_vm1, %v2883_v57  ;;  %v9599_v59 = vpop.f32.mrf.mxu0  ;;  %v1899_v37 = vld [vmem:[#allocation4 + $0x60] sm:$0xff]  ;;  %v878_v57 = vld [vmem:[#allocation4 + $0x88] sm:$0xff] }
 0x192   : > { %7962 = vmatmul.msk.f32.gmra.mxu2 %vm365_vm1, %v1202_v36  ;;  %1836 = vst.msk [vmem:[#allocation4 + $0x68] sm:$0xff] %vm454_vm3, %v1804_v30  ;;  %8135 = vmatmul.msk.f32.vlgmr.msra.gmra.mxu0 %vm365_vm1, %v3224_v55  ;;  %v1740_v54 = vpop.f32.mrf.mxu3  ;;  %v2145_v58 = vadd.f32 %v9547_v29, %v1899_v37  ;;  %v2542_v50 = vld [vmem:[#allocation2 + $0x48] sm:$0xff] }
 0x194   : > { %8035 = vmatmul.msk.f32.gmra.mxu1 %vm365_vm1, %v3224_v55  ;;  %2177 = vst.msk [vmem:[#allocation4 + $0x60] sm:$0xff] %vm454_vm3, %v2145_v58  ;;  %v1062_v4 = vpop.f32.mrf.mxu1  ;;  %v2886_v55 = vld [vmem:[#allocation2 + $0x61] sm:$0xff] }
 0x195   : > { %v1398_v49 = vpop.f32.mrf.mxu2  ;;  %v1124_v9 = vadd.f32 %v1062_v4, %v878_v57 }
 0x196   : > { %v1464_v60 = vadd.f32 %v1398_v49, %v1218_v3  ;;  %v1219_v62 = vld [vmem:[#allocation4 + $0x80] sm:$0xff] }
 0x197   : > { %v1559_v53 = vld [vmem:[#allocation4 + $0x70] sm:$0xff]  ;;  %1156 = vst.msk [vmem:[#allocation4 + $0x88] sm:$0xff] %vm454_vm3, %v1124_v9 }
 0x198   : > { %v1805_v10 = vadd.f32 %v1737_v52, %v1559_v53  ;;  %1496 = vst.msk [vmem:[#allocation4 + $0x78] sm:$0xff] %vm454_vm3, %v1464_v60  ;;  %v3227_v60 = vld [vmem:[#allocation2 + $0x52] sm:$0xff] }
 0x199   : > { %8103 = vmatmul.msk.f32.gmra.mxu3 %vm365_vm1, %v2884_v51  ;;  %v9610_v11 = vpop.f32.mrf.mxu0  ;;  %v1900_v27 = vld [vmem:[#allocation4 + $0x68] sm:$0xff]  ;;  %v879_v51 = vld [vmem:[#allocation4 + $0x90] sm:$0xff] }
 0x19a   : > { %8067 = vmatmul.msk.f32.vlgmr.msra.gmra.mxu2 %vm365_vm1, %v2540_v61  ;;  %1837 = vst.msk [vmem:[#allocation4 + $0x70] sm:$0xff] %vm454_vm3, %v1805_v10  ;;  %8136 = vmatmul.msk.f32.gmra.mxu0 %vm365_vm1, %v3225_v56  ;;  %v1743_v29 = vpop.f32.mrf.mxu3  ;;  %v2146_v52 = vadd.f32 %v9563_v39, %v1900_v27  ;;  %v2543_v9 = vld [vmem:[#allocation2 + $0x50] sm:$0xff] }
 0x19c   : > { %8036 = vmatmul.msk.f32.gmra.mxu1 %vm365_vm1, %v3225_v56  ;;  %2178 = vst.msk [vmem:[#allocation4 + $0x68] sm:$0xff] %vm454_vm3, %v2146_v52  ;;  %v1065_v49 = vpop.f32.mrf.mxu1  ;;  %v2887_v56 = vld [vmem:[#allocation2 + $0x69] sm:$0xff] }
 0x19d   : > { %v1401_v42 = vpop.f32.mrf.mxu2  ;;  %v1125_v0 = vadd.f32 %v1065_v49, %v879_v51 }
 0x19e   : > { %v1465_v63 = vadd.f32 %v1401_v42, %v1219_v62  ;;  %v1220_v37 = vld [vmem:[#allocation4 + $0x88] sm:$0xff] }
 0x19f   : > { %v1560_v23 = vld [vmem:[#allocation4 + $0x78] sm:$0xff]  ;;  %1157 = vst.msk [vmem:[#allocation4 + $0x90] sm:$0xff] %vm454_vm3, %v1125_v0  ;;  %v2544_v0 = vld [vmem:[#allocation2 + $0x60] sm:$0xff] }
 0x1a0   : > { %v1806_v1 = vadd.f32 %v1740_v54, %v1560_v23  ;;  %1497 = vst.msk [vmem:[#allocation4 + $0x80] sm:$0xff] %vm454_vm3, %v1465_v63  ;;  %v3228_v63 = vld [vmem:[#allocation2 + $0x62] sm:$0xff] }
 0x1a1   : > { %8104 = vmatmul.msk.f32.gmra.mxu3 %vm365_vm1, %v2885_v25  ;;  %v9621_v36 = vpop.f32.mrf.mxu0  ;;  %v1901_v45 = vld [vmem:[#allocation4 + $0x70] sm:$0xff]  ;;  %v880_v25 = vld [vmem:[#allocation4 + $0x98] sm:$0xff] }
 0x1a2   : > { %8068 = vmatmul.msk.f32.gmra.mxu2 %vm365_vm1, %v2541_v33  ;;  %1838 = vst.msk [vmem:[#allocation4 + $0x78] sm:$0xff] %vm454_vm3, %v1806_v1  ;;  %8137 = vmatmul.msk.f32.gmra.mxu0 %vm365_vm1, %v3226_v2  ;;  %v1746_v39 = vpop.f32.mrf.mxu3  ;;  %v2147_v54 = vadd.f32 %v9574_v12, %v1901_v45 }
 0x1a4   : > { %8037 = vmatmul.msk.f32.gmra.mxu1 %vm365_vm1, %v3226_v2  ;;  %2179 = vst.msk [vmem:[#allocation4 + $0x70] sm:$0xff] %vm454_vm3, %v2147_v54  ;;  %v1068_v42 = vpop.f32.mrf.mxu1  ;;  %v2888_v2 = vld [vmem:[#allocation2 + $0x79] sm:$0xff] }
 0x1a5   : > { %v1404_v30 = vpop.f32.mrf.mxu2  ;;  %v1126_v4 = vadd.f32 %v1068_v42, %v880_v25 }
 0x1a6   : > { %v1466_v58 = vadd.f32 %v1404_v30, %v1220_v37  ;;  %v1221_v27 = vld [vmem:[#allocation4 + $0x90] sm:$0xff] }
 0x1a7   : > { %v1561_v3 = vld [vmem:[#allocation4 + $0x80] sm:$0xff]  ;;  %1158 = vst.msk [vmem:[#allocation4 + $0x98] sm:$0xff] %vm454_vm3, %v1126_v4  ;;  %v2545_v4 = vld [vmem:[#allocation2 + $0x68] sm:$0xff] }
 0x1a8   : > { %v1807_v53 = vadd.f32 %v1743_v29, %v1561_v3  ;;  %1498 = vst.msk [vmem:[#allocation4 + $0x88] sm:$0xff] %vm454_vm3, %v1466_v58  ;;  %v3229_v58 = vld [vmem:[#allocation2 + $0x6a] sm:$0xff] }
 0x1a9   : > { %8105 = vmatmul.msk.f32.gmra.mxu3 %vm365_vm1, %v2886_v55  ;;  %v9632_v61 = vpop.f32.mrf.mxu0  ;;  %v1902_v57 = vld [vmem:[#allocation4 + $0x78] sm:$0xff]  ;;  %v881_v55 = vld [vmem:[#allocation4 + $0xa0] sm:$0xff] }
 0x1aa   : > { %8069 = vmatmul.msk.f32.gmra.mxu2 %vm365_vm1, %v2542_v50  ;;  %1839 = vst.msk [vmem:[#allocation4 + $0x80] sm:$0xff] %vm454_vm3, %v1807_v53  ;;  %8138 = vmatmul.msk.f32.gmra.mxu0 %vm365_vm1, %v3227_v60  ;;  %v1749_v12 = vpop.f32.mrf.mxu3  ;;  %v2148_v29 = vadd.f32 %v9588_v47, %v1902_v57 }
 0x1ac   : > { %8038 = vmatmul.msk.f32.gmra.mxu1 %vm365_vm1, %v3227_v60  ;;  %2180 = vst.msk [vmem:[#allocation4 + $0x78] sm:$0xff] %vm454_vm3, %v2148_v29  ;;  %v1071_v30 = vpop.f32.mrf.mxu1  ;;  %v2889_v60 = vld [vmem:[#allocation2 + $0x81] sm:$0xff] }
 0x1ad   : > { %v1407_v10 = vpop.f32.mrf.mxu2  ;;  %v1127_v49 = vadd.f32 %v1071_v30, %v881_v55 }
 0x1ae   : > { %v1467_v52 = vadd.f32 %v1407_v10, %v1221_v27  ;;  %v1222_v45 = vld [vmem:[#allocation4 + $0x98] sm:$0xff] }
 0x1af   : > { %v1562_v62 = vld [vmem:[#allocation4 + $0x88] sm:$0xff]  ;;  %1159 = vst.msk [vmem:[#allocation4 + $0xa0] sm:$0xff] %vm454_vm3, %v1127_v49  ;;  %v2546_v49 = vld [vmem:[#allocation2 + $0x78] sm:$0xff] }
 0x1b0   : > { %v1808_v23 = vadd.f32 %v1746_v39, %v1562_v62  ;;  %1499 = vst.msk [vmem:[#allocation4 + $0x90] sm:$0xff] %vm454_vm3, %v1467_v52  ;;  %v3230_v52 = vld [vmem:[#allocation2 + $0x7a] sm:$0xff] }
 0x1b1   : > { %8106 = vmatmul.msk.f32.gmra.mxu3 %vm365_vm1, %v2887_v56  ;;  %v9643_v33 = vpop.f32.mrf.mxu0  ;;  %v1903_v51 = vld [vmem:[#allocation4 + $0x80] sm:$0xff]  ;;  %v882_v56 = vld [vmem:[#allocation4 + $0xa8] sm:$0xff] }
 0x1b2   : > { %8070 = vmatmul.msk.f32.gmra.mxu2 %vm365_vm1, %v2543_v9  ;;  %1840 = vst.msk [vmem:[#allocation4 + $0x88] sm:$0xff] %vm454_vm3, %v1808_v23  ;;  %8139 = vmatmul.msk.f32.gmra.mxu0 %vm365_vm1, %v3228_v63  ;;  %v1752_v47 = vpop.f32.mrf.mxu3  ;;  %v2149_v39 = vadd.f32 %v9599_v59, %v1903_v51 }
 0x1b4   : > { %8039 = vmatmul.msk.f32.gmra.mxu1 %vm365_vm1, %v3228_v63  ;;  %2181 = vst.msk [vmem:[#allocation4 + $0x80] sm:$0xff] %vm454_vm3, %v2149_v39  ;;  %v1074_v10 = vpop.f32.mrf.mxu1  ;;  %v2890_v63 = vld [vmem:[#allocation2 + $0x91] sm:$0xff] }
 0x1b5   : > { %v1410_v1 = vpop.f32.mrf.mxu2  ;;  %v1128_v42 = vadd.f32 %v1074_v10, %v882_v56 }
 0x1b6   : > { %v1468_v54 = vadd.f32 %v1410_v1, %v1222_v45  ;;  %v1223_v57 = vld [vmem:[#allocation4 + $0xa0] sm:$0xff] }
 0x1b7   : > { %v1563_v37 = vld [vmem:[#allocation4 + $0x90] sm:$0xff]  ;;  %1160 = vst.msk [vmem:[#allocation4 + $0xa8] sm:$0xff] %vm454_vm3, %v1128_v42  ;;  %v2547_v42 = vld [vmem:[#allocation2 + $0x80] sm:$0xff] }
 0x1b8   : > { %v1809_v3 = vadd.f32 %v1749_v12, %v1563_v37  ;;  %1500 = vst.msk [vmem:[#allocation4 + $0x98] sm:$0xff] %vm454_vm3, %v1468_v54  ;;  %v3231_v54 = vld [vmem:[#allocation2 + $0x82] sm:$0xff] }
 0x1b9   : > { %8107 = vmatmul.msk.f32.gmra.mxu3 %vm365_vm1, %v2888_v2  ;;  %v9654_v50 = vpop.f32.mrf.mxu0  ;;  %v1904_v25 = vld [vmem:[#allocation4 + $0x88] sm:$0xff]  ;;  %v883_v2 = vld [vmem:[#allocation4 + $0xb0] sm:$0xff] }
 0x1ba   : > { %8071 = vmatmul.msk.f32.gmra.mxu2 %vm365_vm1, %v2544_v0  ;;  %1841 = vst.msk [vmem:[#allocation4 + $0x90] sm:$0xff] %vm454_vm3, %v1809_v3  ;;  %8140 = vmatmul.msk.f32.gmra.mxu0 %vm365_vm1, %v3229_v58  ;;  %v1755_v59 = vpop.f32.mrf.mxu3  ;;  %v2150_v12 = vadd.f32 %v9610_v11, %v1904_v25 }
 0x1bc   : > { %8040 = vmatmul.msk.f32.gmra.mxu1 %vm365_vm1, %v3229_v58  ;;  %2182 = vst.msk [vmem:[#allocation4 + $0x88] sm:$0xff] %vm454_vm3, %v2150_v12  ;;  %v1077_v1 = vpop.f32.mrf.mxu1  ;;  %v2891_v58 = vld [vmem:[#allocation2 + $0x99] sm:$0xff] }
 0x1bd   : > { %v1413_v53 = vpop.f32.mrf.mxu2  ;;  %v1129_v30 = vadd.f32 %v1077_v1, %v883_v2 }
 0x1be   : > { %v1469_v29 = vadd.f32 %v1413_v53, %v1223_v57  ;;  %v1224_v51 = vld [vmem:[#allocation4 + $0xa8] sm:$0xff] }
 0x1bf   : > { %v1564_v27 = vld [vmem:[#allocation4 + $0x98] sm:$0xff]  ;;  %1161 = vst.msk [vmem:[#allocation4 + $0xb0] sm:$0xff] %vm454_vm3, %v1129_v30  ;;  %v2548_v30 = vld [vmem:[#allocation2 + $0x90] sm:$0xff] }
 0x1c0   : > { %v1810_v62 = vadd.f32 %v1752_v47, %v1564_v27  ;;  %1501 = vst.msk [vmem:[#allocation4 + $0xa0] sm:$0xff] %vm454_vm3, %v1469_v29  ;;  %v3232_v29 = vld [vmem:[#allocation2 + $0x92] sm:$0xff] }
 0x1c1   : > { %8108 = vmatmul.msk.f32.gmra.mxu3 %vm365_vm1, %v2889_v60  ;;  %v9665_v9 = vpop.f32.mrf.mxu0  ;;  %v1905_v55 = vld [vmem:[#allocation4 + $0x90] sm:$0xff]  ;;  %v884_v60 = vld [vmem:[#allocation4 + $0xb8] sm:$0xff] }
 0x1c2   : > { %8072 = vmatmul.msk.f32.gmra.mxu2 %vm365_vm1, %v2545_v4  ;;  %1842 = vst.msk [vmem:[#allocation4 + $0x98] sm:$0xff] %vm454_vm3, %v1810_v62  ;;  %8141 = vmatmul.msk.f32.gmra.mxu0 %vm365_vm1, %v3230_v52  ;;  %v1758_v11 = vpop.f32.mrf.mxu3  ;;  %v2151_v47 = vadd.f32 %v9621_v36, %v1905_v55 }
 0x1c4   : > { %8041 = vmatmul.msk.f32.gmra.mxu1 %vm365_vm1, %v3230_v52  ;;  %2183 = vst.msk [vmem:[#allocation4 + $0x90] sm:$0xff] %vm454_vm3, %v2151_v47  ;;  %v1080_v53 = vpop.f32.mrf.mxu1  ;;  %v2892_v52 = vld [vmem:[#allocation2 + $0xa9] sm:$0xff] }
 0x1c5   : > { %v1416_v23 = vpop.f32.mrf.mxu2  ;;  %v1130_v10 = vadd.f32 %v1080_v53, %v884_v60 }
 0x1c6   : > { %v1470_v39 = vadd.f32 %v1416_v23, %v1224_v51  ;;  %v1225_v25 = vld [vmem:[#allocation4 + $0xb0] sm:$0xff] }
 0x1c7   : > { %v1565_v45 = vld [vmem:[#allocation4 + $0xa0] sm:$0xff]  ;;  %1162 = vst.msk [vmem:[#allocation4 + $0xb8] sm:$0xff] %vm454_vm3, %v1130_v10  ;;  %v2549_v10 = vld [vmem:[#allocation2 + $0x98] sm:$0xff] }
 0x1c8   : > { %v1811_v37 = vadd.f32 %v1755_v59, %v1565_v45  ;;  %1502 = vst.msk [vmem:[#allocation4 + $0xa8] sm:$0xff] %vm454_vm3, %v1470_v39  ;;  %v3233_v39 = vld [vmem:[#allocation2 + $0x9a] sm:$0xff] }
 0x1c9   : > { %8109 = vmatmul.msk.f32.gmra.mxu3 %vm365_vm1, %v2890_v63  ;;  %v9676_v0 = vpop.f32.mrf.mxu0  ;;  %v1906_v56 = vld [vmem:[#allocation4 + $0x98] sm:$0xff]  ;;  %v885_v63 = vld [vmem:[#allocation4 + $0xc0] sm:$0xff] }
 0x1ca   : > { %8073 = vmatmul.msk.f32.gmra.mxu2 %vm365_vm1, %v2546_v49  ;;  %1843 = vst.msk [vmem:[#allocation4 + $0xa0] sm:$0xff] %vm454_vm3, %v1811_v37  ;;  %8142 = vmatmul.msk.f32.gmra.mxu0 %vm365_vm1, %v3231_v54  ;;  %v1761_v36 = vpop.f32.mrf.mxu3  ;;  %v2152_v59 = vadd.f32 %v9632_v61, %v1906_v56 }
 0x1cc   : > { %8042 = vmatmul.msk.f32.gmra.mxu1 %vm365_vm1, %v3231_v54  ;;  %2184 = vst.msk [vmem:[#allocation4 + $0x98] sm:$0xff] %vm454_vm3, %v2152_v59  ;;  %v1083_v23 = vpop.f32.mrf.mxu1  ;;  %v2893_v54 = vld [vmem:[#allocation2 + $0xb1] sm:$0xff] }
 0x1cd   : > { %v1419_v3 = vpop.f32.mrf.mxu2  ;;  %v1131_v1 = vadd.f32 %v1083_v23, %v885_v63 }
 0x1ce   : > { %v1471_v12 = vadd.f32 %v1419_v3, %v1225_v25  ;;  %v1226_v55 = vld [vmem:[#allocation4 + $0xb8] sm:$0xff] }
 0x1cf   : > { %v1566_v57 = vld [vmem:[#allocation4 + $0xa8] sm:$0xff]  ;;  %1163 = vst.msk [vmem:[#allocation4 + $0xc0] sm:$0xff] %vm454_vm3, %v1131_v1 }
 0x1d0   : > { %v1812_v27 = vadd.f32 %v1758_v11, %v1566_v57  ;;  %1503 = vst.msk [vmem:[#allocation4 + $0xb0] sm:$0xff] %vm454_vm3, %v1471_v12  ;;  %v3234_v12 = vld [vmem:[#allocation2 + $0xaa] sm:$0xff] }
 0x1d1   : > { %8110 = vmatmul.msk.f32.gmra.mxu3 %vm365_vm1, %v2891_v58  ;;  %v9687_v4 = vpop.f32.mrf.mxu0  ;;  %v1907_v2 = vld [vmem:[#allocation4 + $0xa0] sm:$0xff]  ;;  %v886_v58 = vld [vmem:[#allocation4 + $0xc8] sm:$0xff] }
 0x1d2   : > { %8074 = vmatmul.msk.f32.gmra.mxu2 %vm365_vm1, %v2547_v42  ;;  %1844 = vst.msk [vmem:[#allocation4 + $0xa8] sm:$0xff] %vm454_vm3, %v1812_v27  ;;  %8143 = vmatmul.msk.f32.gmra.mxu0 %vm365_vm1, %v3232_v29  ;;  %v1764_v61 = vpop.f32.mrf.mxu3  ;;  %v2153_v11 = vadd.f32 %v9643_v33, %v1907_v2  ;;  %v2550_v1 = vld [vmem:[#allocation2 + $0xa8] sm:$0xff] }
 0x1d4   : > { %8043 = vmatmul.msk.f32.gmra.mxu1 %vm365_vm1, %v3232_v29  ;;  %2185 = vst.msk [vmem:[#allocation4 + $0xa0] sm:$0xff] %vm454_vm3, %v2153_v11  ;;  %v1086_v3 = vpop.f32.mrf.mxu1  ;;  %v2894_v29 = vld [vmem:[#allocation2 + $0xc1] sm:$0xff] }
 0x1d5   : > { %v1422_v62 = vpop.f32.mrf.mxu2  ;;  %v1132_v53 = vadd.f32 %v1086_v3, %v886_v58 }
 0x1d6   : > { %v1472_v47 = vadd.f32 %v1422_v62, %v1226_v55  ;;  %v1227_v56 = vld [vmem:[#allocation4 + $0xc0] sm:$0xff] }
 0x1d7   : > { %v1567_v51 = vld [vmem:[#allocation4 + $0xb0] sm:$0xff]  ;;  %1164 = vst.msk [vmem:[#allocation4 + $0xc8] sm:$0xff] %vm454_vm3, %v1132_v53 }
 0x1d8   : > { %v1813_v45 = vadd.f32 %v1761_v36, %v1567_v51  ;;  %1504 = vst.msk [vmem:[#allocation4 + $0xb8] sm:$0xff] %vm454_vm3, %v1472_v47  ;;  %v3235_v47 = vld [vmem:[#allocation2 + $0xb2] sm:$0xff] }
 0x1d9   : > { %8111 = vmatmul.msk.f32.gmra.mxu3 %vm365_vm1, %v2892_v52  ;;  %v9698_v49 = vpop.f32.mrf.mxu0  ;;  %v1908_v60 = vld [vmem:[#allocation4 + $0xa8] sm:$0xff]  ;;  %v887_v52 = vld [vmem:[#allocation4 + $0xd0] sm:$0xff] }
 0x1da   : > { %8075 = vmatmul.msk.f32.gmra.mxu2 %vm365_vm1, %v2548_v30  ;;  %1845 = vst.msk [vmem:[#allocation4 + $0xb0] sm:$0xff] %vm454_vm3, %v1813_v45  ;;  %8144 = vmatmul.msk.f32.gmra.mxu0 %vm365_vm1, %v3233_v39  ;;  %v1767_v33 = vpop.f32.mrf.mxu3  ;;  %v2154_v36 = vadd.f32 %v9654_v50, %v1908_v60  ;;  %v2551_v53 = vld [vmem:[#allocation2 + $0xb0] sm:$0xff] }
 0x1dc   : > { %8044 = vmatmul.msk.f32.gmra.mxu1 %vm365_vm1, %v3233_v39  ;;  %2186 = vst.msk [vmem:[#allocation4 + $0xa8] sm:$0xff] %vm454_vm3, %v2154_v36  ;;  %v1089_v62 = vpop.f32.mrf.mxu1  ;;  %v2895_v39 = vld [vmem:[#allocation2 + $0xc9] sm:$0xff] }
 0x1dd   : > { %v1425_v37 = vpop.f32.mrf.mxu2  ;;  %v1133_v23 = vadd.f32 %v1089_v62, %v887_v52 }
 0x1de   : > { %v1473_v59 = vadd.f32 %v1425_v37, %v1227_v56  ;;  %v1228_v2 = vld [vmem:[#allocation4 + $0xc8] sm:$0xff] }
 0x1df   : > { %v1568_v25 = vld [vmem:[#allocation4 + $0xb8] sm:$0xff]  ;;  %1165 = vst.msk [vmem:[#allocation4 + $0xd0] sm:$0xff] %vm454_vm3, %v1133_v23  ;;  %v2552_v23 = vld [vmem:[#allocation2 + $0xc0] sm:$0xff] }
 0x1e0   : > { %v1814_v57 = vadd.f32 %v1764_v61, %v1568_v25  ;;  %1505 = vst.msk [vmem:[#allocation4 + $0xc0] sm:$0xff] %vm454_vm3, %v1473_v59  ;;  %v3236_v59 = vld [vmem:[#allocation2 + $0xc2] sm:$0xff] }
 0x1e1   : > { %8112 = vmatmul.msk.f32.gmra.mxu3 %vm365_vm1, %v2893_v54  ;;  %v9709_v42 = vpop.f32.mrf.mxu0  ;;  %v1909_v63 = vld [vmem:[#allocation4 + $0xb0] sm:$0xff]  ;;  %v888_v54 = vld [vmem:[#allocation4 + $0xd8] sm:$0xff] }
 0x1e2   : > { %8076 = vmatmul.msk.f32.gmra.mxu2 %vm365_vm1, %v2549_v10  ;;  %1846 = vst.msk [vmem:[#allocation4 + $0xb8] sm:$0xff] %vm454_vm3, %v1814_v57  ;;  %8145 = vmatmul.msk.f32.gmra.mxu0 %vm365_vm1, %v3234_v12  ;;  %v1770_v50 = vpop.f32.mrf.mxu3  ;;  %v2155_v61 = vadd.f32 %v9665_v9, %v1909_v63 }
 0x1e4   : > { %8045 = vmatmul.msk.f32.gmra.mxu1 %vm365_vm1, %v3234_v12  ;;  %2187 = vst.msk [vmem:[#allocation4 + $0xb0] sm:$0xff] %vm454_vm3, %v2155_v61  ;;  %v1092_v37 = vpop.f32.mrf.mxu1  ;;  %v2896_v12 = vld [vmem:[#allocation2 + $0xd9] sm:$0xff] }
 0x1e5   : > { %v1428_v27 = vpop.f32.mrf.mxu2  ;;  %v1134_v3 = vadd.f32 %v1092_v37, %v888_v54 }
 0x1e6   : > { %v1474_v11 = vadd.f32 %v1428_v27, %v1228_v2  ;;  %v1229_v60 = vld [vmem:[#allocation4 + $0xd0] sm:$0xff] }
 0x1e7   : > { %v1569_v55 = vld [vmem:[#allocation4 + $0xc0] sm:$0xff]  ;;  %1166 = vst.msk [vmem:[#allocation4 + $0xd8] sm:$0xff] %vm454_vm3, %v1134_v3  ;;  %v2553_v3 = vld [vmem:[#allocation2 + $0xc8] sm:$0xff] }
 0x1e8   : > { %v1815_v51 = vadd.f32 %v1767_v33, %v1569_v55  ;;  %1506 = vst.msk [vmem:[#allocation4 + $0xc8] sm:$0xff] %vm454_vm3, %v1474_v11  ;;  %v3237_v11 = vld [vmem:[#allocation2 + $0xca] sm:$0xff] }
 0x1e9   : > { %8113 = vmatmul.msk.f32.gmra.mxu3 %vm365_vm1, %v2894_v29  ;;  %v9720_v30 = vpop.f32.mrf.mxu0  ;;  %v1910_v58 = vld [vmem:[#allocation4 + $0xb8] sm:$0xff]  ;;  %v889_v29 = vld [vmem:[#allocation4 + $0xe0] sm:$0xff] }
 0x1ea   : > { %8077 = vmatmul.msk.f32.gmra.mxu2 %vm365_vm1, %v2550_v1  ;;  %1847 = vst.msk [vmem:[#allocation4 + $0xc0] sm:$0xff] %vm454_vm3, %v1815_v51  ;;  %8146 = vmatmul.msk.f32.gmra.mxu0 %vm365_vm1, %v3235_v47  ;;  %v1773_v9 = vpop.f32.mrf.mxu3  ;;  %v2156_v33 = vadd.f32 %v9676_v0, %v1910_v58 }
 0x1ec   : > { %8046 = vmatmul.msk.f32.gmra.mxu1 %vm365_vm1, %v3235_v47  ;;  %2188 = vst.msk [vmem:[#allocation4 + $0xb8] sm:$0xff] %vm454_vm3, %v2156_v33  ;;  %v1095_v27 = vpop.f32.mrf.mxu1  ;;  %v2897_v47 = vld [vmem:[#allocation2 + $0xe1] sm:$0xff] }
 0x1ed   : > { %v1431_v45 = vpop.f32.mrf.mxu2  ;;  %v1135_v62 = vadd.f32 %v1095_v27, %v889_v29 }
 0x1ee   : > { %v1475_v36 = vadd.f32 %v1431_v45, %v1229_v60  ;;  %v1230_v63 = vld [vmem:[#allocation4 + $0xd8] sm:$0xff] }
 0x1ef   : > { %v1570_v56 = vld [vmem:[#allocation4 + $0xc8] sm:$0xff]  ;;  %1167 = vst.msk [vmem:[#allocation4 + $0xe0] sm:$0xff] %vm454_vm3, %v1135_v62  ;;  %v2554_v62 = vld [vmem:[#allocation2 + $0xd8] sm:$0xff] }
 0x1f0   : > { %v1816_v25 = vadd.f32 %v1770_v50, %v1570_v56  ;;  %1507 = vst.msk [vmem:[#allocation4 + $0xd0] sm:$0xff] %vm454_vm3, %v1475_v36  ;;  %v3238_v36 = vld [vmem:[#allocation2 + $0xda] sm:$0xff] }
 0x1f1   : > { %8114 = vmatmul.msk.f32.gmra.mxu3 %vm365_vm1, %v2895_v39  ;;  %v9731_v10 = vpop.f32.mrf.mxu0  ;;  %v1911_v52 = vld [vmem:[#allocation4 + $0xc0] sm:$0xff]  ;;  %v890_v39 = vld [vmem:[#allocation4 + $0xe8] sm:$0xff] }
 0x1f2   : > { %8078 = vmatmul.msk.f32.gmra.mxu2 %vm365_vm1, %v2551_v53  ;;  %1848 = vst.msk [vmem:[#allocation4 + $0xc8] sm:$0xff] %vm454_vm3, %v1816_v25  ;;  %8147 = vmatmul.msk.f32.gmra.mxu0 %vm365_vm1, %v3236_v59  ;;  %v1776_v0 = vpop.f32.mrf.mxu3  ;;  %v2157_v50 = vadd.f32 %v9687_v4, %v1911_v52 }
 0x1f4   : > { %8047 = vmatmul.msk.f32.gmra.mxu1 %vm365_vm1, %v3236_v59  ;;  %2189 = vst.msk [vmem:[#allocation4 + $0xc0] sm:$0xff] %vm454_vm3, %v2157_v50  ;;  %v1098_v45 = vpop.f32.mrf.mxu1  ;;  %v2898_v59 = vld [vmem:[#allocation2 + $0xf1] sm:$0xff] }
 0x1f5   : > { %v1434_v57 = vpop.f32.mrf.mxu2  ;;  %v1136_v37 = vadd.f32 %v1098_v45, %v890_v39 }
 0x1f6   : > { %v1476_v61 = vadd.f32 %v1434_v57, %v1230_v63  ;;  %v1231_v58 = vld [vmem:[#allocation4 + $0xe0] sm:$0xff] }
 0x1f7   : > { %v1571_v2 = vld [vmem:[#allocation4 + $0xd0] sm:$0xff]  ;;  %1168 = vst.msk [vmem:[#allocation4 + $0xe8] sm:$0xff] %vm454_vm3, %v1136_v37 }
 0x1f8   : > { %v1817_v55 = vadd.f32 %v1773_v9, %v1571_v2  ;;  %1508 = vst.msk [vmem:[#allocation4 + $0xd8] sm:$0xff] %vm454_vm3, %v1476_v61  ;;  %v3239_v61 = vld [vmem:[#allocation2 + $0xe2] sm:$0xff] }
 0x1f9   : > { %8115 = vmatmul.msk.f32.gmra.mxu3 %vm365_vm1, %v2896_v12  ;;  %v9742_v1 = vpop.f32.mrf.mxu0  ;;  %v1912_v54 = vld [vmem:[#allocation4 + $0xc8] sm:$0xff]  ;;  %v891_v12 = vld [vmem:[#allocation4 + $0xf0] sm:$0xff] }
 0x1fa   : > { %8079 = vmatmul.msk.f32.gmra.mxu2 %vm365_vm1, %v2552_v23  ;;  %1849 = vst.msk [vmem:[#allocation4 + $0xd0] sm:$0xff] %vm454_vm3, %v1817_v55  ;;  %8148 = vmatmul.msk.f32.gmra.mxu0 %vm365_vm1, %v3237_v11  ;;  %v1779_v4 = vpop.f32.mrf.mxu3  ;;  %v2158_v9 = vadd.f32 %v9698_v49, %v1912_v54  ;;  %v892_v55 = vld [vmem:[#allocation4 + $0xf8] sm:$0xff] }
 0x1fc   : > { %8048 = vmatmul.msk.f32.gmra.mxu1 %vm365_vm1, %v3237_v11  ;;  %2190 = vst.msk [vmem:[#allocation4 + $0xc8] sm:$0xff] %vm454_vm3, %v2158_v9  ;;  %v1101_v57 = vpop.f32.mrf.mxu1 }
 0x1fd   : > { %v1437_v51 = vpop.f32.mrf.mxu2  ;;  %v1137_v27 = vadd.f32 %v1101_v57, %v891_v12 }
 0x1fe   : > { %v1477_v33 = vadd.f32 %v1437_v51, %v1231_v58  ;;  %v1232_v52 = vld [vmem:[#allocation4 + $0xe8] sm:$0xff] }
 0x1ff   : > { %v1572_v60 = vld [vmem:[#allocation4 + $0xd8] sm:$0xff]  ;;  %1169 = vst.msk [vmem:[#allocation4 + $0xf0] sm:$0xff] %vm454_vm3, %v1137_v27 }
 0x200   : > { %v1818_v56 = vadd.f32 %v1776_v0, %v1572_v60  ;;  %1509 = vst.msk [vmem:[#allocation4 + $0xe0] sm:$0xff] %vm454_vm3, %v1477_v33 }
 0x201   : > { %8116 = vmatmul.msk.f32.gmra.mxu3 %vm365_vm1, %v2897_v47  ;;  %v9753_v53 = vpop.f32.mrf.mxu0  ;;  %v1913_v29 = vld [vmem:[#allocation4 + $0xd0] sm:$0xff] }
 0x202   : > { %8080 = vmatmul.msk.f32.gmra.mxu2 %vm365_vm1, %v2553_v3  ;;  %1850 = vst.msk [vmem:[#allocation4 + $0xd8] sm:$0xff] %vm454_vm3, %v1818_v56  ;;  %8149 = vmatmul.msk.f32.gmra.mxu0 %vm365_vm1, %v3238_v36  ;;  %v1782_v49 = vpop.f32.mrf.mxu3  ;;  %v2159_v0 = vadd.f32 %v9709_v42, %v1913_v29  ;;  %v3240_v3 = vld [vmem:[#allocation2 + $0xf2] sm:$0xff] }
 0x204   : > { %8049 = vmatmul.msk.f32.gmra.mxu1 %vm365_vm1, %v3238_v36  ;;  %2191 = vst.msk [vmem:[#allocation4 + $0xd0] sm:$0xff] %vm454_vm3, %v2159_v0  ;;  %v1104_v47 = vpop.f32.mrf.mxu1  ;;  %v2229_v36 = vld [vmem:[#allocation4] sm:$0xff] }
 0x205   : > { %v1440_v25 = vpop.f32.mrf.mxu2  ;;  %v1138_v39 = vadd.f32 %v1104_v47, %v892_v55 }
 0x206   : > { %v1478_v50 = vadd.f32 %v1440_v25, %v1232_v52  ;;  %v1233_v54 = vld [vmem:[#allocation4 + $0xf0] sm:$0xff]  ;;  %v3241_v52 = vld [vmem:[#allocation2 + $0xfa] sm:$0xff] }
 0x207   : > { %v1573_v63 = vld [vmem:[#allocation4 + $0xe0] sm:$0xff]  ;;  %1170 = vst.msk [vmem:[#allocation4 + $0xf8] sm:$0xff] %vm454_vm3, %v1138_v39  ;;  %v8232_v39 = vld [vmem:[%s11564_s3 + $0x10] sm:$0xff] }
 0x208   : > { %v1819_v2 = vadd.f32 %v1779_v4, %v1573_v63  ;;  %1510 = vst.msk [vmem:[#allocation4 + $0xe8] sm:$0xff] %vm454_vm3, %v1478_v50  ;;  %v2555_v4 = vld [vmem:[#allocation2 + $0xe0] sm:$0xff]  ;;  %4704 = vmatpush.msrb.mxu3 %v8232_v39 }
 0x209   : > { %8117 = vmatmul.msk.f32.gmra.mxu3 %vm365_vm1, %v2898_v59  ;;  %v9764_v23 = vpop.f32.mrf.mxu0  ;;  %v1914_v51 = vld [vmem:[#allocation4 + $0xd8] sm:$0xff] }
 0x20a   : > { %8081 = vmatmul.msk.f32.gmra.mxu2 %vm365_vm1, %v2554_v62  ;;  %1851 = vst.msk [vmem:[#allocation4 + $0xe0] sm:$0xff] %vm454_vm3, %v1819_v2  ;;  %8150 = vmatmul.msk.f32.gmra.mxu0 %vm365_vm1, %v3239_v61  ;;  %v1785_v42 = vpop.f32.mrf.mxu3  ;;  %v2160_v45 = vadd.f32 %v9720_v30, %v1914_v51  ;;  %v8199_v51 = vld [vmem:[%s11564_s3 + $0x8] sm:$0xff] }
 0x20b   : > { %4365 = vmatpush.msrb.mxu2 %v8199_v51 }
 0x20c   : > { %8050 = vmatmul.msk.f32.gmra.mxu1 %vm365_vm1, %v3239_v61  ;;  %2192 = vst.msk [vmem:[#allocation4 + $0xd8] sm:$0xff] %vm454_vm3, %v2160_v45  ;;  %v2379_v56 = vpop.f32.mrf.mxu1  ;;  %v2557_v45 = vld [vmem:[#allocation2 + $0xf8] sm:$0xff] }
 0x20d   : > { %v1443_v11 = vpop.f32.mrf.mxu2  ;;  %v2475_v25 = vadd.f32 %v2379_v56, %v2229_v36 }
 0x20e   : > { %v1479_v37 = vadd.f32 %v1443_v11, %v1233_v54  ;;  %v1234_v57 = vld [vmem:[#allocation4 + $0xf8] sm:$0xff]  ;;  %v2230_v11 = vld [vmem:[#allocation4 + $0x8] sm:$0xff] }
 0x20f   : > { %v1574_v9 = vld [vmem:[#allocation4 + $0xe8] sm:$0xff]  ;;  %2507 = vst.msk [vmem:[#allocation4] sm:$0xff] %vm454_vm3, %v2475_v25 }
 0x210   : > { %v1820_v33 = vadd.f32 %v1782_v49, %v1574_v9  ;;  %1511 = vst.msk [vmem:[#allocation4 + $0xf0] sm:$0xff] %vm454_vm3, %v1479_v37  ;;  %v2556_v49 = vld [vmem:[#allocation2 + $0xf0] sm:$0xff] }
 0x211   : > { %v9774_v58 = vpop.f32.mrf.mxu0  ;;  %v1915_v59 = vld [vmem:[#allocation4 + $0xe0] sm:$0xff]  ;;  %v3242_v37 = vld [vmem:[#allocation2 + $0x10a] sm:$0xff] }
 0x212   : > { %8082 = vmatmul.msk.f32.gmra.mxu2 %vm365_vm1, %v2555_v4  ;;  %1852 = vst.msk [vmem:[#allocation4 + $0xe8] sm:$0xff] %vm454_vm3, %v1820_v33  ;;  %8151 = vmatmul.msk.f32.gmra.mxu0 %vm365_vm1, %v3240_v3  ;;  %v1788_v30 = vpop.f32.mrf.mxu3  ;;  %v2161_v12 = vadd.f32 %v9731_v10, %v1915_v59  ;;  %v2899_v4 = vld [vmem:[#allocation2 + $0xf9] sm:$0xff] }
 0x213   : > { %8118 = vmatmul.msk.f32.gmra.mxu3 %vm365_vm1, %v2899_v4 }
 0x214   : > { %8051 = vmatmul.msk.f32.gmra.mxu1 %vm365_vm1, %v3240_v3  ;;  %2193 = vst.msk [vmem:[#allocation4 + $0xe0] sm:$0xff] %vm454_vm3, %v2161_v12  ;;  %v2382_v55 = vpop.f32.mrf.mxu1  ;;  %v8265_v12 = vld [vmem:[%s11564_s3 + $0x18] sm:$0xff] }
 0x215   : > { %v1446_v60 = vpop.f32.mrf.mxu2  ;;  %5043 = vmatpush.msrb.mxu0 %v8265_v12 }
 0x216   : > { %v1480_v29 = vadd.f32 %v1446_v60, %v1234_v57  ;;  %v2572_v2 = vld [vmem:[#allocation4] sm:$0xff] }
 0x217   : > { %v1575_v27 = vld [vmem:[#allocation4 + $0xf0] sm:$0xff] }
 0x218   : > { %v1821_v62 = vadd.f32 %v1785_v42, %v1575_v27  ;;  %1512 = vst.msk [vmem:[#allocation4 + $0xf8] sm:$0xff] %vm454_vm3, %v1480_v29  ;;  %v2476_v42 = vadd.f32 %v2382_v55, %v2230_v11 }
 0x219   : > { %v9784_v0 = vpop.f32.mrf.mxu0  ;;  %v1916_v63 = vld [vmem:[#allocation4 + $0xe8] sm:$0xff] }
 0x21a   : > { %8083 = vmatmul.msk.f32.gmra.mxu2 %vm365_vm1, %v2556_v49  ;;  %1853 = vst.msk [vmem:[#allocation4 + $0xf0] sm:$0xff] %vm454_vm3, %v1821_v62  ;;  %8152 = vmatmul.msk.f32.gmra.mxu0 %vm365_vm1, %v3241_v52  ;;  %v3064_v10 = vpop.f32.mrf.mxu3  ;;  %v2162_v61 = vadd.f32 %v9742_v1, %v1916_v63  ;;  %v2558_v49 = vld [vmem:[#allocation2 + $0x108] sm:$0xff] }
 0x21b   : > { %2508 = vst.msk [vmem:[#allocation4 + $0x8] sm:$0xff] %vm454_vm3, %v2476_v42  ;;  %v2901_v42 = vld [vmem:[#allocation2 + $0x111] sm:$0xff] }
 0x21c   : > { %8052 = vmatmul.msk.f32.gmra.mxu1 %vm365_vm1, %v3241_v52  ;;  %2194 = vst.msk [vmem:[#allocation4 + $0xe8] sm:$0xff] %vm454_vm3, %v2162_v61  ;;  %v2385_v56 = vpop.f32.mrf.mxu1  ;;  %v3243_v52 = vld [vmem:[#allocation2 + $0x112] sm:$0xff] }
 0x21d   : > { %v2722_v50 = vpop.f32.mrf.mxu2 }
 0x21e   : > { %v2818_v47 = vadd.f32 %v2722_v50, %v2572_v2  ;;  %v2232_v2 = vld [vmem:[#allocation4 + $0x18] sm:$0xff] }
 0x21f   : > { %v1576_v54 = vld [vmem:[#allocation4 + $0xf8] sm:$0xff] }
 0x220   : > { %v1822_v9 = vadd.f32 %v1788_v30, %v1576_v54  ;;  %2850 = vst.msk [vmem:[#allocation4] sm:$0xff] %vm454_vm3, %v2818_v47  ;;  %v2231_v30 = vld [vmem:[#allocation4 + $0x10] sm:$0xff] }
 0x221   : > { %v9800_v1 = vpop.f32.mrf.mxu0  ;;  %v1917_v60 = vld [vmem:[#allocation4 + $0xf0] sm:$0xff]  ;;  %v2477_v59 = vadd.f32 %v2385_v56, %v2231_v30 }
 0x222   : > { %8084 = vmatmul.msk.f32.gmra.mxu2 %vm365_vm1, %v2557_v45  ;;  %1854 = vst.msk [vmem:[#allocation4 + $0xf8] sm:$0xff] %vm454_vm3, %v1822_v9  ;;  %8153 = vmatmul.msk.f32.gmra.mxu0 %vm365_vm1, %v3242_v37  ;;  %v3067_v3 = vpop.f32.mrf.mxu3  ;;  %v2163_v36 = vadd.f32 %v9753_v53, %v1917_v60  ;;  %v2573_v27 = vld [vmem:[#allocation4 + $0x8] sm:$0xff]  ;;  %v2559_v47 = vld [vmem:[#allocation2 + $0x110] sm:$0xff] }
 0x223   : > { %2509 = vst.msk [vmem:[#allocation4 + $0x10] sm:$0xff] %vm454_vm3, %v2477_v59  ;;  %v2900_v53 = vld [vmem:[#allocation2 + $0x109] sm:$0xff]  ;;  %v2560_v59 = vld [vmem:[#allocation2 + $0x120] sm:$0xff] }
 0x224   : > { %8053 = vmatmul.msk.f32.gmra.mxu1 %vm365_vm1, %v3242_v37  ;;  %2195 = vst.msk [vmem:[#allocation4 + $0xf0] sm:$0xff] %vm454_vm3, %v2163_v36  ;;  %8119 = vmatmul.msk.f32.gmra.mxu3 %vm365_vm1, %v2900_v53  ;;  %v2388_v11 = vpop.f32.mrf.mxu1  ;;  %v3244_v45 = vld [vmem:[#allocation2 + $0x122] sm:$0xff] }
 0x225   : > { %v2725_v33 = vpop.f32.mrf.mxu2  ;;  %v2478_v55 = vadd.f32 %v2388_v11, %v2232_v2  ;;  %v2233_v36 = vld [vmem:[#allocation4 + $0x20] sm:$0xff]  ;;  %v2234_v11 = vld [vmem:[#allocation4 + $0x28] sm:$0xff] }
 0x226   : > { %v2819_v62 = vadd.f32 %v2725_v33, %v2573_v27 }
 0x227   : > { %v2914_v25 = vld [vmem:[#allocation4] sm:$0xff]  ;;  %2510 = vst.msk [vmem:[#allocation4 + $0x18] sm:$0xff] %vm454_vm3, %v2478_v55 }
 0x228   : > { %v3160_v29 = vadd.f32 %v3064_v10, %v2914_v25  ;;  %2851 = vst.msk [vmem:[#allocation4 + $0x8] sm:$0xff] %vm454_vm3, %v2819_v62  ;;  %v2902_v25 = vld [vmem:[#allocation2 + $0x121] sm:$0xff] }
 0x229   : > { %v9814_v57 = vpop.f32.mrf.mxu0  ;;  %v1918_v10 = vld [vmem:[#allocation4 + $0xf8] sm:$0xff] }
 0x22a   : > { %8085 = vmatmul.msk.f32.gmra.mxu2 %vm365_vm1, %v2558_v49  ;;  %3192 = vst.msk [vmem:[#allocation4] sm:$0xff] %vm454_vm3, %v3160_v29  ;;  %8154 = vmatmul.msk.f32.gmra.mxu0 %vm365_vm1, %v3243_v52  ;;  %v3070_v50 = vpop.f32.mrf.mxu3  ;;  %v2164_v61 = vadd.f32 %v9764_v23, %v1918_v10  ;;  %v2574_v51 = vld [vmem:[#allocation4 + $0x10] sm:$0xff] }
 0x22b   : > { %v3245_v49 = vld [vmem:[#allocation2 + $0x12a] sm:$0xff] }
 0x22c   : > { %8054 = vmatmul.msk.f32.gmra.mxu1 %vm365_vm1, %v3243_v52  ;;  %2196 = vst.msk [vmem:[#allocation4 + $0xf8] sm:$0xff] %vm454_vm3, %v2164_v61  ;;  %8120 = vmatmul.msk.f32.gmra.mxu3 %vm365_vm1, %v2901_v42  ;;  %v2391_v30 = vpop.f32.mrf.mxu1  ;;  %v2561_v42 = vld [vmem:[#allocation2 + $0x128] sm:$0xff] }
 0x22d   : > { %v2728_v63 = vpop.f32.mrf.mxu2  ;;  %v2479_v56 = vadd.f32 %v2391_v30, %v2233_v36 }
 0x22e   : > { %v2820_v54 = vadd.f32 %v2728_v63, %v2574_v51  ;;  %v2903_v51 = vld [vmem:[#allocation2 + $0x129] sm:$0xff] }
 0x22f   : > { %v2915_v37 = vld [vmem:[#allocation4 + $0x8] sm:$0xff]  ;;  %2511 = vst.msk [vmem:[#allocation4 + $0x20] sm:$0xff] %vm454_vm3, %v2479_v56 }
 0x230   : > { %2852 = vst.msk [vmem:[#allocation4 + $0x10] sm:$0xff] %vm454_vm3, %v2820_v54  ;;  %v3161_v33 = vadd.f32 %v3067_v3, %v2915_v37  ;;  %v9841_v3 = vld [vmem:[%s11563_s2] ss:$0 sm:$0xff] }
 0x231   : > { %v9825_v39 = vpop.f32.mrf.mxu0  ;;  %v3256_v4 = vld [vmem:[#allocation4] sm:$0xff] }
 0x232   : > { %8086 = vmatmul.msk.f32.gmra.mxu2 %vm365_vm1, %v2559_v47  ;;  %v3502_v23 = vadd.f32 %v9774_v58, %v3256_v4  ;;  %8155 = vmatmul.msk.f32.gmra.mxu0 %vm365_vm1, %v3244_v45  ;;  %v3073_v9 = vpop.f32.mrf.mxu3  ;;  %3193 = vst.msk [vmem:[#allocation4 + $0x8] sm:$0xff] %vm454_vm3, %v3161_v33  ;;  %v2575_v58 = vld [vmem:[#allocation4 + $0x18] sm:$0xff] }
 0x233   : > { %v3246_v4 = vld [vmem:[#allocation2 + $0x13a] sm:$0xff] }
 0x234   : > { %8055 = vmatmul.msk.f32.gmra.mxu1 %vm365_vm1, %v3244_v45  ;;  %3534 = vst.msk [vmem:[#allocation4] sm:$0xff] %vm454_vm3, %v3502_v23  ;;  %8121 = vmatmul.msk.f32.gmra.mxu3 %vm365_vm1, %v2902_v25  ;;  %v2394_v55 = vpop.f32.mrf.mxu1 }
 0x235   : > { %v2731_v60 = vpop.f32.mrf.mxu2 }
 0x236   : > { %v2821_v29 = vadd.f32 %v2731_v60, %v2575_v58  ;;  %v2576_v45 = vld [vmem:[#allocation4 + $0x20] sm:$0xff] }
 0x237   : > { %v2916_v27 = vld [vmem:[#allocation4 + $0x10] sm:$0xff] }
 0x238   : > { %v3162_v53 = vadd.f32 %v3070_v50, %v2916_v27  ;;  %2853 = vst.msk [vmem:[#allocation4 + $0x18] sm:$0xff] %vm454_vm3, %v2821_v29  ;;  %v2480_v50 = vadd.f32 %v2394_v55, %v2234_v11  ;;  %v2904_v29 = vld [vmem:[#allocation2 + $0x139] sm:$0xff] }
 0x239   : > { %v9836_v12 = vpop.f32.mrf.mxu0  ;;  %v3257_v61 = vld [vmem:[#allocation4 + $0x8] sm:$0xff] }
 0x23a   : > { %8087 = vmatmul.msk.f32.gmra.mxu2 %vm365_vm1, %v2560_v59  ;;  %8156 = vmatmul.msk.f32.gmra.mxu0 %vm365_vm1, %v3245_v49  ;;  %v3076_v52 = vpop.f32.mrf.mxu3  ;;  %3194 = vst.msk [vmem:[#allocation4 + $0x10] sm:$0xff] %vm454_vm3, %v3162_v53  ;;  %v3503_v2 = vadd.f32 %v9784_v0, %v3257_v61  ;;  %v2235_v59 = vld [vmem:[#allocation4 + $0x30] sm:$0xff] }
 0x23b   : > { %v3566_v62 = vld [vmem:[#allocation4] sm:$0xff]  ;;  %2512 = vst.msk [vmem:[#allocation4 + $0x28] sm:$0xff] %vm454_vm3, %v2480_v50 }
 0x23c   : > { %8056 = vmatmul.msk.f32.gmra.mxu1 %vm365_vm1, %v3245_v49  ;;  %v3602_v10 = vadd.f32 %v9841_v3, %v3566_v62  ;;  %3535 = vst.msk [vmem:[#allocation4 + $0x8] sm:$0xff] %vm454_vm3, %v3503_v2  ;;  %8122 = vmatmul.msk.f32.gmra.mxu3 %vm365_vm1, %v2903_v51  ;;  %v2562_v49 = vld [vmem:[#allocation2 + $0x138] sm:$0xff] }
 0x23d   : > { %v2734_v63 = vpop.f32.mrf.mxu2 }
 0x23e   : > { %v3666_v47 = vmul.f32 0.01, %v3602_v10  ;;  %v2822_v23 = vadd.f32 %v2734_v63, %v2576_v45  ;;  %vm3634_vm4 = vcmp.ge.f32.partialorder %v3602_v10, 0.0  ;;  %v3247_v63 = vld [vmem:[#allocation2 + $0x142] sm:$0xff]  ;;  %v2236_v45 = vld [vmem:[#allocation4 + $0x38] sm:$0xff] }
 0x23f   : > { %v2917_v37 = vld [vmem:[#allocation4 + $0x18] sm:$0xff] }
 0x240   : > { %v3163_v0 = vadd.f32 %v3073_v9, %v2917_v37  ;;  %2854 = vst.msk [vmem:[#allocation4 + $0x20] sm:$0xff] %vm454_vm3, %v2822_v23  ;;  %v9860_v60 = vsel %vm3634_vm4, %v3602_v10, %v3666_v47  ;;  %v2397_v9 = vpop.f32.mrf.mxu1  ;;  %v2563_v23 = vld [vmem:[#allocation2 + $0x140] sm:$0xff] }
 0x241   : > { %v9853_v54 = vpop.f32.mrf.mxu0  ;;  %v3258_v36 = vld [vmem:[#allocation4 + $0x10] sm:$0xff]  ;;  %3786 = vst.msk [vmem:[#allocation3 + $0x19] sm:$0xff] %vm454_vm3, %v9860_v60  ;;  %v2481_v58 = vadd.f32 %v2397_v9, %v2235_v59  ;;  %v2905_v37 = vld [vmem:[#allocation2 + $0x141] sm:$0xff] }
 0x242   : > { %8088 = vmatmul.msk.f32.gmra.mxu2 %vm365_vm1, %v2561_v42  ;;  %8157 = vmatmul.msk.f32.gmra.mxu0 %vm365_vm1, %v3246_v4  ;;  %v3079_v33 = vpop.f32.mrf.mxu3  ;;  %v3504_v56 = vadd.f32 %v9800_v1, %v3258_v36  ;;  %3195 = vst.msk [vmem:[#allocation4 + $0x18] sm:$0xff] %vm454_vm3, %v3163_v0  ;;  %v2577_v53 = vld [vmem:[#allocation4 + $0x28] sm:$0xff]  ;;  %v11611_v42 = vmov 0.0  }
 0x243   : > { %v3567_v25 = vld [vmem:[#allocation4 + $0x8] sm:$0xff]  ;;  %2513 = vst.msk [vmem:[#allocation4 + $0x30] sm:$0xff] %vm454_vm3, %v2481_v58 }
 0x244   : > { %8057 = vmatmul.msk.f32.gmra.mxu1 %vm365_vm1, %v3246_v4  ;;  %3536 = vst.msk [vmem:[#allocation4 + $0x10] sm:$0xff] %vm454_vm3, %v3504_v56  ;;  %v3603_v27 = vadd.f32 %v9841_v3, %v3567_v25  ;;  %8123 = vmatmul.msk.f32.gmra.mxu3 %vm365_vm1, %v2904_v29  ;;  %v2237_v29 = vld [vmem:[#allocation4 + $0x40] sm:$0xff] }
 0x245   : > { %v2737_v30 = vpop.f32.mrf.mxu2  ;;  %3736 = vst.msk [vmem:[#allocation3 + $0x28] sm:$0x3] %vm3732_vm6, %v11611_v42 }
 0x246   : > { %v2823_v10 = vadd.f32 %v2737_v30, %v2577_v53  ;;  %vm3635_vm5 = vcmp.ge.f32.partialorder %v3603_v27, 0.0  ;;  %v3667_v61 = vmul.f32 0.01, %v3603_v27  ;;  %v3248_v30 = vld [vmem:[#allocation2 + $0x152] sm:$0xff]  ;;  %3733 = vst.msk [vmem:[#allocation3 + $0x10] sm:$0x3] %vm3732_vm6, %v11611_v42 }
 0x247   : > { %v2918_v1 = vld [vmem:[#allocation4 + $0x20] sm:$0xff]  ;;  %3739 = vst.msk [vmem:[#allocation3 + $0x40] sm:$0x3] %vm3732_vm6, %v11611_v42  ;;  %v2564_v53 = vld [vmem:[#allocation2 + $0x150] sm:$0xff] }
 0x248   : > { %v3164_v2 = vadd.f32 %v3076_v52, %v2918_v1  ;;  %2855 = vst.msk [vmem:[#allocation4 + $0x28] sm:$0xff] %vm454_vm3, %v2823_v10  ;;  %v9877_v50 = vsel %vm3635_vm5, %v3603_v27, %v3667_v61  ;;  %v2400_v52 = vpop.f32.mrf.mxu1  ;;  %v3249_v61 = vld [vmem:[#allocation2 + $0x15a] sm:$0xff] }
 0x249   : > { %v9869_v62 = vpop.f32.mrf.mxu0  ;;  %v3259_v55 = vld [vmem:[#allocation4 + $0x18] sm:$0xff]  ;;  %3787 = vst.msk [vmem:[#allocation3 + $0x21] sm:$0xff] %vm454_vm3, %v9877_v50  ;;  %v2482_v4 = vadd.f32 %v2400_v52, %v2236_v45 }
 0x24a   : > { %8089 = vmatmul.msk.f32.gmra.mxu2 %vm365_vm1, %v2562_v49  ;;  %8158 = vmatmul.msk.f32.gmra.mxu0 %vm365_vm1, %v3247_v63  ;;  %v3082_v11 = vpop.f32.mrf.mxu3  ;;  %v3505_v51 = vadd.f32 %v9814_v57, %v3259_v55  ;;  %3196 = vst.msk [vmem:[#allocation4 + $0x20] sm:$0xff] %vm454_vm3, %v3164_v2  ;;  %v2578_v0 = vld [vmem:[#allocation4 + $0x30] sm:$0xff] }
 0x24b   : > { %2514 = vst.msk [vmem:[#allocation4 + $0x38] sm:$0xff] %vm454_vm3, %v2482_v4  ;;  %v2238_v4 = vld [vmem:[#allocation4 + $0x48] sm:$0xff] }
 0x24c   : > { %8058 = vmatmul.msk.f32.gmra.mxu1 %vm365_vm1, %v3247_v63  ;;  %3537 = vst.msk [vmem:[#allocation4 + $0x18] sm:$0xff] %vm454_vm3, %v3505_v51  ;;  %8124 = vmatmul.msk.f32.gmra.mxu3 %vm365_vm1, %v2905_v37  ;;  %v2906_v63 = vld [vmem:[#allocation2 + $0x151] sm:$0xff] }
 0x24d   : > { %v2740_v47 = vpop.f32.mrf.mxu2  ;;  %3742 = vst.msk [vmem:[#allocation3 + $0x58] sm:$0x3] %vm3732_vm6, %v11611_v42  ;;  %v2565_v37 = vld [vmem:[#allocation2 + $0x158] sm:$0xff] }
 0x24e   : > { %v2824_v57 = vadd.f32 %v2740_v47, %v2578_v0  ;;  %3745 = vst.msk [vmem:[#allocation3 + $0x70] sm:$0x3] %vm3732_vm6, %v11611_v42  ;;  %v2907_v0 = vld [vmem:[#allocation2 + $0x159] sm:$0xff] }
 0x24f   : > { %v2919_v56 = vld [vmem:[#allocation4 + $0x28] sm:$0xff]  ;;  %3748 = vst.msk [vmem:[#allocation3 + $0x88] sm:$0x3] %vm3732_vm6, %v11611_v42 }
 0x250   : > { %v3165_v59 = vadd.f32 %v3079_v33, %v2919_v56  ;;  %2856 = vst.msk [vmem:[#allocation4 + $0x30] sm:$0xff] %vm454_vm3, %v2824_v57  ;;  %v2403_v27 = vpop.f32.mrf.mxu1  ;;  %v3250_v56 = vld [vmem:[#allocation2 + $0x16a] sm:$0xff] }
 0x251   : > { %v9886_v36 = vpop.f32.mrf.mxu0  ;;  %v3260_v25 = vld [vmem:[#allocation4 + $0x20] sm:$0xff]  ;;  %v2483_v33 = vadd.f32 %v2403_v27, %v2237_v29  ;;  %3751 = vst.msk [vmem:[#allocation3 + $0xa0] sm:$0x3] %vm3732_vm6, %v11611_v42 }
 0x252   : > { %8090 = vmatmul.msk.f32.gmra.mxu2 %vm365_vm1, %v2563_v23  ;;  %8159 = vmatmul.msk.f32.gmra.mxu0 %vm365_vm1, %v3248_v30  ;;  %v3085_v9 = vpop.f32.mrf.mxu3  ;;  %v3506_v49 = vadd.f32 %v9825_v39, %v3260_v25  ;;  %3197 = vst.msk [vmem:[#allocation4 + $0x28] sm:$0xff] %vm454_vm3, %v3165_v59  ;;  %v2579_v10 = vld [vmem:[#allocation4 + $0x38] sm:$0xff] }
 0x253   : > { %2515 = vst.msk [vmem:[#allocation4 + $0x40] sm:$0xff] %vm454_vm3, %v2483_v33 }
 0x254   : > { %8059 = vmatmul.msk.f32.gmra.mxu1 %vm365_vm1, %v3248_v30  ;;  %3538 = vst.msk [vmem:[#allocation4 + $0x20] sm:$0xff] %vm454_vm3, %v3506_v49  ;;  %8125 = vmatmul.msk.f32.gmra.mxu3 %vm365_vm1, %v2906_v63  ;;  %v3568_v49 = vld [vmem:[#allocation4 + $0x10] sm:$0xff] }
 0x255   : > { %v2743_v58 = vpop.f32.mrf.mxu2  ;;  %3754 = vst.msk [vmem:[#allocation3 + $0xb8] sm:$0x3] %vm3732_vm6, %v11611_v42 }
 0x256   : > { %v2825_v39 = vadd.f32 %v2743_v58, %v2579_v10  ;;  %3757 = vst.msk [vmem:[#allocation3 + $0xd0] sm:$0x3] %vm3732_vm6, %v11611_v42  ;;  %v3604_v10 = vadd.f32 %v9841_v3, %v3568_v49 }
 0x257   : > { %v2920_v2 = vld [vmem:[#allocation4 + $0x30] sm:$0xff]  ;;  %3760 = vst.msk [vmem:[#allocation3 + $0xe8] sm:$0x3] %vm3732_vm6, %v11611_v42 }
 0x258   : > { %v3166_v55 = vadd.f32 %v3082_v11, %v2920_v2  ;;  %2857 = vst.msk [vmem:[#allocation4 + $0x38] sm:$0xff] %vm454_vm3, %v2825_v39  ;;  %v2406_v23 = vpop.f32.mrf.mxu1  ;;  %v2566_v39 = vld [vmem:[#allocation2 + $0x168] sm:$0xff]  ;;  %vm3636_vm7 = vcmp.ge.f32.partialorder %v3604_v10, 0.0 }
 0x259   : > { %v9905_v1 = vpop.f32.mrf.mxu0  ;;  %v3261_v51 = vld [vmem:[#allocation4 + $0x28] sm:$0xff]  ;;  %v2484_v11 = vadd.f32 %v2406_v23, %v2238_v4  ;;  %3763 = vst.msk [vmem:[#allocation3 + $0x100] sm:$0x3] %vm3732_vm6, %v11611_v42 }
 0x25a   : > { %8091 = vmatmul.msk.f32.gmra.mxu2 %vm365_vm1, %v2564_v53  ;;  %8160 = vmatmul.msk.f32.gmra.mxu0 %vm365_vm1, %v3249_v61  ;;  %v3088_v47 = vpop.f32.mrf.mxu3  ;;  %v3507_v52 = vadd.f32 %v9836_v12, %v3261_v51  ;;  %3198 = vst.msk [vmem:[#allocation4 + $0x30] sm:$0xff] %vm454_vm3, %v3166_v55  ;;  %v2580_v30 = vld [vmem:[#allocation4 + $0x40] sm:$0xff]  ;;  %v3569_v53 = vld [vmem:[#allocation4 + $0x18] sm:$0xff]  ;;  %v2908_v2 = vld [vmem:[#allocation2 + $0x169] sm:$0xff] }
 0x25b   : > { %2516 = vst.msk [vmem:[#allocation4 + $0x48] sm:$0xff] %vm454_vm3, %v2484_v11  ;;  %v3570_v55 = vld [vmem:[#allocation4 + $0x20] sm:$0xff] }
 0x25c   : > { %8060 = vmatmul.msk.f32.gmra.mxu1 %vm365_vm1, %v3249_v61  ;;  %3539 = vst.msk [vmem:[#allocation4 + $0x28] sm:$0xff] %vm454_vm3, %v3507_v52  ;;  %8126 = vmatmul.msk.f32.gmra.mxu3 %vm365_vm1, %v2907_v0  ;;  %v3605_v52 = vadd.f32 %v9841_v3, %v3569_v53 }
 0x25d   : > { %v2746_v45 = vpop.f32.mrf.mxu2  ;;  %3766 = vst.msk [vmem:[#allocation3 + $0x118] sm:$0x3] %vm3732_vm6, %v11611_v42 }
 0x25e   : > { %v2826_v12 = vadd.f32 %v2746_v45, %v2580_v30  ;;  %3769 = vst.msk [vmem:[#allocation3 + $0x130] sm:$0x3] %vm3732_vm6, %v11611_v42  ;;  %vm3637_vm8 = vcmp.ge.f32.partialorder %v3605_v52, 0.0 }
 0x25f   : > { %v2921_v59 = vld [vmem:[#allocation4 + $0x38] sm:$0xff]  ;;  %3772 = vst.msk [vmem:[#allocation3 + $0x148] sm:$0x3] %vm3732_vm6, %v11611_v42 }
 0x260   : > { %v3167_v25 = vadd.f32 %v3085_v9, %v2921_v59  ;;  %2858 = vst.msk [vmem:[#allocation4 + $0x40] sm:$0xff] %vm454_vm3, %v2826_v12  ;;  %v2239_v9 = vld [vmem:[#allocation4 + $0x50] sm:$0xff]  ;;  %v2409_v63 = vpop.f32.mrf.mxu1 }
 0x261   : > { %v9924_v57 = vpop.f32.mrf.mxu0  ;;  %v3262_v29 = vld [vmem:[#allocation4 + $0x30] sm:$0xff]  ;;  %v2485_v61 = vadd.f32 %v2409_v63, %v2239_v9  ;;  %3775 = vst.msk [vmem:[#allocation3 + $0x160] sm:$0x3] %vm3732_vm6, %v11611_v42 }
 0x262   : > { %8092 = vmatmul.msk.f32.gmra.mxu2 %vm365_vm1, %v2565_v37  ;;  %8161 = vmatmul.msk.f32.gmra.mxu0 %vm365_vm1, %v3250_v56  ;;  %v9935_v58 = vpop.f32.mrf.mxu3  ;;  %v3508_v33 = vadd.f32 %v9853_v54, %v3262_v29  ;;  %3199 = vst.msk [vmem:[#allocation4 + $0x38] sm:$0xff] %vm454_vm3, %v3167_v25  ;;  %v2581_v51 = vld [vmem:[#allocation4 + $0x48] sm:$0xff]  ;;  %v3251_v54 = vld [vmem:[#allocation2 + $0x172] sm:$0xff]  ;;  %v3606_v37 = vadd.f32 %v9841_v3, %v3570_v55 }
 0x263   : > { %2517 = vst.msk [vmem:[#allocation4 + $0x50] sm:$0xff] %vm454_vm3, %v2485_v61  ;;  %v3571_v23 = vld [vmem:[#allocation4 + $0x28] sm:$0xff]  ;;  %v2567_v63 = vld [vmem:[#allocation2 + $0x170] sm:$0xff] }
 0x264   : > { %8061 = vmatmul.msk.f32.gmra.mxu1 %vm365_vm1, %v3250_v56  ;;  %3540 = vst.msk [vmem:[#allocation4 + $0x30] sm:$0xff] %vm454_vm3, %v3508_v33  ;;  %8127 = vmatmul.msk.f32.gmra.mxu3 %vm365_vm1, %v2908_v2  ;;  %v3668_v56 = vmul.f32 0.01, %v3604_v10  ;;  %v3607_v25 = vadd.f32 %v9841_v3, %v3571_v23  ;;  %v2909_v61 = vld [vmem:[#allocation2 + $0x171] sm:$0xff]  ;;  %vm3638_vm9 = vcmp.ge.f32.partialorder %v3606_v37, 0.0 }
 0x265   : > { %v2749_v27 = vpop.f32.mrf.mxu2  ;;  %3778 = vst.msk [vmem:[#allocation3 + $0x178] sm:$0x3] %vm3732_vm6, %v11611_v42 }
 0x266   : > { %v2827_v4 = vadd.f32 %v2749_v27, %v2581_v51  ;;  %v2240_v27 = vld [vmem:[#allocation4 + $0x58] sm:$0xff]  ;;  %3781 = vst.msk [vmem:[#allocation3 + $0x190] sm:$0x3] %vm3732_vm6, %v11611_v42  ;;  %v3252_v51 = vld [vmem:[#allocation2 + $0x182] sm:$0xff]  ;;  %v3671_v23 = vmul.f32 0.01, %v3607_v25 }
 0x267   : > { %v2922_v11 = vld [vmem:[#allocation4 + $0x40] sm:$0xff]  ;;  %3784 = vst.msk [vmem:[#allocation3 + $0x1a8] sm:$0x3] %vm3732_vm6, %v11611_v42  ;;  %vm3639_vm10 = vcmp.ge.f32.partialorder %v3607_v25, 0.0 }
 0x268   : > { %v3168_v0 = vadd.f32 %v3088_v47, %v2922_v11  ;;  %2859 = vst.msk [vmem:[#allocation4 + $0x48] sm:$0xff] %vm454_vm3, %v2827_v4  ;;  %v3669_v47 = vmul.f32 0.01, %v3605_v52  ;;  %v2412_v33 = vpop.f32.mrf.mxu1 }
 0x269   : > { %v9946_v45 = vpop.f32.mrf.mxu0  ;;  %v3263_v12 = vld [vmem:[#allocation4 + $0x38] sm:$0xff]  ;;  %v2486_v9 = vadd.f32 %v2412_v33, %v2240_v27  ;;  %v2568_v33 = vld [vmem:[#allocation2 + $0x180] sm:$0xff] }
 0x26a   : > { %8093 = vmatmul.msk.f32.gmra.mxu2 %vm365_vm1, %v2566_v39  ;;  %8162 = vmatmul.msk.f32.gmra.mxu0 %vm365_vm1, %v3251_v54  ;;  %v9959_v30 = vpop.f32.mrf.mxu3  ;;  %v3509_v49 = vadd.f32 %v9869_v62, %v3263_v12  ;;  %3200 = vst.msk [vmem:[#allocation4 + $0x40] sm:$0xff] %vm454_vm3, %v3168_v0  ;;  %v9971_v39 = vsel %vm3636_vm7, %v3604_v10, %v3668_v56  ;;  %v3670_v62 = vmul.f32 0.01, %v3606_v37  ;;  %v2582_v2 = vld [vmem:[#allocation4 + $0x50] sm:$0xff] }
 0x26b   : > { %v3572_v29 = vld [vmem:[#allocation4 + $0x30] sm:$0xff]  ;;  %2518 = vst.msk [vmem:[#allocation4 + $0x58] sm:$0xff] %vm454_vm3, %v2486_v9  ;;  %v9980_v4 = vsel %vm3637_vm8, %v3605_v52, %v3669_v47  ;;  %v2241_v47 = vld [vmem:[#allocation4 + $0x60] sm:$0xff] }
 0x26c   : > { %8062 = vmatmul.msk.f32.gmra.mxu1 %vm365_vm1, %v3251_v54  ;;  %v3608_v53 = vadd.f32 %v9841_v3, %v3572_v29  ;;  %3541 = vst.msk [vmem:[#allocation4 + $0x38] sm:$0xff] %vm454_vm3, %v3509_v49  ;;  %8128 = vmatmul.msk.f32.gmra.mxu3 %vm365_vm1, %v2909_v61  ;;  %v9988_v0 = vsel %vm3638_vm9, %v3606_v37, %v3670_v62  ;;  %v2910_v9 = vld [vmem:[#allocation2 + $0x181] sm:$0xff] }
 0x26d   : > { %v2752_v59 = vpop.f32.mrf.mxu2  ;;  %3788 = vst.msk [vmem:[#allocation3 + $0x31] sm:$0xff] %vm454_vm3, %v9971_v39 }
 0x26e   : > { %v2828_v54 = vadd.f32 %v2752_v59, %v2582_v2  ;;  %v3672_v56 = vmul.f32 0.01, %v3608_v53  ;;  %3789 = vst.msk [vmem:[#allocation3 + $0x39] sm:$0xff] %vm454_vm3, %v9980_v4  ;;  %vm3640_vm11 = vcmp.ge.f32.partialorder %v3608_v53, 0.0 }
 0x26f   : > { %v2923_v10 = vld [vmem:[#allocation4 + $0x48] sm:$0xff]  ;;  %3790 = vst.msk [vmem:[#allocation3 + $0x49] sm:$0xff] %vm454_vm3, %v9988_v0 }
 0x270   : > { %v3169_v11 = vadd.f32 %v9935_v58, %v2923_v10  ;;  %2860 = vst.msk [vmem:[#allocation4 + $0x50] sm:$0xff] %vm454_vm3, %v2828_v54  ;;  %v9995_v58 = vsel %vm3639_vm10, %v3607_v25, %v3671_v23  ;;  %v2415_v29 = vpop.f32.mrf.mxu1  ;;  %v3253_v25 = vld [vmem:[#allocation2 + $0x18a] sm:$0xff] }
 0x271   : > { %v9973_v55 = vpop.f32.mrf.mxu0  ;;  %v3264_v52 = vld [vmem:[#allocation4 + $0x40] sm:$0xff]  ;;  %v2487_v27 = vadd.f32 %v2415_v29, %v2241_v47  ;;  %3791 = vst.msk [vmem:[#allocation3 + $0x51] sm:$0xff] %vm454_vm3, %v9995_v58  ;;  %v2569_v47 = vld [vmem:[#allocation2 + $0x188] sm:$0xff] }
 0x272   : > { %8094 = vmatmul.msk.f32.gmra.mxu2 %vm365_vm1, %v2567_v63  ;;  %8163 = vmatmul.msk.f32.gmra.mxu0 %vm365_vm1, %v3252_v51  ;;  %v3097_v42 = vpop.f32.mrf.mxu3  ;;  %v3510_v59 = vadd.f32 %v9886_v36, %v3264_v52  ;;  %3201 = vst.msk [vmem:[#allocation4 + $0x48] sm:$0xff] %vm454_vm3, %v3169_v11  ;;  %v10001_v63 = vsel %vm3640_vm11, %v3608_v53, %v3672_v56  ;;  %v2583_v36 = vld [vmem:[#allocation4 + $0x58] sm:$0xff]  ;;  %v2911_v29 = vld [vmem:[#allocation2 + $0x189] sm:$0xff] }
 0x273   : > { %v3573_v49 = vld [vmem:[#allocation4 + $0x38] sm:$0xff]  ;;  %2519 = vst.msk [vmem:[#allocation4 + $0x60] sm:$0xff] %vm454_vm3, %v2487_v27 }
 0x274   : > { %8063 = vmatmul.msk.f32.gmra.mxu1 %vm365_vm1, %v3252_v51  ;;  %v3609_v37 = vadd.f32 %v9841_v3, %v3573_v49  ;;  %3542 = vst.msk [vmem:[#allocation4 + $0x40] sm:$0xff] %vm454_vm3, %v3510_v59  ;;  %8129 = vmatmul.msk.f32.gmra.mxu3 %vm365_vm1, %v2910_v9 }
 0x275   : > { %v2755_v12 = vpop.f32.mrf.mxu2  ;;  %3792 = vst.msk [vmem:[#allocation3 + $0x61] sm:$0xff] %vm454_vm3, %v10001_v63 }
 0x276   : > { %v2829_v62 = vadd.f32 %v2755_v12, %v2583_v36  ;;  %vm3641_vm12 = vcmp.ge.f32.partialorder %v3609_v37, 0.0  ;;  %v3673_v2 = vmul.f32 0.01, %v3609_v37 }
 0x277   : > { %v2924_v51 = vld [vmem:[#allocation4 + $0x50] sm:$0xff] }
 0x278   : > { %v3170_v53 = vadd.f32 %v9959_v30, %v2924_v51  ;;  %2861 = vst.msk [vmem:[#allocation4 + $0x58] sm:$0xff] %vm454_vm3, %v2829_v62  ;;  %v10015_v23 = vsel %vm3641_vm12, %v3609_v37, %v3673_v2  ;;  %v2242_v30 = vld [vmem:[#allocation4 + $0x68] sm:$0xff]  ;;  %v2418_v12 = vpop.f32.mrf.mxu1 }
 0x279   : > { %v10003_v61 = vpop.f32.mrf.mxu0  ;;  %v3265_v10 = vld [vmem:[#allocation4 + $0x48] sm:$0xff]  ;;  %3793 = vst.msk [vmem:[#allocation3 + $0x69] sm:$0xff] %vm454_vm3, %v10015_v23  ;;  %v2488_v49 = vadd.f32 %v2418_v12, %v2242_v30  ;;  %v2570_v12 = vld [vmem:[#allocation2 + $0x198] sm:$0xff] }
 0x27a   : > { %8095 = vmatmul.msk.f32.gmra.mxu2 %vm365_vm1, %v2568_v33  ;;  %8164 = vmatmul.msk.f32.gmra.mxu0 %vm365_vm1, %v3253_v25  ;;  %v3100_v54 = vpop.f32.mrf.mxu3  ;;  %v3511_v56 = vadd.f32 %v9905_v1, %v3265_v10  ;;  %3202 = vst.msk [vmem:[#allocation4 + $0x50] sm:$0xff] %vm454_vm3, %v3170_v53  ;;  %v2584_v37 = vld [vmem:[#allocation4 + $0x60] sm:$0xff] }
 0x27b   : > { %v3574_v52 = vld [vmem:[#allocation4 + $0x40] sm:$0xff]  ;;  %2520 = vst.msk [vmem:[#allocation4 + $0x68] sm:$0xff] %vm454_vm3, %v2488_v49 }
 0x27c   : > { %8064 = vmatmul.msk.f32.gmra.mxu1 %vm365_vm1, %v3253_v25  ;;  %v3610_v59 = vadd.f32 %v9841_v3, %v3574_v52  ;;  %3543 = vst.msk [vmem:[#allocation4 + $0x48] sm:$0xff] %vm454_vm3, %v3511_v56  ;;  %v3254_v33 = vld [vmem:[#allocation2 + $0x19a] sm:$0xff]  ;;  %8130 = vmatmul.msk.f32.gmra.mxu3 %vm365_vm1, %v2911_v29  ;;  %v2243_v56 = vld [vmem:[#allocation4 + $0x70] sm:$0xff]  ;;  %v3255_v29 = vld [vmem:[#allocation2 + $0x1a2] sm:$0xff] }
 0x27d   : > { %v2758_v11 = vpop.f32.mrf.mxu2  ;;  %v2912_v49 = vld [vmem:[#allocation2 + $0x199] sm:$0xff] }
 0x27e   : > { %v2830_v9 = vadd.f32 %v2758_v11, %v2584_v37  ;;  %vm3642_vm13 = vcmp.ge.f32.partialorder %v3610_v59, 0.0  ;;  %v3674_v36 = vmul.f32 0.01, %v3610_v59 }
 0x27f   : > { %v2925_v1 = vld [vmem:[#allocation4 + $0x58] sm:$0xff] }
 0x280   : > { %v3171_v25 = vadd.f32 %v3097_v42, %v2925_v1  ;;  %2862 = vst.msk [vmem:[#allocation4 + $0x60] sm:$0xff] %vm454_vm3, %v2830_v9  ;;  %v10031_v53 = vsel %vm3642_vm13, %v3610_v59, %v3674_v36  ;;  %v2421_v52 = vpop.f32.mrf.mxu1 }
 0x281   : > { %v10024_v27 = vpop.f32.mrf.mxu0  ;;  %v3266_v2 = vld [vmem:[#allocation4 + $0x50] sm:$0xff]  ;;  %3794 = vst.msk [vmem:[#allocation3 + $0x79] sm:$0xff] %vm454_vm3, %v10031_v53  ;;  %v2489_v30 = vadd.f32 %v2421_v52, %v2243_v56 }
 0x282   : > { %8096 = vmatmul.msk.f32.gmra.mxu2 %vm365_vm1, %v2569_v47  ;;  %8165 = vmatmul.msk.f32.gmra.mxu0 %vm365_vm1, %v3254_v33  ;;  %v3103_v62 = vpop.f32.mrf.mxu3  ;;  %v3512_v10 = vadd.f32 %v9924_v57, %v3266_v2  ;;  %3203 = vst.msk [vmem:[#allocation4 + $0x58] sm:$0xff] %vm454_vm3, %v3171_v25  ;;  %v2585_v47 = vld [vmem:[#allocation4 + $0x68] sm:$0xff] }
 0x283   : > { %v3575_v11 = vld [vmem:[#allocation4 + $0x48] sm:$0xff]  ;;  %2521 = vst.msk [vmem:[#allocation4 + $0x70] sm:$0xff] %vm454_vm3, %v2489_v30  ;;  %v2571_v30 = vld [vmem:[#allocation2 + $0x1a0] sm:$0xff] }
 0x284   : > { %v3611_v42 = vadd.f32 %v9841_v3, %v3575_v11  ;;  %3544 = vst.msk [vmem:[#allocation4 + $0x50] sm:$0xff] %vm454_vm3, %v3512_v10  ;;  %8131 = vmatmul.msk.f32.gmra.mxu3 %vm365_vm1, %v2912_v49  ;;  %v2244_v11 = vld [vmem:[#allocation4 + $0x78] sm:$0xff] }
 0x285   : > { %v2761_v51 = vpop.f32.mrf.mxu2 }
 0x286   : > { %v2831_v57 = vadd.f32 %v2761_v51, %v2585_v47  ;;  %vm3643_vm14 = vcmp.ge.f32.partialorder %v3611_v42, 0.0  ;;  %v3675_v37 = vmul.f32 0.01, %v3611_v42 }
 0x287   : > { %v2926_v33 = vld [vmem:[#allocation4 + $0x60] sm:$0xff] }
 0x288   : > { %v3172_v9 = vadd.f32 %v3100_v54, %v2926_v33  ;;  %2863 = vst.msk [vmem:[#allocation4 + $0x68] sm:$0xff] %vm454_vm3, %v2831_v57  ;;  %v10046_v36 = vsel %vm3643_vm14, %v3611_v42, %v3675_v37  ;;  %v2424_v56 = vpop.f32.mrf.mxu1  ;;  %v2913_v42 = vld [vmem:[#allocation2 + $0x1a1] sm:$0xff] }
 0x289   : > { %v10039_v59 = vpop.f32.mrf.mxu0  ;;  %v3267_v25 = vld [vmem:[#allocation4 + $0x58] sm:$0xff]  ;;  %3795 = vst.msk [vmem:[#allocation3 + $0x81] sm:$0xff] %vm454_vm3, %v10046_v36  ;;  %v2490_v52 = vadd.f32 %v2424_v56, %v2244_v11  ;;  %v10059_v57 = vld [vmem:[#allocation3 + $0x18] sm:$0xff]  ;;  %v2245_v11 = vld [vmem:[#allocation4 + $0x80] sm:$0xff] }
 0x28a   : > { %8097 = vmatmul.msk.f32.gmra.mxu2 %vm365_vm1, %v2570_v12  ;;  %8166 = vmatmul.msk.f32.gmra.mxu0 %vm365_vm1, %v3255_v29  ;;  %v3106_v1 = vpop.f32.mrf.mxu3  ;;  %v3513_v51 = vadd.f32 %v9946_v45, %v3267_v25  ;;  %3204 = vst.msk [vmem:[#allocation4 + $0x60] sm:$0xff] %vm454_vm3, %v3172_v9  ;;  %v2586_v12 = vld [vmem:[#allocation4 + $0x70] sm:$0xff] }
 0x28b   : > { %v3576_v10 = vld [vmem:[#allocation4 + $0x50] sm:$0xff]  ;;  %2522 = vst.msk [vmem:[#allocation4 + $0x78] sm:$0xff] %vm454_vm3, %v2490_v52 }
 0x28c   : > { %v3612_v54 = vadd.f32 %v9841_v3, %v3576_v10  ;;  %3545 = vst.msk [vmem:[#allocation4 + $0x58] sm:$0xff] %vm454_vm3, %v3513_v51  ;;  %8132 = vmatmul.msk.f32.gmra.mxu3 %vm365_vm1, %v2913_v42  ;;  %v4527_v42 = vld [vmem:[#allocation3 + $0x2] sm:$0xff] }
 0x28d   : > { %v2764_v2 = vpop.f32.mrf.mxu2 }
 0x28e   : > { %v2832_v47 = vadd.f32 %v2764_v2, %v2586_v12  ;;  %vm3644_vm15 = vcmp.ge.f32.partialorder %v3612_v54, 0.0  ;;  %v3676_v45 = vmul.f32 0.01, %v3612_v54 }
 0x28f   : > { %v2927_v29 = vld [vmem:[#allocation4 + $0x68] sm:$0xff] }
 0x290   : > { %v3173_v37 = vadd.f32 %v3103_v62, %v2927_v29  ;;  %2864 = vst.msk [vmem:[#allocation4 + $0x70] sm:$0xff] %vm454_vm3, %v2832_v47  ;;  %v10064_v9 = vsel %vm3644_vm15, %v3612_v54, %v3676_v45  ;;  %v2427_v62 = vpop.f32.mrf.mxu1  ;;  %v4188_v54 = vld [vmem:[#allocation3 + $0x1] sm:$0xff] }
 0x291   : > { %v10054_v49 = vpop.f32.mrf.mxu0  ;;  %v3268_v25 = vld [vmem:[#allocation4 + $0x60] sm:$0xff]  ;;  %3796 = vst.msk [vmem:[#allocation3 + $0x91] sm:$0xff] %vm454_vm3, %v10064_v9  ;;  %v2491_v52 = vadd.f32 %v2427_v62, %v2245_v11 }
 0x292   : > { %8098 = vmatmul.msk.f32.gmra.mxu2 %vm365_vm1, %v2571_v30  ;;  %8266 = vmatmul.msk.f32.vlgmr.msrb.gmra.mxu0 %vm454_vm3, %v10059_v57  ;;  %v3109_v33 = vpop.f32.mrf.mxu3  ;;  %v3514_v51 = vadd.f32 %v9973_v55, %v3268_v25  ;;  %3205 = vst.msk [vmem:[#allocation4 + $0x68] sm:$0xff] %vm454_vm3, %v3173_v37  ;;  %v3850_v30 = vld [vmem:[#allocation3] sm:$0xff]  ;;  %v2587_v12 = vld [vmem:[#allocation4 + $0x78] sm:$0xff]  ;;  %v8298_v55 = vld [vmem:[%s11564_s3 + $0x20] sm:$0xff] }
 0x293   : > { %v3577_v10 = vld [vmem:[#allocation4 + $0x58] sm:$0xff]  ;;  %8167 = vmatmul.msk.f32.vlgmr.msrb.gmra.mxu1 %vm454_vm3, %v3850_v30  ;;  %2523 = vst.msk [vmem:[#allocation4 + $0x80] sm:$0xff] %vm454_vm3, %v2491_v52  ;;  %v10081_v25 = vld [vmem:[#allocation3 + $0x20] sm:$0xff] }
 0x294   : > { %v3613_v56 = vadd.f32 %v9841_v3, %v3577_v10  ;;  %3546 = vst.msk [vmem:[#allocation4 + $0x60] sm:$0xff] %vm454_vm3, %v3514_v51  ;;  %5382 = vmatpush.msra.mxu1 %v8298_v55  ;;  %8233 = vmatmul.msk.f32.vlgmr.msrb.gmra.mxu3 %vm454_vm3, %v4527_v42  ;;  %v3851_v55 = vld [vmem:[#allocation3 + $0x8] sm:$0xff] }
 0x295   : > { %v2767_v2 = vpop.f32.mrf.mxu2 }
 0x296   : > { %v2833_v45 = vadd.f32 %v2767_v2, %v2587_v12  ;;  %vm3645_vm2 = vcmp.ge.f32.partialorder %v3613_v56, 0.0  ;;  %v3677_v29 = vmul.f32 0.01, %v3613_v56 }
 0x297   : > { %v2928_v37 = vld [vmem:[#allocation4 + $0x70] sm:$0xff] }
 0x298   : > { %v3174_v51 = vadd.f32 %v3106_v1, %v2928_v37  ;;  %2865 = vst.msk [vmem:[#allocation4 + $0x78] sm:$0xff] %vm454_vm3, %v2833_v45  ;;  %v10086_v2 = vsel %vm3645_vm2, %v3613_v56, %v3677_v29  ;;  %v2430_v1 = vpop.f32.mrf.mxu1  ;;  %v4189_v56 = vld [vmem:[#allocation3 + $0x9] sm:$0xff] }
 0x299   : > { %v10072_v47 = vpop.f32.mrf.mxu0  ;;  %v3269_v11 = vld [vmem:[#allocation4 + $0x68] sm:$0xff]  ;;  %3797 = vst.msk [vmem:[#allocation3 + $0x99] sm:$0xff] %vm454_vm3, %v10086_v2  ;;  %v4528_v45 = vld [vmem:[#allocation3 + $0xa] sm:$0xff] }
 0x29a   : > { %8200 = vmatmul.msk.f32.vlgmr.msrb.gmra.mxu2 %vm454_vm3, %v4188_v54  ;;  %8267 = vmatmul.msk.f32.gmra.mxu0 %vm454_vm3, %v10081_v25  ;;  %v3112_v10 = vpop.f32.mrf.mxu3  ;;  %v3515_v52 = vadd.f32 %v10003_v61, %v3269_v11  ;;  %3206 = vst.msk [vmem:[#allocation4 + $0x70] sm:$0xff] %vm454_vm3, %v3174_v51  ;;  %v2246_v54 = vld [vmem:[#allocation4 + $0x88] sm:$0xff]  ;;  %v2588_v29 = vld [vmem:[#allocation4 + $0x80] sm:$0xff] }
 0x29b   : > { %v3578_v30 = vld [vmem:[#allocation4 + $0x60] sm:$0xff]  ;;  %v2492_v12 = vadd.f32 %v2430_v1, %v2246_v54  ;;  %8168 = vmatmul.msk.f32.gmra.mxu1 %vm454_vm3, %v3851_v55 }
 0x29c   : > { %v3614_v42 = vadd.f32 %v9841_v3, %v3578_v30  ;;  %3547 = vst.msk [vmem:[#allocation4 + $0x68] sm:$0xff] %vm454_vm3, %v3515_v52  ;;  %8234 = vmatmul.msk.f32.gmra.mxu3 %vm454_vm3, %v4528_v45  ;;  %v10100_v11 = vld [vmem:[#allocation3 + $0x30] sm:$0xff] }
 0x29d   : > { %v2770_v62 = vpop.f32.mrf.mxu2  ;;  %2524 = vst.msk [vmem:[#allocation4 + $0x88] sm:$0xff] %vm454_vm3, %v2492_v12 }
 0x29e   : > { %v2834_v35 = vadd.f32 %v2770_v62, %v2588_v29  ;;  %vm3646_vm4 = vcmp.ge.f32.partialorder %v3614_v42, 0.0  ;;  %v3678_v61 = vmul.f32 0.01, %v3614_v42 }
 0x29f   : > { %v2929_v51 = vld [vmem:[#allocation4 + $0x78] sm:$0xff] }
 0x2a0   : > { %v3175_v52 = vadd.f32 %v3109_v33, %v2929_v51  ;;  %2866 = vst.msk [vmem:[#allocation4 + $0x80] sm:$0xff] %vm454_vm3, %v2834_v35  ;;  %v10105_v30 = vsel %vm3646_vm4, %v3614_v42, %v3678_v61  ;;  %v2433_v33 = vpop.f32.mrf.mxu1  ;;  %v4190_v61 = vld [vmem:[#allocation3 + $0x19] sm:$0xff] }
 0x2a1   : > { %v10094_v37 = vpop.f32.mrf.mxu0  ;;  %v3270_v62 = vld [vmem:[#allocation4 + $0x70] sm:$0xff]  ;;  %3798 = vst.msk [vmem:[#allocation3 + $0xa9] sm:$0xff] %vm454_vm3, %v10105_v30 }
 0x2a2   : > { %8201 = vmatmul.msk.f32.gmra.mxu2 %vm454_vm3, %v4189_v56  ;;  %8268 = vmatmul.msk.f32.gmra.mxu0 %vm454_vm3, %v10100_v11  ;;  %v3115_v1 = vpop.f32.mrf.mxu3  ;;  %v3516_v12 = vadd.f32 %v10024_v27, %v3270_v62  ;;  %3207 = vst.msk [vmem:[#allocation4 + $0x78] sm:$0xff] %vm454_vm3, %v3175_v52  ;;  %v2247_v56 = vld [vmem:[#allocation4 + $0x90] sm:$0xff] }
 0x2a3   : > { %v3579_v55 = vld [vmem:[#allocation4 + $0x68] sm:$0xff]  ;;  %v2493_v45 = vadd.f32 %v2433_v33, %v2247_v56  ;;  %8169 = vmatmul.msk.f32.gmra.mxu1 %vm454_vm3, %v10059_v57 }
 0x2a4   : > { %v3615_v35 = vadd.f32 %v9841_v3, %v3579_v55  ;;  %3548 = vst.msk [vmem:[#allocation4 + $0x70] sm:$0xff] %vm454_vm3, %v3516_v12  ;;  %v2589_v42 = vld [vmem:[#allocation4 + $0x88] sm:$0xff] }
 0x2a5   : > { %v2773_v54 = vpop.f32.mrf.mxu2  ;;  %2525 = vst.msk [vmem:[#allocation4 + $0x90] sm:$0xff] %vm454_vm3, %v2493_v45  ;;  %v4529_v27 = vld [vmem:[#allocation3 + $0x1a] sm:$0xff] }
 0x2a6   : > { %v2835_v51 = vadd.f32 %v2773_v54, %v2589_v42  ;;  %vm3647_vm5 = vcmp.ge.f32.partialorder %v3615_v35, 0.0  ;;  %v3679_v52 = vmul.f32 0.01, %v3615_v35  ;;  %8235 = vmatmul.msk.f32.gmra.mxu3 %vm454_vm3, %v4529_v27  ;;  %v10120_v12 = vld [vmem:[#allocation3 + $0x38] sm:$0xff] }
 0x2a7   : > { %v2930_v62 = vld [vmem:[#allocation4 + $0x80] sm:$0xff] }
 0x2a8   : > { %v3176_v55 = vadd.f32 %v3112_v10, %v2930_v62  ;;  %2867 = vst.msk [vmem:[#allocation4 + $0x88] sm:$0xff] %vm454_vm3, %v2835_v51  ;;  %v10125_v57 = vsel %vm3647_vm5, %v3615_v35, %v3679_v52  ;;  %v2436_v10 = vpop.f32.mrf.mxu1  ;;  %v4191_v62 = vld [vmem:[#allocation3 + $0x21] sm:$0xff] }
 0x2a9   : > { %v10113_v29 = vpop.f32.mrf.mxu0  ;;  %v3271_v54 = vld [vmem:[#allocation4 + $0x78] sm:$0xff]  ;;  %3799 = vst.msk [vmem:[#allocation3 + $0xb1] sm:$0xff] %vm454_vm3, %v10125_v57 }
 0x2aa   : > { %8202 = vmatmul.msk.f32.gmra.mxu2 %vm454_vm3, %v4190_v61  ;;  %8269 = vmatmul.msk.f32.gmra.mxu0 %vm454_vm3, %v10120_v12  ;;  %v3517_v33 = vadd.f32 %v10039_v59, %v3271_v54  ;;  %3208 = vst.msk [vmem:[#allocation4 + $0x80] sm:$0xff] %vm454_vm3, %v3176_v55  ;;  %v3118_v45 = vpop.f32.mrf.mxu3  ;;  %v2248_v61 = vld [vmem:[#allocation4 + $0x98] sm:$0xff] }
 0x2ab   : > { %v3580_v42 = vld [vmem:[#allocation4 + $0x70] sm:$0xff]  ;;  %v2494_v27 = vadd.f32 %v2436_v10, %v2248_v61  ;;  %8170 = vmatmul.msk.f32.gmra.mxu1 %vm454_vm3, %v10081_v25 }
 0x2ac   : > { %v3616_v51 = vadd.f32 %v9841_v3, %v3580_v42  ;;  %3549 = vst.msk [vmem:[#allocation4 + $0x78] sm:$0xff] %vm454_vm3, %v3517_v33  ;;  %v2590_v35 = vld [vmem:[#allocation4 + $0x90] sm:$0xff]  ;;  %v10140_v33 = vld [vmem:[#allocation3 + $0x48] sm:$0xff] }
 0x2ad   : > { %v2776_v56 = vpop.f32.mrf.mxu2  ;;  %2526 = vst.msk [vmem:[#allocation4 + $0x98] sm:$0xff] %vm454_vm3, %v2494_v27  ;;  %v4530_v59 = vld [vmem:[#allocation3 + $0x22] sm:$0xff] }
 0x2ae   : > { %v2836_v48 = vadd.f32 %v2776_v56, %v2590_v35  ;;  %vm3648_vm6 = vcmp.ge.f32.partialorder %v3616_v51, 0.0  ;;  %v3680_v55 = vmul.f32 0.01, %v3616_v51  ;;  %8236 = vmatmul.msk.f32.gmra.mxu3 %vm454_vm3, %v4530_v59 }
 0x2af   : > { %v2931_v54 = vld [vmem:[#allocation4 + $0x88] sm:$0xff] }
 0x2b0   : > { %v3177_v42 = vadd.f32 %v3115_v1, %v2931_v54  ;;  %2868 = vst.msk [vmem:[#allocation4 + $0x90] sm:$0xff] %vm454_vm3, %v2836_v48  ;;  %v10145_v25 = vsel %vm3648_vm6, %v3616_v51, %v3680_v55  ;;  %v2439_v1 = vpop.f32.mrf.mxu1  ;;  %v4192_v54 = vld [vmem:[#allocation3 + $0x31] sm:$0xff] }
 0x2b1   : > { %v10133_v52 = vpop.f32.mrf.mxu0  ;;  %v3272_v56 = vld [vmem:[#allocation4 + $0x80] sm:$0xff]  ;;  %3800 = vst.msk [vmem:[#allocation3 + $0xc1] sm:$0xff] %vm454_vm3, %v10145_v25 }
 0x2b2   : > { %8203 = vmatmul.msk.f32.gmra.mxu2 %vm454_vm3, %v4191_v62  ;;  %8270 = vmatmul.msk.f32.gmra.mxu0 %vm454_vm3, %v10140_v33  ;;  %v3518_v10 = vadd.f32 %v10054_v49, %v3272_v56  ;;  %3209 = vst.msk [vmem:[#allocation4 + $0x88] sm:$0xff] %vm454_vm3, %v3177_v42  ;;  %v3121_v27 = vpop.f32.mrf.mxu3  ;;  %v2249_v62 = vld [vmem:[#allocation4 + $0xa0] sm:$0xff] }
 0x2b3   : > { %v3581_v35 = vld [vmem:[#allocation4 + $0x78] sm:$0xff]  ;;  %v2495_v59 = vadd.f32 %v2439_v1, %v2249_v62  ;;  %8171 = vmatmul.msk.f32.gmra.mxu1 %vm454_vm3, %v10100_v11  ;;  %v4531_v49 = vld [vmem:[#allocation3 + $0x32] sm:$0xff] }
 0x2b4   : > { %v3617_v48 = vadd.f32 %v9841_v3, %v3581_v35  ;;  %3550 = vst.msk [vmem:[#allocation4 + $0x80] sm:$0xff] %vm454_vm3, %v3518_v10  ;;  %v2591_v51 = vld [vmem:[#allocation4 + $0x98] sm:$0xff]  ;;  %v10160_v10 = vld [vmem:[#allocation3 + $0x50] sm:$0xff] }
 0x2b5   : > { %v2779_v61 = vpop.f32.mrf.mxu2  ;;  %2527 = vst.msk [vmem:[#allocation4 + $0xa0] sm:$0xff] %vm454_vm3, %v2495_v59 }
 0x2b6   : > { %v2837_v22 = vadd.f32 %v2779_v61, %v2591_v51  ;;  %vm3649_vm7 = vcmp.ge.f32.partialorder %v3617_v48, 0.0  ;;  %v3681_v42 = vmul.f32 0.01, %v3617_v48  ;;  %8237 = vmatmul.msk.f32.gmra.mxu3 %vm454_vm3, %v4531_v49 }
 0x2b7   : > { %v2932_v56 = vld [vmem:[#allocation4 + $0x90] sm:$0xff] }
 0x2b8   : > { %v3178_v35 = vadd.f32 %v3118_v45, %v2932_v56  ;;  %2869 = vst.msk [vmem:[#allocation4 + $0x98] sm:$0xff] %vm454_vm3, %v2837_v22  ;;  %v10165_v11 = vsel %vm3649_vm7, %v3617_v48, %v3681_v42  ;;  %v2442_v45 = vpop.f32.mrf.mxu1  ;;  %v4193_v56 = vld [vmem:[#allocation3 + $0x39] sm:$0xff] }
 0x2b9   : > { %v10153_v55 = vpop.f32.mrf.mxu0  ;;  %v3273_v61 = vld [vmem:[#allocation4 + $0x88] sm:$0xff]  ;;  %3801 = vst.msk [vmem:[#allocation3 + $0xc9] sm:$0xff] %vm454_vm3, %v10165_v11 }
 0x2ba   : > { %8204 = vmatmul.msk.f32.gmra.mxu2 %vm454_vm3, %v4192_v54  ;;  %8271 = vmatmul.msk.f32.gmra.mxu0 %vm454_vm3, %v10160_v10  ;;  %v3519_v1 = vadd.f32 %v10072_v47, %v3273_v61  ;;  %3210 = vst.msk [vmem:[#allocation4 + $0x90] sm:$0xff] %vm454_vm3, %v3178_v35  ;;  %v3124_v59 = vpop.f32.mrf.mxu3  ;;  %v2250_v54 = vld [vmem:[#allocation4 + $0xa8] sm:$0xff] }
 0x2bb   : > { %v3582_v51 = vld [vmem:[#allocation4 + $0x80] sm:$0xff]  ;;  %v2496_v49 = vadd.f32 %v2442_v45, %v2250_v54  ;;  %8172 = vmatmul.msk.f32.gmra.mxu1 %vm454_vm3, %v10120_v12  ;;  %v4532_v47 = vld [vmem:[#allocation3 + $0x3a] sm:$0xff] }
 0x2bc   : > { %v3618_v22 = vadd.f32 %v9841_v3, %v3582_v51  ;;  %3551 = vst.msk [vmem:[#allocation4 + $0x88] sm:$0xff] %vm454_vm3, %v3519_v1  ;;  %v2592_v48 = vld [vmem:[#allocation4 + $0xa0] sm:$0xff]  ;;  %v10180_v3 = vld [vmem:[#allocation3 + $0x60] sm:$0xff] }
 0x2bd   : > { %v2782_v62 = vpop.f32.mrf.mxu2  ;;  %2528 = vst.msk [vmem:[#allocation4 + $0xa8] sm:$0xff] %vm454_vm3, %v2496_v49 }
 0x2be   : > { %v2838_v18 = vadd.f32 %v2782_v62, %v2592_v48  ;;  %vm3650_vm8 = vcmp.ge.f32.partialorder %v3618_v22, 0.0  ;;  %v3682_v35 = vmul.f32 0.01, %v3618_v22  ;;  %8238 = vmatmul.msk.f32.gmra.mxu3 %vm454_vm3, %v4532_v47  ;;  %v2251_v48 = vld [vmem:[#allocation4 + $0xb0] sm:$0xff] }
 0x2bf   : > { %v2933_v61 = vld [vmem:[#allocation4 + $0x98] sm:$0xff] }
 0x2c0   : > { %v3179_v1 = vadd.f32 %v3121_v27, %v2933_v61  ;;  %2870 = vst.msk [vmem:[#allocation4 + $0xa0] sm:$0xff] %vm454_vm3, %v2838_v18  ;;  %v10185_v12 = vsel %vm3650_vm8, %v3618_v22, %v3682_v35  ;;  %v2445_v27 = vpop.f32.mrf.mxu1  ;;  %v10194_v18 = vld [vmem:[%s11563_s2] ss:$0 sm:$0xff] }
 0x2c1   : > { %v10173_v42 = vpop.f32.mrf.mxu0  ;;  %v3274_v62 = vld [vmem:[#allocation4 + $0x90] sm:$0xff]  ;;  %3802 = vst.msk [vmem:[#allocation3 + $0xd9] sm:$0xff] %vm454_vm3, %v10185_v12 }
 0x2c2   : > { %8205 = vmatmul.msk.f32.gmra.mxu2 %vm454_vm3, %v4193_v56  ;;  %8272 = vmatmul.msk.f32.gmra.mxu0 %vm454_vm3, %v10180_v3  ;;  %v3520_v54 = vadd.f32 %v10094_v37, %v3274_v62  ;;  %3211 = vst.msk [vmem:[#allocation4 + $0x98] sm:$0xff] %vm454_vm3, %v3179_v1  ;;  %v3127_v45 = vpop.f32.mrf.mxu3  ;;  %v2497_v56 = vadd.f32 %v2445_v27, %v2251_v48  ;;  %v4194_v37 = vld [vmem:[#allocation3 + $0x49] sm:$0xff] }
 0x2c3   : > { %v3583_v49 = vld [vmem:[#allocation4 + $0x88] sm:$0xff]  ;;  %8173 = vmatmul.msk.f32.gmra.mxu1 %vm454_vm3, %v10140_v33  ;;  %v4533_v1 = vld [vmem:[#allocation3 + $0x4a] sm:$0xff] }
 0x2c4   : > { %v3619_v22 = vadd.f32 %v10194_v18, %v3583_v49  ;;  %3552 = vst.msk [vmem:[#allocation4 + $0x90] sm:$0xff] %vm454_vm3, %v3520_v54  ;;  %v2593_v47 = vld [vmem:[#allocation4 + $0xa8] sm:$0xff]  ;;  %v10205_v54 = vld [vmem:[#allocation3 + $0x68] sm:$0xff] }
 0x2c5   : > { %v2785_v51 = vpop.f32.mrf.mxu2  ;;  %2529 = vst.msk [vmem:[#allocation4 + $0xb0] sm:$0xff] %vm454_vm3, %v2497_v56 }
 0x2c6   : > { %v2839_v61 = vadd.f32 %v2785_v51, %v2593_v47  ;;  %vm3651_vm9 = vcmp.ge.f32.partialorder %v3619_v22, 0.0  ;;  %v3683_v62 = vmul.f32 0.01, %v3619_v22  ;;  %8239 = vmatmul.msk.f32.gmra.mxu3 %vm454_vm3, %v4533_v1 }
 0x2c7   : > { %v2934_v14 = vld [vmem:[#allocation4 + $0xa0] sm:$0xff] }
 0x2c8   : > { %v3180_v49 = vadd.f32 %v3124_v59, %v2934_v14  ;;  %2871 = vst.msk [vmem:[#allocation4 + $0xa8] sm:$0xff] %vm454_vm3, %v2839_v61  ;;  %v10210_v33 = vsel %vm3651_vm9, %v3619_v22, %v3683_v62  ;;  %v2448_v14 = vpop.f32.mrf.mxu1  ;;  %v4195_v62 = vld [vmem:[#allocation3 + $0x51] sm:$0xff] }
 0x2c9   : > { %v10198_v35 = vpop.f32.mrf.mxu0  ;;  %v3275_v51 = vld [vmem:[#allocation4 + $0x98] sm:$0xff]  ;;  %3803 = vst.msk [vmem:[#allocation3 + $0xe1] sm:$0xff] %vm454_vm3, %v10210_v33 }
 0x2ca   : > { %8206 = vmatmul.msk.f32.gmra.mxu2 %vm454_vm3, %v4194_v37  ;;  %8273 = vmatmul.msk.f32.gmra.mxu0 %vm454_vm3, %v10205_v54  ;;  %v3521_v27 = vadd.f32 %v10113_v29, %v3275_v51  ;;  %3212 = vst.msk [vmem:[#allocation4 + $0xa0] sm:$0xff] %vm454_vm3, %v3180_v49  ;;  %v3130_v56 = vpop.f32.mrf.mxu3  ;;  %v2252_v37 = vld [vmem:[#allocation4 + $0xb8] sm:$0xff]  ;;  %v4534_v29 = vld [vmem:[#allocation3 + $0x52] sm:$0xff] }
 0x2cb   : > { %v3584_v47 = vld [vmem:[#allocation4 + $0x90] sm:$0xff]  ;;  %v2498_v61 = vadd.f32 %v2448_v14, %v2252_v37  ;;  %8174 = vmatmul.msk.f32.gmra.mxu1 %vm454_vm3, %v10160_v10 }
 0x2cc   : > { %v3620_v59 = vadd.f32 %v10194_v18, %v3584_v47  ;;  %3553 = vst.msk [vmem:[#allocation4 + $0x98] sm:$0xff] %vm454_vm3, %v3521_v27  ;;  %v2594_v22 = vld [vmem:[#allocation4 + $0xb0] sm:$0xff]  ;;  %v10225_v27 = vld [vmem:[#allocation3 + $0x78] sm:$0xff] }
 0x2cd   : > { %v2788_v48 = vpop.f32.mrf.mxu2  ;;  %2530 = vst.msk [vmem:[#allocation4 + $0xb8] sm:$0xff] %vm454_vm3, %v2498_v61 }
 0x2ce   : > { %v2840_v7 = vadd.f32 %v2788_v48, %v2594_v22  ;;  %vm3652_vm10 = vcmp.ge.f32.partialorder %v3620_v59, 0.0  ;;  %v3684_v49 = vmul.f32 0.01, %v3620_v59  ;;  %8240 = vmatmul.msk.f32.gmra.mxu3 %vm454_vm3, %v4534_v29 }
 0x2cf   : > { %v2935_v51 = vld [vmem:[#allocation4 + $0xa8] sm:$0xff] }
 0x2d0   : > { %v3181_v47 = vadd.f32 %v3127_v45, %v2935_v51  ;;  %2872 = vst.msk [vmem:[#allocation4 + $0xb0] sm:$0xff] %vm454_vm3, %v2840_v7  ;;  %v10230_v10 = vsel %vm3652_vm10, %v3620_v59, %v3684_v49  ;;  %v2451_v45 = vpop.f32.mrf.mxu1  ;;  %v4196_v51 = vld [vmem:[#allocation3 + $0x61] sm:$0xff] }
 0x2d1   : > { %v10218_v1 = vpop.f32.mrf.mxu0  ;;  %v3276_v48 = vld [vmem:[#allocation4 + $0xa0] sm:$0xff]  ;;  %3804 = vst.msk [vmem:[#allocation3 + $0xf1] sm:$0xff] %vm454_vm3, %v10230_v10 }
 0x2d2   : > { %8207 = vmatmul.msk.f32.gmra.mxu2 %vm454_vm3, %v4195_v62  ;;  %8274 = vmatmul.msk.f32.gmra.mxu0 %vm454_vm3, %v10225_v27  ;;  %v3522_v14 = vadd.f32 %v10133_v52, %v3276_v48  ;;  %3213 = vst.msk [vmem:[#allocation4 + $0xa8] sm:$0xff] %vm454_vm3, %v3181_v47  ;;  %v3133_v61 = vpop.f32.mrf.mxu3  ;;  %v2253_v62 = vld [vmem:[#allocation4 + $0xc0] sm:$0xff]  ;;  %v4535_v52 = vld [vmem:[#allocation3 + $0x62] sm:$0xff] }
 0x2d3   : > { %v3585_v22 = vld [vmem:[#allocation4 + $0x98] sm:$0xff]  ;;  %v2499_v29 = vadd.f32 %v2451_v45, %v2253_v62  ;;  %8175 = vmatmul.msk.f32.gmra.mxu1 %vm454_vm3, %v10180_v3 }
 0x2d4   : > { %v3621_v7 = vadd.f32 %v10194_v18, %v3585_v22  ;;  %3554 = vst.msk [vmem:[#allocation4 + $0xa0] sm:$0xff] %vm454_vm3, %v3522_v14  ;;  %v2595_v59 = vld [vmem:[#allocation4 + $0xb8] sm:$0xff]  ;;  %v10245_v14 = vld [vmem:[#allocation3 + $0x80] sm:$0xff] }
 0x2d5   : > { %v2791_v37 = vpop.f32.mrf.mxu2  ;;  %2531 = vst.msk [vmem:[#allocation4 + $0xc0] sm:$0xff] %vm454_vm3, %v2499_v29 }
 0x2d6   : > { %v2841_v46 = vadd.f32 %v2791_v37, %v2595_v59  ;;  %vm3653_vm11 = vcmp.ge.f32.partialorder %v3621_v7, 0.0  ;;  %v3685_v47 = vmul.f32 0.01, %v3621_v7  ;;  %8241 = vmatmul.msk.f32.gmra.mxu3 %vm454_vm3, %v4535_v52 }
 0x2d7   : > { %v2936_v48 = vld [vmem:[#allocation4 + $0xb0] sm:$0xff] }
 0x2d8   : > { %v3182_v22 = vadd.f32 %v3130_v56, %v2936_v48  ;;  %2873 = vst.msk [vmem:[#allocation4 + $0xb8] sm:$0xff] %vm454_vm3, %v2841_v46  ;;  %v10250_v3 = vsel %vm3653_vm11, %v3621_v7, %v3685_v47  ;;  %v2454_v56 = vpop.f32.mrf.mxu1  ;;  %v4197_v48 = vld [vmem:[#allocation3 + $0x69] sm:$0xff] }
 0x2d9   : > { %v10238_v49 = vpop.f32.mrf.mxu0  ;;  %11612 = vst [vmem:[#allocation19_spill] sm:$0xff] %v10250_v3  ;;  %v3277_v37 = vld [vmem:[#allocation4 + $0xa8] sm:$0xff] }
 0x2da   : > { %8208 = vmatmul.msk.f32.gmra.mxu2 %vm454_vm3, %v4196_v51  ;;  %8275 = vmatmul.msk.f32.gmra.mxu0 %vm454_vm3, %v10245_v14  ;;  %3805 = vst.msk [vmem:[#allocation3 + $0xf9] sm:$0xff] %vm454_vm3, %v10250_v3  ;;  %v3523_v45 = vadd.f32 %v10153_v55, %v3277_v37  ;;  %v3136_v29 = vpop.f32.mrf.mxu3  ;;  %v2254_v51 = vld [vmem:[#allocation4 + $0xc8] sm:$0xff]  ;;  %v4536_v55 = vld [vmem:[#allocation3 + $0x6a] sm:$0xff] }
 0x2db   : > { %3214 = vst.msk [vmem:[#allocation4 + $0xb0] sm:$0xff] %vm454_vm3, %v3182_v22  ;;  %v3586_v59 = vld [vmem:[#allocation4 + $0xa0] sm:$0xff]  ;;  %v2500_v52 = vadd.f32 %v2454_v56, %v2254_v51  ;;  %8176 = vmatmul.msk.f32.gmra.mxu1 %vm454_vm3, %v10205_v54 }
 0x2dc   : > { %v3622_v46 = vadd.f32 %v10194_v18, %v3586_v59  ;;  %3555 = vst.msk [vmem:[#allocation4 + $0xa8] sm:$0xff] %vm454_vm3, %v3523_v45  ;;  %v2596_v7 = vld [vmem:[#allocation4 + $0xc0] sm:$0xff] }
 0x2dd   : > { %v2794_v62 = vpop.f32.mrf.mxu2  ;;  %2532 = vst.msk [vmem:[#allocation4 + $0xc8] sm:$0xff] %vm454_vm3, %v2500_v52  ;;  %v10265_v45 = vld [vmem:[#allocation3 + $0x90] sm:$0xff] }
 0x2de   : > { %v2842_v41 = vadd.f32 %v2794_v62, %v2596_v7  ;;  %vm3654_vm12 = vcmp.ge.f32.partialorder %v3622_v46, 0.0  ;;  %v3686_v22 = vmul.f32 0.01, %v3622_v46  ;;  %8242 = vmatmul.msk.f32.gmra.mxu3 %vm454_vm3, %v4536_v55 }
 0x2df   : > { %v2937_v37 = vld [vmem:[#allocation4 + $0xb8] sm:$0xff] }
 0x2e0   : > { %v3183_v59 = vadd.f32 %v3133_v61, %v2937_v37  ;;  %2874 = vst.msk [vmem:[#allocation4 + $0xc0] sm:$0xff] %vm454_vm3, %v2842_v41  ;;  %v10270_v54 = vsel %vm3654_vm12, %v3622_v46, %v3686_v22  ;;  %v2457_v61 = vpop.f32.mrf.mxu1  ;;  %v4198_v37 = vld [vmem:[#allocation3 + $0x79] sm:$0xff] }
 0x2e1   : > { %v10258_v47 = vpop.f32.mrf.mxu0  ;;  %11613 = vst [vmem:[#allocation20_spill] sm:$0xff] %v10270_v54 }
 0x2e2   : > { %8209 = vmatmul.msk.f32.gmra.mxu2 %vm454_vm3, %v4197_v48  ;;  %8276 = vmatmul.msk.f32.gmra.mxu0 %vm454_vm3, %v10265_v45  ;;  %v3278_v62 = vld [vmem:[#allocation4 + $0xb0] sm:$0xff]  ;;  %3806 = vst.msk [vmem:[#allocation3 + $0x109] sm:$0xff] %vm454_vm3, %v10270_v54  ;;  %v3139_v52 = vpop.f32.mrf.mxu3 }
 0x2e3   : > { %v3524_v56 = vadd.f32 %v10173_v42, %v3278_v62  ;;  %3215 = vst.msk [vmem:[#allocation4 + $0xb8] sm:$0xff] %vm454_vm3, %v3183_v59  ;;  %v3587_v7 = vld [vmem:[#allocation4 + $0xa8] sm:$0xff]  ;;  %v2255_v48 = vld [vmem:[#allocation4 + $0xd0] sm:$0xff]  ;;  %8177 = vmatmul.msk.f32.gmra.mxu1 %vm454_vm3, %v10225_v27 }
 0x2e4   : > { %v3623_v41 = vadd.f32 %v10194_v18, %v3587_v7  ;;  %v2501_v55 = vadd.f32 %v2457_v61, %v2255_v48  ;;  %v2597_v46 = vld [vmem:[#allocation4 + $0xc8] sm:$0xff] }
 0x2e5   : > { %v2797_v51 = vpop.f32.mrf.mxu2  ;;  %3556 = vst.msk [vmem:[#allocation4 + $0xb0] sm:$0xff] %vm454_vm3, %v3524_v56  ;;  %v4537_v42 = vld [vmem:[#allocation3 + $0x7a] sm:$0xff] }
 0x2e6   : > { %v2843_v54 = vadd.f32 %v2797_v51, %v2597_v46  ;;  %2533 = vst.msk [vmem:[#allocation4 + $0xd0] sm:$0xff] %vm454_vm3, %v2501_v55  ;;  %vm3655_vm13 = vcmp.ge.f32.partialorder %v3623_v41, 0.0  ;;  %v3687_v59 = vmul.f32 0.01, %v3623_v41  ;;  %8243 = vmatmul.msk.f32.gmra.mxu3 %vm454_vm3, %v4537_v42  ;;  %v10285_v56 = vld [vmem:[#allocation3 + $0x98] sm:$0xff] }
 0x2e7   : > { %v2938_v62 = vld [vmem:[#allocation4 + $0xc0] sm:$0xff] }
 0x2e8   : > { %v3184_v7 = vadd.f32 %v3136_v29, %v2938_v62  ;;  %2875 = vst.msk [vmem:[#allocation4 + $0xc8] sm:$0xff] %vm454_vm3, %v2843_v54  ;;  %v10290_v27 = vsel %vm3655_vm13, %v3623_v41, %v3687_v59  ;;  %v2460_v29 = vpop.f32.mrf.mxu1  ;;  %v4199_v62 = vld [vmem:[#allocation3 + $0x81] sm:$0xff] }
 0x2e9   : > { %v10278_v22 = vpop.f32.mrf.mxu0  ;;  %11614 = vst [vmem:[#allocation21_spill] sm:$0xff] %v10290_v27 }
 0x2ea   : > { %8210 = vmatmul.msk.f32.gmra.mxu2 %vm454_vm3, %v4198_v37  ;;  %8277 = vmatmul.msk.f32.gmra.mxu0 %vm454_vm3, %v10285_v56  ;;  %v3279_v51 = vld [vmem:[#allocation4 + $0xb8] sm:$0xff]  ;;  %3807 = vst.msk [vmem:[#allocation3 + $0x111] sm:$0xff] %vm454_vm3, %v10290_v27  ;;  %v3142_v55 = vpop.f32.mrf.mxu3 }
 0x2eb   : > { %v3525_v61 = vadd.f32 %v10198_v35, %v3279_v51  ;;  %3216 = vst.msk [vmem:[#allocation4 + $0xc0] sm:$0xff] %vm454_vm3, %v3184_v7  ;;  %v2256_v37 = vld [vmem:[#allocation4 + $0xd8] sm:$0xff]  ;;  %8178 = vmatmul.msk.f32.gmra.mxu1 %vm454_vm3, %v10245_v14 }
 0x2ec   : > { %v3588_v46 = vld [vmem:[#allocation4 + $0xb0] sm:$0xff]  ;;  %v2502_v42 = vadd.f32 %v2460_v29, %v2256_v37 }
 0x2ed   : > { %v2800_v48 = vpop.f32.mrf.mxu2  ;;  %v3624_v54 = vadd.f32 %v10194_v18, %v3588_v46  ;;  %3557 = vst.msk [vmem:[#allocation4 + $0xb8] sm:$0xff] %vm454_vm3, %v3525_v61  ;;  %v2598_v41 = vld [vmem:[#allocation4 + $0xd0] sm:$0xff]  ;;  %v10305_v61 = vld [vmem:[#allocation3 + $0xa8] sm:$0xff] }
 0x2ee   : > { %v2844_v27 = vadd.f32 %v2800_v48, %v2598_v41  ;;  %2534 = vst.msk [vmem:[#allocation4 + $0xd8] sm:$0xff] %vm454_vm3, %v2502_v42  ;;  %v4538_v35 = vld [vmem:[#allocation3 + $0x82] sm:$0xff] }
 0x2ef   : > { %vm3656_vm14 = vcmp.ge.f32.partialorder %v3624_v54, 0.0  ;;  %v3688_v7 = vmul.f32 0.01, %v3624_v54  ;;  %v2939_v51 = vld [vmem:[#allocation4 + $0xc8] sm:$0xff]  ;;  %8244 = vmatmul.msk.f32.gmra.mxu3 %vm454_vm3, %v4538_v35 }
 0x2f0   : > { %v3185_v46 = vadd.f32 %v3139_v52, %v2939_v51  ;;  %2876 = vst.msk [vmem:[#allocation4 + $0xd0] sm:$0xff] %vm454_vm3, %v2844_v27  ;;  %v2463_v52 = vpop.f32.mrf.mxu1  ;;  %v4200_v51 = vld [vmem:[#allocation3 + $0x91] sm:$0xff] }
 0x2f1   : > { %v10298_v59 = vpop.f32.mrf.mxu0  ;;  %v10310_v14 = vsel %vm3656_vm14, %v3624_v54, %v3688_v7 }
 0x2f2   : > { %8211 = vmatmul.msk.f32.gmra.mxu2 %vm454_vm3, %v4199_v62  ;;  %8278 = vmatmul.msk.f32.gmra.mxu0 %vm454_vm3, %v10305_v61  ;;  %11615 = vst [vmem:[#allocation22_spill] sm:$0xff] %v10310_v14  ;;  %v3280_v48 = vld [vmem:[#allocation4 + $0xc0] sm:$0xff]  ;;  %v3145_v42 = vpop.f32.mrf.mxu3 }
 0x2f3   : > { %3808 = vst.msk [vmem:[#allocation3 + $0x121] sm:$0xff] %vm454_vm3, %v10310_v14  ;;  %v3526_v29 = vadd.f32 %v10218_v1, %v3280_v48  ;;  %v2257_v62 = vld [vmem:[#allocation4 + $0xe0] sm:$0xff]  ;;  %8179 = vmatmul.msk.f32.gmra.mxu1 %vm454_vm3, %v10265_v45 }
 0x2f4   : > { %3217 = vst.msk [vmem:[#allocation4 + $0xc8] sm:$0xff] %vm454_vm3, %v3185_v46  ;;  %v3589_v41 = vld [vmem:[#allocation4 + $0xb8] sm:$0xff]  ;;  %v2503_v35 = vadd.f32 %v2463_v52, %v2257_v62  ;;  %v4539_v1 = vld [vmem:[#allocation3 + $0x92] sm:$0xff] }
 0x2f5   : > { %v2803_v37 = vpop.f32.mrf.mxu2  ;;  %v3625_v27 = vadd.f32 %v10194_v18, %v3589_v41  ;;  %3558 = vst.msk [vmem:[#allocation4 + $0xc0] sm:$0xff] %vm454_vm3, %v3526_v29  ;;  %v2599_v54 = vld [vmem:[#allocation4 + $0xd8] sm:$0xff]  ;;  %v10325_v29 = vld [vmem:[#allocation3 + $0xb0] sm:$0xff] }
 0x2f6   : > { %v2845_v14 = vadd.f32 %v2803_v37, %v2599_v54  ;;  %2535 = vst.msk [vmem:[#allocation4 + $0xe0] sm:$0xff] %vm454_vm3, %v2503_v35 }
 0x2f7   : > { %vm3657_vm15 = vcmp.ge.f32.partialorder %v3625_v27, 0.0  ;;  %v3689_v46 = vmul.f32 0.01, %v3625_v27  ;;  %v2940_v48 = vld [vmem:[#allocation4 + $0xd0] sm:$0xff]  ;;  %8245 = vmatmul.msk.f32.gmra.mxu3 %vm454_vm3, %v4539_v1 }
 0x2f8   : > { %v3186_v41 = vadd.f32 %v3142_v55, %v2940_v48  ;;  %2877 = vst.msk [vmem:[#allocation4 + $0xd8] sm:$0xff] %vm454_vm3, %v2845_v14  ;;  %v2466_v55 = vpop.f32.mrf.mxu1  ;;  %v4201_v48 = vld [vmem:[#allocation3 + $0x99] sm:$0xff] }
 0x2f9   : > { %v10318_v7 = vpop.f32.mrf.mxu0  ;;  %v10330_v45 = vsel %vm3657_vm15, %v3625_v27, %v3689_v46 }
 0x2fa   : > { %8212 = vmatmul.msk.f32.gmra.mxu2 %vm454_vm3, %v4200_v51  ;;  %8279 = vmatmul.msk.f32.gmra.mxu0 %vm454_vm3, %v10325_v29  ;;  %11616 = vst [vmem:[#allocation23_spill] sm:$0xff] %v10330_v45  ;;  %v3148_v35 = vpop.f32.mrf.mxu3  ;;  %v2258_v51 = vld [vmem:[#allocation4 + $0xe8] sm:$0xff] }
 0x2fb   : > { %v3281_v37 = vld [vmem:[#allocation4 + $0xc8] sm:$0xff]  ;;  %3809 = vst.msk [vmem:[#allocation3 + $0x129] sm:$0xff] %vm454_vm3, %v10330_v45  ;;  %v2504_v1 = vadd.f32 %v2466_v55, %v2258_v51  ;;  %8180 = vmatmul.msk.f32.gmra.mxu1 %vm454_vm3, %v10285_v56 }
 0x2fc   : > { %v3527_v52 = vadd.f32 %v10238_v49, %v3281_v37  ;;  %3218 = vst.msk [vmem:[#allocation4 + $0xd0] sm:$0xff] %vm454_vm3, %v3186_v41  ;;  %v3590_v54 = vld [vmem:[#allocation4 + $0xc0] sm:$0xff]  ;;  %v4540_v49 = vld [vmem:[#allocation3 + $0x9a] sm:$0xff] }
 0x2fd   : > { %v2806_v62 = vpop.f32.mrf.mxu2  ;;  %v3626_v14 = vadd.f32 %v10194_v18, %v3590_v54  ;;  %v2600_v27 = vld [vmem:[#allocation4 + $0xe0] sm:$0xff]  ;;  %2536 = vst.msk [vmem:[#allocation4 + $0xe8] sm:$0xff] %vm454_vm3, %v2504_v1 }
 0x2fe   : > { %3559 = vst.msk [vmem:[#allocation4 + $0xc8] sm:$0xff] %vm454_vm3, %v3527_v52  ;;  %v2846_v45 = vadd.f32 %v2806_v62, %v2600_v27  ;;  %v10345_v52 = vld [vmem:[#allocation3 + $0xc0] sm:$0xff] }
 0x2ff   : > { %vm3658_vm2 = vcmp.ge.f32.partialorder %v3626_v14, 0.0  ;;  %v3690_v41 = vmul.f32 0.01, %v3626_v14  ;;  %v2941_v37 = vld [vmem:[#allocation4 + $0xd8] sm:$0xff]  ;;  %8246 = vmatmul.msk.f32.gmra.mxu3 %vm454_vm3, %v4540_v49 }
 0x300   : > { %v3187_v54 = vadd.f32 %v3145_v42, %v2941_v37  ;;  %2878 = vst.msk [vmem:[#allocation4 + $0xe0] sm:$0xff] %vm454_vm3, %v2846_v45  ;;  %v2469_v42 = vpop.f32.mrf.mxu1  ;;  %v4202_v37 = vld [vmem:[#allocation3 + $0xa9] sm:$0xff] }
 0x301   : > { %v10338_v46 = vpop.f32.mrf.mxu0  ;;  %v10350_v56 = vsel %vm3658_vm2, %v3626_v14, %v3690_v41 }
 0x302   : > { %8213 = vmatmul.msk.f32.gmra.mxu2 %vm454_vm3, %v4201_v48  ;;  %8280 = vmatmul.msk.f32.gmra.mxu0 %vm454_vm3, %v10345_v52  ;;  %11617 = vst [vmem:[#allocation24_spill] sm:$0xff] %v10350_v56  ;;  %v3151_v1 = vpop.f32.mrf.mxu3  ;;  %v2259_v48 = vld [vmem:[#allocation4 + $0xf0] sm:$0xff] }
 0x303   : > { %v3282_v62 = vld [vmem:[#allocation4 + $0xd0] sm:$0xff]  ;;  %3810 = vst.msk [vmem:[#allocation3 + $0x139] sm:$0xff] %vm454_vm3, %v10350_v56  ;;  %v2505_v49 = vadd.f32 %v2469_v42, %v2259_v48  ;;  %8181 = vmatmul.msk.f32.gmra.mxu1 %vm454_vm3, %v10305_v61 }
 0x304   : > { %v3528_v55 = vadd.f32 %v10258_v47, %v3282_v62  ;;  %3219 = vst.msk [vmem:[#allocation4 + $0xd8] sm:$0xff] %vm454_vm3, %v3187_v54  ;;  %v2601_v14 = vld [vmem:[#allocation4 + $0xe8] sm:$0xff]  ;;  %v4541_v47 = vld [vmem:[#allocation3 + $0xaa] sm:$0xff] }
 0x305   : > { %v2809_v51 = vpop.f32.mrf.mxu2  ;;  %v3591_v27 = vld [vmem:[#allocation4 + $0xc8] sm:$0xff]  ;;  %2537 = vst.msk [vmem:[#allocation4 + $0xf0] sm:$0xff] %vm454_vm3, %v2505_v49 }
 0x306   : > { %v3627_v45 = vadd.f32 %v10194_v18, %v3591_v27  ;;  %3560 = vst.msk [vmem:[#allocation4 + $0xd0] sm:$0xff] %vm454_vm3, %v3528_v55  ;;  %v2847_v56 = vadd.f32 %v2809_v51, %v2601_v14  ;;  %v10365_v55 = vld [vmem:[#allocation3 + $0xc8] sm:$0xff] }
 0x307   : > { %v2942_v62 = vld [vmem:[#allocation4 + $0xe0] sm:$0xff]  ;;  %8247 = vmatmul.msk.f32.gmra.mxu3 %vm454_vm3, %v4541_v47 }
 0x308   : > { %vm3659_vm4 = vcmp.ge.f32.partialorder %v3627_v45, 0.0  ;;  %v3691_v54 = vmul.f32 0.01, %v3627_v45  ;;  %v3188_v27 = vadd.f32 %v3148_v35, %v2942_v62  ;;  %2879 = vst.msk [vmem:[#allocation4 + $0xe8] sm:$0xff] %vm454_vm3, %v2847_v56  ;;  %v2472_v35 = vpop.f32.mrf.mxu1  ;;  %v4203_v62 = vld [vmem:[#allocation3 + $0xb1] sm:$0xff] }
 0x309   : > { %v10358_v41 = vpop.f32.mrf.mxu0 }
 0x30a   : > { %8214 = vmatmul.msk.f32.gmra.mxu2 %vm454_vm3, %v4202_v37  ;;  %8281 = vmatmul.msk.f32.gmra.mxu0 %vm454_vm3, %v10365_v55  ;;  %v10370_v61 = vsel %vm3659_vm4, %v3627_v45, %v3691_v54  ;;  %3220 = vst.msk [vmem:[#allocation4 + $0xe0] sm:$0xff] %vm454_vm3, %v3188_v27  ;;  %v3154_v49 = vpop.f32.mrf.mxu3  ;;  %v2260_v37 = vld [vmem:[#allocation4 + $0xf8] sm:$0xff] }
 0x30b   : > { %11618 = vst [vmem:[#allocation25_spill] sm:$0xff] %v10370_v61  ;;  %v3283_v51 = vld [vmem:[#allocation4 + $0xd8] sm:$0xff]  ;;  %v2506_v47 = vadd.f32 %v2472_v35, %v2260_v37  ;;  %8182 = vmatmul.msk.f32.gmra.mxu1 %vm454_vm3, %v10325_v29 }
 0x30c   : > { %3811 = vst.msk [vmem:[#allocation3 + $0x141] sm:$0xff] %vm454_vm3, %v10370_v61  ;;  %v3529_v42 = vadd.f32 %v10278_v22, %v3283_v51  ;;  %v2602_v45 = vld [vmem:[#allocation4 + $0xf0] sm:$0xff]  ;;  %v4542_v22 = vld [vmem:[#allocation3 + $0xb2] sm:$0xff] }
 0x30d   : > { %v2812_v48 = vpop.f32.mrf.mxu2  ;;  %v3592_v14 = vld [vmem:[#allocation4 + $0xd0] sm:$0xff]  ;;  %2538 = vst.msk [vmem:[#allocation4 + $0xf8] sm:$0xff] %vm454_vm3, %v2506_v47 }
 0x30e   : > { %v3628_v56 = vadd.f32 %v10194_v18, %v3592_v14  ;;  %3561 = vst.msk [vmem:[#allocation4 + $0xd8] sm:$0xff] %vm454_vm3, %v3529_v42  ;;  %v2848_v61 = vadd.f32 %v2812_v48, %v2602_v45  ;;  %v10385_v42 = vld [vmem:[#allocation3 + $0xd8] sm:$0xff] }
 0x30f   : > { %v2943_v51 = vld [vmem:[#allocation4 + $0xe8] sm:$0xff]  ;;  %8248 = vmatmul.msk.f32.gmra.mxu3 %vm454_vm3, %v4542_v22 }
 0x310   : > { %vm3660_vm5 = vcmp.ge.f32.partialorder %v3628_v56, 0.0  ;;  %v3692_v27 = vmul.f32 0.01, %v3628_v56  ;;  %v3189_v14 = vadd.f32 %v3151_v1, %v2943_v51  ;;  %2880 = vst.msk [vmem:[#allocation4 + $0xf0] sm:$0xff] %vm454_vm3, %v2848_v61  ;;  %v4028_v1 = vpop.f32.mrf.mxu1 }
 0x311   : > { %v10378_v54 = vpop.f32.mrf.mxu0  ;;  %v3284_v48 = vld [vmem:[#allocation4 + $0xe0] sm:$0xff] }
 0x312   : > { %8215 = vmatmul.msk.f32.gmra.mxu2 %vm454_vm3, %v4203_v62  ;;  %8282 = vmatmul.msk.f32.gmra.mxu0 %vm454_vm3, %v10385_v42  ;;  %v10390_v29 = vsel %vm3660_vm5, %v3628_v56, %v3692_v27  ;;  %v3530_v35 = vadd.f32 %v10298_v59, %v3284_v48  ;;  %3221 = vst.msk [vmem:[#allocation4 + $0xe8] sm:$0xff] %vm454_vm3, %v3189_v14  ;;  %v3157_v47 = vpop.f32.mrf.mxu3  ;;  %v3882_v62 = vld [vmem:[#allocation5] sm:$0xff]  ;;  %v8331_v56 = vld [vmem:[%s11564_s3 + $0x28] sm:$0xff]  ;;  %v8364_v27 = vld [vmem:[%s11564_s3 + $0x30] sm:$0xff] }
 0x313   : > { %11619 = vst [vmem:[#allocation26_spill] sm:$0xff] %v10390_v29  ;;  %v4124_v22 = vadd.f32 %v4028_v1, %v3882_v62  ;;  %8183 = vmatmul.msk.f32.gmra.mxu1 %vm454_vm3, %v10345_v52  ;;  %v4204_v14 = vld [vmem:[#allocation3 + $0xc1] sm:$0xff]  ;;  %5721 = vmatpush.msra.mxu2 %v8331_v56 }
 0x314   : > { %3812 = vst.msk [vmem:[#allocation3 + $0x151] sm:$0xff] %vm454_vm3, %v10390_v29  ;;  %v2603_v59 = vld [vmem:[#allocation4 + $0xf8] sm:$0xff]  ;;  %6061 = vmatpush.msra.mxu3 %v8364_v27  ;;  %v10414_v29 = vld [vmem:[#allocation3 + $0xe0] sm:$0xff] }
 0x315   : > { %v2815_v37 = vpop.f32.mrf.mxu2  ;;  %v3593_v45 = vld [vmem:[#allocation4 + $0xd8] sm:$0xff]  ;;  %3562 = vst.msk [vmem:[#allocation4 + $0xe0] sm:$0xff] %vm454_vm3, %v3530_v35 }
 0x316   : > { %v3629_v61 = vadd.f32 %v10194_v18, %v3593_v45  ;;  %v8397_v48 = vld [vmem:[%s11564_s3 + $0x38] sm:$0xff]  ;;  %v2849_v35 = vadd.f32 %v2815_v37, %v2603_v59  ;;  %4156 = vst.msk [vmem:[#allocation5] sm:$0xff] %vm454_vm3, %v4124_v22  ;;  %v3883_v59 = vld [vmem:[#allocation5 + $0x8] sm:$0xff] }
 0x317   : > { %v4543_v45 = vld [vmem:[#allocation3 + $0xc2] sm:$0xff]  ;;  %6400 = vmatpush.msra.mxu0 %v8397_v48 }
 0x318   : > { %vm3661_vm6 = vcmp.ge.f32.partialorder %v3629_v61, 0.0  ;;  %v3693_v62 = vmul.f32 0.01, %v3629_v61  ;;  %v2944_v1 = vld [vmem:[#allocation4 + $0xf0] sm:$0xff]  ;;  %8249 = vmatmul.msk.f32.gmra.mxu3 %vm454_vm3, %v4543_v45  ;;  %2881 = vst.msk [vmem:[#allocation4 + $0xf8] sm:$0xff] %vm454_vm3, %v2849_v35 }
 0x319   : > { %v10404_v51 = vpop.f32.mrf.mxu0  ;;  %v3190_v52 = vadd.f32 %v3154_v49, %v2944_v1  ;;  %v3285_v22 = vld [vmem:[#allocation4 + $0xe8] sm:$0xff]  ;;  %v4031_v49 = vpop.f32.mrf.mxu1  ;;  %v4205_v1 = vld [vmem:[#allocation3 + $0xc9] sm:$0xff] }
 0x31a   : > { %8216 = vmatmul.msk.f32.gmra.mxu2 %vm454_vm3, %v4204_v14  ;;  %8283 = vmatmul.msk.f32.gmra.mxu0 %vm454_vm3, %v10414_v29  ;;  %v10419_v37 = vsel %vm3661_vm6, %v3629_v61, %v3693_v62  ;;  %v3531_v27 = vadd.f32 %v10318_v7, %v3285_v22  ;;  %v4706_v14 = vpop.f32.mrf.mxu3  ;;  %v4125_v45 = vadd.f32 %v4031_v49, %v3883_v59  ;;  %v4544_v7 = vld [vmem:[#allocation3 + $0xca] sm:$0xff]  ;;  %v3884_v49 = vld [vmem:[#allocation5 + $0x10] sm:$0xff] }
 0x31b   : > { %11620 = vst [vmem:[#allocation27_spill] sm:$0xff] %v10419_v37  ;;  %8184 = vmatmul.msk.f32.gmra.mxu1 %vm454_vm3, %v10365_v55 }
 0x31c   : > { %3813 = vst.msk [vmem:[#allocation3 + $0x159] sm:$0xff] %vm454_vm3, %v10419_v37  ;;  %v3594_v48 = vld [vmem:[#allocation4 + $0xe0] sm:$0xff] }
 0x31d   : > { %v4367_v56 = vpop.f32.mrf.mxu2  ;;  %3222 = vst.msk [vmem:[#allocation4 + $0xf0] sm:$0xff] %vm454_vm3, %v3190_v52  ;;  %v3630_v35 = vadd.f32 %v10194_v18, %v3594_v48  ;;  %v4220_v61 = vld [vmem:[#allocation5] sm:$0xff] }
 0x31e   : > { %3563 = vst.msk [vmem:[#allocation4 + $0xe8] sm:$0xff] %vm454_vm3, %v3531_v27  ;;  %v4463_v37 = vadd.f32 %v4367_v56, %v4220_v61  ;;  %v10434_v27 = vld [vmem:[#allocation3 + $0xf0] sm:$0xff] }
 0x31f   : > { %4157 = vst.msk [vmem:[#allocation5 + $0x8] sm:$0xff] %vm454_vm3, %v4125_v45  ;;  %vm3662_vm7 = vcmp.ge.f32.partialorder %v3630_v35, 0.0  ;;  %v3694_v52 = vmul.f32 0.01, %v3630_v35  ;;  %v2945_v22 = vld [vmem:[#allocation4 + $0xf8] sm:$0xff] }
 0x320   : > { %8250 = vmatmul.msk.f32.gmra.mxu3 %vm454_vm3, %v4544_v7  ;;  %v3191_v59 = vadd.f32 %v3157_v47, %v2945_v22  ;;  %4495 = vst.msk [vmem:[#allocation5] sm:$0xff] %vm454_vm3, %v4463_v37  ;;  %v4206_v22 = vld [vmem:[#allocation3 + $0xd9] sm:$0xff] }
 0x321   : > { %v10427_v62 = vpop.f32.mrf.mxu0  ;;  %v10439_v55 = vsel %vm3662_vm7, %v3630_v35, %v3694_v52  ;;  %v4034_v47 = vpop.f32.mrf.mxu1 }
 0x322   : > { %8217 = vmatmul.msk.f32.gmra.mxu2 %vm454_vm3, %v4205_v1  ;;  %8284 = vmatmul.msk.f32.gmra.mxu0 %vm454_vm3, %v10434_v27  ;;  %11621 = vst [vmem:[#allocation28_spill] sm:$0xff] %v10439_v55  ;;  %v4709_v61 = vpop.f32.mrf.mxu3  ;;  %v4126_v7 = vadd.f32 %v4034_v47, %v3884_v49  ;;  %v3885_v47 = vld [vmem:[#allocation5 + $0x18] sm:$0xff] }
 0x323   : > { %3814 = vst.msk [vmem:[#allocation3 + $0x169] sm:$0xff] %vm454_vm3, %v10439_v55  ;;  %8185 = vmatmul.msk.f32.gmra.mxu1 %vm454_vm3, %v10385_v42 }
 0x324   : > { %v3286_v56 = vld [vmem:[#allocation4 + $0xf0] sm:$0xff]  ;;  %3223 = vst.msk [vmem:[#allocation4 + $0xf8] sm:$0xff] %vm454_vm3, %v3191_v59 }
 0x325   : > { %v4370_v48 = vpop.f32.mrf.mxu2  ;;  %v3532_v45 = vadd.f32 %v10338_v46, %v3286_v56  ;;  %v3595_v1 = vld [vmem:[#allocation4 + $0xe8] sm:$0xff]  ;;  %4158 = vst.msk [vmem:[#allocation5 + $0x10] sm:$0xff] %vm454_vm3, %v4126_v7 }
 0x326   : > { %v3631_v37 = vadd.f32 %v10194_v18, %v3595_v1  ;;  %v4221_v35 = vld [vmem:[#allocation5 + $0x8] sm:$0xff] }
 0x327   : > { %3564 = vst.msk [vmem:[#allocation4 + $0xf0] sm:$0xff] %vm454_vm3, %v3532_v45  ;;  %v4464_v55 = vadd.f32 %v4370_v48, %v4221_v35  ;;  %v4545_v46 = vld [vmem:[#allocation3 + $0xda] sm:$0xff]  ;;  %v4559_v56 = vld [vmem:[#allocation5] sm:$0xff] }
 0x328   : > { %vm3663_vm8 = vcmp.ge.f32.partialorder %v3631_v37, 0.0  ;;  %v3695_v59 = vmul.f32 0.01, %v3631_v37  ;;  %8251 = vmatmul.msk.f32.gmra.mxu3 %vm454_vm3, %v4545_v46  ;;  %v10454_v45 = vld [vmem:[#allocation3 + $0xf8] sm:$0xff]  ;;  %v4802_v49 = vadd.f32 %v4706_v14, %v4559_v56  ;;  %v4207_v56 = vld [vmem:[#allocation3 + $0xe1] sm:$0xff] }
 0x329   : > { %v10447_v52 = vpop.f32.mrf.mxu0  ;;  %4496 = vst.msk [vmem:[#allocation5 + $0x8] sm:$0xff] %vm454_vm3, %v4464_v55  ;;  %v4037_v14 = vpop.f32.mrf.mxu1 }
 0x32a   : > { %8218 = vmatmul.msk.f32.gmra.mxu2 %vm454_vm3, %v4206_v22  ;;  %8285 = vmatmul.msk.f32.gmra.mxu0 %vm454_vm3, %v10454_v45  ;;  %v10459_v42 = vsel %vm3663_vm8, %v3631_v37, %v3695_v59  ;;  %4834 = vst.msk [vmem:[#allocation5] sm:$0xff] %vm454_vm3, %v4802_v49  ;;  %v4712_v35 = vpop.f32.mrf.mxu3  ;;  %v4127_v46 = vadd.f32 %v4037_v14, %v3885_v47 }
 0x32b   : > { %11622 = vst [vmem:[#allocation29_spill] sm:$0xff] %v10459_v42  ;;  %v3287_v48 = vld [vmem:[#allocation4 + $0xf8] sm:$0xff]  ;;  %8186 = vmatmul.msk.f32.gmra.mxu1 %vm454_vm3, %v10414_v29 }
 0x32c   : > { %3815 = vst.msk [vmem:[#allocation3 + $0x171] sm:$0xff] %vm454_vm3, %v10459_v42  ;;  %v3533_v7 = vadd.f32 %v10358_v41, %v3287_v48  ;;  %v4222_v37 = vld [vmem:[#allocation5 + $0x10] sm:$0xff] }
 0x32d   : > { %v4373_v1 = vpop.f32.mrf.mxu2  ;;  %4159 = vst.msk [vmem:[#allocation5 + $0x18] sm:$0xff] %vm454_vm3, %v4127_v46  ;;  %v4546_v41 = vld [vmem:[#allocation3 + $0xe2] sm:$0xff] }
 0x32e   : > { %v3596_v22 = vld [vmem:[#allocation4 + $0xf0] sm:$0xff]  ;;  %3565 = vst.msk [vmem:[#allocation4 + $0xf8] sm:$0xff] %vm454_vm3, %v3533_v7  ;;  %v4465_v42 = vadd.f32 %v4373_v1, %v4222_v37  ;;  %v10474_v7 = vld [vmem:[#allocation3 + $0x108] sm:$0xff] }
 0x32f   : > { %v3632_v55 = vadd.f32 %v10194_v18, %v3596_v22  ;;  %v3886_v22 = vld [vmem:[#allocation5 + $0x20] sm:$0xff] }
 0x330   : > { %v4560_v48 = vld [vmem:[#allocation5 + $0x8] sm:$0xff]  ;;  %8252 = vmatmul.msk.f32.gmra.mxu3 %vm454_vm3, %v4546_v41  ;;  %4497 = vst.msk [vmem:[#allocation5 + $0x10] sm:$0xff] %vm454_vm3, %v4465_v42 }
 0x331   : > { %v10467_v59 = vpop.f32.mrf.mxu0  ;;  %vm3664_vm9 = vcmp.ge.f32.partialorder %v3632_v55, 0.0  ;;  %v3696_v49 = vmul.f32 0.01, %v3632_v55  ;;  %v4803_v47 = vadd.f32 %v4709_v61, %v4560_v48  ;;  %v4040_v37 = vpop.f32.mrf.mxu1 }
 0x332   : > { %8219 = vmatmul.msk.f32.gmra.mxu2 %vm454_vm3, %v4207_v56  ;;  %8286 = vmatmul.msk.f32.gmra.mxu0 %vm454_vm3, %v10474_v7  ;;  %v4715_v14 = vpop.f32.mrf.mxu3  ;;  %v4898_v56 = vld [vmem:[#allocation5] sm:$0xff]  ;;  %v4128_v41 = vadd.f32 %v4040_v37, %v3886_v22  ;;  %v3887_v22 = vld [vmem:[#allocation5 + $0x28] sm:$0xff] }
 0x333   : > { %v10479_v29 = vsel %vm3664_vm9, %v3632_v55, %v3696_v49  ;;  %4835 = vst.msk [vmem:[#allocation5 + $0x8] sm:$0xff] %vm454_vm3, %v4803_v47  ;;  %v5141_v42 = vadd.f32 %v10378_v54, %v4898_v56  ;;  %8187 = vmatmul.msk.f32.gmra.mxu1 %vm454_vm3, %v10434_v27  ;;  %v4208_v55 = vld [vmem:[#allocation3 + $0xf1] sm:$0xff] }
 0x334   : > { %11623 = vst [vmem:[#allocation30_spill] sm:$0xff] %v10479_v29  ;;  %v4223_v48 = vld [vmem:[#allocation5 + $0x18] sm:$0xff]  ;;  %v4547_v47 = vld [vmem:[#allocation3 + $0xf2] sm:$0xff] }
 0x335   : > { %v4376_v1 = vpop.f32.mrf.mxu2  ;;  %3816 = vst.msk [vmem:[#allocation3 + $0x181] sm:$0xff] %vm454_vm3, %v10479_v29  ;;  %v3597_v46 = vld [vmem:[#allocation4 + $0xf8] sm:$0xff] }
 0x336   : > { %v3633_v61 = vadd.f32 %v10194_v18, %v3597_v46  ;;  %v4466_v49 = vadd.f32 %v4376_v1, %v4223_v48  ;;  %4160 = vst.msk [vmem:[#allocation5 + $0x20] sm:$0xff] %vm454_vm3, %v4128_v41  ;;  %v10493_v18 = vld [vmem:[#allocation3 + $0x110] sm:$0xff]  ;;  %v4548_v48 = vld [vmem:[#allocation3 + $0xfa] sm:$0xff] }
 0x337   : > { %v4561_v3 = vld [vmem:[#allocation5 + $0x10] sm:$0xff]  ;;  %5173 = vst.msk [vmem:[#allocation5] sm:$0xff] %vm454_vm3, %v5141_v42 }
 0x338   : > { %vm3665_vm10 = vcmp.ge.f32.partialorder %v3633_v61, 0.0  ;;  %v3697_v29 = vmul.f32 0.01, %v3633_v61  ;;  %8253 = vmatmul.msk.f32.gmra.mxu3 %vm454_vm3, %v4547_v47  ;;  %v4804_v54 = vadd.f32 %v4712_v35, %v4561_v3  ;;  %4498 = vst.msk [vmem:[#allocation5 + $0x18] sm:$0xff] %vm454_vm3, %v4466_v49  ;;  %v4888_v49 = vld [vmem:[#allocation3 + $0x120] sm:$0xff] }
 0x339   : > { %v10486_v34 = vpop.f32.mrf.mxu0  ;;  %v4043_v37 = vpop.f32.mrf.mxu1 }
 0x33a   : > { %8220 = vmatmul.msk.f32.gmra.mxu2 %vm454_vm3, %v4208_v55  ;;  %8287 = vmatmul.msk.f32.gmra.mxu0 %vm454_vm3, %v10493_v18  ;;  %v10499_v27 = vsel %vm3665_vm10, %v3633_v61, %v3697_v29  ;;  %4836 = vst.msk [vmem:[#allocation5 + $0x10] sm:$0xff] %vm454_vm3, %v4804_v54  ;;  %v4718_v46 = vpop.f32.mrf.mxu3  ;;  %v4899_v56 = vld [vmem:[#allocation5 + $0x8] sm:$0xff]  ;;  %v4129_v41 = vadd.f32 %v4043_v37, %v3887_v22 }
 0x33b   : > { %3817 = vst.msk [vmem:[#allocation3 + $0x189] sm:$0xff] %vm454_vm3, %v10499_v27  ;;  %v5142_v3 = vadd.f32 %v10404_v51, %v4899_v56  ;;  %8188 = vmatmul.msk.f32.gmra.mxu1 %vm454_vm3, %v10454_v45  ;;  %v4209_v29 = vld [vmem:[#allocation3 + $0xf9] sm:$0xff] }
 0x33c   : > { %4161 = vst.msk [vmem:[#allocation5 + $0x28] sm:$0xff] %vm454_vm3, %v4129_v41  ;;  %v3888_v45 = vld [vmem:[#allocation5 + $0x30] sm:$0xff] }
 0x33d   : > { %v4379_v1 = vpop.f32.mrf.mxu2  ;;  %v4224_v35 = vld [vmem:[#allocation5 + $0x20] sm:$0xff]  ;;  %5174 = vst.msk [vmem:[#allocation5 + $0x8] sm:$0xff] %vm454_vm3, %v5142_v3 }
 0x33e   : > { %v4467_v61 = vadd.f32 %v4379_v1, %v4224_v35 }
 0x33f   : > { %v4562_v55 = vld [vmem:[#allocation5 + $0x18] sm:$0xff] }
 0x340   : > { %8254 = vmatmul.msk.f32.gmra.mxu3 %vm454_vm3, %v4548_v48  ;;  %v4805_v51 = vadd.f32 %v4715_v14, %v4562_v55  ;;  %4499 = vst.msk [vmem:[#allocation5 + $0x20] sm:$0xff] %vm454_vm3, %v4467_v61  ;;  %v4210_v14 = vld [vmem:[#allocation3 + $0x109] sm:$0xff] }
 0x341   : > { %v10505_v42 = vpop.f32.mrf.mxu0  ;;  %v4046_v1 = vpop.f32.mrf.mxu1  ;;  %v4900_v22 = vld [vmem:[#allocation5 + $0x10] sm:$0xff]  ;;  %v4889_v48 = vld [vmem:[#allocation3 + $0x128] sm:$0xff] }
 0x342   : > { %8221 = vmatmul.msk.f32.gmra.mxu2 %vm454_vm3, %v4209_v29  ;;  %8288 = vmatmul.msk.f32.gmra.mxu0 %vm454_vm3, %v4888_v49  ;;  %4837 = vst.msk [vmem:[#allocation5 + $0x18] sm:$0xff] %vm454_vm3, %v4805_v51  ;;  %v4721_v54 = vpop.f32.mrf.mxu3  ;;  %v4130_v37 = vadd.f32 %v4046_v1, %v3888_v45  ;;  %v5143_v56 = vadd.f32 %v10427_v62, %v4900_v22  ;;  %v4549_v29 = vld [vmem:[#allocation3 + $0x10a] sm:$0xff] }
 0x343   : > { %v4225_v41 = vld [vmem:[#allocation5 + $0x28] sm:$0xff]  ;;  %8189 = vmatmul.msk.f32.gmra.mxu1 %vm454_vm3, %v10474_v7  ;;  %v3889_v7 = vld [vmem:[#allocation5 + $0x38] sm:$0xff] }
 0x344   : > { %4162 = vst.msk [vmem:[#allocation5 + $0x30] sm:$0xff] %vm454_vm3, %v4130_v37 }
 0x345   : > { %v4382_v47 = vpop.f32.mrf.mxu2  ;;  %5175 = vst.msk [vmem:[#allocation5 + $0x10] sm:$0xff] %vm454_vm3, %v5143_v56 }
 0x346   : > { %v4468_v3 = vadd.f32 %v4382_v47, %v4225_v41 }
 0x347   : > { %v4563_v61 = vld [vmem:[#allocation5 + $0x20] sm:$0xff] }
 0x348   : > { %8255 = vmatmul.msk.f32.gmra.mxu3 %vm454_vm3, %v4549_v29  ;;  %v4806_v62 = vadd.f32 %v4718_v46, %v4563_v61  ;;  %4500 = vst.msk [vmem:[#allocation5 + $0x28] sm:$0xff] %vm454_vm3, %v4468_v3  ;;  %v4211_v46 = vld [vmem:[#allocation3 + $0x111] sm:$0xff] }
 0x349   : > { %v10517_v35 = vpop.f32.mrf.mxu0  ;;  %v4049_v47 = vpop.f32.mrf.mxu1  ;;  %v4901_v45 = vld [vmem:[#allocation5 + $0x18] sm:$0xff]  ;;  %v4890_v29 = vld [vmem:[#allocation3 + $0x138] sm:$0xff] }
 0x34a   : > { %8222 = vmatmul.msk.f32.gmra.mxu2 %vm454_vm3, %v4210_v14  ;;  %8289 = vmatmul.msk.f32.gmra.mxu0 %vm454_vm3, %v4889_v48  ;;  %4838 = vst.msk [vmem:[#allocation5 + $0x20] sm:$0xff] %vm454_vm3, %v4806_v62  ;;  %v4724_v51 = vpop.f32.mrf.mxu3  ;;  %v4131_v1 = vadd.f32 %v4049_v47, %v3889_v7  ;;  %v5144_v22 = vadd.f32 %v10447_v52, %v4901_v45  ;;  %v4550_v14 = vld [vmem:[#allocation3 + $0x112] sm:$0xff] }
 0x34b   : > { %v4226_v37 = vld [vmem:[#allocation5 + $0x30] sm:$0xff]  ;;  %8190 = vmatmul.msk.f32.gmra.mxu1 %vm454_vm3, %v10493_v18  ;;  %v3890_v18 = vld [vmem:[#allocation5 + $0x40] sm:$0xff] }
 0x34c   : > { %4163 = vst.msk [vmem:[#allocation5 + $0x38] sm:$0xff] %vm454_vm3, %v4131_v1 }
 0x34d   : > { %v4385_v55 = vpop.f32.mrf.mxu2  ;;  %5176 = vst.msk [vmem:[#allocation5 + $0x18] sm:$0xff] %vm454_vm3, %v5144_v22 }
 0x34e   : > { %v4469_v56 = vadd.f32 %v4385_v55, %v4226_v37 }
 0x34f   : > { %v4564_v3 = vld [vmem:[#allocation5 + $0x28] sm:$0xff] }
 0x350   : > { %8256 = vmatmul.msk.f32.gmra.mxu3 %vm454_vm3, %v4550_v14  ;;  %v4807_v52 = vadd.f32 %v4721_v54, %v4564_v3  ;;  %4501 = vst.msk [vmem:[#allocation5 + $0x30] sm:$0xff] %vm454_vm3, %v4469_v56  ;;  %v4212_v54 = vld [vmem:[#allocation3 + $0x121] sm:$0xff] }
 0x351   : > { %v10529_v41 = vpop.f32.mrf.mxu0  ;;  %v4052_v55 = vpop.f32.mrf.mxu1  ;;  %v4902_v7 = vld [vmem:[#allocation5 + $0x20] sm:$0xff]  ;;  %v4891_v14 = vld [vmem:[#allocation3 + $0x140] sm:$0xff] }
 0x352   : > { %8223 = vmatmul.msk.f32.gmra.mxu2 %vm454_vm3, %v4211_v46  ;;  %8290 = vmatmul.msk.f32.gmra.mxu0 %vm454_vm3, %v4890_v29  ;;  %4839 = vst.msk [vmem:[#allocation5 + $0x28] sm:$0xff] %vm454_vm3, %v4807_v52  ;;  %v4727_v62 = vpop.f32.mrf.mxu3  ;;  %v4132_v47 = vadd.f32 %v4052_v55, %v3890_v18  ;;  %v5145_v45 = vadd.f32 %v10467_v59, %v4902_v7  ;;  %v4551_v46 = vld [vmem:[#allocation3 + $0x122] sm:$0xff] }
 0x353   : > { %v4227_v1 = vld [vmem:[#allocation5 + $0x38] sm:$0xff]  ;;  %8191 = vmatmul.msk.f32.gmra.mxu1 %vm454_vm3, %v4888_v49  ;;  %v3891_v49 = vld [vmem:[#allocation5 + $0x48] sm:$0xff] }
 0x354   : > { %4164 = vst.msk [vmem:[#allocation5 + $0x40] sm:$0xff] %vm454_vm3, %v4132_v47 }
 0x355   : > { %v4388_v61 = vpop.f32.mrf.mxu2  ;;  %5177 = vst.msk [vmem:[#allocation5 + $0x20] sm:$0xff] %vm454_vm3, %v5145_v45 }
 0x356   : > { %v4470_v22 = vadd.f32 %v4388_v61, %v4227_v1 }
 0x357   : > { %v4565_v56 = vld [vmem:[#allocation5 + $0x30] sm:$0xff] }
 0x358   : > { %8257 = vmatmul.msk.f32.gmra.mxu3 %vm454_vm3, %v4551_v46  ;;  %v4808_v3 = vadd.f32 %v4724_v51, %v4565_v56  ;;  %4502 = vst.msk [vmem:[#allocation5 + $0x38] sm:$0xff] %vm454_vm3, %v4470_v22  ;;  %v4213_v51 = vld [vmem:[#allocation3 + $0x129] sm:$0xff] }
 0x359   : > { %v10541_v37 = vpop.f32.mrf.mxu0  ;;  %v4055_v61 = vpop.f32.mrf.mxu1  ;;  %v4903_v18 = vld [vmem:[#allocation5 + $0x28] sm:$0xff]  ;;  %v4892_v46 = vld [vmem:[#allocation3 + $0x150] sm:$0xff] }
 0x35a   : > { %8224 = vmatmul.msk.f32.gmra.mxu2 %vm454_vm3, %v4212_v54  ;;  %8291 = vmatmul.msk.f32.gmra.mxu0 %vm454_vm3, %v4891_v14  ;;  %4840 = vst.msk [vmem:[#allocation5 + $0x30] sm:$0xff] %vm454_vm3, %v4808_v3  ;;  %v4730_v52 = vpop.f32.mrf.mxu3  ;;  %v4133_v55 = vadd.f32 %v4055_v61, %v3891_v49  ;;  %v5146_v7 = vadd.f32 %v10486_v34, %v4903_v18  ;;  %v4552_v54 = vld [vmem:[#allocation3 + $0x12a] sm:$0xff] }
 0x35b   : > { %v4228_v47 = vld [vmem:[#allocation5 + $0x40] sm:$0xff]  ;;  %8192 = vmatmul.msk.f32.gmra.mxu1 %vm454_vm3, %v4889_v48  ;;  %v3892_v48 = vld [vmem:[#allocation5 + $0x50] sm:$0xff] }
 0x35c   : > { %4165 = vst.msk [vmem:[#allocation5 + $0x48] sm:$0xff] %vm454_vm3, %v4133_v55 }
 0x35d   : > { %v4391_v59 = vpop.f32.mrf.mxu2  ;;  %5178 = vst.msk [vmem:[#allocation5 + $0x28] sm:$0xff] %vm454_vm3, %v5146_v7 }
 0x35e   : > { %v4471_v45 = vadd.f32 %v4391_v59, %v4228_v47 }
 0x35f   : > { %v4566_v22 = vld [vmem:[#allocation5 + $0x38] sm:$0xff] }
 0x360   : > { %8258 = vmatmul.msk.f32.gmra.mxu3 %vm454_vm3, %v4552_v54  ;;  %v4809_v56 = vadd.f32 %v4727_v62, %v4566_v22  ;;  %4503 = vst.msk [vmem:[#allocation5 + $0x40] sm:$0xff] %vm454_vm3, %v4471_v45  ;;  %v4214_v62 = vld [vmem:[#allocation3 + $0x139] sm:$0xff] }
 0x361   : > { %v10552_v1 = vpop.f32.mrf.mxu0  ;;  %v4058_v59 = vpop.f32.mrf.mxu1  ;;  %v4904_v49 = vld [vmem:[#allocation5 + $0x30] sm:$0xff]  ;;  %v4893_v54 = vld [vmem:[#allocation3 + $0x158] sm:$0xff] }
 0x362   : > { %8225 = vmatmul.msk.f32.gmra.mxu2 %vm454_vm3, %v4213_v51  ;;  %8292 = vmatmul.msk.f32.gmra.mxu0 %vm454_vm3, %v4892_v46  ;;  %4841 = vst.msk [vmem:[#allocation5 + $0x38] sm:$0xff] %vm454_vm3, %v4809_v56  ;;  %v4733_v3 = vpop.f32.mrf.mxu3  ;;  %v4134_v61 = vadd.f32 %v4058_v59, %v3892_v48  ;;  %v5147_v18 = vadd.f32 %v10505_v42, %v4904_v49  ;;  %v4553_v51 = vld [vmem:[#allocation3 + $0x13a] sm:$0xff] }
 0x363   : > { %v4229_v55 = vld [vmem:[#allocation5 + $0x48] sm:$0xff]  ;;  %8193 = vmatmul.msk.f32.gmra.mxu1 %vm454_vm3, %v4890_v29  ;;  %v3893_v29 = vld [vmem:[#allocation5 + $0x58] sm:$0xff] }
 0x364   : > { %4166 = vst.msk [vmem:[#allocation5 + $0x50] sm:$0xff] %vm454_vm3, %v4134_v61 }
 0x365   : > { %v4394_v34 = vpop.f32.mrf.mxu2  ;;  %5179 = vst.msk [vmem:[#allocation5 + $0x30] sm:$0xff] %vm454_vm3, %v5147_v18 }
 0x366   : > { %v4472_v7 = vadd.f32 %v4394_v34, %v4229_v55 }
 0x367   : > { %v4567_v45 = vld [vmem:[#allocation5 + $0x40] sm:$0xff] }
 0x368   : > { %8259 = vmatmul.msk.f32.gmra.mxu3 %vm454_vm3, %v4553_v51  ;;  %v4810_v22 = vadd.f32 %v4730_v52, %v4567_v45  ;;  %4504 = vst.msk [vmem:[#allocation5 + $0x48] sm:$0xff] %vm454_vm3, %v4472_v7  ;;  %v4215_v52 = vld [vmem:[#allocation3 + $0x141] sm:$0xff]  ;;  %v3894_v45 = vld [vmem:[#allocation5 + $0x60] sm:$0xff] }
 0x369   : > { %v10563_v47 = vpop.f32.mrf.mxu0  ;;  %v4061_v34 = vpop.f32.mrf.mxu1  ;;  %v4905_v48 = vld [vmem:[#allocation5 + $0x38] sm:$0xff] }
 0x36a   : > { %8226 = vmatmul.msk.f32.gmra.mxu2 %vm454_vm3, %v4214_v62  ;;  %8293 = vmatmul.msk.f32.gmra.mxu0 %vm454_vm3, %v4893_v54  ;;  %4842 = vst.msk [vmem:[#allocation5 + $0x40] sm:$0xff] %vm454_vm3, %v4810_v22  ;;  %v4736_v56 = vpop.f32.mrf.mxu3  ;;  %v4135_v59 = vadd.f32 %v4061_v34, %v3893_v29  ;;  %v5148_v49 = vadd.f32 %v10517_v35, %v4905_v48  ;;  %v4554_v62 = vld [vmem:[#allocation3 + $0x142] sm:$0xff] }
 0x36b   : > { %v4230_v61 = vld [vmem:[#allocation5 + $0x50] sm:$0xff]  ;;  %8194 = vmatmul.msk.f32.gmra.mxu1 %vm454_vm3, %v4891_v14  ;;  %v10580_v51 = vld [vmem:[#allocation3 + $0x168] sm:$0xff] }
 0x36c   : > { %4167 = vst.msk [vmem:[#allocation5 + $0x58] sm:$0xff] %vm454_vm3, %v4135_v59 }
 0x36d   : > { %v4397_v42 = vpop.f32.mrf.mxu2  ;;  %5180 = vst.msk [vmem:[#allocation5 + $0x38] sm:$0xff] %vm454_vm3, %v5148_v49 }
 0x36e   : > { %v4473_v18 = vadd.f32 %v4397_v42, %v4230_v61 }
 0x36f   : > { %v4568_v7 = vld [vmem:[#allocation5 + $0x48] sm:$0xff] }
 0x370   : > { %8260 = vmatmul.msk.f32.gmra.mxu3 %vm454_vm3, %v4554_v62  ;;  %v4811_v35 = vadd.f32 %v4733_v3, %v4568_v7  ;;  %4505 = vst.msk [vmem:[#allocation5 + $0x50] sm:$0xff] %vm454_vm3, %v4473_v18  ;;  %v4216_v3 = vld [vmem:[#allocation3 + $0x151] sm:$0xff] }
 0x371   : > { %v10574_v55 = vpop.f32.mrf.mxu0  ;;  %v4064_v42 = vpop.f32.mrf.mxu1  ;;  %v4906_v29 = vld [vmem:[#allocation5 + $0x40] sm:$0xff]  ;;  %v3895_v7 = vld [vmem:[#allocation5 + $0x68] sm:$0xff] }
 0x372   : > { %8227 = vmatmul.msk.f32.gmra.mxu2 %vm454_vm3, %v4215_v52  ;;  %8294 = vmatmul.msk.f32.gmra.mxu0 %vm454_vm3, %v10580_v51  ;;  %4843 = vst.msk [vmem:[#allocation5 + $0x48] sm:$0xff] %vm454_vm3, %v4811_v35  ;;  %v4739_v22 = vpop.f32.mrf.mxu3  ;;  %v4136_v34 = vadd.f32 %v4064_v42, %v3894_v45  ;;  %v5149_v48 = vadd.f32 %v10529_v41, %v4906_v29  ;;  %v4555_v52 = vld [vmem:[#allocation3 + $0x152] sm:$0xff] }
 0x373   : > { %v4231_v59 = vld [vmem:[#allocation5 + $0x58] sm:$0xff]  ;;  %8195 = vmatmul.msk.f32.gmra.mxu1 %vm454_vm3, %v4892_v46  ;;  %v10594_v62 = vld [vmem:[#allocation3 + $0x170] sm:$0xff] }
 0x374   : > { %4168 = vst.msk [vmem:[#allocation5 + $0x60] sm:$0xff] %vm454_vm3, %v4136_v34 }
 0x375   : > { %v4400_v14 = vpop.f32.mrf.mxu2  ;;  %5181 = vst.msk [vmem:[#allocation5 + $0x40] sm:$0xff] %vm454_vm3, %v5149_v48 }
 0x376   : > { %v4474_v49 = vadd.f32 %v4400_v14, %v4231_v59 }
 0x377   : > { %v4569_v18 = vld [vmem:[#allocation5 + $0x50] sm:$0xff] }
 0x378   : > { %8261 = vmatmul.msk.f32.gmra.mxu3 %vm454_vm3, %v4555_v52  ;;  %v4812_v41 = vadd.f32 %v4736_v56, %v4569_v18  ;;  %4506 = vst.msk [vmem:[#allocation5 + $0x58] sm:$0xff] %vm454_vm3, %v4474_v49  ;;  %v4217_v56 = vld [vmem:[#allocation3 + $0x159] sm:$0xff] }
 0x379   : > { %v10588_v61 = vpop.f32.mrf.mxu0  ;;  %v4067_v14 = vpop.f32.mrf.mxu1  ;;  %v4907_v45 = vld [vmem:[#allocation5 + $0x48] sm:$0xff]  ;;  %v4896_v52 = vld [vmem:[#allocation3 + $0x180] sm:$0xff] }
 0x37a   : > { %8228 = vmatmul.msk.f32.gmra.mxu2 %vm454_vm3, %v4216_v3  ;;  %8295 = vmatmul.msk.f32.gmra.mxu0 %vm454_vm3, %v10594_v62  ;;  %4844 = vst.msk [vmem:[#allocation5 + $0x50] sm:$0xff] %vm454_vm3, %v4812_v41  ;;  %v4742_v35 = vpop.f32.mrf.mxu3  ;;  %v4137_v42 = vadd.f32 %v4067_v14, %v3895_v7  ;;  %v5150_v29 = vadd.f32 %v10541_v37, %v4907_v45  ;;  %v4556_v3 = vld [vmem:[#allocation3 + $0x15a] sm:$0xff] }
 0x37b   : > { %v4232_v34 = vld [vmem:[#allocation5 + $0x60] sm:$0xff]  ;;  %8196 = vmatmul.msk.f32.gmra.mxu1 %vm454_vm3, %v4893_v54  ;;  %v3896_v54 = vld [vmem:[#allocation5 + $0x70] sm:$0xff] }
 0x37c   : > { %4169 = vst.msk [vmem:[#allocation5 + $0x68] sm:$0xff] %vm454_vm3, %v4137_v42 }
 0x37d   : > { %v4403_v46 = vpop.f32.mrf.mxu2  ;;  %5182 = vst.msk [vmem:[#allocation5 + $0x48] sm:$0xff] %vm454_vm3, %v5150_v29 }
 0x37e   : > { %v4475_v48 = vadd.f32 %v4403_v46, %v4232_v34  ;;  %v8430_v46 = vld [vmem:[%s11564_s3 + $0x40] sm:$0xff] }
 0x37f   : > { %v4570_v49 = vld [vmem:[#allocation5 + $0x58] sm:$0xff]  ;;  %6739 = vmatpush.msrb.mxu1 %v8430_v46 }
 0x380   : > { %8262 = vmatmul.msk.f32.gmra.mxu3 %vm454_vm3, %v4556_v3  ;;  %v4813_v18 = vadd.f32 %v4739_v22, %v4570_v49  ;;  %4507 = vst.msk [vmem:[#allocation5 + $0x60] sm:$0xff] %vm454_vm3, %v4475_v48  ;;  %v4218_v34 = vld [vmem:[#allocation3 + $0x169] sm:$0xff] }
 0x381   : > { %v10602_v59 = vpop.f32.mrf.mxu0  ;;  %v4070_v7 = vpop.f32.mrf.mxu1  ;;  %v4908_v14 = vld [vmem:[#allocation5 + $0x50] sm:$0xff]  ;;  %v4557_v48 = vld [vmem:[#allocation3 + $0x16a] sm:$0xff] }
 0x382   : > { %8229 = vmatmul.msk.f32.gmra.mxu2 %vm454_vm3, %v4217_v56  ;;  %8296 = vmatmul.msk.f32.gmra.mxu0 %vm454_vm3, %v4896_v52  ;;  %4845 = vst.msk [vmem:[#allocation5 + $0x58] sm:$0xff] %vm454_vm3, %v4813_v18  ;;  %v4745_v41 = vpop.f32.mrf.mxu3  ;;  %v4138_v45 = vadd.f32 %v4070_v7, %v3896_v54  ;;  %v5151_v42 = vadd.f32 %v10552_v1, %v4908_v14  ;;  %v4897_v49 = vld [vmem:[#allocation3 + $0x188] sm:$0xff] }
 0x383   : > { %v4233_v22 = vld [vmem:[#allocation5 + $0x68] sm:$0xff]  ;;  %8197 = vmatmul.msk.f32.gmra.mxu1 %vm454_vm3, %v10580_v51  ;;  %v3897_v51 = vld [vmem:[#allocation5 + $0x78] sm:$0xff] }
 0x384   : > { %4170 = vst.msk [vmem:[#allocation5 + $0x70] sm:$0xff] %vm454_vm3, %v4138_v45 }
 0x385   : > { %v4406_v37 = vpop.f32.mrf.mxu2  ;;  %5183 = vst.msk [vmem:[#allocation5 + $0x50] sm:$0xff] %vm454_vm3, %v5151_v42 }
 0x386   : > { %v4476_v56 = vadd.f32 %v4406_v37, %v4233_v22  ;;  %v4558_v22 = vld [vmem:[#allocation3 + $0x172] sm:$0xff] }
 0x387   : > { %v4571_v3 = vld [vmem:[#allocation5 + $0x60] sm:$0xff] }
 0x388   : > { %8263 = vmatmul.msk.f32.gmra.mxu3 %vm454_vm3, %v4557_v48  ;;  %v4814_v1 = vadd.f32 %v4742_v35, %v4571_v3  ;;  %4508 = vst.msk [vmem:[#allocation5 + $0x68] sm:$0xff] %vm454_vm3, %v4476_v56  ;;  %v4219_v35 = vld [vmem:[#allocation3 + $0x171] sm:$0xff] }
 0x389   : > { %v10616_v29 = vpop.f32.mrf.mxu0  ;;  %v4073_v37 = vpop.f32.mrf.mxu1  ;;  %v4909_v54 = vld [vmem:[#allocation5 + $0x58] sm:$0xff]  ;;  %v10635_v56 = vld [vmem:[#allocation3 + $0x31] sm:$0xff] }
 0x38a   : > { %8230 = vmatmul.msk.f32.gmra.mxu2 %vm454_vm3, %v4218_v34  ;;  %8297 = vmatmul.msk.f32.gmra.mxu0 %vm454_vm3, %v4897_v49  ;;  %4846 = vst.msk [vmem:[#allocation5 + $0x60] sm:$0xff] %vm454_vm3, %v4814_v1  ;;  %v4748_v18 = vpop.f32.mrf.mxu3  ;;  %v4139_v46 = vadd.f32 %v4073_v37, %v3897_v51  ;;  %v5152_v7 = vadd.f32 %v10563_v47, %v4909_v54  ;;  %v3898_v48 = vld [vmem:[#allocation5 + $0x80] sm:$0xff]  ;;  %v5205_v51 = vld [vmem:[#allocation3 + $0x19] sm:$0xff] }
 0x38b   : > { %v4234_v14 = vld [vmem:[#allocation5 + $0x70] sm:$0xff]  ;;  %8198 = vmatmul.msk.f32.gmra.mxu1 %vm454_vm3, %v10594_v62 }
 0x38c   : > { %4171 = vst.msk [vmem:[#allocation5 + $0x78] sm:$0xff] %vm454_vm3, %v4139_v46 }
 0x38d   : > { %v4409_v52 = vpop.f32.mrf.mxu2  ;;  %5184 = vst.msk [vmem:[#allocation5 + $0x58] sm:$0xff] %vm454_vm3, %v5152_v7 }
 0x38e   : > { %v4477_v42 = vadd.f32 %v4409_v52, %v4234_v14  ;;  %v5884_v14 = vld [vmem:[#allocation3 + $0x30] sm:$0xff] }
 0x38f   : > { %v4572_v34 = vld [vmem:[#allocation5 + $0x68] sm:$0xff] }
 0x390   : > { %8264 = vmatmul.msk.f32.gmra.mxu3 %vm454_vm3, %v4558_v22  ;;  %v4815_v47 = vadd.f32 %v4745_v41, %v4572_v34  ;;  %4509 = vst.msk [vmem:[#allocation5 + $0x70] sm:$0xff] %vm454_vm3, %v4477_v42  ;;  %v5544_v41 = vld [vmem:[#allocation3 + $0x1a] sm:$0xff] }
 0x391   : > { %v10628_v45 = vpop.f32.mrf.mxu0  ;;  %v4076_v49 = vpop.f32.mrf.mxu1  ;;  %v4910_v1 = vld [vmem:[#allocation5 + $0x60] sm:$0xff]  ;;  %v6224_v42 = vld [vmem:[#allocation3 + $0x39] sm:$0xff] }
 0x392   : > { %8231 = vmatmul.msk.f32.gmra.mxu2 %vm454_vm3, %v4219_v35  ;;  %8398 = vmatmul.msk.f32.vlgmr.msra.gmra.mxu0 %vm454_vm3, %v10635_v56  ;;  %4847 = vst.msk [vmem:[#allocation5 + $0x68] sm:$0xff] %vm454_vm3, %v4815_v47  ;;  %v4751_v3 = vpop.f32.mrf.mxu3  ;;  %v4140_v52 = vadd.f32 %v4076_v49, %v3898_v48  ;;  %v5153_v37 = vadd.f32 %v10574_v55, %v4910_v1  ;;  %v3899_v34 = vld [vmem:[#allocation5 + $0x88] sm:$0xff]  ;;  %v5206_v1 = vld [vmem:[#allocation3 + $0x21] sm:$0xff] }
 0x393   : > { %v4235_v54 = vld [vmem:[#allocation5 + $0x78] sm:$0xff]  ;;  %8299 = vmatmul.msk.f32.vlgmr.msra.gmra.mxu1 %vm454_vm3, %v5205_v51 }
 0x394   : > { %4172 = vst.msk [vmem:[#allocation5 + $0x80] sm:$0xff] %vm454_vm3, %v4140_v52 }
 0x395   : > { %v4412_v62 = vpop.f32.mrf.mxu2  ;;  %5185 = vst.msk [vmem:[#allocation5 + $0x60] sm:$0xff] %vm454_vm3, %v5153_v37 }
 0x396   : > { %v4478_v7 = vadd.f32 %v4412_v62, %v4235_v54 }
 0x397   : > { %v4573_v35 = vld [vmem:[#allocation5 + $0x70] sm:$0xff] }
 0x398   : > { %8365 = vmatmul.msk.f32.vlgmr.msra.gmra.mxu3 %vm454_vm3, %v5884_v14  ;;  %v4816_v22 = vadd.f32 %v4748_v18, %v4573_v35  ;;  %4510 = vst.msk [vmem:[#allocation5 + $0x78] sm:$0xff] %vm454_vm3, %v4478_v7  ;;  %v5545_v18 = vld [vmem:[#allocation3 + $0x22] sm:$0xff] }
 0x399   : > { %v10643_v46 = vpop.f32.mrf.mxu0  ;;  %v4079_v62 = vpop.f32.mrf.mxu1  ;;  %v4911_v48 = vld [vmem:[#allocation5 + $0x68] sm:$0xff]  ;;  %v6225_v14 = vld [vmem:[#allocation3 + $0x49] sm:$0xff] }
 0x39a   : > { %8332 = vmatmul.msk.f32.vlgmr.msra.gmra.mxu2 %vm454_vm3, %v5544_v41  ;;  %8399 = vmatmul.msk.f32.gmra.mxu0 %vm454_vm3, %v6224_v42  ;;  %4848 = vst.msk [vmem:[#allocation5 + $0x70] sm:$0xff] %vm454_vm3, %v4816_v22  ;;  %v4141_v49 = vadd.f32 %v4079_v62, %v3899_v34  ;;  %v5154_v52 = vadd.f32 %v10588_v61, %v4911_v48  ;;  %v5885_v41 = vld [vmem:[#allocation3 + $0x38] sm:$0xff]  ;;  %v3900_v22 = vld [vmem:[#allocation5 + $0x90] sm:$0xff] }
 0x39b   : > { %v4754_v47 = vpop.f32.mrf.mxu3  ;;  %v4236_v51 = vld [vmem:[#allocation5 + $0x80] sm:$0xff]  ;;  %8300 = vmatmul.msk.f32.gmra.mxu1 %vm454_vm3, %v5206_v1 }
 0x39c   : > { %4173 = vst.msk [vmem:[#allocation5 + $0x88] sm:$0xff] %vm454_vm3, %v4141_v49 }
 0x39d   : > { %v4415_v55 = vpop.f32.mrf.mxu2  ;;  %5186 = vst.msk [vmem:[#allocation5 + $0x68] sm:$0xff] %vm454_vm3, %v5154_v52 }
 0x39e   : > { %v4479_v37 = vadd.f32 %v4415_v55, %v4236_v51 }
 0x39f   : > { %v4574_v7 = vld [vmem:[#allocation5 + $0x78] sm:$0xff] }
 0x3a0   : > { %8366 = vmatmul.msk.f32.gmra.mxu3 %vm454_vm3, %v5885_v41  ;;  %v4817_v35 = vadd.f32 %v4751_v3, %v4574_v7  ;;  %4511 = vst.msk [vmem:[#allocation5 + $0x80] sm:$0xff] %vm454_vm3, %v4479_v37  ;;  %v5546_v3 = vld [vmem:[#allocation3 + $0x32] sm:$0xff] }
 0x3a1   : > { %v10654_v54 = vpop.f32.mrf.mxu0  ;;  %v4082_v34 = vpop.f32.mrf.mxu1  ;;  %v4912_v62 = vld [vmem:[#allocation5 + $0x70] sm:$0xff]  ;;  %v6226_v41 = vld [vmem:[#allocation3 + $0x51] sm:$0xff] }
 0x3a2   : > { %8333 = vmatmul.msk.f32.gmra.mxu2 %vm454_vm3, %v5545_v18  ;;  %8400 = vmatmul.msk.f32.gmra.mxu0 %vm454_vm3, %v6225_v14  ;;  %4849 = vst.msk [vmem:[#allocation5 + $0x78] sm:$0xff] %vm454_vm3, %v4817_v35  ;;  %v4142_v48 = vadd.f32 %v4082_v34, %v3900_v22  ;;  %v5155_v49 = vadd.f32 %v10602_v59, %v4912_v62  ;;  %v5886_v18 = vld [vmem:[#allocation3 + $0x48] sm:$0xff] }
 0x3a3   : > { %v4757_v55 = vpop.f32.mrf.mxu3  ;;  %v4237_v1 = vld [vmem:[#allocation5 + $0x88] sm:$0xff]  ;;  %8301 = vmatmul.msk.f32.gmra.mxu1 %vm454_vm3, %v10635_v56  ;;  %v3901_v56 = vld [vmem:[#allocation5 + $0x98] sm:$0xff] }
 0x3a4   : > { %4174 = vst.msk [vmem:[#allocation5 + $0x90] sm:$0xff] %vm454_vm3, %v4142_v48 }
 0x3a5   : > { %v4418_v61 = vpop.f32.mrf.mxu2  ;;  %5187 = vst.msk [vmem:[#allocation5 + $0x70] sm:$0xff] %vm454_vm3, %v5155_v49 }
 0x3a6   : > { %v4480_v52 = vadd.f32 %v4418_v61, %v4237_v1 }
 0x3a7   : > { %v4575_v37 = vld [vmem:[#allocation5 + $0x80] sm:$0xff] }
 0x3a8   : > { %8367 = vmatmul.msk.f32.gmra.mxu3 %vm454_vm3, %v5886_v18  ;;  %v4818_v59 = vadd.f32 %v4754_v47, %v4575_v37  ;;  %4512 = vst.msk [vmem:[#allocation5 + $0x88] sm:$0xff] %vm454_vm3, %v4480_v52  ;;  %v5547_v47 = vld [vmem:[#allocation3 + $0x3a] sm:$0xff] }
 0x3a9   : > { %v10665_v51 = vpop.f32.mrf.mxu0  ;;  %v4085_v61 = vpop.f32.mrf.mxu1  ;;  %v4913_v22 = vld [vmem:[#allocation5 + $0x78] sm:$0xff] }
 0x3aa   : > { %8334 = vmatmul.msk.f32.gmra.mxu2 %vm454_vm3, %v5546_v3  ;;  %8401 = vmatmul.msk.f32.gmra.mxu0 %vm454_vm3, %v6226_v41  ;;  %4850 = vst.msk [vmem:[#allocation5 + $0x80] sm:$0xff] %vm454_vm3, %v4818_v59  ;;  %v4143_v34 = vadd.f32 %v4085_v61, %v3901_v56  ;;  %v5156_v62 = vadd.f32 %v10616_v29, %v4913_v22  ;;  %v5887_v3 = vld [vmem:[#allocation3 + $0x50] sm:$0xff]  ;;  %v6227_v18 = vld [vmem:[#allocation3 + $0x61] sm:$0xff] }
 0x3ab   : > { %v4760_v35 = vpop.f32.mrf.mxu3  ;;  %v4238_v48 = vld [vmem:[#allocation5 + $0x90] sm:$0xff]  ;;  %8302 = vmatmul.msk.f32.gmra.mxu1 %vm454_vm3, %v6224_v42  ;;  %v3902_v42 = vld [vmem:[#allocation5 + $0xa0] sm:$0xff] }
 0x3ac   : > { %4175 = vst.msk [vmem:[#allocation5 + $0x98] sm:$0xff] %vm454_vm3, %v4143_v34 }
 0x3ad   : > { %v4421_v7 = vpop.f32.mrf.mxu2  ;;  %5188 = vst.msk [vmem:[#allocation5 + $0x78] sm:$0xff] %vm454_vm3, %v5156_v62 }
 0x3ae   : > { %v4481_v49 = vadd.f32 %v4421_v7, %v4238_v48 }
 0x3af   : > { %v4576_v52 = vld [vmem:[#allocation5 + $0x88] sm:$0xff] }
 0x3b0   : > { %8368 = vmatmul.msk.f32.gmra.mxu3 %vm454_vm3, %v5887_v3  ;;  %v4819_v37 = vadd.f32 %v4757_v55, %v4576_v52  ;;  %4513 = vst.msk [vmem:[#allocation5 + $0x90] sm:$0xff] %vm454_vm3, %v4481_v49  ;;  %v5548_v55 = vld [vmem:[#allocation3 + $0x4a] sm:$0xff] }
 0x3b1   : > { %v10677_v1 = vpop.f32.mrf.mxu0  ;;  %v4088_v7 = vpop.f32.mrf.mxu1  ;;  %v4914_v56 = vld [vmem:[#allocation5 + $0x80] sm:$0xff] }
 0x3b2   : > { %8335 = vmatmul.msk.f32.gmra.mxu2 %vm454_vm3, %v5547_v47  ;;  %8402 = vmatmul.msk.f32.gmra.mxu0 %vm454_vm3, %v6227_v18  ;;  %4851 = vst.msk [vmem:[#allocation5 + $0x88] sm:$0xff] %vm454_vm3, %v4819_v37  ;;  %v4144_v61 = vadd.f32 %v4088_v7, %v3902_v42  ;;  %v5157_v22 = vadd.f32 %v10628_v45, %v4914_v56  ;;  %v5888_v47 = vld [vmem:[#allocation3 + $0x60] sm:$0xff]  ;;  %v6228_v3 = vld [vmem:[#allocation3 + $0x69] sm:$0xff] }
 0x3b3   : > { %v4763_v59 = vpop.f32.mrf.mxu3  ;;  %v4239_v34 = vld [vmem:[#allocation5 + $0x98] sm:$0xff]  ;;  %8303 = vmatmul.msk.f32.gmra.mxu1 %vm454_vm3, %v6225_v14  ;;  %v3903_v14 = vld [vmem:[#allocation5 + $0xa8] sm:$0xff] }
 0x3b4   : > { %4176 = vst.msk [vmem:[#allocation5 + $0xa0] sm:$0xff] %vm454_vm3, %v4144_v61  ;;  %v5549_v61 = vld [vmem:[#allocation3 + $0x52] sm:$0xff] }
 0x3b5   : > { %v4424_v29 = vpop.f32.mrf.mxu2  ;;  %5189 = vst.msk [vmem:[#allocation5 + $0x80] sm:$0xff] %vm454_vm3, %v5157_v22 }
 0x3b6   : > { %v4482_v62 = vadd.f32 %v4424_v29, %v4239_v34 }
 0x3b7   : > { %v4577_v49 = vld [vmem:[#allocation5 + $0x90] sm:$0xff] }
 0x3b8   : > { %8369 = vmatmul.msk.f32.gmra.mxu3 %vm454_vm3, %v5888_v47  ;;  %v4820_v52 = vadd.f32 %v4760_v35, %v4577_v49  ;;  %4514 = vst.msk [vmem:[#allocation5 + $0x98] sm:$0xff] %vm454_vm3, %v4482_v62  ;;  %v5889_v35 = vld [vmem:[#allocation3 + $0x68] sm:$0xff] }
 0x3b9   : > { %v10688_v48 = vpop.f32.mrf.mxu0  ;;  %v4091_v29 = vpop.f32.mrf.mxu1  ;;  %v4915_v47 = vld [vmem:[#allocation5 + $0x88] sm:$0xff] }
 0x3ba   : > { %8336 = vmatmul.msk.f32.gmra.mxu2 %vm454_vm3, %v5548_v55  ;;  %8403 = vmatmul.msk.f32.gmra.mxu0 %vm454_vm3, %v6228_v3  ;;  %4852 = vst.msk [vmem:[#allocation5 + $0x90] sm:$0xff] %vm454_vm3, %v4820_v52  ;;  %v4145_v42 = vadd.f32 %v4091_v29, %v3903_v14  ;;  %v6229_v55 = vld [vmem:[#allocation3 + $0x79] sm:$0xff] }
 0x3bb   : > { %v4766_v37 = vpop.f32.mrf.mxu3  ;;  %v4240_v7 = vld [vmem:[#allocation5 + $0xa0] sm:$0xff]  ;;  %8304 = vmatmul.msk.f32.gmra.mxu1 %vm454_vm3, %v6226_v41  ;;  %v3904_v52 = vld [vmem:[#allocation5 + $0xb0] sm:$0xff]  ;;  %v5158_v41 = vadd.f32 %v10643_v46, %v4915_v47  ;;  %v3905_v47 = vld [vmem:[#allocation5 + $0xb8] sm:$0xff] }
 0x3bc   : > { %4177 = vst.msk [vmem:[#allocation5 + $0xa8] sm:$0xff] %vm454_vm3, %v4145_v42 }
 0x3bd   : > { %v4427_v45 = vpop.f32.mrf.mxu2  ;;  %5190 = vst.msk [vmem:[#allocation5 + $0x88] sm:$0xff] %vm454_vm3, %v5158_v41 }
 0x3be   : > { %v4483_v34 = vadd.f32 %v4427_v45, %v4240_v7 }
 0x3bf   : > { %v4578_v22 = vld [vmem:[#allocation5 + $0x98] sm:$0xff] }
 0x3c0   : > { %8370 = vmatmul.msk.f32.gmra.mxu3 %vm454_vm3, %v5889_v35  ;;  %v4821_v62 = vadd.f32 %v4763_v59, %v4578_v22  ;;  %4515 = vst.msk [vmem:[#allocation5 + $0xa0] sm:$0xff] %vm454_vm3, %v4483_v34  ;;  %v5550_v59 = vld [vmem:[#allocation3 + $0x62] sm:$0xff]  ;;  %v5890_v34 = vld [vmem:[#allocation3 + $0x78] sm:$0xff] }
 0x3c1   : > { %v10698_v56 = vpop.f32.mrf.mxu0  ;;  %v4094_v14 = vpop.f32.mrf.mxu1  ;;  %v6230_v35 = vld [vmem:[#allocation3 + $0x81] sm:$0xff] }
 0x3c2   : > { %8337 = vmatmul.msk.f32.gmra.mxu2 %vm454_vm3, %v5549_v61  ;;  %8404 = vmatmul.msk.f32.gmra.mxu0 %vm454_vm3, %v6229_v55  ;;  %4853 = vst.msk [vmem:[#allocation5 + $0x98] sm:$0xff] %vm454_vm3, %v4821_v62  ;;  %v4146_v29 = vadd.f32 %v4094_v14, %v3904_v52  ;;  %v4916_v52 = vld [vmem:[#allocation5 + $0x90] sm:$0xff] }
 0x3c3   : > { %v4769_v45 = vpop.f32.mrf.mxu3  ;;  %v4241_v42 = vld [vmem:[#allocation5 + $0xa8] sm:$0xff]  ;;  %8305 = vmatmul.msk.f32.gmra.mxu1 %vm454_vm3, %v6227_v18 }
 0x3c4   : > { %4178 = vst.msk [vmem:[#allocation5 + $0xb0] sm:$0xff] %vm454_vm3, %v4146_v29 }
 0x3c5   : > { %v4430_v49 = vpop.f32.mrf.mxu2 }
 0x3c6   : > { %v4484_v61 = vadd.f32 %v4430_v49, %v4241_v42  ;;  %v5159_v49 = vadd.f32 %v10654_v54, %v4916_v52  ;;  %v6231_v54 = vld [vmem:[#allocation3 + $0x91] sm:$0xff] }
 0x3c7   : > { %v4579_v46 = vld [vmem:[#allocation5 + $0xa0] sm:$0xff] }
 0x3c8   : > { %8371 = vmatmul.msk.f32.gmra.mxu3 %vm454_vm3, %v5890_v34  ;;  %v4822_v22 = vadd.f32 %v4766_v37, %v4579_v46  ;;  %4516 = vst.msk [vmem:[#allocation5 + $0xa8] sm:$0xff] %vm454_vm3, %v4484_v61  ;;  %v5551_v37 = vld [vmem:[#allocation3 + $0x6a] sm:$0xff]  ;;  %v5891_v61 = vld [vmem:[#allocation3 + $0x80] sm:$0xff] }
 0x3c9   : > { %v10709_v7 = vpop.f32.mrf.mxu0  ;;  %v4097_v41 = vpop.f32.mrf.mxu1  ;;  %5191 = vst.msk [vmem:[#allocation5 + $0x90] sm:$0xff] %vm454_vm3, %v5159_v49  ;;  %v4917_v52 = vld [vmem:[#allocation5 + $0x98] sm:$0xff] }
 0x3ca   : > { %8338 = vmatmul.msk.f32.gmra.mxu2 %vm454_vm3, %v5550_v59  ;;  %8405 = vmatmul.msk.f32.gmra.mxu0 %vm454_vm3, %v6230_v35  ;;  %4854 = vst.msk [vmem:[#allocation5 + $0xa0] sm:$0xff] %vm454_vm3, %v4822_v22  ;;  %v4147_v14 = vadd.f32 %v4097_v41, %v3905_v47  ;;  %v3906_v47 = vld [vmem:[#allocation5 + $0xc0] sm:$0xff] }
 0x3cb   : > { %v4772_v18 = vpop.f32.mrf.mxu3  ;;  %v4242_v29 = vld [vmem:[#allocation5 + $0xb0] sm:$0xff]  ;;  %8306 = vmatmul.msk.f32.gmra.mxu1 %vm454_vm3, %v6228_v3 }
 0x3cc   : > { %4179 = vst.msk [vmem:[#allocation5 + $0xb8] sm:$0xff] %vm454_vm3, %v4147_v14 }
 0x3cd   : > { %v4433_v62 = vpop.f32.mrf.mxu2 }
 0x3ce   : > { %v4485_v59 = vadd.f32 %v4433_v62, %v4242_v29  ;;  %v5160_v62 = vadd.f32 %v10665_v51, %v4917_v52  ;;  %v6232_v51 = vld [vmem:[#allocation3 + $0x99] sm:$0xff] }
 0x3cf   : > { %v4580_v34 = vld [vmem:[#allocation5 + $0xa8] sm:$0xff] }
 0x3d0   : > { %8372 = vmatmul.msk.f32.gmra.mxu3 %vm454_vm3, %v5891_v61  ;;  %v4823_v46 = vadd.f32 %v4769_v45, %v4580_v34  ;;  %4517 = vst.msk [vmem:[#allocation5 + $0xb0] sm:$0xff] %vm454_vm3, %v4485_v59  ;;  %v5552_v45 = vld [vmem:[#allocation3 + $0x7a] sm:$0xff]  ;;  %v5892_v59 = vld [vmem:[#allocation3 + $0x90] sm:$0xff] }
 0x3d1   : > { %v10720_v42 = vpop.f32.mrf.mxu0  ;;  %v4100_v49 = vpop.f32.mrf.mxu1  ;;  %5192 = vst.msk [vmem:[#allocation5 + $0x98] sm:$0xff] %vm454_vm3, %v5160_v62  ;;  %v4918_v52 = vld [vmem:[#allocation5 + $0xa0] sm:$0xff] }
 0x3d2   : > { %8339 = vmatmul.msk.f32.gmra.mxu2 %vm454_vm3, %v5551_v37  ;;  %8406 = vmatmul.msk.f32.gmra.mxu0 %vm454_vm3, %v6231_v54  ;;  %4855 = vst.msk [vmem:[#allocation5 + $0xa8] sm:$0xff] %vm454_vm3, %v4823_v46  ;;  %v4148_v41 = vadd.f32 %v4100_v49, %v3906_v47  ;;  %v3907_v47 = vld [vmem:[#allocation5 + $0xc8] sm:$0xff] }
 0x3d3   : > { %v4775_v3 = vpop.f32.mrf.mxu3  ;;  %v4243_v14 = vld [vmem:[#allocation5 + $0xb8] sm:$0xff]  ;;  %8307 = vmatmul.msk.f32.gmra.mxu1 %vm454_vm3, %v6229_v55 }
 0x3d4   : > { %4180 = vst.msk [vmem:[#allocation5 + $0xc0] sm:$0xff] %vm454_vm3, %v4148_v41 }
 0x3d5   : > { %v4436_v22 = vpop.f32.mrf.mxu2 }
 0x3d6   : > { %v4486_v37 = vadd.f32 %v4436_v22, %v4243_v14  ;;  %v5161_v22 = vadd.f32 %v10677_v1, %v4918_v52  ;;  %v6233_v1 = vld [vmem:[#allocation3 + $0xa9] sm:$0xff] }
 0x3d7   : > { %v4581_v61 = vld [vmem:[#allocation5 + $0xb0] sm:$0xff] }
 0x3d8   : > { %8373 = vmatmul.msk.f32.gmra.mxu3 %vm454_vm3, %v5892_v59  ;;  %v4824_v34 = vadd.f32 %v4772_v18, %v4581_v61  ;;  %4518 = vst.msk [vmem:[#allocation5 + $0xb8] sm:$0xff] %vm454_vm3, %v4486_v37  ;;  %v5553_v18 = vld [vmem:[#allocation3 + $0x82] sm:$0xff]  ;;  %v5893_v37 = vld [vmem:[#allocation3 + $0x98] sm:$0xff] }
 0x3d9   : > { %v10731_v29 = vpop.f32.mrf.mxu0  ;;  %v4103_v62 = vpop.f32.mrf.mxu1  ;;  %5193 = vst.msk [vmem:[#allocation5 + $0xa0] sm:$0xff] %vm454_vm3, %v5161_v22  ;;  %v4919_v52 = vld [vmem:[#allocation5 + $0xa8] sm:$0xff] }
 0x3da   : > { %8340 = vmatmul.msk.f32.gmra.mxu2 %vm454_vm3, %v5552_v45  ;;  %8407 = vmatmul.msk.f32.gmra.mxu0 %vm454_vm3, %v6232_v51  ;;  %4856 = vst.msk [vmem:[#allocation5 + $0xb0] sm:$0xff] %vm454_vm3, %v4824_v34  ;;  %v4149_v49 = vadd.f32 %v4103_v62, %v3907_v47  ;;  %v3908_v47 = vld [vmem:[#allocation5 + $0xd0] sm:$0xff] }
 0x3db   : > { %v4778_v55 = vpop.f32.mrf.mxu3  ;;  %v4244_v41 = vld [vmem:[#allocation5 + $0xc0] sm:$0xff]  ;;  %8308 = vmatmul.msk.f32.gmra.mxu1 %vm454_vm3, %v6230_v35 }
 0x3dc   : > { %4181 = vst.msk [vmem:[#allocation5 + $0xc8] sm:$0xff] %vm454_vm3, %v4149_v49 }
 0x3dd   : > { %v4439_v46 = vpop.f32.mrf.mxu2 }
 0x3de   : > { %v4487_v45 = vadd.f32 %v4439_v46, %v4244_v41  ;;  %v5162_v46 = vadd.f32 %v10688_v48, %v4919_v52  ;;  %v6234_v48 = vld [vmem:[#allocation3 + $0xb1] sm:$0xff] }
 0x3df   : > { %v4582_v59 = vld [vmem:[#allocation5 + $0xb8] sm:$0xff] }
 0x3e0   : > { %8374 = vmatmul.msk.f32.gmra.mxu3 %vm454_vm3, %v5893_v37  ;;  %v4825_v61 = vadd.f32 %v4775_v3, %v4582_v59  ;;  %4519 = vst.msk [vmem:[#allocation5 + $0xc0] sm:$0xff] %vm454_vm3, %v4487_v45  ;;  %v5554_v3 = vld [vmem:[#allocation3 + $0x92] sm:$0xff]  ;;  %v5894_v45 = vld [vmem:[#allocation3 + $0xa8] sm:$0xff] }
 0x3e1   : > { %v10742_v14 = vpop.f32.mrf.mxu0  ;;  %v4106_v22 = vpop.f32.mrf.mxu1  ;;  %5194 = vst.msk [vmem:[#allocation5 + $0xa8] sm:$0xff] %vm454_vm3, %v5162_v46  ;;  %v4920_v52 = vld [vmem:[#allocation5 + $0xb0] sm:$0xff] }
 0x3e2   : > { %8341 = vmatmul.msk.f32.gmra.mxu2 %vm454_vm3, %v5553_v18  ;;  %8408 = vmatmul.msk.f32.gmra.mxu0 %vm454_vm3, %v6233_v1  ;;  %4857 = vst.msk [vmem:[#allocation5 + $0xb8] sm:$0xff] %vm454_vm3, %v4825_v61  ;;  %v4150_v62 = vadd.f32 %v4106_v22, %v3908_v47  ;;  %v3909_v47 = vld [vmem:[#allocation5 + $0xd8] sm:$0xff] }
 0x3e3   : > { %v4781_v35 = vpop.f32.mrf.mxu3  ;;  %v4245_v49 = vld [vmem:[#allocation5 + $0xc8] sm:$0xff]  ;;  %8309 = vmatmul.msk.f32.gmra.mxu1 %vm454_vm3, %v6231_v54 }
 0x3e4   : > { %4182 = vst.msk [vmem:[#allocation5 + $0xd0] sm:$0xff] %vm454_vm3, %v4150_v62 }
 0x3e5   : > { %v4442_v34 = vpop.f32.mrf.mxu2 }
 0x3e6   : > { %v4488_v18 = vadd.f32 %v4442_v34, %v4245_v49  ;;  %v5163_v34 = vadd.f32 %v10698_v56, %v4920_v52  ;;  %v6235_v56 = vld [vmem:[#allocation3 + $0xc1] sm:$0xff] }
 0x3e7   : > { %v4583_v37 = vld [vmem:[#allocation5 + $0xc0] sm:$0xff] }
 0x3e8   : > { %8375 = vmatmul.msk.f32.gmra.mxu3 %vm454_vm3, %v5894_v45  ;;  %v4826_v59 = vadd.f32 %v4778_v55, %v4583_v37  ;;  %4520 = vst.msk [vmem:[#allocation5 + $0xc8] sm:$0xff] %vm454_vm3, %v4488_v18  ;;  %v5555_v55 = vld [vmem:[#allocation3 + $0x9a] sm:$0xff]  ;;  %v5895_v18 = vld [vmem:[#allocation3 + $0xb0] sm:$0xff] }
 0x3e9   : > { %v10753_v41 = vpop.f32.mrf.mxu0  ;;  %v4109_v46 = vpop.f32.mrf.mxu1  ;;  %5195 = vst.msk [vmem:[#allocation5 + $0xb0] sm:$0xff] %vm454_vm3, %v5163_v34  ;;  %v4921_v52 = vld [vmem:[#allocation5 + $0xb8] sm:$0xff] }
 0x3ea   : > { %8342 = vmatmul.msk.f32.gmra.mxu2 %vm454_vm3, %v5554_v3  ;;  %8409 = vmatmul.msk.f32.gmra.mxu0 %vm454_vm3, %v6234_v48  ;;  %4858 = vst.msk [vmem:[#allocation5 + $0xc0] sm:$0xff] %vm454_vm3, %v4826_v59  ;;  %v4151_v22 = vadd.f32 %v4109_v46, %v3909_v47  ;;  %v3910_v47 = vld [vmem:[#allocation5 + $0xe0] sm:$0xff] }
 0x3eb   : > { %v4784_v54 = vpop.f32.mrf.mxu3  ;;  %v4246_v62 = vld [vmem:[#allocation5 + $0xd0] sm:$0xff]  ;;  %8310 = vmatmul.msk.f32.gmra.mxu1 %vm454_vm3, %v6232_v51 }
 0x3ec   : > { %4183 = vst.msk [vmem:[#allocation5 + $0xd8] sm:$0xff] %vm454_vm3, %v4151_v22 }
 0x3ed   : > { %v4445_v61 = vpop.f32.mrf.mxu2 }
 0x3ee   : > { %v4489_v3 = vadd.f32 %v4445_v61, %v4246_v62  ;;  %v5164_v61 = vadd.f32 %v10709_v7, %v4921_v52  ;;  %v10781_v7 = vld [vmem:[#allocation3 + $0xc9] sm:$0xff] }
 0x3ef   : > { %v4584_v45 = vld [vmem:[#allocation5 + $0xc8] sm:$0xff] }
 0x3f0   : > { %8376 = vmatmul.msk.f32.gmra.mxu3 %vm454_vm3, %v5895_v18  ;;  %v4827_v37 = vadd.f32 %v4781_v35, %v4584_v45  ;;  %4521 = vst.msk [vmem:[#allocation5 + $0xd0] sm:$0xff] %vm454_vm3, %v4489_v3  ;;  %v5556_v35 = vld [vmem:[#allocation3 + $0xaa] sm:$0xff]  ;;  %v5896_v3 = vld [vmem:[#allocation3 + $0xc0] sm:$0xff] }
 0x3f1   : > { %v10764_v49 = vpop.f32.mrf.mxu0  ;;  %v4112_v34 = vpop.f32.mrf.mxu1  ;;  %5196 = vst.msk [vmem:[#allocation5 + $0xb8] sm:$0xff] %vm454_vm3, %v5164_v61 }
 0x3f2   : > { %8343 = vmatmul.msk.f32.gmra.mxu2 %vm454_vm3, %v5555_v55  ;;  %8410 = vmatmul.msk.f32.gmra.mxu0 %vm454_vm3, %v6235_v56  ;;  %4859 = vst.msk [vmem:[#allocation5 + $0xc8] sm:$0xff] %vm454_vm3, %v4827_v37  ;;  %v4152_v46 = vadd.f32 %v4112_v34, %v3910_v47  ;;  %v4922_v47 = vld [vmem:[#allocation5 + $0xc0] sm:$0xff] }
 0x3f3   : > { %v4787_v51 = vpop.f32.mrf.mxu3  ;;  %v4247_v22 = vld [vmem:[#allocation5 + $0xd8] sm:$0xff]  ;;  %8311 = vmatmul.msk.f32.gmra.mxu1 %vm454_vm3, %v6233_v1  ;;  %v3911_v1 = vld [vmem:[#allocation5 + $0xe8] sm:$0xff]  ;;  %v5165_v52 = vadd.f32 %v10720_v42, %v4922_v47 }
 0x3f4   : > { %4184 = vst.msk [vmem:[#allocation5 + $0xe0] sm:$0xff] %vm454_vm3, %v4152_v46  ;;  %v10795_v42 = vld [vmem:[#allocation3 + $0xd9] sm:$0xff] }
 0x3f5   : > { %v4448_v59 = vpop.f32.mrf.mxu2  ;;  %5197 = vst.msk [vmem:[#allocation5 + $0xc0] sm:$0xff] %vm454_vm3, %v5165_v52 }
 0x3f6   : > { %v4490_v55 = vadd.f32 %v4448_v59, %v4247_v22 }
 0x3f7   : > { %v4585_v18 = vld [vmem:[#allocation5 + $0xd0] sm:$0xff] }
 0x3f8   : > { %8377 = vmatmul.msk.f32.gmra.mxu3 %vm454_vm3, %v5896_v3  ;;  %v4828_v45 = vadd.f32 %v4784_v54, %v4585_v18  ;;  %4522 = vst.msk [vmem:[#allocation5 + $0xd8] sm:$0xff] %vm454_vm3, %v4490_v55  ;;  %v5557_v54 = vld [vmem:[#allocation3 + $0xb2] sm:$0xff]  ;;  %v5897_v55 = vld [vmem:[#allocation3 + $0xc8] sm:$0xff] }
 0x3f9   : > { %v10775_v62 = vpop.f32.mrf.mxu0  ;;  %v4115_v61 = vpop.f32.mrf.mxu1 }
 0x3fa   : > { %8344 = vmatmul.msk.f32.gmra.mxu2 %vm454_vm3, %v5556_v35  ;;  %8411 = vmatmul.msk.f32.gmra.mxu0 %vm454_vm3, %v10781_v7  ;;  %4860 = vst.msk [vmem:[#allocation5 + $0xd0] sm:$0xff] %vm454_vm3, %v4828_v45  ;;  %v4153_v34 = vadd.f32 %v4115_v61, %v3911_v1  ;;  %v4923_v1 = vld [vmem:[#allocation5 + $0xc8] sm:$0xff] }
 0x3fb   : > { %v4790_v59 = vpop.f32.mrf.mxu3  ;;  %v4248_v46 = vld [vmem:[#allocation5 + $0xe0] sm:$0xff]  ;;  %8312 = vmatmul.msk.f32.gmra.mxu1 %vm454_vm3, %v6234_v48  ;;  %v3912_v48 = vld [vmem:[#allocation5 + $0xf0] sm:$0xff]  ;;  %v5166_v47 = vadd.f32 %v10731_v29, %v4923_v1 }
 0x3fc   : > { %4185 = vst.msk [vmem:[#allocation5 + $0xe8] sm:$0xff] %vm454_vm3, %v4153_v34  ;;  %v10809_v29 = vld [vmem:[#allocation3 + $0xe1] sm:$0xff]  ;;  %v7066_v1 = vld [vmem:[%s11567_s6] sm:$0xff] }
 0x3fd   : > { %v4451_v37 = vpop.f32.mrf.mxu2  ;;  %5198 = vst.msk [vmem:[#allocation5 + $0xc8] sm:$0xff] %vm454_vm3, %v5166_v47  ;;  %v7065_v47 = vld [vmem:[%s11566_s5] sm:$0xf]  ;;  %7178 = vmatpush.msrb.mxu2 %v7066_v1 }
 0x3fe   : > { %v4491_v35 = vadd.f32 %v4451_v37, %v4248_v46  ;;  %8495 = vmatpush.msk.msrb.mxu3 %vm648_vm0, %v7065_v47  ;;  %v7488_v1 = vld [vmem:[%s11568_s7] sm:$0xff] }
 0x3ff   : > { %v4586_v3 = vld [vmem:[#allocation5 + $0xd8] sm:$0xff]  ;;  %7600 = vmatpush.msrb.mxu0 %v7488_v1 }
 0x400   : > { %8378 = vmatmul.msk.f32.gmra.mxu3 %vm454_vm3, %v5897_v55  ;;  %v4829_v18 = vadd.f32 %v4787_v51, %v4586_v3  ;;  %4523 = vst.msk [vmem:[#allocation5 + $0xe0] sm:$0xff] %vm454_vm3, %v4491_v35  ;;  %v5558_v51 = vld [vmem:[#allocation3 + $0xc2] sm:$0xff]  ;;  %v5898_v35 = vld [vmem:[#allocation3 + $0xd8] sm:$0xff] }
 0x401   : > { %v10789_v22 = vpop.f32.mrf.mxu0  ;;  %v4118_v52 = vpop.f32.mrf.mxu1 }
 0x402   : > { %8345 = vmatmul.msk.f32.gmra.mxu2 %vm454_vm3, %v5557_v54  ;;  %8412 = vmatmul.msk.f32.gmra.mxu0 %vm454_vm3, %v10795_v42  ;;  %4861 = vst.msk [vmem:[#allocation5 + $0xd8] sm:$0xff] %vm454_vm3, %v4829_v18  ;;  %v4154_v61 = vadd.f32 %v4118_v52, %v3912_v48  ;;  %v4924_v48 = vld [vmem:[#allocation5 + $0xd0] sm:$0xff] }
 0x403   : > { %v4793_v37 = vpop.f32.mrf.mxu3  ;;  %v4249_v34 = vld [vmem:[#allocation5 + $0xe8] sm:$0xff]  ;;  %8313 = vmatmul.msk.f32.gmra.mxu1 %vm454_vm3, %v6235_v56  ;;  %v3913_v56 = vld [vmem:[#allocation5 + $0xf8] sm:$0xff] }
 0x404   : > { %4186 = vst.msk [vmem:[#allocation5 + $0xf0] sm:$0xff] %vm454_vm3, %v4154_v61 }
 0x405   : > { %v4454_v45 = vpop.f32.mrf.mxu2 }
 0x406   : > { %v4492_v54 = vadd.f32 %v4454_v45, %v4249_v34 }
 0x407   : > { %v4587_v55 = vld [vmem:[#allocation5 + $0xe0] sm:$0xff] }
 0x408   : > { %8379 = vmatmul.msk.f32.gmra.mxu3 %vm454_vm3, %v5898_v35  ;;  %v4830_v3 = vadd.f32 %v4790_v59, %v4587_v55  ;;  %4524 = vst.msk [vmem:[#allocation5 + $0xe8] sm:$0xff] %vm454_vm3, %v4492_v54  ;;  %v5167_v59 = vadd.f32 %v10742_v14, %v4924_v48  ;;  %v5559_v54 = vld [vmem:[#allocation3 + $0xca] sm:$0xff]  ;;  %v5899_v14 = vld [vmem:[#allocation3 + $0xe0] sm:$0xff] }
 0x409   : > { %v10803_v46 = vpop.f32.mrf.mxu0  ;;  %v4121_v52 = vpop.f32.mrf.mxu1 }
 0x40a   : > { %8346 = vmatmul.msk.f32.gmra.mxu2 %vm454_vm3, %v5558_v51  ;;  %8413 = vmatmul.msk.f32.gmra.mxu0 %vm454_vm3, %v10809_v29  ;;  %4862 = vst.msk [vmem:[#allocation5 + $0xe0] sm:$0xff] %vm454_vm3, %v4830_v3  ;;  %v4155_v61 = vadd.f32 %v4121_v52, %v3913_v56  ;;  %v10831_v3 = vld [vmem:[#allocation3 + $0xf1] sm:$0xff] }
 0x40b   : > { %v4796_v45 = vpop.f32.mrf.mxu3  ;;  %5199 = vst.msk [vmem:[#allocation5 + $0xd0] sm:$0xff] %vm454_vm3, %v5167_v59  ;;  %v4250_v34 = vld [vmem:[#allocation5 + $0xf0] sm:$0xff]  ;;  %8314 = vmatmul.msk.f32.gmra.mxu1 %vm454_vm3, %v10781_v7  ;;  %v4925_v7 = vld [vmem:[#allocation5 + $0xd8] sm:$0xff]  ;;  %v5237_v59 = vld [vmem:[#allocation5] sm:$0xff] }
 0x40c   : > { %4187 = vst.msk [vmem:[#allocation5 + $0xf8] sm:$0xff] %vm454_vm3, %v4155_v61  ;;  %v5168_v47 = vadd.f32 %v10753_v41, %v4925_v7 }
 0x40d   : > { %v4457_v18 = vpop.f32.mrf.mxu2 }
 0x40e   : > { %v4493_v35 = vadd.f32 %v4457_v18, %v4250_v34  ;;  %5200 = vst.msk [vmem:[#allocation5 + $0xd8] sm:$0xff] %vm454_vm3, %v5168_v47  ;;  %v5238_v47 = vld [vmem:[#allocation5 + $0x8] sm:$0xff] }
 0x40f   : > { %v4588_v55 = vld [vmem:[#allocation5 + $0xe8] sm:$0xff] }
 0x410   : > { %8380 = vmatmul.msk.f32.gmra.mxu3 %vm454_vm3, %v5899_v14  ;;  %v4831_v56 = vadd.f32 %v4793_v37, %v4588_v55  ;;  %4525 = vst.msk [vmem:[#allocation5 + $0xf0] sm:$0xff] %vm454_vm3, %v4493_v35  ;;  %v5900_v14 = vld [vmem:[#allocation3 + $0xf0] sm:$0xff]  ;;  %v6240_v55 = vld [vmem:[#allocation3 + $0xf9] sm:$0xff] }
 0x411   : > { %v10824_v51 = vpop.f32.mrf.mxu0  ;;  %v5384_v52 = vpop.f32.mrf.mxu1  ;;  %v4926_v1 = vld [vmem:[#allocation5 + $0xe0] sm:$0xff] }
 0x412   : > { %8347 = vmatmul.msk.f32.gmra.mxu2 %vm454_vm3, %v5559_v54  ;;  %8414 = vmatmul.msk.f32.gmra.mxu0 %vm454_vm3, %v10831_v3  ;;  %4863 = vst.msk [vmem:[#allocation5 + $0xe8] sm:$0xff] %vm454_vm3, %v4831_v56  ;;  %v5480_v37 = vadd.f32 %v5384_v52, %v5237_v59  ;;  %v5560_v54 = vld [vmem:[#allocation3 + $0xda] sm:$0xff] }
 0x413   : > { %v4799_v18 = vpop.f32.mrf.mxu3  ;;  %v4251_v61 = vld [vmem:[#allocation5 + $0xf8] sm:$0xff]  ;;  %8315 = vmatmul.msk.f32.gmra.mxu1 %vm454_vm3, %v10795_v42 }
 0x414   : > { %5512 = vst.msk [vmem:[#allocation5] sm:$0xff] %vm454_vm3, %v5480_v37 }
 0x415   : > { %v4460_v48 = vpop.f32.mrf.mxu2 }
 0x416   : > { %v4494_v35 = vadd.f32 %v4460_v48, %v4251_v61  ;;  %v5169_v48 = vadd.f32 %v10764_v49, %v4926_v1  ;;  %v6241_v49 = vld [vmem:[#allocation3 + $0x109] sm:$0xff] }
 0x417   : > { %v4589_v41 = vld [vmem:[#allocation5 + $0xf0] sm:$0xff] }
 0x418   : > { %8381 = vmatmul.msk.f32.gmra.mxu3 %vm454_vm3, %v5900_v14  ;;  %v4832_v56 = vadd.f32 %v4796_v45, %v4589_v41  ;;  %4526 = vst.msk [vmem:[#allocation5 + $0xf8] sm:$0xff] %vm454_vm3, %v4494_v35  ;;  %v5561_v45 = vld [vmem:[#allocation3 + $0xe2] sm:$0xff]  ;;  %v5901_v35 = vld [vmem:[#allocation3 + $0xf8] sm:$0xff] }
 0x419   : > { %v10842_v34 = vpop.f32.mrf.mxu0  ;;  %v5387_v59 = vpop.f32.mrf.mxu1  ;;  %5201 = vst.msk [vmem:[#allocation5 + $0xe0] sm:$0xff] %vm454_vm3, %v5169_v48  ;;  %v4927_v1 = vld [vmem:[#allocation5 + $0xe8] sm:$0xff]  ;;  %v5239_v48 = vld [vmem:[#allocation5 + $0x10] sm:$0xff] }
 0x41a   : > { %8348 = vmatmul.msk.f32.gmra.mxu2 %vm454_vm3, %v5560_v54  ;;  %8415 = vmatmul.msk.f32.gmra.mxu0 %vm454_vm3, %v6240_v55  ;;  %4864 = vst.msk [vmem:[#allocation5 + $0xf0] sm:$0xff] %vm454_vm3, %v4832_v56  ;;  %v5481_v52 = vadd.f32 %v5387_v59, %v5238_v47 }
 0x41b   : > { %v6063_v42 = vpop.f32.mrf.mxu3  ;;  %v5576_v37 = vld [vmem:[#allocation5] sm:$0xff]  ;;  %8316 = vmatmul.msk.f32.gmra.mxu1 %vm454_vm3, %v10809_v29 }
 0x41c   : > { %5513 = vst.msk [vmem:[#allocation5 + $0x8] sm:$0xff] %vm454_vm3, %v5481_v52 }
 0x41d   : > { %v5723_v7 = vpop.f32.mrf.mxu2 }
 0x41e   : > { %v5819_v54 = vadd.f32 %v5723_v7, %v5576_v37  ;;  %v5170_v7 = vadd.f32 %v10775_v62, %v4927_v1  ;;  %v6242_v62 = vld [vmem:[#allocation3 + $0x111] sm:$0xff] }
 0x41f   : > { %v4590_v14 = vld [vmem:[#allocation5 + $0xf8] sm:$0xff] }
 0x420   : > { %8382 = vmatmul.msk.f32.gmra.mxu3 %vm454_vm3, %v5901_v35  ;;  %v4833_v41 = vadd.f32 %v4799_v18, %v4590_v14  ;;  %5851 = vst.msk [vmem:[#allocation5] sm:$0xff] %vm454_vm3, %v5819_v54  ;;  %v5562_v18 = vld [vmem:[#allocation3 + $0xf2] sm:$0xff]  ;;  %v5902_v54 = vld [vmem:[#allocation3 + $0x108] sm:$0xff] }
 0x421   : > { %v10854_v61 = vpop.f32.mrf.mxu0  ;;  %v5390_v47 = vpop.f32.mrf.mxu1  ;;  %5202 = vst.msk [vmem:[#allocation5 + $0xe8] sm:$0xff] %vm454_vm3, %v5170_v7  ;;  %v4928_v1 = vld [vmem:[#allocation5 + $0xf0] sm:$0xff]  ;;  %v5240_v7 = vld [vmem:[#allocation5 + $0x18] sm:$0xff] }
 0x422   : > { %8349 = vmatmul.msk.f32.gmra.mxu2 %vm454_vm3, %v5561_v45  ;;  %8416 = vmatmul.msk.f32.gmra.mxu0 %vm454_vm3, %v6241_v49  ;;  %4865 = vst.msk [vmem:[#allocation5 + $0xf8] sm:$0xff] %vm454_vm3, %v4833_v41  ;;  %v5482_v59 = vadd.f32 %v5390_v47, %v5239_v48 }
 0x423   : > { %v6066_v29 = vpop.f32.mrf.mxu3  ;;  %v5577_v52 = vld [vmem:[#allocation5 + $0x8] sm:$0xff]  ;;  %8317 = vmatmul.msk.f32.gmra.mxu1 %vm454_vm3, %v10831_v3 }
 0x424   : > { %5514 = vst.msk [vmem:[#allocation5 + $0x10] sm:$0xff] %vm454_vm3, %v5482_v59 }
 0x425   : > { %v5726_v56 = vpop.f32.mrf.mxu2 }
 0x426   : > { %v5820_v45 = vadd.f32 %v5726_v56, %v5577_v52  ;;  %v5171_v56 = vadd.f32 %v10789_v22, %v4928_v1  ;;  %v6243_v22 = vld [vmem:[#allocation3 + $0x121] sm:$0xff] }
 0x427   : > { %v5916_v35 = vld [vmem:[#allocation5] sm:$0xff] }
 0x428   : > { %8383 = vmatmul.msk.f32.gmra.mxu3 %vm454_vm3, %v5902_v54  ;;  %v6159_v14 = vadd.f32 %v6063_v42, %v5916_v35  ;;  %5852 = vst.msk [vmem:[#allocation5 + $0x8] sm:$0xff] %vm454_vm3, %v5820_v45  ;;  %v5563_v42 = vld [vmem:[#allocation3 + $0xfa] sm:$0xff]  ;;  %v5903_v45 = vld [vmem:[#allocation3 + $0x110] sm:$0xff] }
 0x429   : > { %v10866_v37 = vpop.f32.mrf.mxu0  ;;  %v5393_v48 = vpop.f32.mrf.mxu1  ;;  %5203 = vst.msk [vmem:[#allocation5 + $0xf0] sm:$0xff] %vm454_vm3, %v5171_v56  ;;  %v4929_v1 = vld [vmem:[#allocation5 + $0xf8] sm:$0xff]  ;;  %v5241_v56 = vld [vmem:[#allocation5 + $0x20] sm:$0xff] }
 0x42a   : > { %8350 = vmatmul.msk.f32.gmra.mxu2 %vm454_vm3, %v5562_v18  ;;  %8417 = vmatmul.msk.f32.gmra.mxu0 %vm454_vm3, %v6242_v62  ;;  %6191 = vst.msk [vmem:[#allocation5] sm:$0xff] %vm454_vm3, %v6159_v14  ;;  %v5483_v47 = vadd.f32 %v5393_v48, %v5240_v7 }
 0x42b   : > { %v6069_v3 = vpop.f32.mrf.mxu3  ;;  %v5578_v59 = vld [vmem:[#allocation5 + $0x10] sm:$0xff]  ;;  %8318 = vmatmul.msk.f32.gmra.mxu1 %vm454_vm3, %v6240_v55 }
 0x42c   : > { %5515 = vst.msk [vmem:[#allocation5 + $0x18] sm:$0xff] %vm454_vm3, %v5483_v47 }
 0x42d   : > { %v5729_v41 = vpop.f32.mrf.mxu2 }
 0x42e   : > { %v5821_v18 = vadd.f32 %v5729_v41, %v5578_v59  ;;  %v5172_v41 = vadd.f32 %v10803_v46, %v4929_v1  ;;  %v6244_v46 = vld [vmem:[#allocation3 + $0x129] sm:$0xff] }
 0x42f   : > { %v5917_v54 = vld [vmem:[#allocation5 + $0x8] sm:$0xff] }
 0x430   : > { %8384 = vmatmul.msk.f32.gmra.mxu3 %vm454_vm3, %v5903_v45  ;;  %v6160_v35 = vadd.f32 %v6066_v29, %v5917_v54  ;;  %5853 = vst.msk [vmem:[#allocation5 + $0x10] sm:$0xff] %vm454_vm3, %v5821_v18  ;;  %v5564_v29 = vld [vmem:[#allocation3 + $0x10a] sm:$0xff]  ;;  %v5904_v18 = vld [vmem:[#allocation3 + $0x120] sm:$0xff] }
 0x431   : > { %v10878_v52 = vpop.f32.mrf.mxu0  ;;  %v5396_v7 = vpop.f32.mrf.mxu1  ;;  %5204 = vst.msk [vmem:[#allocation5 + $0xf8] sm:$0xff] %vm454_vm3, %v5172_v41  ;;  %v6255_v1 = vld [vmem:[#allocation5] sm:$0xff]  ;;  %v5242_v41 = vld [vmem:[#allocation5 + $0x28] sm:$0xff] }
 0x432   : > { %8351 = vmatmul.msk.f32.gmra.mxu2 %vm454_vm3, %v5563_v42  ;;  %8418 = vmatmul.msk.f32.gmra.mxu0 %vm454_vm3, %v6243_v22  ;;  %6192 = vst.msk [vmem:[#allocation5 + $0x8] sm:$0xff] %vm454_vm3, %v6160_v35  ;;  %v5484_v48 = vadd.f32 %v5396_v7, %v5241_v56 }
 0x433   : > { %v6072_v55 = vpop.f32.mrf.mxu3  ;;  %v5579_v47 = vld [vmem:[#allocation5 + $0x18] sm:$0xff]  ;;  %8319 = vmatmul.msk.f32.gmra.mxu1 %vm454_vm3, %v6241_v49 }
 0x434   : > { %5516 = vst.msk [vmem:[#allocation5 + $0x20] sm:$0xff] %vm454_vm3, %v5484_v48 }
 0x435   : > { %v5732_v14 = vpop.f32.mrf.mxu2 }
 0x436   : > { %v5822_v42 = vadd.f32 %v5732_v14, %v5579_v47  ;;  %v6498_v14 = vadd.f32 %v10824_v51, %v6255_v1  ;;  %v6245_v51 = vld [vmem:[#allocation3 + $0x139] sm:$0xff] }
 0x437   : > { %v5918_v45 = vld [vmem:[#allocation5 + $0x10] sm:$0xff] }
 0x438   : > { %8385 = vmatmul.msk.f32.gmra.mxu3 %vm454_vm3, %v5904_v18  ;;  %v6161_v54 = vadd.f32 %v6069_v3, %v5918_v45  ;;  %5854 = vst.msk [vmem:[#allocation5 + $0x18] sm:$0xff] %vm454_vm3, %v5822_v42  ;;  %v5565_v3 = vld [vmem:[#allocation3 + $0x112] sm:$0xff]  ;;  %v5905_v42 = vld [vmem:[#allocation3 + $0x128] sm:$0xff] }
 0x439   : > { %v10889_v59 = vpop.f32.mrf.mxu0  ;;  %v5399_v56 = vpop.f32.mrf.mxu1  ;;  %6530 = vst.msk [vmem:[#allocation5] sm:$0xff] %vm454_vm3, %v6498_v14  ;;  %v6256_v1 = vld [vmem:[#allocation5 + $0x8] sm:$0xff]  ;;  %v5243_v14 = vld [vmem:[#allocation5 + $0x30] sm:$0xff] }
 0x43a   : > { %8352 = vmatmul.msk.f32.gmra.mxu2 %vm454_vm3, %v5564_v29  ;;  %8419 = vmatmul.msk.f32.gmra.mxu0 %vm454_vm3, %v6244_v46  ;;  %6193 = vst.msk [vmem:[#allocation5 + $0x10] sm:$0xff] %vm454_vm3, %v6161_v54  ;;  %v5485_v7 = vadd.f32 %v5399_v56, %v5242_v41 }
 0x43b   : > { %v6075_v49 = vpop.f32.mrf.mxu3  ;;  %v5580_v48 = vld [vmem:[#allocation5 + $0x20] sm:$0xff]  ;;  %8320 = vmatmul.msk.f32.gmra.mxu1 %vm454_vm3, %v6242_v62 }
 0x43c   : > { %5517 = vst.msk [vmem:[#allocation5 + $0x28] sm:$0xff] %vm454_vm3, %v5485_v7 }
 0x43d   : > { %v5735_v35 = vpop.f32.mrf.mxu2 }
 0x43e   : > { %v5823_v29 = vadd.f32 %v5735_v35, %v5580_v48  ;;  %v6499_v35 = vadd.f32 %v10842_v34, %v6256_v1  ;;  %v6246_v34 = vld [vmem:[#allocation3 + $0x141] sm:$0xff] }
 0x43f   : > { %v5919_v18 = vld [vmem:[#allocation5 + $0x18] sm:$0xff] }
 0x440   : > { %8386 = vmatmul.msk.f32.gmra.mxu3 %vm454_vm3, %v5905_v42  ;;  %v6162_v45 = vadd.f32 %v6072_v55, %v5919_v18  ;;  %5855 = vst.msk [vmem:[#allocation5 + $0x20] sm:$0xff] %vm454_vm3, %v5823_v29  ;;  %v5566_v55 = vld [vmem:[#allocation3 + $0x122] sm:$0xff]  ;;  %v5906_v29 = vld [vmem:[#allocation3 + $0x138] sm:$0xff] }
 0x441   : > { %v10900_v47 = vpop.f32.mrf.mxu0  ;;  %v5402_v41 = vpop.f32.mrf.mxu1  ;;  %6531 = vst.msk [vmem:[#allocation5 + $0x8] sm:$0xff] %vm454_vm3, %v6499_v35  ;;  %v6257_v1 = vld [vmem:[#allocation5 + $0x10] sm:$0xff]  ;;  %v5244_v35 = vld [vmem:[#allocation5 + $0x38] sm:$0xff] }
 0x442   : > { %8353 = vmatmul.msk.f32.gmra.mxu2 %vm454_vm3, %v5565_v3  ;;  %8420 = vmatmul.msk.f32.gmra.mxu0 %vm454_vm3, %v6245_v51  ;;  %6194 = vst.msk [vmem:[#allocation5 + $0x18] sm:$0xff] %vm454_vm3, %v6162_v45  ;;  %v5486_v56 = vadd.f32 %v5402_v41, %v5243_v14 }
 0x443   : > { %v6078_v62 = vpop.f32.mrf.mxu3  ;;  %v5581_v7 = vld [vmem:[#allocation5 + $0x28] sm:$0xff]  ;;  %8321 = vmatmul.msk.f32.gmra.mxu1 %vm454_vm3, %v6243_v22 }
 0x444   : > { %5518 = vst.msk [vmem:[#allocation5 + $0x30] sm:$0xff] %vm454_vm3, %v5486_v56 }
 0x445   : > { %v5738_v54 = vpop.f32.mrf.mxu2 }
 0x446   : > { %v5824_v3 = vadd.f32 %v5738_v54, %v5581_v7  ;;  %v6500_v54 = vadd.f32 %v10854_v61, %v6257_v1  ;;  %v6247_v61 = vld [vmem:[#allocation3 + $0x151] sm:$0xff] }
 0x447   : > { %v5920_v42 = vld [vmem:[#allocation5 + $0x20] sm:$0xff] }
 0x448   : > { %8387 = vmatmul.msk.f32.gmra.mxu3 %vm454_vm3, %v5906_v29  ;;  %v6163_v18 = vadd.f32 %v6075_v49, %v5920_v42  ;;  %5856 = vst.msk [vmem:[#allocation5 + $0x28] sm:$0xff] %vm454_vm3, %v5824_v3  ;;  %v5567_v49 = vld [vmem:[#allocation3 + $0x12a] sm:$0xff]  ;;  %v5907_v3 = vld [vmem:[#allocation3 + $0x140] sm:$0xff] }
 0x449   : > { %v10911_v48 = vpop.f32.mrf.mxu0  ;;  %v5405_v14 = vpop.f32.mrf.mxu1  ;;  %6532 = vst.msk [vmem:[#allocation5 + $0x10] sm:$0xff] %vm454_vm3, %v6500_v54  ;;  %v6258_v1 = vld [vmem:[#allocation5 + $0x18] sm:$0xff]  ;;  %v5245_v54 = vld [vmem:[#allocation5 + $0x40] sm:$0xff] }
 0x44a   : > { %8354 = vmatmul.msk.f32.gmra.mxu2 %vm454_vm3, %v5566_v55  ;;  %8421 = vmatmul.msk.f32.gmra.mxu0 %vm454_vm3, %v6246_v34  ;;  %6195 = vst.msk [vmem:[#allocation5 + $0x20] sm:$0xff] %vm454_vm3, %v6163_v18  ;;  %v5487_v41 = vadd.f32 %v5405_v14, %v5244_v35 }
 0x44b   : > { %v6081_v22 = vpop.f32.mrf.mxu3  ;;  %v5582_v56 = vld [vmem:[#allocation5 + $0x30] sm:$0xff]  ;;  %8322 = vmatmul.msk.f32.gmra.mxu1 %vm454_vm3, %v6244_v46 }
 0x44c   : > { %5519 = vst.msk [vmem:[#allocation5 + $0x38] sm:$0xff] %vm454_vm3, %v5487_v41 }
 0x44d   : > { %v5741_v45 = vpop.f32.mrf.mxu2 }
 0x44e   : > { %v5825_v55 = vadd.f32 %v5741_v45, %v5582_v56  ;;  %v6501_v45 = vadd.f32 %v10866_v37, %v6258_v1  ;;  %v6248_v37 = vld [vmem:[#allocation3 + $0x159] sm:$0xff] }
 0x44f   : > { %v5921_v29 = vld [vmem:[#allocation5 + $0x28] sm:$0xff] }
 0x450   : > { %8388 = vmatmul.msk.f32.gmra.mxu3 %vm454_vm3, %v5907_v3  ;;  %v6164_v42 = vadd.f32 %v6078_v62, %v5921_v29  ;;  %5857 = vst.msk [vmem:[#allocation5 + $0x30] sm:$0xff] %vm454_vm3, %v5825_v55  ;;  %v5568_v62 = vld [vmem:[#allocation3 + $0x13a] sm:$0xff]  ;;  %v5908_v55 = vld [vmem:[#allocation3 + $0x150] sm:$0xff] }
 0x451   : > { %v10922_v7 = vpop.f32.mrf.mxu0  ;;  %v5408_v35 = vpop.f32.mrf.mxu1  ;;  %6533 = vst.msk [vmem:[#allocation5 + $0x18] sm:$0xff] %vm454_vm3, %v6501_v45  ;;  %v6259_v1 = vld [vmem:[#allocation5 + $0x20] sm:$0xff]  ;;  %v5246_v45 = vld [vmem:[#allocation5 + $0x48] sm:$0xff] }
 0x452   : > { %8355 = vmatmul.msk.f32.gmra.mxu2 %vm454_vm3, %v5567_v49  ;;  %8422 = vmatmul.msk.f32.gmra.mxu0 %vm454_vm3, %v6247_v61  ;;  %6196 = vst.msk [vmem:[#allocation5 + $0x28] sm:$0xff] %vm454_vm3, %v6164_v42  ;;  %v5488_v14 = vadd.f32 %v5408_v35, %v5245_v54 }
 0x453   : > { %v6084_v46 = vpop.f32.mrf.mxu3  ;;  %v5583_v41 = vld [vmem:[#allocation5 + $0x38] sm:$0xff]  ;;  %8323 = vmatmul.msk.f32.gmra.mxu1 %vm454_vm3, %v6245_v51 }
 0x454   : > { %5520 = vst.msk [vmem:[#allocation5 + $0x40] sm:$0xff] %vm454_vm3, %v5488_v14 }
 0x455   : > { %v5744_v18 = vpop.f32.mrf.mxu2 }
 0x456   : > { %v5826_v49 = vadd.f32 %v5744_v18, %v5583_v41  ;;  %v6502_v18 = vadd.f32 %v10878_v52, %v6259_v1  ;;  %v6249_v52 = vld [vmem:[#allocation3 + $0x169] sm:$0xff] }
 0x457   : > { %v5922_v3 = vld [vmem:[#allocation5 + $0x30] sm:$0xff] }
 0x458   : > { %8389 = vmatmul.msk.f32.gmra.mxu3 %vm454_vm3, %v5908_v55  ;;  %v6165_v29 = vadd.f32 %v6081_v22, %v5922_v3  ;;  %5858 = vst.msk [vmem:[#allocation5 + $0x38] sm:$0xff] %vm454_vm3, %v5826_v49  ;;  %v5569_v22 = vld [vmem:[#allocation3 + $0x142] sm:$0xff]  ;;  %v5909_v49 = vld [vmem:[#allocation3 + $0x158] sm:$0xff] }
 0x459   : > { %v10933_v56 = vpop.f32.mrf.mxu0  ;;  %v5411_v54 = vpop.f32.mrf.mxu1  ;;  %6534 = vst.msk [vmem:[#allocation5 + $0x20] sm:$0xff] %vm454_vm3, %v6502_v18  ;;  %v6260_v1 = vld [vmem:[#allocation5 + $0x28] sm:$0xff]  ;;  %v5247_v18 = vld [vmem:[#allocation5 + $0x50] sm:$0xff] }
 0x45a   : > { %8356 = vmatmul.msk.f32.gmra.mxu2 %vm454_vm3, %v5568_v62  ;;  %8423 = vmatmul.msk.f32.gmra.mxu0 %vm454_vm3, %v6248_v37  ;;  %6197 = vst.msk [vmem:[#allocation5 + $0x30] sm:$0xff] %vm454_vm3, %v6165_v29  ;;  %v5489_v35 = vadd.f32 %v5411_v54, %v5246_v45 }
 0x45b   : > { %v6087_v51 = vpop.f32.mrf.mxu3  ;;  %v5584_v14 = vld [vmem:[#allocation5 + $0x40] sm:$0xff]  ;;  %8324 = vmatmul.msk.f32.gmra.mxu1 %vm454_vm3, %v6246_v34 }
 0x45c   : > { %5521 = vst.msk [vmem:[#allocation5 + $0x48] sm:$0xff] %vm454_vm3, %v5489_v35 }
 0x45d   : > { %v5747_v42 = vpop.f32.mrf.mxu2 }
 0x45e   : > { %v5827_v62 = vadd.f32 %v5747_v42, %v5584_v14  ;;  %v6503_v42 = vadd.f32 %v10889_v59, %v6260_v1  ;;  %v6250_v59 = vld [vmem:[#allocation3 + $0x171] sm:$0xff] }
 0x45f   : > { %v5923_v55 = vld [vmem:[#allocation5 + $0x38] sm:$0xff] }
 0x460   : > { %8390 = vmatmul.msk.f32.gmra.mxu3 %vm454_vm3, %v5909_v49  ;;  %v6166_v3 = vadd.f32 %v6084_v46, %v5923_v55  ;;  %5859 = vst.msk [vmem:[#allocation5 + $0x40] sm:$0xff] %vm454_vm3, %v5827_v62  ;;  %v5570_v46 = vld [vmem:[#allocation3 + $0x152] sm:$0xff]  ;;  %v5910_v62 = vld [vmem:[#allocation3 + $0x168] sm:$0xff] }
 0x461   : > { %v10944_v41 = vpop.f32.mrf.mxu0  ;;  %v5414_v45 = vpop.f32.mrf.mxu1  ;;  %6535 = vst.msk [vmem:[#allocation5 + $0x28] sm:$0xff] %vm454_vm3, %v6503_v42  ;;  %v6261_v1 = vld [vmem:[#allocation5 + $0x30] sm:$0xff]  ;;  %v5248_v42 = vld [vmem:[#allocation5 + $0x58] sm:$0xff] }
 0x462   : > { %8357 = vmatmul.msk.f32.gmra.mxu2 %vm454_vm3, %v5569_v22  ;;  %8424 = vmatmul.msk.f32.gmra.mxu0 %vm454_vm3, %v6249_v52  ;;  %6198 = vst.msk [vmem:[#allocation5 + $0x38] sm:$0xff] %vm454_vm3, %v6166_v3  ;;  %v5490_v54 = vadd.f32 %v5414_v45, %v5247_v18 }
 0x463   : > { %v6090_v34 = vpop.f32.mrf.mxu3  ;;  %v5585_v35 = vld [vmem:[#allocation5 + $0x48] sm:$0xff]  ;;  %8325 = vmatmul.msk.f32.gmra.mxu1 %vm454_vm3, %v6247_v61 }
 0x464   : > { %5522 = vst.msk [vmem:[#allocation5 + $0x50] sm:$0xff] %vm454_vm3, %v5490_v54 }
 0x465   : > { %v5750_v29 = vpop.f32.mrf.mxu2 }
 0x466   : > { %v5828_v22 = vadd.f32 %v5750_v29, %v5585_v35  ;;  %v6504_v29 = vadd.f32 %v10900_v47, %v6261_v1  ;;  %v6251_v47 = vld [vmem:[#allocation3 + $0x181] sm:$0xff] }
 0x467   : > { %v5924_v49 = vld [vmem:[#allocation5 + $0x40] sm:$0xff] }
 0x468   : > { %8391 = vmatmul.msk.f32.gmra.mxu3 %vm454_vm3, %v5910_v62  ;;  %v6167_v55 = vadd.f32 %v6087_v51, %v5924_v49  ;;  %5860 = vst.msk [vmem:[#allocation5 + $0x48] sm:$0xff] %vm454_vm3, %v5828_v22  ;;  %v5571_v51 = vld [vmem:[#allocation3 + $0x15a] sm:$0xff]  ;;  %v5911_v22 = vld [vmem:[#allocation3 + $0x170] sm:$0xff] }
 0x469   : > { %v10955_v14 = vpop.f32.mrf.mxu0  ;;  %v5417_v18 = vpop.f32.mrf.mxu1  ;;  %6536 = vst.msk [vmem:[#allocation5 + $0x30] sm:$0xff] %vm454_vm3, %v6504_v29  ;;  %v6262_v1 = vld [vmem:[#allocation5 + $0x38] sm:$0xff]  ;;  %v5249_v29 = vld [vmem:[#allocation5 + $0x60] sm:$0xff] }
 0x46a   : > { %8358 = vmatmul.msk.f32.gmra.mxu2 %vm454_vm3, %v5570_v46  ;;  %8425 = vmatmul.msk.f32.gmra.mxu0 %vm454_vm3, %v6250_v59  ;;  %6199 = vst.msk [vmem:[#allocation5 + $0x40] sm:$0xff] %vm454_vm3, %v6167_v55  ;;  %v5491_v45 = vadd.f32 %v5417_v18, %v5248_v42 }
 0x46b   : > { %v6093_v61 = vpop.f32.mrf.mxu3  ;;  %v5586_v54 = vld [vmem:[#allocation5 + $0x50] sm:$0xff]  ;;  %8326 = vmatmul.msk.f32.gmra.mxu1 %vm454_vm3, %v6248_v37 }
 0x46c   : > { %5523 = vst.msk [vmem:[#allocation5 + $0x58] sm:$0xff] %vm454_vm3, %v5491_v45 }
 0x46d   : > { %v5753_v3 = vpop.f32.mrf.mxu2 }
 0x46e   : > { %v5829_v46 = vadd.f32 %v5753_v3, %v5586_v54  ;;  %v6505_v3 = vadd.f32 %v10911_v48, %v6262_v1  ;;  %v6252_v48 = vld [vmem:[#allocation3 + $0x189] sm:$0xff] }
 0x46f   : > { %v5925_v62 = vld [vmem:[#allocation5 + $0x48] sm:$0xff] }
 0x470   : > { %8392 = vmatmul.msk.f32.gmra.mxu3 %vm454_vm3, %v5911_v22  ;;  %v6168_v49 = vadd.f32 %v6090_v34, %v5925_v62  ;;  %5861 = vst.msk [vmem:[#allocation5 + $0x50] sm:$0xff] %vm454_vm3, %v5829_v46  ;;  %v5572_v34 = vld [vmem:[#allocation3 + $0x16a] sm:$0xff]  ;;  %v5912_v46 = vld [vmem:[#allocation3 + $0x180] sm:$0xff] }
 0x471   : > { %v10966_v35 = vpop.f32.mrf.mxu0  ;;  %v5420_v42 = vpop.f32.mrf.mxu1  ;;  %6537 = vst.msk [vmem:[#allocation5 + $0x38] sm:$0xff] %vm454_vm3, %v6505_v3  ;;  %v6263_v1 = vld [vmem:[#allocation5 + $0x40] sm:$0xff]  ;;  %v5250_v3 = vld [vmem:[#allocation5 + $0x68] sm:$0xff] }
 0x472   : > { %8359 = vmatmul.msk.f32.gmra.mxu2 %vm454_vm3, %v5571_v51  ;;  %8426 = vmatmul.msk.f32.gmra.mxu0 %vm454_vm3, %v6251_v47  ;;  %6200 = vst.msk [vmem:[#allocation5 + $0x48] sm:$0xff] %vm454_vm3, %v6168_v49  ;;  %v5492_v18 = vadd.f32 %v5420_v42, %v5249_v29 }
 0x473   : > { %v6096_v37 = vpop.f32.mrf.mxu3  ;;  %v5587_v45 = vld [vmem:[#allocation5 + $0x58] sm:$0xff]  ;;  %8327 = vmatmul.msk.f32.gmra.mxu1 %vm454_vm3, %v6249_v52 }
 0x474   : > { %5524 = vst.msk [vmem:[#allocation5 + $0x60] sm:$0xff] %vm454_vm3, %v5492_v18 }
 0x475   : > { %v5756_v55 = vpop.f32.mrf.mxu2 }
 0x476   : > { %v5830_v51 = vadd.f32 %v5756_v55, %v5587_v45  ;;  %v6506_v55 = vadd.f32 %v10922_v7, %v6263_v1  ;;  %v5251_v1 = vld [vmem:[#allocation5 + $0x70] sm:$0xff] }
 0x477   : > { %v5926_v22 = vld [vmem:[#allocation5 + $0x50] sm:$0xff] }
 0x478   : > { %8393 = vmatmul.msk.f32.gmra.mxu3 %vm454_vm3, %v5912_v46  ;;  %v6169_v62 = vadd.f32 %v6093_v61, %v5926_v22  ;;  %5862 = vst.msk [vmem:[#allocation5 + $0x58] sm:$0xff] %vm454_vm3, %v5830_v51  ;;  %v5573_v61 = vld [vmem:[#allocation3 + $0x172] sm:$0xff] }
 0x479   : > { %v10977_v54 = vpop.f32.mrf.mxu0  ;;  %v5423_v29 = vpop.f32.mrf.mxu1  ;;  %6538 = vst.msk [vmem:[#allocation5 + $0x40] sm:$0xff] %vm454_vm3, %v6506_v55 }
 0x47a   : > { %8360 = vmatmul.msk.f32.gmra.mxu2 %vm454_vm3, %v5572_v34  ;;  %8427 = vmatmul.msk.f32.gmra.mxu0 %vm454_vm3, %v6252_v48  ;;  %6201 = vst.msk [vmem:[#allocation5 + $0x50] sm:$0xff] %vm454_vm3, %v6169_v62  ;;  %v5493_v42 = vadd.f32 %v5423_v29, %v5250_v3  ;;  %v5913_v34 = vld [vmem:[#allocation3 + $0x188] sm:$0xff]  ;;  %v6264_v62 = vld [vmem:[#allocation5 + $0x48] sm:$0xff] }
 0x47b   : > { %v6099_v52 = vpop.f32.mrf.mxu3  ;;  %v5588_v18 = vld [vmem:[#allocation5 + $0x60] sm:$0xff]  ;;  %8328 = vmatmul.msk.f32.gmra.mxu1 %vm454_vm3, %v6250_v59  ;;  %v5914_v29 = vld [vmem:[#allocation3 + $0x198] sm:$0xff] }
 0x47c   : > { %5525 = vst.msk [vmem:[#allocation5 + $0x68] sm:$0xff] %vm454_vm3, %v5493_v42 }
 0x47d   : > { %v5759_v49 = vpop.f32.mrf.mxu2 }
 0x47e   : > { %v5831_v45 = vadd.f32 %v5759_v49, %v5588_v18  ;;  %v6507_v49 = vadd.f32 %v10933_v56, %v6264_v62  ;;  %v5574_v18 = vld [vmem:[#allocation3 + $0x182] sm:$0xff] }
 0x47f   : > { %v5927_v51 = vld [vmem:[#allocation5 + $0x58] sm:$0xff] }
 0x480   : > { %8394 = vmatmul.msk.f32.gmra.mxu3 %vm454_vm3, %v5913_v34  ;;  %v6170_v7 = vadd.f32 %v6096_v37, %v5927_v51  ;;  %5863 = vst.msk [vmem:[#allocation5 + $0x60] sm:$0xff] %vm454_vm3, %v5831_v45 }
 0x481   : > { %v10991_v46 = vpop.f32.mrf.mxu0  ;;  %v5426_v55 = vpop.f32.mrf.mxu1  ;;  %6539 = vst.msk [vmem:[#allocation5 + $0x48] sm:$0xff] %vm454_vm3, %v6507_v49  ;;  %v6265_v51 = vld [vmem:[#allocation5 + $0x50] sm:$0xff] }
 0x482   : > { %8361 = vmatmul.msk.f32.gmra.mxu2 %vm454_vm3, %v5573_v61  ;;  %6202 = vst.msk [vmem:[#allocation5 + $0x58] sm:$0xff] %vm454_vm3, %v6170_v7  ;;  %v5494_v3 = vadd.f32 %v5426_v55, %v5251_v1  ;;  %v5915_v1 = vld [vmem:[#allocation3 + $0x1a0] sm:$0xff] }
 0x483   : > { %v6102_v59 = vpop.f32.mrf.mxu3  ;;  %v5589_v42 = vld [vmem:[#allocation5 + $0x68] sm:$0xff]  ;;  %8329 = vmatmul.msk.f32.gmra.mxu1 %vm454_vm3, %v6251_v47  ;;  %v6508_v47 = vadd.f32 %v10944_v41, %v6265_v51 }
 0x484   : > { %5526 = vst.msk [vmem:[#allocation5 + $0x70] sm:$0xff] %vm454_vm3, %v5494_v3 }
 0x485   : > { %v5762_v22 = vpop.f32.mrf.mxu2  ;;  %6540 = vst.msk [vmem:[#allocation5 + $0x50] sm:$0xff] %vm454_vm3, %v6508_v47 }
 0x486   : > { %v5832_v37 = vadd.f32 %v5762_v22, %v5589_v42  ;;  %v5252_v22 = vld [vmem:[#allocation5 + $0x78] sm:$0xff] }
 0x487   : > { %v5928_v61 = vld [vmem:[#allocation5 + $0x60] sm:$0xff] }
 0x488   : > { %8395 = vmatmul.msk.f32.gmra.mxu3 %vm454_vm3, %v5914_v29  ;;  %v6171_v45 = vadd.f32 %v6099_v52, %v5928_v61  ;;  %5864 = vst.msk [vmem:[#allocation5 + $0x68] sm:$0xff] %vm454_vm3, %v5832_v37  ;;  %v5575_v52 = vld [vmem:[#allocation3 + $0x18a] sm:$0xff]  ;;  %v6253_v61 = vld [vmem:[#allocation3 + $0x199] sm:$0xff] }
 0x489   : > { %v11003_v56 = vpop.f32.mrf.mxu0  ;;  %v5429_v62 = vpop.f32.mrf.mxu1  ;;  %8428 = vmatmul.msk.f32.gmra.mxu0 %vm454_vm3, %v6253_v61 }
 0x48a   : > { %8362 = vmatmul.msk.f32.gmra.mxu2 %vm454_vm3, %v5574_v18  ;;  %6203 = vst.msk [vmem:[#allocation5 + $0x60] sm:$0xff] %vm454_vm3, %v6171_v45  ;;  %v5495_v49 = vadd.f32 %v5429_v62, %v5252_v22  ;;  %v6266_v18 = vld [vmem:[#allocation5 + $0x58] sm:$0xff]  ;;  %v6562_v22 = vld [vmem:[#allocation3 + $0x32] sm:$0xff] }
 0x48b   : > { %v6105_v7 = vpop.f32.mrf.mxu3  ;;  %v5590_v55 = vld [vmem:[#allocation5 + $0x70] sm:$0xff]  ;;  %8330 = vmatmul.msk.f32.gmra.mxu1 %vm454_vm3, %v6252_v48  ;;  %v6509_v48 = vadd.f32 %v10955_v14, %v6266_v18 }
 0x48c   : > { %5527 = vst.msk [vmem:[#allocation5 + $0x78] sm:$0xff] %vm454_vm3, %v5495_v49  ;;  %v6563_v18 = vld [vmem:[#allocation3 + $0x3a] sm:$0xff] }
 0x48d   : > { %v5765_v34 = vpop.f32.mrf.mxu2  ;;  %6541 = vst.msk [vmem:[#allocation5 + $0x58] sm:$0xff] %vm454_vm3, %v6509_v48 }
 0x48e   : > { %v5833_v3 = vadd.f32 %v5765_v34, %v5590_v55  ;;  %v5253_v34 = vld [vmem:[#allocation5 + $0x80] sm:$0xff] }
 0x48f   : > { %v5929_v29 = vld [vmem:[#allocation5 + $0x68] sm:$0xff] }
 0x490   : > { %8396 = vmatmul.msk.f32.gmra.mxu3 %vm454_vm3, %v5915_v1  ;;  %v6172_v42 = vadd.f32 %v6102_v59, %v5929_v29  ;;  %5865 = vst.msk [vmem:[#allocation5 + $0x70] sm:$0xff] %vm454_vm3, %v5833_v3  ;;  %v6254_v3 = vld [vmem:[#allocation3 + $0x1a1] sm:$0xff] }
 0x491   : > { %v11015_v45 = vpop.f32.mrf.mxu0  ;;  %v5432_v51 = vpop.f32.mrf.mxu1  ;;  %v6267_v55 = vld [vmem:[#allocation5 + $0x60] sm:$0xff]  ;;  %8429 = vmatmul.msk.f32.gmra.mxu0 %vm454_vm3, %v6254_v3 }
 0x492   : > { %8363 = vmatmul.msk.f32.gmra.mxu2 %vm454_vm3, %v5575_v52  ;;  %6204 = vst.msk [vmem:[#allocation5 + $0x68] sm:$0xff] %vm454_vm3, %v6172_v42  ;;  %v5496_v47 = vadd.f32 %v5432_v51, %v5253_v34  ;;  %v6510_v29 = vadd.f32 %v10966_v35, %v6267_v55  ;;  %v5254_v42 = vld [vmem:[#allocation5 + $0x88] sm:$0xff] }
 0x493   : > { %v6108_v37 = vpop.f32.mrf.mxu3  ;;  %v5591_v59 = vld [vmem:[#allocation5 + $0x78] sm:$0xff]  ;;  %8431 = vmatmul.msk.f32.vlgmr.msrb.gmra.mxu1 %vm454_vm3, %v6562_v22 }
 0x494   : > { %5528 = vst.msk [vmem:[#allocation5 + $0x80] sm:$0xff] %vm454_vm3, %v5496_v47 }
 0x495   : > { %v5768_v41 = vpop.f32.mrf.mxu2  ;;  %6542 = vst.msk [vmem:[#allocation5 + $0x60] sm:$0xff] %vm454_vm3, %v6510_v29 }
 0x496   : > { %v5834_v62 = vadd.f32 %v5768_v41, %v5591_v59  ;;  %v5255_v59 = vld [vmem:[#allocation5 + $0x90] sm:$0xff] }
 0x497   : > { %v5930_v14 = vld [vmem:[#allocation5 + $0x70] sm:$0xff] }
 0x498   : > { %8496 = vmatmul.msk.f32.vlgmr.msrb.gmra.mxu3 %vm365_vm1, %v8822_v15  ;;  %v6173_v49 = vadd.f32 %v6105_v7, %v5930_v14  ;;  %5866 = vst.msk [vmem:[#allocation5 + $0x78] sm:$0xff] %vm454_vm3, %v5834_v62 }
 0x499   : > { %v5435_v41 = vpop.f32.mrf.mxu1  ;;  %v11030_v15 = vpop.f32.mrf.mxu0  ;;  %v6268_v51 = vld [vmem:[#allocation5 + $0x68] sm:$0xff] }
 0x49a   : > { %8463 = vmatmul.msk.f32.vlgmr.msrb.gmra.mxu2 %vm454_vm3, %v9860_v60  ;;  %6205 = vst.msk [vmem:[#allocation5 + $0x70] sm:$0xff] %vm454_vm3, %v6173_v49  ;;  %v5497_v60 = vadd.f32 %v5435_v41, %v5254_v42  ;;  %v6511_v22 = vadd.f32 %v10977_v54, %v6268_v51  ;;  %v6564_v49 = vld [vmem:[#allocation3 + $0x4a] sm:$0xff] }
 0x49b   : > { %v6111_v52 = vpop.f32.mrf.mxu3  ;;  %v5592_v7 = vld [vmem:[#allocation5 + $0x80] sm:$0xff]  ;;  %8432 = vmatmul.msk.f32.gmra.mxu1 %vm454_vm3, %v6563_v18  ;;  %v5256_v41 = vld [vmem:[#allocation5 + $0x98] sm:$0xff] }
 0x49c   : > { %5529 = vst.msk [vmem:[#allocation5 + $0x88] sm:$0xff] %vm454_vm3, %v5497_v60 }
 0x49d   : > { %v5771_v1 = vpop.f32.mrf.mxu2  ;;  %6543 = vst.msk [vmem:[#allocation5 + $0x68] sm:$0xff] %vm454_vm3, %v6511_v22  ;;  %v5257_v22 = vld [vmem:[#allocation5 + $0xa0] sm:$0xff] }
 0x49e   : > { %v5835_v61 = vadd.f32 %v5771_v1, %v5592_v7 }
 0x49f   : > { %v5931_v35 = vld [vmem:[#allocation5 + $0x78] sm:$0xff] }
 0x4a0   : > { %8497 = vmatmul.msk.f32.gmra.mxu3 %vm365_vm1, %v8842_v19  ;;  %v6174_v48 = vadd.f32 %v6108_v37, %v5931_v35  ;;  %5867 = vst.msk [vmem:[#allocation5 + $0x80] sm:$0xff] %vm454_vm3, %v5835_v61 }
 0x4a1   : > { %v5438_v62 = vpop.f32.mrf.mxu1  ;;  %v11046_v1 = vpop.f32.mrf.mxu0  ;;  %v6269_v3 = vld [vmem:[#allocation5 + $0x70] sm:$0xff] }
 0x4a2   : > { %8464 = vmatmul.msk.f32.gmra.mxu2 %vm454_vm3, %v9877_v50  ;;  %6206 = vst.msk [vmem:[#allocation5 + $0x78] sm:$0xff] %vm454_vm3, %v6174_v48  ;;  %v5498_v14 = vadd.f32 %v5438_v62, %v5255_v59  ;;  %v6512_v42 = vadd.f32 %v10991_v46, %v6269_v3 }
 0x4a3   : > { %v6114_v47 = vpop.f32.mrf.mxu3  ;;  %v5593_v50 = vld [vmem:[#allocation5 + $0x88] sm:$0xff]  ;;  %8433 = vmatmul.msk.f32.gmra.mxu1 %vm454_vm3, %v6564_v49 }
 0x4a4   : > { %5530 = vst.msk [vmem:[#allocation5 + $0x90] sm:$0xff] %vm454_vm3, %v5498_v14 }
 0x4a5   : > { %v5774_v34 = vpop.f32.mrf.mxu2  ;;  %6544 = vst.msk [vmem:[#allocation5 + $0x70] sm:$0xff] %vm454_vm3, %v6512_v42 }
 0x4a6   : > { %v5836_v19 = vadd.f32 %v5774_v34, %v5593_v50 }
 0x4a7   : > { %v5932_v37 = vld [vmem:[#allocation5 + $0x80] sm:$0xff] }
 0x4a8   : > { %8498 = vmatmul.msk.f32.gmra.mxu3 %vm365_vm1, %v8864_v24  ;;  %v6175_v54 = vadd.f32 %v6111_v52, %v5932_v37  ;;  %5868 = vst.msk [vmem:[#allocation5 + $0x88] sm:$0xff] %vm454_vm3, %v5836_v19 }
 0x4a9   : > { %v5441_v60 = vpop.f32.mrf.mxu1  ;;  %v11061_v61 = vpop.f32.mrf.mxu0  ;;  %v6270_v48 = vld [vmem:[#allocation5 + $0x78] sm:$0xff] }
 0x4aa   : > { %8465 = vmatmul.msk.f32.gmra.mxu2 %vm454_vm3, %v9971_v39  ;;  %6207 = vst.msk [vmem:[#allocation5 + $0x80] sm:$0xff] %vm454_vm3, %v6175_v54  ;;  %v5499_v18 = vadd.f32 %v5441_v60, %v5256_v41  ;;  %v6565_v39 = vld [vmem:[#allocation3 + $0x52] sm:$0xff]  ;;  %v6513_v51 = vadd.f32 %v11003_v56, %v6270_v48 }
 0x4ab   : > { %v6117_v29 = vpop.f32.mrf.mxu3  ;;  %v5594_v7 = vld [vmem:[#allocation5 + $0x90] sm:$0xff]  ;;  %8434 = vmatmul.msk.f32.gmra.mxu1 %vm454_vm3, %v6565_v39 }
 0x4ac   : > { %5531 = vst.msk [vmem:[#allocation5 + $0x98] sm:$0xff] %vm454_vm3, %v5499_v18 }
 0x4ad   : > { %v5777_v55 = vpop.f32.mrf.mxu2  ;;  %6545 = vst.msk [vmem:[#allocation5 + $0x78] sm:$0xff] %vm454_vm3, %v6513_v51 }
 0x4ae   : > { %v5837_v24 = vadd.f32 %v5777_v55, %v5594_v7  ;;  %v5258_v55 = vld [vmem:[#allocation5 + $0xa8] sm:$0xff] }
 0x4af   : > { %v5933_v52 = vld [vmem:[#allocation5 + $0x88] sm:$0xff] }
 0x4b0   : > { %8499 = vmatmul.msk.f32.gmra.mxu3 %vm365_vm1, %v8895_v31  ;;  %v6176_v46 = vadd.f32 %v6114_v47, %v5933_v52  ;;  %5869 = vst.msk [vmem:[#allocation5 + $0x90] sm:$0xff] %vm454_vm3, %v5837_v24  ;;  %v5259_v24 = vld [vmem:[#allocation5 + $0xb0] sm:$0xff] }
 0x4b1   : > { %v5444_v59 = vpop.f32.mrf.mxu1  ;;  %v6271_v50 = vld [vmem:[#allocation5 + $0x80] sm:$0xff]  ;;  %v11075_v54 = vpop.f32.mrf.mxu0 }
 0x4b2   : > { %8466 = vmatmul.msk.f32.gmra.mxu2 %vm454_vm3, %v9980_v4  ;;  %6208 = vst.msk [vmem:[#allocation5 + $0x88] sm:$0xff] %vm454_vm3, %v6176_v46  ;;  %v5500_v62 = vadd.f32 %v5444_v59, %v5257_v22  ;;  %v6566_v4 = vld [vmem:[#allocation3 + $0x62] sm:$0xff]  ;;  %v6514_v37 = vadd.f32 %v11015_v45, %v6271_v50 }
 0x4b3   : > { %v6120_v34 = vpop.f32.mrf.mxu3  ;;  %v5595_v14 = vld [vmem:[#allocation5 + $0x98] sm:$0xff]  ;;  %8435 = vmatmul.msk.f32.gmra.mxu1 %vm454_vm3, %v6566_v4 }
 0x4b4   : > { %5532 = vst.msk [vmem:[#allocation5 + $0xa0] sm:$0xff] %vm454_vm3, %v5500_v62  ;;  %v5260_v4 = vld [vmem:[#allocation5 + $0xb8] sm:$0xff] }
 0x4b5   : > { %v5780_v35 = vpop.f32.mrf.mxu2  ;;  %6546 = vst.msk [vmem:[#allocation5 + $0x80] sm:$0xff] %vm454_vm3, %v6514_v37 }
 0x4b6   : > { %v5838_v31 = vadd.f32 %v5780_v35, %v5595_v14  ;;  %v6568_v35 = vld [vmem:[#allocation3 + $0x7a] sm:$0xff] }
 0x4b7   : > { %v5934_v47 = vld [vmem:[#allocation5 + $0x90] sm:$0xff] }
 0x4b8   : > { %8500 = vmatmul.msk.f32.gmra.mxu3 %vm365_vm1, %v8919_v38  ;;  %v6177_v56 = vadd.f32 %v6117_v29, %v5934_v47  ;;  %5870 = vst.msk [vmem:[#allocation5 + $0x98] sm:$0xff] %vm454_vm3, %v5838_v31  ;;  %v6569_v47 = vld [vmem:[#allocation3 + $0x82] sm:$0xff] }
 0x4b9   : > { %v5447_v3 = vpop.f32.mrf.mxu1  ;;  %v6272_v18 = vld [vmem:[#allocation5 + $0x88] sm:$0xff] }
 0x4ba   : > { %8467 = vmatmul.msk.f32.gmra.mxu2 %vm454_vm3, %v9988_v0  ;;  %6209 = vst.msk [vmem:[#allocation5 + $0x90] sm:$0xff] %vm454_vm3, %v6177_v56  ;;  %v5501_v42 = vadd.f32 %v5447_v3, %v5258_v55  ;;  %v6567_v0 = vld [vmem:[#allocation3 + $0x6a] sm:$0xff]  ;;  %v6515_v7 = vadd.f32 %v11030_v15, %v6272_v18 }
 0x4bb   : > { %v6123_v19 = vpop.f32.mrf.mxu3  ;;  %v5596_v41 = vld [vmem:[#allocation5 + $0xa0] sm:$0xff]  ;;  %8436 = vmatmul.msk.f32.gmra.mxu1 %vm454_vm3, %v6567_v0 }
 0x4bc   : > { %5533 = vst.msk [vmem:[#allocation5 + $0xa8] sm:$0xff] %vm454_vm3, %v5501_v42  ;;  %v5261_v3 = vld [vmem:[#allocation5 + $0xc0] sm:$0xff] }
 0x4bd   : > { %v5783_v49 = vpop.f32.mrf.mxu2  ;;  %6547 = vst.msk [vmem:[#allocation5 + $0x88] sm:$0xff] %vm454_vm3, %v6515_v7  ;;  %v5262_v7 = vld [vmem:[#allocation5 + $0xc8] sm:$0xff] }
 0x4be   : > { %v5839_v38 = vadd.f32 %v5783_v49, %v5596_v41 }
 0x4bf   : > { %v5935_v29 = vld [vmem:[#allocation5 + $0x98] sm:$0xff] }
 0x4c0   : > { %8501 = vmatmul.msk.f32.gmra.mxu3 %vm365_vm1, %v8948_v43  ;;  %v6178_v45 = vadd.f32 %v6120_v34, %v5935_v29  ;;  %5871 = vst.msk [vmem:[#allocation5 + $0xa0] sm:$0xff] %vm454_vm3, %v5839_v38 }
 0x4c1   : > { %v5450_v52 = vpop.f32.mrf.mxu1  ;;  %v6273_v22 = vld [vmem:[#allocation5 + $0x90] sm:$0xff] }
 0x4c2   : > { %8468 = vmatmul.msk.f32.gmra.mxu2 %vm454_vm3, %v9995_v58  ;;  %6210 = vst.msk [vmem:[#allocation5 + $0x98] sm:$0xff] %vm454_vm3, %v6178_v45  ;;  %v5502_v46 = vadd.f32 %v5450_v52, %v5259_v24  ;;  %v11088_v58 = vpop.f32.mrf.mxu0  ;;  %v6516_v62 = vadd.f32 %v11046_v1, %v6273_v22  ;;  %v5263_v22 = vld [vmem:[#allocation5 + $0xd0] sm:$0xff] }
 0x4c3   : > { %v6126_v39 = vpop.f32.mrf.mxu3  ;;  %v5597_v48 = vld [vmem:[#allocation5 + $0xa8] sm:$0xff]  ;;  %8437 = vmatmul.msk.f32.gmra.mxu1 %vm454_vm3, %v6568_v35 }
 0x4c4   : > { %5534 = vst.msk [vmem:[#allocation5 + $0xb0] sm:$0xff] %vm454_vm3, %v5502_v46 }
 0x4c5   : > { %v5786_v60 = vpop.f32.mrf.mxu2  ;;  %6548 = vst.msk [vmem:[#allocation5 + $0x90] sm:$0xff] %vm454_vm3, %v6516_v62 }
 0x4c6   : > { %v5840_v43 = vadd.f32 %v5786_v60, %v5597_v48 }
 0x4c7   : > { %v5936_v34 = vld [vmem:[#allocation5 + $0xa0] sm:$0xff] }
 0x4c8   : > { %8502 = vmatmul.msk.f32.gmra.mxu3 %vm365_vm1, %v8743_v5  ;;  %v6179_v15 = vadd.f32 %v6123_v19, %v5936_v34  ;;  %5872 = vst.msk [vmem:[#allocation5 + $0xa8] sm:$0xff] %vm454_vm3, %v5840_v43 }
 0x4c9   : > { %v5453_v14 = vpop.f32.mrf.mxu1  ;;  %v6274_v19 = vld [vmem:[#allocation5 + $0x98] sm:$0xff] }
 0x4ca   : > { %8469 = vmatmul.msk.f32.gmra.mxu2 %vm454_vm3, %v10001_v63  ;;  %6211 = vst.msk [vmem:[#allocation5 + $0xa0] sm:$0xff] %vm454_vm3, %v6179_v15  ;;  %v5503_v31 = vadd.f32 %v5453_v14, %v5260_v4  ;;  %v11104_v56 = vpop.f32.mrf.mxu0  ;;  %v6517_v55 = vadd.f32 %v11061_v61, %v6274_v19  ;;  %v6572_v4 = vld [vmem:[#allocation3 + $0xaa] sm:$0xff]  ;;  %v6573_v19 = vld [vmem:[#allocation3 + $0xb2] sm:$0xff] }
 0x4cb   : > { %v6129_v59 = vpop.f32.mrf.mxu3  ;;  %v5598_v63 = vld [vmem:[#allocation5 + $0xb0] sm:$0xff]  ;;  %8438 = vmatmul.msk.f32.gmra.mxu1 %vm454_vm3, %v6569_v47 }
 0x4cc   : > { %5535 = vst.msk [vmem:[#allocation5 + $0xb8] sm:$0xff] %vm454_vm3, %v5503_v31 }
 0x4cd   : > { %v5789_v51 = vpop.f32.mrf.mxu2  ;;  %6549 = vst.msk [vmem:[#allocation5 + $0x98] sm:$0xff] %vm454_vm3, %v6517_v55 }
 0x4ce   : > { %v5841_v5 = vadd.f32 %v5789_v51, %v5598_v63 }
 0x4cf   : > { %v5937_v49 = vld [vmem:[#allocation5 + $0xa8] sm:$0xff] }
 0x4d0   : > { %8503 = vmatmul.msk.f32.gmra.mxu3 %vm365_vm1, %v8760_v8  ;;  %v6180_v1 = vadd.f32 %v6126_v39, %v5937_v49  ;;  %5873 = vst.msk [vmem:[#allocation5 + $0xb0] sm:$0xff] %vm454_vm3, %v5841_v5  ;;  %v5264_v49 = vld [vmem:[#allocation5 + $0xd8] sm:$0xff] }
 0x4d1   : > { %v5456_v42 = vpop.f32.mrf.mxu1  ;;  %v6275_v60 = vld [vmem:[#allocation5 + $0xa0] sm:$0xff] }
 0x4d2   : > { %8470 = vmatmul.msk.f32.gmra.mxu2 %vm454_vm3, %v10015_v23  ;;  %6212 = vst.msk [vmem:[#allocation5 + $0xa8] sm:$0xff] %vm454_vm3, %v6180_v1  ;;  %v5504_v0 = vadd.f32 %v5456_v42, %v5261_v3  ;;  %v6570_v23 = vld [vmem:[#allocation3 + $0x92] sm:$0xff]  ;;  %v11119_v29 = vpop.f32.mrf.mxu0  ;;  %v6518_v39 = vadd.f32 %v11075_v54, %v6275_v60 }
 0x4d3   : > { %v6132_v37 = vpop.f32.mrf.mxu3  ;;  %v5599_v41 = vld [vmem:[#allocation5 + $0xb8] sm:$0xff]  ;;  %8439 = vmatmul.msk.f32.gmra.mxu1 %vm454_vm3, %v6570_v23 }
 0x4d4   : > { %5536 = vst.msk [vmem:[#allocation5 + $0xc0] sm:$0xff] %vm454_vm3, %v5504_v0 }
 0x4d5   : > { %v5792_v50 = vpop.f32.mrf.mxu2  ;;  %6550 = vst.msk [vmem:[#allocation5 + $0xa0] sm:$0xff] %vm454_vm3, %v6518_v39 }
 0x4d6   : > { %v5842_v8 = vadd.f32 %v5792_v50, %v5599_v41  ;;  %v5265_v41 = vld [vmem:[#allocation5 + $0xe0] sm:$0xff] }
 0x4d7   : > { %v5938_v38 = vld [vmem:[#allocation5 + $0xb0] sm:$0xff] }
 0x4d8   : > { %8504 = vmatmul.msk.f32.gmra.mxu3 %vm365_vm1, %v8827_v16  ;;  %v6181_v61 = vadd.f32 %v6129_v59, %v5938_v38  ;;  %5874 = vst.msk [vmem:[#allocation5 + $0xb8] sm:$0xff] %vm454_vm3, %v5842_v8 }
 0x4d9   : > { %v5459_v24 = vpop.f32.mrf.mxu1  ;;  %v6276_v43 = vld [vmem:[#allocation5 + $0xa8] sm:$0xff] }
 0x4da   : > { %8471 = vmatmul.msk.f32.gmra.mxu2 %vm454_vm3, %v10031_v53  ;;  %6213 = vst.msk [vmem:[#allocation5 + $0xb0] sm:$0xff] %vm454_vm3, %v6181_v61  ;;  %v5505_v52 = vadd.f32 %v5459_v24, %v5262_v7  ;;  %v6571_v53 = vld [vmem:[#allocation3 + $0x9a] sm:$0xff]  ;;  %v6519_v15 = vadd.f32 %v11088_v58, %v6276_v43  ;;  %v6474_v51 = vpop.f32.mrf.mxu0  ;;  %v6574_v61 = vld [vmem:[#allocation3 + $0xc2] sm:$0xff] }
 0x4db   : > { %v6135_v18 = vpop.f32.mrf.mxu3  ;;  %v5600_v46 = vld [vmem:[#allocation5 + $0xc0] sm:$0xff]  ;;  %8440 = vmatmul.msk.f32.gmra.mxu1 %vm454_vm3, %v6571_v53 }
 0x4dc   : > { %5537 = vst.msk [vmem:[#allocation5 + $0xc8] sm:$0xff] %vm454_vm3, %v5505_v52  ;;  %v5266_v52 = vld [vmem:[#allocation5 + $0xe8] sm:$0xff] }
 0x4dd   : > { %v5795_v45 = vpop.f32.mrf.mxu2  ;;  %6551 = vst.msk [vmem:[#allocation5 + $0xa8] sm:$0xff] %vm454_vm3, %v6519_v15 }
 0x4de   : > { %v5843_v16 = vadd.f32 %v5795_v45, %v5600_v46 }
 0x4df   : > { %v5939_v35 = vld [vmem:[#allocation5 + $0xb8] sm:$0xff] }
 0x4e0   : > { %8505 = vmatmul.msk.f32.gmra.mxu3 %vm365_vm1, %v8847_v20  ;;  %v6182_v54 = vadd.f32 %v6132_v37, %v5939_v35  ;;  %5875 = vst.msk [vmem:[#allocation5 + $0xc0] sm:$0xff] %vm454_vm3, %v5843_v16  ;;  %v6575_v16 = vld [vmem:[#allocation3 + $0xca] sm:$0xff] }
 0x4e1   : > { %v5462_v59 = vpop.f32.mrf.mxu1  ;;  %v6277_v47 = vld [vmem:[#allocation5 + $0xb0] sm:$0xff] }
 0x4e2   : > { %8472 = vmatmul.msk.f32.gmra.mxu2 %vm454_vm3, %v10046_v36  ;;  %6214 = vst.msk [vmem:[#allocation5 + $0xb8] sm:$0xff] %vm454_vm3, %v6182_v54  ;;  %v5506_v62 = vadd.f32 %v5462_v59, %v5263_v22  ;;  %v6520_v5 = vadd.f32 %v11104_v56, %v6277_v47  ;;  %v5267_v22 = vld [vmem:[#allocation5 + $0xf0] sm:$0xff] }
 0x4e3   : > { %v6138_v34 = vpop.f32.mrf.mxu3  ;;  %v5601_v36 = vld [vmem:[#allocation5 + $0xc8] sm:$0xff]  ;;  %8441 = vmatmul.msk.f32.gmra.mxu1 %vm454_vm3, %v6572_v4 }
 0x4e4   : > { %5538 = vst.msk [vmem:[#allocation5 + $0xd0] sm:$0xff] %vm454_vm3, %v5506_v62  ;;  %v6576_v4 = vld [vmem:[#allocation3 + $0xda] sm:$0xff] }
 0x4e5   : > { %v5798_v48 = vpop.f32.mrf.mxu2  ;;  %6552 = vst.msk [vmem:[#allocation5 + $0xb0] sm:$0xff] %vm454_vm3, %v6520_v5  ;;  %v5268_v5 = vld [vmem:[#allocation5 + $0xf8] sm:$0xff] }
 0x4e6   : > { %v5844_v20 = vadd.f32 %v5798_v48, %v5601_v36 }
 0x4e7   : > { %v5940_v14 = vld [vmem:[#allocation5 + $0xc0] sm:$0xff] }
 0x4e8   : > { %8506 = vmatmul.msk.f32.gmra.mxu3 %vm365_vm1, %v8871_v26  ;;  %v6183_v58 = vadd.f32 %v6135_v18, %v5940_v14  ;;  %5876 = vst.msk [vmem:[#allocation5 + $0xc8] sm:$0xff] %vm454_vm3, %v5844_v20 }
 0x4e9   : > { %v5465_v1 = vpop.f32.mrf.mxu1  ;;  %v6278_v42 = vld [vmem:[#allocation5 + $0xb8] sm:$0xff] }
 0x4ea   : > { %8473 = vmatmul.msk.f32.gmra.mxu2 %vm454_vm3, %v10064_v9  ;;  %6215 = vst.msk [vmem:[#allocation5 + $0xc0] sm:$0xff] %vm454_vm3, %v6183_v58  ;;  %v5507_v50 = vadd.f32 %v5465_v1, %v5264_v49  ;;  %v6477_v9 = vpop.f32.mrf.mxu0  ;;  %v6521_v23 = vadd.f32 %v11119_v29, %v6278_v42 }
 0x4eb   : > { %v6141_v63 = vpop.f32.mrf.mxu3  ;;  %v5602_v37 = vld [vmem:[#allocation5 + $0xd0] sm:$0xff]  ;;  %8442 = vmatmul.msk.f32.gmra.mxu1 %vm454_vm3, %v6573_v19 }
 0x4ec   : > { %5539 = vst.msk [vmem:[#allocation5 + $0xd8] sm:$0xff] %vm454_vm3, %v5507_v50  ;;  %v6577_v50 = vld [vmem:[#allocation3 + $0xe2] sm:$0xff] }
 0x4ed   : > { %v5801_v31 = vpop.f32.mrf.mxu2  ;;  %6553 = vst.msk [vmem:[#allocation5 + $0xb8] sm:$0xff] %vm454_vm3, %v6521_v23  ;;  %v6578_v23 = vld [vmem:[#allocation3 + $0xf2] sm:$0xff] }
 0x4ee   : > { %v5845_v26 = vadd.f32 %v5801_v31, %v5602_v37 }
 0x4ef   : > { %v5941_v55 = vld [vmem:[#allocation5 + $0xc8] sm:$0xff] }
 0x4f0   : > { %8507 = vmatmul.msk.f32.gmra.mxu3 %vm365_vm1, %v8900_v32  ;;  %v6184_v56 = vadd.f32 %v6138_v34, %v5941_v55  ;;  %5877 = vst.msk [vmem:[#allocation5 + $0xd0] sm:$0xff] %vm454_vm3, %v5845_v26 }
 0x4f1   : > { %v5468_v8 = vpop.f32.mrf.mxu1  ;;  %v6279_v39 = vld [vmem:[#allocation5 + $0xc0] sm:$0xff] }
 0x4f2   : > { %8474 = vmatmul.msk.f32.gmra.mxu2 %vm454_vm3, %v10086_v2  ;;  %6216 = vst.msk [vmem:[#allocation5 + $0xc8] sm:$0xff] %vm454_vm3, %v6184_v56  ;;  %v5508_v38 = vadd.f32 %v5468_v8, %v5265_v41  ;;  %v6480_v45 = vpop.f32.mrf.mxu0  ;;  %v6522_v24 = vadd.f32 %v6474_v51, %v6279_v39 }
 0x4f3   : > { %v6144_v0 = vpop.f32.mrf.mxu3  ;;  %v5603_v2 = vld [vmem:[#allocation5 + $0xd8] sm:$0xff]  ;;  %8443 = vmatmul.msk.f32.gmra.mxu1 %vm454_vm3, %v6574_v61 }
 0x4f4   : > { %5540 = vst.msk [vmem:[#allocation5 + $0xe0] sm:$0xff] %vm454_vm3, %v5508_v38 }
 0x4f5   : > { %v5804_v3 = vpop.f32.mrf.mxu2  ;;  %6554 = vst.msk [vmem:[#allocation5 + $0xc0] sm:$0xff] %vm454_vm3, %v6522_v24 }
 0x4f6   : > { %v5846_v32 = vadd.f32 %v5804_v3, %v5603_v2  ;;  %v6594_v3 = vld [vmem:[#allocation5] sm:$0xff] }
 0x4f7   : > { %v5942_v60 = vld [vmem:[#allocation5 + $0xd0] sm:$0xff] }
 0x4f8   : > { %8508 = vmatmul.msk.f32.gmra.mxu3 %vm365_vm1, %v8928_v40  ;;  %v6185_v29 = vadd.f32 %v6141_v63, %v5942_v60  ;;  %5878 = vst.msk [vmem:[#allocation5 + $0xd8] sm:$0xff] %vm454_vm3, %v5846_v32 }
 0x4f9   : > { %v5471_v53 = vpop.f32.mrf.mxu1  ;;  %v6280_v34 = vld [vmem:[#allocation5 + $0xc8] sm:$0xff] }
 0x4fa   : > { %8475 = vmatmul.msk.f32.gmra.mxu2 %vm454_vm3, %v10105_v30  ;;  %6217 = vst.msk [vmem:[#allocation5 + $0xd0] sm:$0xff] %vm454_vm3, %v6185_v29  ;;  %v5509_v46 = vadd.f32 %v5471_v53, %v5266_v52  ;;  %v6483_v48 = vpop.f32.mrf.mxu0  ;;  %v6523_v51 = vadd.f32 %v6477_v9, %v6280_v34 }
 0x4fb   : > { %v6147_v7 = vpop.f32.mrf.mxu3  ;;  %v5604_v30 = vld [vmem:[#allocation5 + $0xe0] sm:$0xff]  ;;  %8444 = vmatmul.msk.f32.gmra.mxu1 %vm454_vm3, %v6575_v16 }
 0x4fc   : > { %5541 = vst.msk [vmem:[#allocation5 + $0xe8] sm:$0xff] %vm454_vm3, %v5509_v46 }
 0x4fd   : > { %v5807_v18 = vpop.f32.mrf.mxu2  ;;  %6555 = vst.msk [vmem:[#allocation5 + $0xc8] sm:$0xff] %vm454_vm3, %v6523_v51 }
 0x4fe   : > { %v5847_v35 = vadd.f32 %v5807_v18, %v5604_v30 }
 0x4ff   : > { %v5943_v40 = vld [vmem:[#allocation5 + $0xd8] sm:$0xff] }
 0x500   : > { %8509 = vmatmul.msk.f32.gmra.mxu3 %vm365_vm1, %v8953_v44  ;;  %v6186_v54 = vadd.f32 %v6144_v0, %v5943_v40  ;;  %5879 = vst.msk [vmem:[#allocation5 + $0xe0] sm:$0xff] %vm454_vm3, %v5847_v35 }
 0x501   : > { %v5474_v59 = vpop.f32.mrf.mxu1  ;;  %v6281_v58 = vld [vmem:[#allocation5 + $0xd0] sm:$0xff] }
 0x502   : > { %8476 = vmatmul.msk.f32.gmra.mxu2 %vm454_vm3, %v10125_v57  ;;  %6218 = vst.msk [vmem:[#allocation5 + $0xd8] sm:$0xff] %vm454_vm3, %v6186_v54  ;;  %v5510_v62 = vadd.f32 %v5474_v59, %v5267_v22  ;;  %v6524_v47 = vadd.f32 %v6480_v45, %v6281_v58  ;;  %v6486_v63 = vpop.f32.mrf.mxu0  ;;  %v11201_v45 = vld [vmem:[%s11565_s4] ss:$0 sm:$0xff] }
 0x503   : > { %v6150_v15 = vpop.f32.mrf.mxu3  ;;  %v5605_v57 = vld [vmem:[#allocation5 + $0xe8] sm:$0xff]  ;;  %8445 = vmatmul.msk.f32.gmra.mxu1 %vm454_vm3, %v6576_v4  ;;  %v6580_v22 = vld [vmem:[#allocation3 + $0x10a] sm:$0xff] }
 0x504   : > { %5542 = vst.msk [vmem:[#allocation5 + $0xf0] sm:$0xff] %vm454_vm3, %v5510_v62 }
 0x505   : > { %v5810_v43 = vpop.f32.mrf.mxu2  ;;  %6556 = vst.msk [vmem:[#allocation5 + $0xd0] sm:$0xff] %vm454_vm3, %v6524_v47  ;;  %v6597_v47 = vld [vmem:[#allocation5 + $0x18] sm:$0xff] }
 0x506   : > { %v5848_v44 = vadd.f32 %v5810_v43, %v5605_v57 }
 0x507   : > { %v5944_v36 = vld [vmem:[#allocation5 + $0xe0] sm:$0xff] }
 0x508   : > { %8510 = vmatmul.msk.f32.gmra.mxu3 %vm365_vm1, %v8748_v6  ;;  %v6187_v20 = vadd.f32 %v6147_v7, %v5944_v36  ;;  %5880 = vst.msk [vmem:[#allocation5 + $0xe8] sm:$0xff] %vm454_vm3, %v5848_v44 }
 0x509   : > { %v5477_v49 = vpop.f32.mrf.mxu1  ;;  %v6282_v26 = vld [vmem:[#allocation5 + $0xd8] sm:$0xff] }
 0x50a   : > { %8477 = vmatmul.msk.f32.gmra.mxu2 %vm454_vm3, %v10145_v25  ;;  %6219 = vst.msk [vmem:[#allocation5 + $0xe0] sm:$0xff] %vm454_vm3, %v6187_v20  ;;  %v5511_v1 = vadd.f32 %v5477_v49, %v5268_v5  ;;  %v6525_v56 = vadd.f32 %v6483_v48, %v6282_v26  ;;  %v6581_v5 = vld [vmem:[#allocation3 + $0x112] sm:$0xff] }
 0x50b   : > { %v6153_v31 = vpop.f32.mrf.mxu3  ;;  %v5606_v25 = vld [vmem:[#allocation5 + $0xf0] sm:$0xff]  ;;  %8446 = vmatmul.msk.f32.gmra.mxu1 %vm454_vm3, %v6577_v50  ;;  %v11624_v49 = vld [vmem:[#allocation19_spill] sm:$0xff]  ;;  %v6598_v26 = vld [vmem:[#allocation5 + $0x20] sm:$0xff] }
 0x50c   : > { %5543 = vst.msk [vmem:[#allocation5 + $0xf8] sm:$0xff] %vm454_vm3, %v5511_v1  ;;  %v11625_v50 = vld [vmem:[#allocation11_spill] sm:$0xff] }
 0x50d   : > { %v5813_v14 = vpop.f32.mrf.mxu2  ;;  %6557 = vst.msk [vmem:[#allocation5 + $0xd8] sm:$0xff] %vm454_vm3, %v6525_v56 }
 0x50e   : > { %v5849_v6 = vadd.f32 %v5813_v14, %v5606_v25 }
 0x50f   : > { %v5945_v19 = vld [vmem:[#allocation5 + $0xe8] sm:$0xff] }
 0x510   : > { %8511 = vmatmul.msk.f32.gmra.mxu3 %vm365_vm1, %v8812_v13  ;;  %v6188_v9 = vadd.f32 %v6150_v15, %v5945_v19  ;;  %5881 = vst.msk [vmem:[#allocation5 + $0xf0] sm:$0xff] %vm454_vm3, %v5849_v6 }
 0x511   : > { %v6741_v42 = vpop.f32.mrf.mxu1  ;;  %v6283_v2 = vld [vmem:[#allocation5 + $0xe0] sm:$0xff] }
 0x512   : > { %8478 = vmatmul.msk.f32.gmra.mxu2 %vm454_vm3, %v10165_v11  ;;  %6220 = vst.msk [vmem:[#allocation5 + $0xe8] sm:$0xff] %vm454_vm3, %v6188_v9  ;;  %v6837_v0 = vadd.f32 %v6741_v42, %v6594_v3  ;;  %v6489_v11 = vpop.f32.mrf.mxu0  ;;  %v6526_v60 = vadd.f32 %v6486_v63, %v6283_v2  ;;  %v6582_v3 = vld [vmem:[#allocation3 + $0x122] sm:$0xff]  ;;  %v6599_v2 = vld [vmem:[#allocation5 + $0x28] sm:$0xff] }
 0x513   : > { %v6156_v55 = vpop.f32.mrf.mxu3  ;;  %v5607_v41 = vld [vmem:[#allocation5 + $0xf8] sm:$0xff]  ;;  %8447 = vmatmul.msk.f32.gmra.mxu1 %vm454_vm3, %v6578_v23 }
 0x514   : > { %6869 = vst.msk [vmem:[#allocation5] sm:$0xff] %vm454_vm3, %v6837_v0  ;;  %v11626_v0 = vld [vmem:[#allocation20_spill] sm:$0xff] }
 0x515   : > { %v5816_v37 = vpop.f32.mrf.mxu2  ;;  %6558 = vst.msk [vmem:[#allocation5 + $0xe0] sm:$0xff] %vm454_vm3, %v6526_v60 }
 0x516   : > { %v5850_v13 = vadd.f32 %v5816_v37, %v5607_v41 }
 0x517   : > { %v5946_v8 = vld [vmem:[#allocation5 + $0xf0] sm:$0xff] }
 0x518   : > { %8512 = vmatmul.msk.f32.gmra.mxu3 %vm365_vm1, %v8832_v17  ;;  %v6189_v38 = vadd.f32 %v6153_v31, %v5946_v8  ;;  %5882 = vst.msk [vmem:[#allocation5 + $0xf8] sm:$0xff] %vm454_vm3, %v5850_v13  ;;  %v6579_v17 = vld [vmem:[#allocation3 + $0xfa] sm:$0xff] }
 0x519   : > { %v6744_v18 = vpop.f32.mrf.mxu1  ;;  %v6284_v40 = vld [vmem:[#allocation5 + $0xe8] sm:$0xff] }
 0x51a   : > { %8479 = vmatmul.msk.f32.gmra.mxu2 %vm454_vm3, %v10185_v12  ;;  %6221 = vst.msk [vmem:[#allocation5 + $0xf0] sm:$0xff] %vm454_vm3, %v6189_v38  ;;  %v6595_v12 = vld [vmem:[#allocation5 + $0x8] sm:$0xff]  ;;  %v6492_v7 = vpop.f32.mrf.mxu0  ;;  %v6527_v34 = vadd.f32 %v6489_v11, %v6284_v40  ;;  %v11627_v11 = vld [vmem:[#allocation13_spill] sm:$0xff] }
 0x51b   : > { %v7392_v32 = vpop.f32.mrf.mxu3  ;;  %v6838_v39 = vadd.f32 %v6744_v18, %v6595_v12  ;;  %8448 = vmatmul.msk.f32.gmra.mxu1 %vm454_vm3, %v6579_v17  ;;  %v6901_v24 = vld [vmem:[#allocation5] sm:$0xff] }
 0x51c   : > { %v6937_v52 = vadd.f32 %v11201_v45, %v6901_v24  ;;  %6559 = vst.msk [vmem:[#allocation5 + $0xe8] sm:$0xff] %vm454_vm3, %v6527_v34  ;;  %v6583_v12 = vld [vmem:[#allocation3 + $0x12a] sm:$0xff] }
 0x51d   : > { %v7180_v61 = vpop.f32.mrf.mxu2  ;;  %6870 = vst.msk [vmem:[#allocation5 + $0x8] sm:$0xff] %vm454_vm3, %v6838_v39  ;;  %v11628_v39 = vld [vmem:[#allocation21_spill] sm:$0xff] }
 0x51e   : > { %v11203_v29 = vadd.f32 %v7392_v32, %v7180_v61  ;;  %vm6969_vm0 = vcmp.ge.f32.partialorder %v6937_v52, 0.0  ;;  %v7001_v16 = vmul.f32 0.01, %v6937_v52 }
 0x51f   : > { %v5947_v53 = vld [vmem:[#allocation5 + $0xf8] sm:$0xff] }
 0x520   : > { %8513 = vmatmul.msk.f32.gmra.mxu3 %vm365_vm1, %v8852_v21  ;;  %v6190_v46 = vadd.f32 %v6156_v55, %v5947_v53  ;;  %v7033_v43 = vsel %vm6969_vm0, %v6937_v52, %v7001_v16 }
 0x521   : > { %v6285_v30 = vld [vmem:[#allocation5 + $0xf0] sm:$0xff]  ;;  %v6747_v51 = vpop.f32.mrf.mxu1  ;;  %8528 = vmatmul.msk.f32.vlgmr.msrb.gmra.mxu0 %vm454_vm3, %v7033_v43  ;;  %v11630_v43 = vld [vmem:[#allocation22_spill] sm:$0xff] }
 0x522   : > { %8480 = vmatmul.msk.f32.gmra.mxu2 %vm454_vm3, %v10210_v33  ;;  %6222 = vst.msk [vmem:[#allocation5 + $0xf8] sm:$0xff] %vm454_vm3, %v6190_v46  ;;  %v6528_v54 = vadd.f32 %v6492_v7, %v6285_v30  ;;  %v6596_v33 = vld [vmem:[#allocation5 + $0x10] sm:$0xff]  ;;  %v6495_v4 = vpop.f32.mrf.mxu0  ;;  %v11629_v7 = vld [vmem:[#allocation15_spill] sm:$0xff] }
 0x523   : > { %v7395_v48 = vpop.f32.mrf.mxu3  ;;  %v6839_v21 = vadd.f32 %v6747_v51, %v6596_v33  ;;  %8449 = vmatmul.msk.f32.gmra.mxu1 %vm454_vm3, %v6580_v22  ;;  %v6600_v30 = vld [vmem:[#allocation5 + $0x30] sm:$0xff]  ;;  %v11631_v33 = vld [vmem:[#allocation6_spill] sm:$0xff] }
 0x524   : > { %6560 = vst.msk [vmem:[#allocation5 + $0xf0] sm:$0xff] %vm454_vm3, %v6528_v54  ;;  %v6902_v59 = vld [vmem:[#allocation5 + $0x8] sm:$0xff] }
 0x525   : > { %v7183_v35 = vpop.f32.mrf.mxu2  ;;  %6871 = vst.msk [vmem:[#allocation5 + $0x10] sm:$0xff] %vm454_vm3, %v6839_v21  ;;  %v6938_v62 = vadd.f32 %v11201_v45, %v6902_v59  ;;  %v6584_v54 = vld [vmem:[#allocation3 + $0x13a] sm:$0xff] }
 0x526   : > { %v11214_v15 = vadd.f32 %v7395_v48, %v7183_v35 }
 0x527   : > { %vm6970_vm11 = vcmp.ge.f32.partialorder %v6938_v62, 0.0  ;;  %v7002_v57 = vmul.f32 0.01, %v6938_v62 }
 0x528   : > { %8514 = vmatmul.msk.f32.gmra.mxu3 %vm365_vm1, %v8879_v28 }
 0x529   : > { %v6286_v44 = vld [vmem:[#allocation5 + $0xf8] sm:$0xff]  ;;  %v7034_v58 = vsel %vm6970_vm11, %v6938_v62, %v7002_v57  ;;  %v6750_v63 = vpop.f32.mrf.mxu1 }
 0x52a   : > { %8481 = vmatmul.msk.f32.gmra.mxu2 %vm454_vm3, %v10230_v10  ;;  %v6529_v20 = vadd.f32 %v6495_v4, %v6286_v44  ;;  %8529 = vmatmul.msk.f32.gmra.mxu0 %vm454_vm3, %v7034_v58  ;;  %v6840_v10 = vadd.f32 %v6750_v63, %v6597_v47  ;;  %v6601_v4 = vld [vmem:[#allocation5 + $0x38] sm:$0xff]  ;;  %v11633_v47 = vld [vmem:[#allocation7_spill] sm:$0xff] }
 0x52b   : > { %v7398_v14 = vpop.f32.mrf.mxu3  ;;  %8450 = vmatmul.msk.f32.gmra.mxu1 %vm454_vm3, %v6581_v5 }
 0x52c   : > { %6561 = vst.msk [vmem:[#allocation5 + $0xf8] sm:$0xff] %vm454_vm3, %v6529_v20  ;;  %v6903_v28 = vld [vmem:[#allocation5 + $0x10] sm:$0xff] }
 0x52d   : > { %v7186_v36 = vpop.f32.mrf.mxu2  ;;  %6872 = vst.msk [vmem:[#allocation5 + $0x18] sm:$0xff] %vm454_vm3, %v6840_v10  ;;  %v6939_v1 = vadd.f32 %v11201_v45, %v6903_v28 }
 0x52e   : > { %v11226_v31 = vadd.f32 %v7398_v14, %v7186_v36  ;;  %v6585_v36 = vld [vmem:[#allocation3 + $0x142] sm:$0xff]  ;;  %v11632_v14 = vld [vmem:[#allocation23_spill] sm:$0xff] }
 0x52f   : > { %vm6971_vm12 = vcmp.ge.f32.partialorder %v6939_v1, 0.0  ;;  %v7003_v25 = vmul.f32 0.01, %v6939_v1 }
 0x530   : > { %8515 = vmatmul.msk.f32.gmra.mxu3 %vm365_vm1, %v11625_v50 }
 0x531   : > { %v7035_v9 = vsel %vm6971_vm12, %v6939_v1, %v7003_v25  ;;  %v6753_v55 = vpop.f32.mrf.mxu1  ;;  %v6602_v1 = vld [vmem:[#allocation5 + $0x40] sm:$0xff] }
 0x532   : > { %8482 = vmatmul.msk.f32.gmra.mxu2 %vm454_vm3, %v11624_v49  ;;  %8530 = vmatmul.msk.f32.gmra.mxu0 %vm454_vm3, %v7035_v9  ;;  %v6841_v56 = vadd.f32 %v6753_v55, %v6598_v26  ;;  %v11634_v9 = vld [vmem:[#allocation24_spill] sm:$0xff] }
 0x533   : > { %v7401_v19 = vpop.f32.mrf.mxu3  ;;  %8451 = vmatmul.msk.f32.gmra.mxu1 %vm454_vm3, %v6582_v3  ;;  %v11635_v55 = vld [vmem:[#allocation8_spill] sm:$0xff] }
 0x534   : > { %v6904_v42 = vld [vmem:[#allocation5 + $0x18] sm:$0xff]  ;;  %6873 = vst.msk [vmem:[#allocation5 + $0x20] sm:$0xff] %vm454_vm3, %v6841_v56 }
 0x535   : > { %v7189_v6 = vpop.f32.mrf.mxu2  ;;  %v6940_v23 = vadd.f32 %v11201_v45, %v6904_v42  ;;  %v6603_v42 = vld [vmem:[#allocation5 + $0x48] sm:$0xff] }
 0x536   : > { %v11237_v37 = vadd.f32 %v7401_v19, %v7189_v6  ;;  %v6586_v6 = vld [vmem:[#allocation3 + $0x152] sm:$0xff] }
 0x537   : > { %vm6972_vm13 = vcmp.ge.f32.partialorder %v6940_v23, 0.0  ;;  %v7004_v41 = vmul.f32 0.01, %v6940_v23 }
 0x538   : > { %8516 = vmatmul.msk.f32.gmra.mxu3 %vm365_vm1, %v11627_v11  ;;  %v6587_v11 = vld [vmem:[#allocation3 + $0x15a] sm:$0xff] }
 0x539   : > { %v7036_v38 = vsel %vm6972_vm13, %v6940_v23, %v7004_v41  ;;  %v6756_v32 = vpop.f32.mrf.mxu1 }
 0x53a   : > { %8483 = vmatmul.msk.f32.gmra.mxu2 %vm454_vm3, %v11626_v0  ;;  %8531 = vmatmul.msk.f32.gmra.mxu0 %vm454_vm3, %v7036_v38  ;;  %v6842_v60 = vadd.f32 %v6756_v32, %v6599_v2  ;;  %v11637_v38 = vld [vmem:[#allocation9_spill] sm:$0xff] }
 0x53b   : > { %v7404_v8 = vpop.f32.mrf.mxu3  ;;  %8452 = vmatmul.msk.f32.gmra.mxu1 %vm454_vm3, %v6583_v12  ;;  %v6905_v18 = vld [vmem:[#allocation5 + $0x20] sm:$0xff] }
 0x53c   : > { %6874 = vst.msk [vmem:[#allocation5 + $0x28] sm:$0xff] %vm454_vm3, %v6842_v60  ;;  %v6941_v17 = vadd.f32 %v11201_v45, %v6905_v18  ;;  %v6604_v60 = vld [vmem:[#allocation5 + $0x50] sm:$0xff] }
 0x53d   : > { %v7192_v13 = vpop.f32.mrf.mxu2 }
 0x53e   : > { %v11247_v61 = vadd.f32 %v7404_v8, %v7192_v13  ;;  %vm6973_vm14 = vcmp.ge.f32.partialorder %v6941_v17, 0.0  ;;  %v7005_v24 = vmul.f32 0.01, %v6941_v17  ;;  %v11636_v13 = vld [vmem:[#allocation25_spill] sm:$0xff] }
 0x540   : > { %8517 = vmatmul.msk.f32.gmra.mxu3 %vm365_vm1, %v11629_v7  ;;  %v7037_v46 = vsel %vm6973_vm14, %v6941_v17, %v7005_v24  ;;  %v11638_v7 = vld [vmem:[#allocation26_spill] sm:$0xff] }
 0x541   : > { %v6759_v35 = vpop.f32.mrf.mxu1 }
 0x542   : > { %8484 = vmatmul.msk.f32.gmra.mxu2 %vm454_vm3, %v11628_v39  ;;  %8532 = vmatmul.msk.f32.gmra.mxu0 %vm454_vm3, %v7037_v46  ;;  %v6843_v40 = vadd.f32 %v6759_v35, %v6600_v30  ;;  %v6588_v39 = vld [vmem:[#allocation3 + $0x16a] sm:$0xff] }
 0x543   : > { %v7407_v53 = vpop.f32.mrf.mxu3  ;;  %8453 = vmatmul.msk.f32.gmra.mxu1 %vm454_vm3, %v6584_v54  ;;  %v6906_v48 = vld [vmem:[#allocation5 + $0x28] sm:$0xff]  ;;  %v6605_v30 = vld [vmem:[#allocation5 + $0x58] sm:$0xff] }
 0x544   : > { %6875 = vst.msk [vmem:[#allocation5 + $0x30] sm:$0xff] %vm454_vm3, %v6843_v40  ;;  %v6942_v34 = vadd.f32 %v11201_v45, %v6906_v48  ;;  %v6589_v54 = vld [vmem:[#allocation3 + $0x172] sm:$0xff] }
 0x545   : > { %v7195_v52 = vpop.f32.mrf.mxu2 }
 0x546   : > { %v11257_v16 = vadd.f32 %v7407_v53, %v7195_v52  ;;  %vm6974_vm15 = vcmp.ge.f32.partialorder %v6942_v34, 0.0  ;;  %v7006_v51 = vmul.f32 0.01, %v6942_v34  ;;  %v11639_v52 = vld [vmem:[#allocation10_spill] sm:$0xff] }
 0x548   : > { %8518 = vmatmul.msk.f32.gmra.mxu3 %vm365_vm1, %v11631_v33  ;;  %v7038_v59 = vsel %vm6974_vm15, %v6942_v34, %v7006_v51  ;;  %v11641_v33 = vld [vmem:[#allocation12_spill] sm:$0xff] }
 0x549   : > { %v6762_v57 = vpop.f32.mrf.mxu1 }
 0x54a   : > { %8485 = vmatmul.msk.f32.gmra.mxu2 %vm454_vm3, %v11630_v43  ;;  %8533 = vmatmul.msk.f32.gmra.mxu0 %vm454_vm3, %v7038_v59  ;;  %v6844_v44 = vadd.f32 %v6762_v57, %v6601_v4  ;;  %v11640_v43 = vld [vmem:[#allocation27_spill] sm:$0xff]  ;;  %v6590_v57 = vld [vmem:[#allocation3 + $0x182] sm:$0xff] }
 0x54b   : > { %v7410_v22 = vpop.f32.mrf.mxu3  ;;  %8454 = vmatmul.msk.f32.gmra.mxu1 %vm454_vm3, %v6585_v36  ;;  %v6907_v20 = vld [vmem:[#allocation5 + $0x30] sm:$0xff] }
 0x54c   : > { %6876 = vst.msk [vmem:[#allocation5 + $0x38] sm:$0xff] %vm454_vm3, %v6844_v44  ;;  %v6943_v58 = vadd.f32 %v11201_v45, %v6907_v20  ;;  %v11642_v36 = vld [vmem:[#allocation28_spill] sm:$0xff] }
 0x54d   : > { %v7198_v21 = vpop.f32.mrf.mxu2 }
 0x54e   : > { %v11267_v62 = vadd.f32 %v7410_v22, %v7198_v21  ;;  %vm6975_vm2 = vcmp.ge.f32.partialorder %v6943_v58, 0.0  ;;  %v7007_v63 = vmul.f32 0.01, %v6943_v58  ;;  %v6606_v22 = vld [vmem:[#allocation5 + $0x60] sm:$0xff] }
 0x550   : > { %8519 = vmatmul.msk.f32.gmra.mxu3 %vm365_vm1, %v11633_v47  ;;  %v7039_v28 = vsel %vm6975_vm2, %v6943_v58, %v7007_v63  ;;  %v6607_v63 = vld [vmem:[#allocation5 + $0x68] sm:$0xff] }
 0x551   : > { %v6765_v50 = vpop.f32.mrf.mxu1 }
 0x552   : > { %8486 = vmatmul.msk.f32.gmra.mxu2 %vm454_vm3, %v11632_v14  ;;  %8534 = vmatmul.msk.f32.gmra.mxu0 %vm454_vm3, %v7039_v28  ;;  %v6845_v25 = vadd.f32 %v6765_v50, %v6602_v1  ;;  %v11643_v14 = vld [vmem:[#allocation14_spill] sm:$0xff]  ;;  %v11644_v50 = vld [vmem:[#allocation29_spill] sm:$0xff] }
 0x553   : > { %v7413_v5 = vpop.f32.mrf.mxu3  ;;  %8455 = vmatmul.msk.f32.gmra.mxu1 %vm454_vm3, %v6586_v6  ;;  %v6908_v19 = vld [vmem:[#allocation5 + $0x38] sm:$0xff]  ;;  %v11645_v6 = vld [vmem:[#allocation16_spill] sm:$0xff] }
 0x554   : > { %6877 = vst.msk [vmem:[#allocation5 + $0x40] sm:$0xff] %vm454_vm3, %v6845_v25  ;;  %v6944_v26 = vadd.f32 %v11201_v45, %v6908_v19  ;;  %v6591_v28 = vld [vmem:[#allocation3 + $0x18a] sm:$0xff] }
 0x555   : > { %v7201_v10 = vpop.f32.mrf.mxu2 }
 0x556   : > { %v11277_v49 = vadd.f32 %v7413_v5, %v7201_v10  ;;  %vm6976_vm4 = vcmp.ge.f32.partialorder %v6944_v26, 0.0  ;;  %v7008_v56 = vmul.f32 0.01, %v6944_v26 }
 0x558   : > { %8520 = vmatmul.msk.f32.gmra.mxu3 %vm365_vm1, %v11635_v55  ;;  %v7040_v3 = vsel %vm6976_vm4, %v6944_v26, %v7008_v56  ;;  %v6592_v26 = vld [vmem:[#allocation3 + $0x19a] sm:$0xff] }
 0x559   : > { %v6768_v0 = vpop.f32.mrf.mxu1  ;;  %v6608_v55 = vld [vmem:[#allocation5 + $0x70] sm:$0xff] }
 0x55a   : > { %8487 = vmatmul.msk.f32.gmra.mxu2 %vm454_vm3, %v11634_v9  ;;  %8535 = vmatmul.msk.f32.gmra.mxu0 %vm454_vm3, %v7040_v3  ;;  %v6846_v23 = vadd.f32 %v6768_v0, %v6603_v42  ;;  %v11646_v0 = vld [vmem:[#allocation30_spill] sm:$0xff] }
 0x55b   : > { %8456 = vmatmul.msk.f32.gmra.mxu1 %vm454_vm3, %v6587_v11  ;;  %v6909_v41 = vld [vmem:[#allocation5 + $0x40] sm:$0xff]  ;;  %v11647_v11 = vld [vmem:[#allocation17_spill] sm:$0xff] }
 0x55c   : > { %6878 = vst.msk [vmem:[#allocation5 + $0x48] sm:$0xff] %vm454_vm3, %v6846_v23  ;;  %v6945_v8 = vadd.f32 %v11201_v45, %v6909_v41 }
 0x55e   : > { %vm6977_vm5 = vcmp.ge.f32.partialorder %v6945_v8, 0.0  ;;  %v7009_v2 = vmul.f32 0.01, %v6945_v8 }
 0x560   : > { %8521 = vmatmul.msk.f32.gmra.mxu3 %vm365_vm1, %v11637_v38  ;;  %v7041_v32 = vsel %vm6977_vm5, %v6945_v8, %v7009_v2  ;;  %v6593_v8 = vld [vmem:[#allocation3 + $0x1a2] sm:$0xff] }
 0x561   : > { %v6771_v12 = vpop.f32.mrf.mxu1  ;;  %v6609_v38 = vld [vmem:[#allocation5 + $0x78] sm:$0xff] }
 0x562   : > { %8488 = vmatmul.msk.f32.gmra.mxu2 %vm454_vm3, %v11636_v13  ;;  %8536 = vmatmul.msk.f32.gmra.mxu0 %vm454_vm3, %v7041_v32  ;;  %v6847_v18 = vadd.f32 %v6771_v12, %v6604_v60 }
 0x563   : > { %8457 = vmatmul.msk.f32.gmra.mxu1 %vm454_vm3, %v6588_v39  ;;  %v6910_v17 = vld [vmem:[#allocation5 + $0x48] sm:$0xff] }
 0x564   : > { %6879 = vst.msk [vmem:[#allocation5 + $0x50] sm:$0xff] %vm454_vm3, %v6847_v18  ;;  %v6946_v24 = vadd.f32 %v11201_v45, %v6910_v17  ;;  %v11648_v18 = vld [vmem:[#allocation18_spill] sm:$0xff] }
 0x566   : > { %vm6978_vm6 = vcmp.ge.f32.partialorder %v6946_v24, 0.0  ;;  %v7010_v53 = vmul.f32 0.01, %v6946_v24 }
 0x568   : > { %8522 = vmatmul.msk.f32.gmra.mxu3 %vm365_vm1, %v11639_v52  ;;  %v7042_v46 = vsel %vm6978_vm6, %v6946_v24, %v7010_v53 }
 0x569   : > { %v6774_v35 = vpop.f32.mrf.mxu1 }
 0x56a   : > { %8489 = vmatmul.msk.f32.gmra.mxu2 %vm454_vm3, %v11638_v7  ;;  %8537 = vmatmul.msk.f32.gmra.mxu0 %vm454_vm3, %v7042_v46  ;;  %v6848_v40 = vadd.f32 %v6774_v35, %v6605_v30  ;;  %v6610_v7 = vld [vmem:[#allocation5 + $0x80] sm:$0xff]  ;;  %v6611_v35 = vld [vmem:[#allocation5 + $0x88] sm:$0xff] }
 0x56b   : > { %8458 = vmatmul.msk.f32.gmra.mxu1 %vm454_vm3, %v6589_v54  ;;  %v6911_v48 = vld [vmem:[#allocation5 + $0x50] sm:$0xff] }
 0x56c   : > { %6880 = vst.msk [vmem:[#allocation5 + $0x58] sm:$0xff] %vm454_vm3, %v6848_v40  ;;  %v6947_v34 = vadd.f32 %v11201_v45, %v6911_v48 }
 0x56e   : > { %vm6979_vm7 = vcmp.ge.f32.partialorder %v6947_v34, 0.0  ;;  %v7011_v51 = vmul.f32 0.01, %v6947_v34 }
 0x570   : > { %8523 = vmatmul.msk.f32.gmra.mxu3 %vm365_vm1, %v11641_v33  ;;  %v7043_v21 = vsel %vm6979_vm7, %v6947_v34, %v7011_v51  ;;  %v11352_v34 = vld [vmem:[%s11569_s8] ss:$0 sm:$0xff] }
 0x571   : > { %v6777_v59 = vpop.f32.mrf.mxu1 }
 0x572   : > { %8490 = vmatmul.msk.f32.gmra.mxu2 %vm454_vm3, %v11640_v43  ;;  %8538 = vmatmul.msk.f32.gmra.mxu0 %vm454_vm3, %v7043_v21  ;;  %v6849_v4 = vadd.f32 %v6777_v59, %v6606_v22 }
 0x573   : > { %8459 = vmatmul.msk.f32.gmra.mxu1 %vm454_vm3, %v6590_v57  ;;  %v6912_v44 = vld [vmem:[#allocation5 + $0x58] sm:$0xff] }
 0x574   : > { %6881 = vst.msk [vmem:[#allocation5 + $0x60] sm:$0xff] %vm454_vm3, %v6849_v4  ;;  %v6948_v20 = vadd.f32 %v11201_v45, %v6912_v44  ;;  %v6612_v4 = vld [vmem:[#allocation5 + $0x90] sm:$0xff] }
 0x576   : > { %vm6980_vm8 = vcmp.ge.f32.partialorder %v6948_v20, 0.0  ;;  %v7012_v58 = vmul.f32 0.01, %v6948_v20 }
 0x578   : > { %8524 = vmatmul.msk.f32.gmra.mxu3 %vm365_vm1, %v11643_v14  ;;  %v7044_v47 = vsel %vm6980_vm8, %v6948_v20, %v7012_v58 }
 0x579   : > { %v6780_v10 = vpop.f32.mrf.mxu1 }
 0x57a   : > { %8491 = vmatmul.msk.f32.gmra.mxu2 %vm454_vm3, %v11642_v36  ;;  %8539 = vmatmul.msk.f32.gmra.mxu0 %vm454_vm3, %v7044_v47  ;;  %v6850_v5 = vadd.f32 %v6780_v10, %v6607_v63  ;;  %v6613_v10 = vld [vmem:[#allocation5 + $0x98] sm:$0xff] }
 0x57b   : > { %8460 = vmatmul.msk.f32.gmra.mxu1 %vm454_vm3, %v6591_v28  ;;  %v6913_v1 = vld [vmem:[#allocation5 + $0x60] sm:$0xff] }
 0x57c   : > { %6882 = vst.msk [vmem:[#allocation5 + $0x68] sm:$0xff] %vm454_vm3, %v6850_v5  ;;  %v6949_v25 = vadd.f32 %v11201_v45, %v6913_v1  ;;  %v11371_v1 = vpop.f32.mrf.mxu2 }
 0x57e   : > { %vm6981_vm9 = vcmp.ge.f32.partialorder %v6949_v25, 0.0  ;;  %v7013_v19 = vmul.f32 0.01, %v6949_v25 }
 0x580   : > { %8525 = vmatmul.msk.f32.gmra.mxu3 %vm365_vm1, %v11645_v6  ;;  %v7045_v9 = vsel %vm6981_vm9, %v6949_v25, %v7013_v19  ;;  %v11375_v25 = vpop.f32.mrf.mxu3 }
 0x581   : > { %v6783_v56 = vpop.f32.mrf.mxu1 }
 0x582   : > { %8492 = vmatmul.msk.f32.gmra.mxu2 %vm454_vm3, %v11644_v50  ;;  %8540 = vmatmul.msk.f32.gmra.mxu0 %vm454_vm3, %v7045_v9  ;;  %v6851_v3 = vadd.f32 %v6783_v56, %v6608_v55  ;;  %v6614_v56 = vld [vmem:[#allocation5 + $0xa0] sm:$0xff] }
 0x583   : > { %8461 = vmatmul.msk.f32.gmra.mxu1 %vm454_vm3, %v6592_v26  ;;  %v6914_v42 = vld [vmem:[#allocation5 + $0x68] sm:$0xff] }
 0x584   : > { %6883 = vst.msk [vmem:[#allocation5 + $0x70] sm:$0xff] %vm454_vm3, %v6851_v3  ;;  %v6950_v23 = vadd.f32 %v11201_v45, %v6914_v42 }
 0x586   : > { %vm6982_vm10 = vcmp.ge.f32.partialorder %v6950_v23, 0.0  ;;  %v7014_v41 = vmul.f32 0.01, %v6950_v23 }
 0x588   : > { %8526 = vmatmul.msk.f32.gmra.mxu3 %vm365_vm1, %v11647_v11  ;;  %v7046_v13 = vsel %vm6982_vm10, %v6950_v23, %v7014_v41  ;;  %v11386_v11 = vpop.f32.mrf.mxu2  ;;  %v11388_v41 = vpop.f32.mrf.mxu3 }
 0x589   : > { %v6786_v2 = vpop.f32.mrf.mxu1 }
 0x58a   : > { %8493 = vmatmul.msk.f32.gmra.mxu2 %vm454_vm3, %v11646_v0  ;;  %8541 = vmatmul.msk.f32.gmra.mxu0 %vm454_vm3, %v7046_v13  ;;  %v6852_v32 = vadd.f32 %v6786_v2, %v6609_v38 }
 0x58b   : > { %8462 = vmatmul.msk.f32.gmra.mxu1 %vm454_vm3, %v6593_v8  ;;  %v6915_v60 = vld [vmem:[#allocation5 + $0x70] sm:$0xff] }
 0x58c   : > { %6884 = vst.msk [vmem:[#allocation5 + $0x78] sm:$0xff] %vm454_vm3, %v6852_v32  ;;  %v6951_v12 = vadd.f32 %v11201_v45, %v6915_v60  ;;  %v6615_v32 = vld [vmem:[#allocation5 + $0xa8] sm:$0xff] }
 0x58e   : > { %vm6983_vm0 = vcmp.ge.f32.partialorder %v6951_v12, 0.0  ;;  %v7015_v39 = vmul.f32 0.01, %v6951_v12 }
 0x590   : > { %8527 = vmatmul.msk.f32.gmra.mxu3 %vm365_vm1, %v11648_v18  ;;  %v7047_v17 = vsel %vm6983_vm0, %v6951_v12, %v7015_v39 }
 0x591   : > { %v6789_v24 = vpop.f32.mrf.mxu1 }
 0x592   : > { %8494 = vmatmul.msk.f32.gmra.mxu2 %vm454_vm3, %v10499_v27  ;;  %8542 = vmatmul.msk.f32.gmra.mxu0 %vm454_vm3, %v7047_v17  ;;  %v6853_v52 = vadd.f32 %v6789_v24, %v6610_v7 }
 0x593   : > { %v6916_v53 = vld [vmem:[#allocation5 + $0x78] sm:$0xff] }
 0x594   : > { %6885 = vst.msk [vmem:[#allocation5 + $0x80] sm:$0xff] %vm454_vm3, %v6853_v52  ;;  %v6952_v46 = vadd.f32 %v11201_v45, %v6916_v53  ;;  %v11400_v52 = vpop.f32.mrf.mxu3 }
 0x596   : > { %vm6984_vm11 = vcmp.ge.f32.partialorder %v6952_v46, 0.0  ;;  %v7016_v27 = vmul.f32 0.01, %v6952_v46 }
 0x598   : > { %v7048_v30 = vsel %vm6984_vm11, %v6952_v46, %v7016_v27  ;;  %v6616_v27 = vld [vmem:[#allocation5 + $0xb0] sm:$0xff] }
 0x599   : > { %v6792_v40 = vpop.f32.mrf.mxu1 }
 0x59a   : > { %8543 = vmatmul.msk.f32.gmra.mxu0 %vm454_vm3, %v7048_v30  ;;  %v6854_v54 = vadd.f32 %v6792_v40, %v6611_v35 }
 0x59b   : > { %v6917_v48 = vld [vmem:[#allocation5 + $0x80] sm:$0xff] }
 0x59c   : > { %6886 = vst.msk [vmem:[#allocation5 + $0x88] sm:$0xff] %vm454_vm3, %v6854_v54  ;;  %v6953_v43 = vadd.f32 %v11201_v45, %v6917_v48 }
 0x59e   : > { %v7602_v33 = vpop.f32.mrf.mxu0  ;;  %vm6985_vm1 = vcmp.ge.f32.partialorder %v6953_v43, 0.0  ;;  %v7017_v51 = vmul.f32 0.01, %v6953_v43 }
 0x59f   : > { %v7698_v21 = vadd.f32 %v7602_v33, %v11203_v29 }
 0x5a0   : > { %v7049_v22 = vsel %vm6985_vm1, %v6953_v43, %v7017_v51 }
 0x5a1   : > { %v7734_v59 = vadd.f32 %v11352_v34, %v7698_v21  ;;  %v6795_v57 = vpop.f32.mrf.mxu1 }
 0x5a2   : > { %8544 = vmatmul.msk.f32.gmra.mxu0 %vm454_vm3, %v7049_v22  ;;  %v6855_v44 = vadd.f32 %v6795_v57, %v6612_v4  ;;  %v6617_v22 = vld [vmem:[#allocation5 + $0xb8] sm:$0xff]  ;;  %v11413_v4 = vpop.f32.mrf.mxu3 }
 0x5a3   : > { %7766 = vst.msk [vmem:[%s11360_s12] sm:$0xff] %vm454_vm3, %v7734_v59  ;;  %v6918_v36 = vld [vmem:[#allocation5 + $0x88] sm:$0xff] }
 0x5a4   : > { %6887 = vst.msk [vmem:[#allocation5 + $0x90] sm:$0xff] %vm454_vm3, %v6855_v44  ;;  %v6954_v29 = vadd.f32 %v11201_v45, %v6918_v36 }
 0x5a6   : > { %vm6986_vm12 = vcmp.ge.f32.partialorder %v6954_v29, 0.0  ;;  %v7018_v14 = vmul.f32 0.01, %v6954_v29 }
 0x5a7   : > { %v7605_v20 = vpop.f32.mrf.mxu0 }
 0x5a8   : > { %v7699_v58 = vadd.f32 %v7605_v20, %v11214_v15  ;;  %v7050_v47 = vsel %vm6986_vm12, %v6954_v29, %v7018_v14 }
 0x5a9   : > { %v6798_v5 = vpop.f32.mrf.mxu1 }
 0x5aa   : > { %v7735_v63 = vadd.f32 %v11352_v34, %v7699_v58  ;;  %8545 = vmatmul.msk.f32.gmra.mxu0 %vm454_vm3, %v7050_v47  ;;  %v6856_v28 = vadd.f32 %v6798_v5, %v6613_v10  ;;  %v6618_v47 = vld [vmem:[#allocation5 + $0xc0] sm:$0xff] }
 0x5ab   : > { %v6919_v50 = vld [vmem:[#allocation5 + $0x90] sm:$0xff] }
 0x5ac   : > { %7767 = vst.msk [vmem:[%s11360_s12 + $0x8] sm:$0xff] %vm454_vm3, %v7735_v63  ;;  %v6955_v15 = vadd.f32 %v11201_v45, %v6919_v50  ;;  %v11426_v50 = vpop.f32.mrf.mxu3 }
 0x5ad   : > { %6888 = vst.msk [vmem:[#allocation5 + $0x98] sm:$0xff] %vm454_vm3, %v6856_v28 }
 0x5ae   : > { %vm6987_vm13 = vcmp.ge.f32.partialorder %v6955_v15, 0.0  ;;  %v7019_v19 = vmul.f32 0.01, %v6955_v15 }
 0x5af   : > { %v7608_v6 = vpop.f32.mrf.mxu0 }
 0x5b0   : > { %v7700_v9 = vadd.f32 %v7608_v6, %v11226_v31  ;;  %v7051_v26 = vsel %vm6987_vm13, %v6955_v15, %v7019_v19 }
 0x5b1   : > { %v6801_v3 = vpop.f32.mrf.mxu1 }
 0x5b2   : > { %v7736_v55 = vadd.f32 %v11352_v34, %v7700_v9  ;;  %8546 = vmatmul.msk.f32.gmra.mxu0 %vm454_vm3, %v7051_v26  ;;  %v6857_v42 = vadd.f32 %v6801_v3, %v6614_v56 }
 0x5b4   : > { %7768 = vst.msk [vmem:[%s11360_s12 + $0x10] sm:$0xff] %vm454_vm3, %v7736_v55  ;;  %v6920_v0 = vld [vmem:[#allocation5 + $0x98] sm:$0xff]  ;;  %v6619_v55 = vld [vmem:[#allocation5 + $0xc8] sm:$0xff] }
 0x5b5   : > { %6889 = vst.msk [vmem:[#allocation5 + $0xa0] sm:$0xff] %vm454_vm3, %v6857_v42  ;;  %v6956_v23 = vadd.f32 %v11201_v45, %v6920_v0 }
 0x5b7   : > { %v7611_v31 = vpop.f32.mrf.mxu0  ;;  %vm6988_vm14 = vcmp.ge.f32.partialorder %v6956_v23, 0.0  ;;  %v7020_v13 = vmul.f32 0.01, %v6956_v23 }
 0x5b8   : > { %v7701_v8 = vadd.f32 %v7611_v31, %v11237_v37  ;;  %v11397_v37 = vpop.f32.mrf.mxu2  ;;  %v11441_v31 = vpop.f32.mrf.mxu3 }
 0x5b9   : > { %v7052_v38 = vsel %vm6988_vm14, %v6956_v23, %v7020_v13  ;;  %v6804_v60 = vpop.f32.mrf.mxu1  ;;  %v7417_v23 = vadd.f32 %v11375_v25, %v11371_v1  ;;  %v7420_v25 = vadd.f32 %v11388_v41, %v11386_v11  ;;  %v7423_v41 = vadd.f32 %v11400_v52, %v11397_v37 }
 0x5ba   : > { %v7737_v2 = vadd.f32 %v11352_v34, %v7701_v8  ;;  %8547 = vmatmul.msk.f32.gmra.mxu0 %vm454_vm3, %v7052_v38  ;;  %v6858_v12 = vadd.f32 %v6804_v60, %v6615_v32  ;;  %v6620_v60 = vld [vmem:[#allocation5 + $0xd0] sm:$0xff] }
 0x5bc   : > { %7769 = vst.msk [vmem:[%s11360_s12 + $0x18] sm:$0xff] %vm454_vm3, %v7737_v2  ;;  %v6921_v18 = vld [vmem:[#allocation5 + $0xa0] sm:$0xff] }
 0x5bd   : > { %6890 = vst.msk [vmem:[#allocation5 + $0xa8] sm:$0xff] %vm454_vm3, %v6858_v12  ;;  %v6957_v39 = vadd.f32 %v11201_v45, %v6921_v18 }
 0x5bf   : > { %v7614_v17 = vpop.f32.mrf.mxu0  ;;  %vm6989_vm15 = vcmp.ge.f32.partialorder %v6957_v39, 0.0  ;;  %v7021_v7 = vmul.f32 0.01, %v6957_v39 }
 0x5c0   : > { %v7702_v24 = vadd.f32 %v7614_v17, %v11247_v61  ;;  %v11409_v51 = vpop.f32.mrf.mxu2 }
 0x5c1   : > { %v7053_v53 = vsel %vm6989_vm15, %v6957_v39, %v7021_v7  ;;  %v6807_v30 = vpop.f32.mrf.mxu1 }
 0x5c2   : > { %v7738_v46 = vadd.f32 %v11352_v34, %v7702_v24  ;;  %8548 = vmatmul.msk.f32.gmra.mxu0 %vm454_vm3, %v7053_v53  ;;  %v6859_v35 = vadd.f32 %v6807_v30, %v6616_v27 }
 0x5c4   : > { %7770 = vst.msk [vmem:[%s11360_s12 + $0x20] sm:$0xff] %vm454_vm3, %v7738_v46  ;;  %v6922_v40 = vld [vmem:[#allocation5 + $0xa8] sm:$0xff]  ;;  %v11453_v46 = vpop.f32.mrf.mxu3 }
 0x5c5   : > { %6891 = vst.msk [vmem:[#allocation5 + $0xb0] sm:$0xff] %vm454_vm3, %v6859_v35  ;;  %v6958_v54 = vadd.f32 %v11201_v45, %v6922_v40  ;;  %v6621_v35 = vld [vmem:[#allocation5 + $0xd8] sm:$0xff] }
 0x5c7   : > { %v7617_v48 = vpop.f32.mrf.mxu0  ;;  %vm6990_vm2 = vcmp.ge.f32.partialorder %v6958_v54, 0.0  ;;  %v7022_v61 = vmul.f32 0.01, %v6958_v54 }
 0x5c8   : > { %v7703_v43 = vadd.f32 %v7617_v48, %v11257_v16  ;;  %v11422_v5 = vpop.f32.mrf.mxu2 }
 0x5c9   : > { %v7054_v33 = vsel %vm6990_vm2, %v6958_v54, %v7022_v61  ;;  %v6810_v59 = vpop.f32.mrf.mxu1 }
 0x5ca   : > { %v7739_v21 = vadd.f32 %v11352_v34, %v7703_v43  ;;  %8549 = vmatmul.msk.f32.gmra.mxu0 %vm454_vm3, %v7054_v33  ;;  %v6860_v57 = vadd.f32 %v6810_v59, %v6617_v22 }
 0x5cc   : > { %7771 = vst.msk [vmem:[%s11360_s12 + $0x28] sm:$0xff] %vm454_vm3, %v7739_v21  ;;  %v6923_v44 = vld [vmem:[#allocation5 + $0xb0] sm:$0xff] }
 0x5cd   : > { %6892 = vst.msk [vmem:[#allocation5 + $0xb8] sm:$0xff] %vm454_vm3, %v6860_v57  ;;  %v6959_v16 = vadd.f32 %v11201_v45, %v6923_v44  ;;  %v6622_v57 = vld [vmem:[#allocation5 + $0xe0] sm:$0xff] }
 0x5cf   : > { %v7620_v36 = vpop.f32.mrf.mxu0  ;;  %vm6991_vm4 = vcmp.ge.f32.partialorder %v6959_v16, 0.0  ;;  %v7023_v29 = vmul.f32 0.01, %v6959_v16 }
 0x5d0   : > { %v7704_v20 = vadd.f32 %v7620_v36, %v11267_v62 }
 0x5d1   : > { %v7055_v14 = vsel %vm6991_vm4, %v6959_v16, %v7023_v29  ;;  %v6813_v63 = vpop.f32.mrf.mxu1  ;;  %v11467_v16 = vpop.f32.mrf.mxu3  ;;  %v7426_v29 = vadd.f32 %v11413_v4, %v11409_v51  ;;  %v7429_v4 = vadd.f32 %v11426_v50, %v11422_v5 }
 0x5d2   : > { %v7740_v58 = vadd.f32 %v11352_v34, %v7704_v20  ;;  %8550 = vmatmul.msk.f32.gmra.mxu0 %vm454_vm3, %v7055_v14  ;;  %v6861_v10 = vadd.f32 %v6813_v63, %v6618_v47 }
 0x5d4   : > { %7772 = vst.msk [vmem:[%s11360_s12 + $0x30] sm:$0xff] %vm454_vm3, %v7740_v58  ;;  %v6924_v28 = vld [vmem:[#allocation5 + $0xb8] sm:$0xff] }
 0x5d5   : > { %6893 = vst.msk [vmem:[#allocation5 + $0xc0] sm:$0xff] %vm454_vm3, %v6861_v10  ;;  %v6960_v62 = vadd.f32 %v11201_v45, %v6924_v28  ;;  %v6623_v10 = vld [vmem:[#allocation5 + $0xe8] sm:$0xff] }
 0x5d7   : > { %v7623_v15 = vpop.f32.mrf.mxu0  ;;  %vm6992_vm5 = vcmp.ge.f32.partialorder %v6960_v62, 0.0  ;;  %v7024_v6 = vmul.f32 0.01, %v6960_v62 }
 0x5d8   : > { %v7705_v19 = vadd.f32 %v7623_v15, %v11277_v49  ;;  %v11439_v49 = vpop.f32.mrf.mxu2 }
 0x5d9   : > { %v7056_v9 = vsel %vm6992_vm5, %v6960_v62, %v7024_v6  ;;  %v6816_v56 = vpop.f32.mrf.mxu1  ;;  %v7432_v50 = vadd.f32 %v11441_v31, %v11439_v49 }
 0x5da   : > { %v7741_v26 = vadd.f32 %v11352_v34, %v7705_v19  ;;  %8551 = vmatmul.msk.f32.gmra.mxu0 %vm454_vm3, %v7056_v9  ;;  %v6862_v3 = vadd.f32 %v6816_v56, %v6619_v55  ;;  %v7440_v19 = vpop.f32.mrf.mxu3 }
 0x5dc   : > { %7773 = vst.msk [vmem:[%s11360_s12 + $0x38] sm:$0xff] %vm454_vm3, %v7741_v26  ;;  %v6925_v42 = vld [vmem:[#allocation5 + $0xc0] sm:$0xff] }
 0x5dd   : > { %6894 = vst.msk [vmem:[#allocation5 + $0xc8] sm:$0xff] %vm454_vm3, %v6862_v3  ;;  %v6961_v0 = vadd.f32 %v11201_v45, %v6925_v42  ;;  %v6624_v42 = vld [vmem:[#allocation5 + $0xf0] sm:$0xff] }
 0x5df   : > { %v7626_v13 = vpop.f32.mrf.mxu0  ;;  %vm6993_vm6 = vcmp.ge.f32.partialorder %v6961_v0, 0.0  ;;  %v7025_v8 = vmul.f32 0.01, %v6961_v0 }
 0x5e0   : > { %v7706_v38 = vadd.f32 %v7626_v13, %v7417_v23  ;;  %v11451_v24 = vpop.f32.mrf.mxu2 }
 0x5e1   : > { %v7057_v2 = vsel %vm6993_vm6, %v6961_v0, %v7025_v8  ;;  %v6819_v12 = vpop.f32.mrf.mxu1  ;;  %v7435_v31 = vadd.f32 %v11453_v46, %v11451_v24 }
 0x5e2   : > { %v7742_v32 = vadd.f32 %v11352_v34, %v7706_v38  ;;  %8552 = vmatmul.msk.f32.gmra.mxu0 %vm454_vm3, %v7057_v2  ;;  %v6863_v18 = vadd.f32 %v6819_v12, %v6620_v60  ;;  %v7443_v38 = vpop.f32.mrf.mxu3 }
 0x5e4   : > { %7774 = vst.msk [vmem:[%s11360_s12 + $0x40] sm:$0xff] %vm454_vm3, %v7742_v32  ;;  %v6926_v39 = vld [vmem:[#allocation5 + $0xc8] sm:$0xff] }
 0x5e5   : > { %6895 = vst.msk [vmem:[#allocation5 + $0xd0] sm:$0xff] %vm454_vm3, %v6863_v18  ;;  %v6962_v1 = vadd.f32 %v11201_v45, %v6926_v39  ;;  %v6625_v39 = vld [vmem:[#allocation5 + $0xf8] sm:$0xff] }
 0x5e7   : > { %v7629_v17 = vpop.f32.mrf.mxu0  ;;  %vm6994_vm7 = vcmp.ge.f32.partialorder %v6962_v1, 0.0  ;;  %v7026_v7 = vmul.f32 0.01, %v6962_v1 }
 0x5e8   : > { %v7707_v53 = vadd.f32 %v7629_v17, %v7420_v25  ;;  %v11463_v22 = vpop.f32.mrf.mxu2 }
 0x5e9   : > { %v7058_v27 = vsel %vm6994_vm7, %v6962_v1, %v7026_v7  ;;  %v6822_v40 = vpop.f32.mrf.mxu1  ;;  %v7438_v24 = vadd.f32 %v11467_v16, %v11463_v22 }
 0x5ea   : > { %v7743_v30 = vadd.f32 %v11352_v34, %v7707_v53  ;;  %8553 = vmatmul.msk.f32.gmra.mxu0 %vm454_vm3, %v7058_v27  ;;  %v6864_v54 = vadd.f32 %v6822_v40, %v6621_v35  ;;  %v7446_v35 = vpop.f32.mrf.mxu3 }
 0x5ec   : > { %7775 = vst.msk [vmem:[%s11360_s12 + $0x48] sm:$0xff] %vm454_vm3, %v7743_v30  ;;  %v6927_v48 = vld [vmem:[#allocation5 + $0xd0] sm:$0xff] }
 0x5ed   : > { %6896 = vst.msk [vmem:[#allocation5 + $0xd8] sm:$0xff] %vm454_vm3, %v6864_v54  ;;  %v6963_v11 = vadd.f32 %v11201_v45, %v6927_v48 }
 0x5ef   : > { %v7632_v61 = vpop.f32.mrf.mxu0  ;;  %vm6995_vm8 = vcmp.ge.f32.partialorder %v6963_v11, 0.0  ;;  %v7027_v43 = vmul.f32 0.01, %v6963_v11 }
 0x5f0   : > { %v7708_v33 = vadd.f32 %v7632_v61, %v7423_v41  ;;  %v7228_v15 = vpop.f32.mrf.mxu2 }
 0x5f1   : > { %v7059_v21 = vsel %vm6995_vm8, %v6963_v11, %v7027_v43  ;;  %v6825_v44 = vpop.f32.mrf.mxu1 }
 0x5f2   : > { %v7744_v59 = vadd.f32 %v11352_v34, %v7708_v33  ;;  %8554 = vmatmul.msk.f32.gmra.mxu0 %vm454_vm3, %v7059_v21  ;;  %v6865_v36 = vadd.f32 %v6825_v44, %v6622_v57  ;;  %v7441_v57 = vadd.f32 %v7440_v19, %v7228_v15 }
 0x5f4   : > { %7776 = vst.msk [vmem:[%s11360_s12 + $0x50] sm:$0xff] %vm454_vm3, %v7744_v59  ;;  %v6928_v37 = vld [vmem:[#allocation5 + $0xd8] sm:$0xff]  ;;  %v7449_v59 = vpop.f32.mrf.mxu3 }
 0x5f5   : > { %6897 = vst.msk [vmem:[#allocation5 + $0xe0] sm:$0xff] %vm454_vm3, %v6865_v36  ;;  %v6964_v52 = vadd.f32 %v11201_v45, %v6928_v37 }
 0x5f7   : > { %v7635_v20 = vpop.f32.mrf.mxu0  ;;  %vm6996_vm9 = vcmp.ge.f32.partialorder %v6964_v52, 0.0  ;;  %v7028_v14 = vmul.f32 0.01, %v6964_v52 }
 0x5f8   : > { %v7709_v58 = vadd.f32 %v7635_v20, %v7426_v29  ;;  %v7231_v8 = vpop.f32.mrf.mxu2 }
 0x5f9   : > { %v7060_v47 = vsel %vm6996_vm9, %v6964_v52, %v7028_v14  ;;  %v6828_v28 = vpop.f32.mrf.mxu1  ;;  %v7444_v37 = vadd.f32 %v7443_v38, %v7231_v8 }
 0x5fa   : > { %v7745_v63 = vadd.f32 %v11352_v34, %v7709_v58  ;;  %8555 = vmatmul.msk.f32.gmra.mxu0 %vm454_vm3, %v7060_v47  ;;  %v6866_v62 = vadd.f32 %v6828_v28, %v6623_v10 }
 0x5fc   : > { %7777 = vst.msk [vmem:[%s11360_s12 + $0x58] sm:$0xff] %vm454_vm3, %v7745_v63  ;;  %v6929_v6 = vld [vmem:[#allocation5 + $0xe0] sm:$0xff]  ;;  %v7452_v36 = vpop.f32.mrf.mxu3 }
 0x5fd   : > { %6898 = vst.msk [vmem:[#allocation5 + $0xe8] sm:$0xff] %vm454_vm3, %v6866_v62  ;;  %v6965_v51 = vadd.f32 %v11201_v45, %v6929_v6 }
 0x5ff   : > { %v7638_v9 = vpop.f32.mrf.mxu0  ;;  %vm6997_vm10 = vcmp.ge.f32.partialorder %v6965_v51, 0.0  ;;  %v7029_v26 = vmul.f32 0.01, %v6965_v51 }
 0x600   : > { %v7710_v55 = vadd.f32 %v7638_v9, %v7429_v4  ;;  %v7234_v27 = vpop.f32.mrf.mxu2 }
 0x601   : > { %v7061_v56 = vsel %vm6997_vm10, %v6965_v51, %v7029_v26  ;;  %v6831_v0 = vpop.f32.mrf.mxu1  ;;  %v7447_v14 = vadd.f32 %v7446_v35, %v7234_v27 }
 0x602   : > { %v7746_v3 = vadd.f32 %v11352_v34, %v7710_v55  ;;  %8556 = vmatmul.msk.f32.gmra.mxu0 %vm454_vm3, %v7061_v56  ;;  %v6867_v23 = vadd.f32 %v6831_v0, %v6624_v42 }
 0x604   : > { %7778 = vst.msk [vmem:[%s11360_s12 + $0x60] sm:$0xff] %vm454_vm3, %v7746_v3  ;;  %v6930_v13 = vld [vmem:[#allocation5 + $0xe8] sm:$0xff]  ;;  %v7455_v47 = vpop.f32.mrf.mxu3 }
 0x605   : > { %6899 = vst.msk [vmem:[#allocation5 + $0xf0] sm:$0xff] %vm454_vm3, %v6867_v23  ;;  %v6966_v5 = vadd.f32 %v11201_v45, %v6930_v13 }
 0x607   : > { %v7641_v2 = vpop.f32.mrf.mxu0  ;;  %vm6998_vm0 = vcmp.ge.f32.partialorder %v6966_v5, 0.0  ;;  %v7030_v32 = vmul.f32 0.01, %v6966_v5 }
 0x608   : > { %v7711_v60 = vadd.f32 %v7641_v2, %v7432_v50  ;;  %v7237_v33 = vpop.f32.mrf.mxu2 }
 0x609   : > { %v7062_v12 = vsel %vm6998_vm0, %v6966_v5, %v7030_v32  ;;  %v6834_v1 = vpop.f32.mrf.mxu1  ;;  %v7450_v62 = vadd.f32 %v7449_v59, %v7237_v33 }
 0x60a   : > { %v7747_v18 = vadd.f32 %v11352_v34, %v7711_v60  ;;  %8557 = vmatmul.msk.f32.gmra.mxu0 %vm454_vm3, %v7062_v12  ;;  %v6868_v25 = vadd.f32 %v6834_v1, %v6625_v39 }
 0x60c   : > { %7779 = vst.msk [vmem:[%s11360_s12 + $0x68] sm:$0xff] %vm454_vm3, %v7747_v18  ;;  %v6931_v17 = vld [vmem:[#allocation5 + $0xf0] sm:$0xff]  ;;  %v7458_v51 = vpop.f32.mrf.mxu3 }
 0x60d   : > { %6900 = vst.msk [vmem:[#allocation5 + $0xf8] sm:$0xff] %vm454_vm3, %v6868_v25  ;;  %v6967_v49 = vadd.f32 %v11201_v45, %v6931_v17 }
 0x60f   : > { %v7644_v7 = vpop.f32.mrf.mxu0  ;;  %vm6999_vm11 = vcmp.ge.f32.partialorder %v6967_v49, 0.0  ;;  %v7031_v53 = vmul.f32 0.01, %v6967_v49 }
 0x610   : > { %v7712_v30 = vadd.f32 %v7644_v7, %v7435_v31  ;;  %v7240_v16 = vpop.f32.mrf.mxu2 }
 0x611   : > { %v7063_v40 = vsel %vm6999_vm11, %v6967_v49, %v7031_v53  ;;  %v7453_v9 = vadd.f32 %v7452_v36, %v7240_v16 }
 0x612   : > { %v7748_v54 = vadd.f32 %v11352_v34, %v7712_v30  ;;  %8558 = vmatmul.msk.f32.gmra.mxu0 %vm454_vm3, %v7063_v40 }
 0x614   : > { %7780 = vst.msk [vmem:[%s11360_s12 + $0x70] sm:$0xff] %vm454_vm3, %v7748_v54  ;;  %v6932_v48 = vld [vmem:[#allocation5 + $0xf8] sm:$0xff]  ;;  %v7461_v42 = vpop.f32.mrf.mxu3 }
 0x615   : > { %v6968_v11 = vadd.f32 %v11201_v45, %v6932_v48 }
 0x617   : > { %v7647_v46 = vpop.f32.mrf.mxu0  ;;  %vm7000_vm1 = vcmp.ge.f32.partialorder %v6968_v11, 0.0  ;;  %v7032_v41 = vmul.f32 0.01, %v6968_v11 }
 0x618   : > { %v7713_v61 = vadd.f32 %v7647_v46, %v7438_v24  ;;  %v7243_v58 = vpop.f32.mrf.mxu2 }
 0x619   : > { %v7064_v43 = vsel %vm7000_vm1, %v6968_v11, %v7032_v41  ;;  %v7456_v0 = vadd.f32 %v7455_v47, %v7243_v58 }
 0x61a   : > { %v7749_v21 = vadd.f32 %v11352_v34, %v7713_v61  ;;  %8559 = vmatmul.msk.f32.gmra.mxu0 %vm454_vm3, %v7064_v43 }
 0x61c   : > { %7781 = vst.msk [vmem:[%s11360_s12 + $0x78] sm:$0xff] %vm454_vm3, %v7749_v21  ;;  %v7464_v8 = vpop.f32.mrf.mxu3 }
 0x61f   : > { %v7650_v45 = vpop.f32.mrf.mxu0 }
 0x620   : > { %v7714_v44 = vadd.f32 %v7650_v45, %v7441_v57  ;;  %v7246_v6 = vpop.f32.mrf.mxu2 }
 0x621   : > { %v7459_v38 = vadd.f32 %v7458_v51, %v7246_v6 }
 0x622   : > { %v7750_v22 = vadd.f32 %v11352_v34, %v7714_v44 }
 0x624   : > { %7782 = vst.msk [vmem:[%s11360_s12 + $0x80] sm:$0xff] %vm454_vm3, %v7750_v22  ;;  %v7467_v39 = vpop.f32.mrf.mxu3 }
 0x627   : > { %v7653_v52 = vpop.f32.mrf.mxu0 }
 0x628   : > { %v7715_v29 = vadd.f32 %v7653_v52, %v7444_v37  ;;  %v7249_v56 = vpop.f32.mrf.mxu2 }
 0x629   : > { %v7462_v12 = vadd.f32 %v7461_v42, %v7249_v56 }
 0x62a   : > { %v7751_v20 = vadd.f32 %v11352_v34, %v7715_v29 }
 0x62c   : > { %7783 = vst.msk [vmem:[%s11360_s12 + $0x88] sm:$0xff] %vm454_vm3, %v7751_v20  ;;  %v7470_v27 = vpop.f32.mrf.mxu3 }
 0x62f   : > { %v7656_v63 = vpop.f32.mrf.mxu0 }
 0x630   : > { %v7716_v10 = vadd.f32 %v7656_v63, %v7447_v14  ;;  %v7252_v50 = vpop.f32.mrf.mxu2 }
 0x631   : > { %v7465_v49 = vadd.f32 %v7464_v8, %v7252_v50 }
 0x632   : > { %v7752_v28 = vadd.f32 %v11352_v34, %v7716_v10 }
 0x634   : > { %7784 = vst.msk [vmem:[%s11360_s12 + $0x90] sm:$0xff] %vm454_vm3, %v7752_v28  ;;  %v7473_v24 = vpop.f32.mrf.mxu3 }
 0x637   : > { %v7659_v15 = vpop.f32.mrf.mxu0 }
 0x638   : > { %v7717_v19 = vadd.f32 %v7659_v15, %v7450_v62  ;;  %v7255_v18 = vpop.f32.mrf.mxu2 }
 0x639   : > { %v7468_v35 = vadd.f32 %v7467_v39, %v7255_v18 }
 0x63a   : > { %v7753_v4 = vadd.f32 %v11352_v34, %v7717_v19 }
 0x63c   : > { %7785 = vst.msk [vmem:[%s11360_s12 + $0x98] sm:$0xff] %vm454_vm3, %v7753_v4  ;;  %v7476_v21 = vpop.f32.mrf.mxu3 }
 0x63f   : > { %v7662_v26 = vpop.f32.mrf.mxu0 }
 0x640   : > { %v7718_v55 = vadd.f32 %v7662_v26, %v7453_v9  ;;  %v7258_v7 = vpop.f32.mrf.mxu2 }
 0x641   : > { %v7471_v46 = vadd.f32 %v7470_v27, %v7258_v7 }
 0x642   : > { %v7754_v3 = vadd.f32 %v11352_v34, %v7718_v55 }
 0x644   : > { %7786 = vst.msk [vmem:[%s11360_s12 + $0xa0] sm:$0xff] %vm454_vm3, %v7754_v3  ;;  %v7479_v36 = vpop.f32.mrf.mxu3 }
 0x647   : > { %v7665_v23 = vpop.f32.mrf.mxu0 }
 0x648   : > { %v7719_v13 = vadd.f32 %v7665_v23, %v7456_v0  ;;  %v7261_v48 = vpop.f32.mrf.mxu2 }
 0x649   : > { %v7474_v59 = vadd.f32 %v7473_v24, %v7261_v48 }
 0x64a   : > { %v7755_v5 = vadd.f32 %v11352_v34, %v7719_v13 }
 0x64c   : > { %7787 = vst.msk [vmem:[%s11360_s12 + $0xa8] sm:$0xff] %vm454_vm3, %v7755_v5  ;;  %v7482_v63 = vpop.f32.mrf.mxu3 }
 0x64f   : > { %v7668_v2 = vpop.f32.mrf.mxu0 }
 0x650   : > { %v7720_v32 = vadd.f32 %v7668_v2, %v7459_v38  ;;  %v7264_v33 = vpop.f32.mrf.mxu2 }
 0x651   : > { %v7477_v22 = vadd.f32 %v7476_v21, %v7264_v33 }
 0x652   : > { %v7756_v60 = vadd.f32 %v11352_v34, %v7720_v32 }
 0x654   : > { %7788 = vst.msk [vmem:[%s11360_s12 + $0xb0] sm:$0xff] %vm454_vm3, %v7756_v60  ;;  %v7485_v51 = vpop.f32.mrf.mxu3 }
 0x657   : > { %v7671_v1 = vpop.f32.mrf.mxu0 }
 0x658   : > { %v7721_v25 = vadd.f32 %v7671_v1, %v7462_v12  ;;  %v7267_v16 = vpop.f32.mrf.mxu2 }
 0x659   : > { %v7480_v20 = vadd.f32 %v7479_v36, %v7267_v16 }
 0x65a   : > { %v7757_v17 = vadd.f32 %v11352_v34, %v7721_v25 }
 0x65c   : > { %7789 = vst.msk [vmem:[%s11360_s12 + $0xb8] sm:$0xff] %vm454_vm3, %v7757_v17 }
 0x65f   : > { %v7674_v31 = vpop.f32.mrf.mxu0 }
 0x660   : > { %v7722_v53 = vadd.f32 %v7674_v31, %v7465_v49  ;;  %v7270_v47 = vpop.f32.mrf.mxu2 }
 0x661   : > { %v7483_v28 = vadd.f32 %v7482_v63, %v7270_v47 }
 0x662   : > { %v7758_v30 = vadd.f32 %v11352_v34, %v7722_v53 }
 0x664   : > { %7790 = vst.msk [vmem:[%s11360_s12 + $0xc0] sm:$0xff] %vm454_vm3, %v7758_v30 }
 0x667   : > { %v7677_v40 = vpop.f32.mrf.mxu0 }
 0x668   : > { %v7723_v54 = vadd.f32 %v7677_v40, %v7468_v35  ;;  %v7273_v19 = vpop.f32.mrf.mxu2 }
 0x669   : > { %v7486_v4 = vadd.f32 %v7485_v51, %v7273_v19 }
 0x66a   : > { %v7759_v11 = vadd.f32 %v11352_v34, %v7723_v54 }
 0x66c   : > { %7791 = vst.msk [vmem:[%s11360_s12 + $0xc8] sm:$0xff] %vm454_vm3, %v7759_v11 }
 0x66f   : > { %v7680_v41 = vpop.f32.mrf.mxu0 }
 0x670   : > { %v7724_v61 = vadd.f32 %v7680_v41, %v7471_v46 }
 0x672   : > { %v7760_v43 = vadd.f32 %v11352_v34, %v7724_v61 }
 0x674   : > { %7792 = vst.msk [vmem:[%s11360_s12 + $0xd0] sm:$0xff] %vm454_vm3, %v7760_v43 }
 0x677   : > { %v7683_v57 = vpop.f32.mrf.mxu0 }
 0x678   : > { %v7725_v45 = vadd.f32 %v7683_v57, %v7474_v59 }
 0x67a   : > { %v7761_v44 = vadd.f32 %v11352_v34, %v7725_v45 }
 0x67c   : > { %7793 = vst.msk [vmem:[%s11360_s12 + $0xd8] sm:$0xff] %vm454_vm3, %v7761_v44 }
 0x67f   : > { %v7686_v37 = vpop.f32.mrf.mxu0 }
 0x680   : > { %v7726_v52 = vadd.f32 %v7686_v37, %v7477_v22 }
 0x682   : > { %v7762_v29 = vadd.f32 %v11352_v34, %v7726_v52 }
 0x684   : > { %7794 = vst.msk [vmem:[%s11360_s12 + $0xe0] sm:$0xff] %vm454_vm3, %v7762_v29 }
 0x687   : > { %v7689_v14 = vpop.f32.mrf.mxu0 }
 0x688   : > { %v7727_v58 = vadd.f32 %v7689_v14, %v7480_v20 }
 0x68a   : > { %v7763_v10 = vadd.f32 %v11352_v34, %v7727_v58 }
 0x68c   : > { %7795 = vst.msk [vmem:[%s11360_s12 + $0xe8] sm:$0xff] %vm454_vm3, %v7763_v10 }
 0x68f   : > { %v7692_v62 = vpop.f32.mrf.mxu0 }
 0x690   : > { %v7728_v15 = vadd.f32 %v7692_v62, %v7483_v28 }
 0x692   : > { %v7764_v6 = vadd.f32 %v11352_v34, %v7728_v15 }
 0x694   : > { %7796 = vst.msk [vmem:[%s11360_s12 + $0xf0] sm:$0xff] %vm454_vm3, %v7764_v6 }
 0x697   : > { %v7695_v9 = vpop.f32.mrf.mxu0 }
 0x698   : > { %v7729_v26 = vadd.f32 %v7695_v9, %v7486_v4 }
 0x69a   : > { %v7765_v55 = vadd.f32 %v11352_v34, %v7729_v26 }
 0x69c   : > { %7797 = vst.msk [vmem:[%s11360_s12 + $0xf8] sm:$0xff] %vm454_vm3, %v7765_v55 }
 0x69d PF: > { %s19_s30 = sadd.s32 1, %s8586_s30  }
 0x69e   : > { %p16_p4 = scmp.ge.s32.totalorder %s19_s30, 4  }
 0x6a0   :  { %18 = sbr.rel (!%p16_p4) target bundleno = 1 (0x1), region = 106 }

</bundles_post_ra>
